<compile_context>
chip_gen: v7x
topology: tpu7x:2x2x1
jax: 0.10.0
libtpu: 0.0.40
codegen_flags: <defaults>
</compile_context>

<pallas_src>
import functools

import jax
import jax.numpy as jnp
from jax.experimental import pallas as pl
from jax.experimental.pallas import tpu as pltpu


# ----------------------------- Pallas kernels ------------------------------

def _conv_bn_kernel(p_ref, w_ref, scale_ref, shift_ref, o_ref, *, relu):
    acc = jnp.dot(p_ref[...], w_ref[...], preferred_element_type=jnp.float32)
    out = acc * scale_ref[...] + shift_ref[...]
    if relu:
        out = jnp.maximum(out, 0.0)
    o_ref[...] = out.astype(o_ref.dtype)


def _conv_bn_res_kernel(p_ref, w_ref, scale_ref, shift_ref, r_ref, o_ref,
                        *, relu):
    acc = jnp.dot(p_ref[...], w_ref[...], preferred_element_type=jnp.float32)
    out = acc * scale_ref[...] + shift_ref[...] + r_ref[...].astype(jnp.float32)
    if relu:
        out = jnp.maximum(out, 0.0)
    o_ref[...] = out.astype(o_ref.dtype)


# --------------------------- tiling / call cache ----------------------------

_CALL_CACHE = {}
_VMEM_BUDGET = 20 * (1 << 20)   # conservative; fits default scoped VMEM on v5e/v6e/v7x


def _round_up(x, m):
    return ((x + m - 1) // m) * m


def _vmem_bytes(tm, k, cout, has_res):
    patches = tm * k * 2 * 2            # bf16, double-buffered
    weights = k * cout * 2 * 2          # bf16 (constant block index; budget 2x anyway)
    out = tm * cout * 2 * 2             # bf16, double-buffered
    res = tm * cout * 2 * 2 if has_res else 0
    affine = 2 * cout * 4 * 2
    return patches + weights + out + res + affine


def _choose_tm(M, K, Cout, has_res):
    """Largest M-tile within the VMEM budget; tiny M -> single tile."""
    m16 = _round_up(max(M, 1), 16)
    if m16 <= 1024:
        tm = m16
        while tm > 16 and _vmem_bytes(tm, K, Cout, has_res) > _VMEM_BUDGET:
            tm = _round_up(tm // 2, 8)
        return tm
    for cand in (1024, 512, 256, 128, 64, 32):
        if _vmem_bytes(cand, K, Cout, has_res) <= _VMEM_BUDGET:
            return cand
    return 16


def _get_conv_call(M_pad, TM, K, Cout, has_res, relu):
    """Build (and cache) a pallas_call for one conv-as-matmul signature."""
    key = (M_pad, TM, K, Cout, has_res, relu)
    if key in _CALL_CACHE:
        return _CALL_CACHE[key]

    grid = (M_pad // TM,)

    in_specs = [
        # im2col patches (M_pad, K) bf16 — taps folded into K
        pl.BlockSpec((TM, K), lambda i: (i, 0)),
        # conv weights (K, Cout) bf16 — constant block index -> VMEM-resident
        pl.BlockSpec((K, Cout), lambda i: (0, 0)),
        # folded BN scale / shift (1, Cout) f32
        pl.BlockSpec((1, Cout), lambda i: (0, 0)),
        pl.BlockSpec((1, Cout), lambda i: (0, 0)),
    ]
    if has_res:
        in_specs.append(pl.BlockSpec((TM, Cout), lambda i: (i, 0)))
        kern = functools.partial(_conv_bn_res_kernel, relu=relu)
    else:
        kern = functools.partial(_conv_bn_kernel, relu=relu)

    flops = 2 * M_pad * K * Cout
    bytes_accessed = (M_pad * K * 2                  # bf16 patches
                      + K * Cout * 2                 # bf16 weights
                      + 2 * Cout * 4                 # scale + shift
                      + M_pad * Cout * 2             # bf16 output
                      + (M_pad * Cout * 2 if has_res else 0))

    call = pl.pallas_call(
        kern,
        out_shape=jax.ShapeDtypeStruct((M_pad, Cout), jnp.bfloat16),
        grid=grid,
        in_specs=in_specs,
        out_specs=pl.BlockSpec((TM, Cout), lambda i: (i, 0)),
        compiler_params=pltpu.CompilerParams(
            dimension_semantics=("parallel",)),
        cost_estimate=pl.CostEstimate(flops=flops, transcendentals=0,
                                      bytes_accessed=bytes_accessed),
    )
    _CALL_CACHE[key] = call
    return call


# ------------------------------ conv plumbing ------------------------------

def _im2col(x, kh, kw, stride, pad):
    """x: NHWC bf16 -> (N*Ho*Wo, kh*kw*C) bf16 patch matrix (tap-major K).

    All slice bounds are static Python ints (shapes + static stride/pad).
    """
    sh, sw = stride
    ph, pw = pad
    N, H, W, C = x.shape
    Ho = (H + 2 * ph - kh) // sh + 1
    Wo = (W + 2 * pw - kw) // sw + 1
    xp = x if (ph == 0 and pw == 0) else jnp.pad(
        x, ((0, 0), (ph, ph), (pw, pw), (0, 0)))
    cols = []
    for dy in range(kh):
        for dx in range(kw):
            cols.append(xp[:, dy:dy + sh * Ho:sh, dx:dx + sw * Wo:sw, :]
                        .reshape(N * Ho * Wo, C))
    patches = cols[0] if len(cols) == 1 else jnp.concatenate(cols, axis=-1)
    return patches, (N, Ho, Wo)


def conv_bn_act(x, w, scale, shift, kh, kw, stride, pad,
                residual=None, relu=True):
    """Fused Conv2d(no bias) + BatchNorm(+optional residual) + optional ReLU.

    w: (kh*kw*Cin, Cout) bf16, row order (dy, dx, cin) matching _im2col.
    """
    patches, (N, Ho, Wo) = _im2col(x, kh, kw, stride, pad)
    M, K = patches.shape
    Cout = w.shape[-1]
    has_res = residual is not None

    TM = _choose_tm(M, K, Cout, has_res)
    M_pad = _round_up(M, TM)
    if M_pad != M:
        patches = jnp.pad(patches, ((0, M_pad - M), (0, 0)))

    args = [patches, w, scale, shift]
    if has_res:
        r = residual.reshape(M, Cout)
        if M_pad != M:
            r = jnp.pad(r, ((0, M_pad - M), (0, 0)))
        args.append(r)

    call = _get_conv_call(M_pad, TM, K, Cout, has_res, relu)
    out = call(*args)
    if M_pad != M:
        out = out[:M]
    return out.reshape(N, Ho, Wo, Cout)


# -------------------------- synthetic parameters ---------------------------

_LAYERS = [3, 4, 6, 6, 3]   # resnet45 block counts


def _conv_w(key, kh, kw, cin, cout):
    fan_in = kh * kw * cin
    w = jax.random.normal(key, (kh, kw, cin, cout), jnp.float32)
    w = w * (2.0 / fan_in) ** 0.5
    # torch weight (cout, cin, kh, kw) maps here via .transpose(2, 3, 1, 0)
    # then reshape to (kh*kw*cin, cout); row order (dy, dx, cin) matches _im2col.
    return w.reshape(kh * kw * cin, cout).astype(jnp.bfloat16)


def _bn(key, c, bias=None):
    k1, k2 = jax.random.split(key)
    gamma = 1.0 + 0.1 * jax.random.normal(k1, (1, c), jnp.float32)
    beta = 0.1 * jax.random.normal(k2, (1, c), jnp.float32)
    eps = 1e-5
    # TODO(synk): fold real running_mean / running_var here for checkpoints.
    scale = gamma / jnp.sqrt(1.0 + eps)          # running_mean=0, running_var=1
    shift = beta if bias is None else beta + scale * bias
    return scale, shift


def build_params(key, oupch, compress_layer):
    keys = iter(jax.random.split(key, 512))
    nk = lambda: next(keys)
    params = {"conv1": _conv_w(nk(), 3, 3, 3, 32), "bn1": _bn(nk(), 32)}
    inplanes = 32
    planes_list = [32, 64, 128, 256, oupch]
    for li, (planes, nblocks) in enumerate(zip(planes_list, _LAYERS)):
        blocks = []
        for bi in range(nblocks):
            blk = {
                "conv1": _conv_w(nk(), 3, 3, inplanes, planes),
                "bn1": _bn(nk(), planes),
                "conv2": _conv_w(nk(), 3, 3, planes, planes),
                "bn2": _bn(nk(), planes),
            }
            if bi == 0:
                # mirrors torch `stride != 1 or inplanes != planes` (tuple
                # strides make the condition always True on the first block).
                blk["ds_conv"] = _conv_w(nk(), 1, 1, inplanes, planes)
                blk["ds_bn"] = _bn(nk(), planes)
            blocks.append(blk)
            inplanes = planes
        params[f"layer{li + 1}"] = blocks
    if compress_layer:
        bias6 = 0.1 * jax.random.normal(nk(), (1, oupch), jnp.float32)
        params["layer6"] = {
            "conv": _conv_w(nk(), 3, 1, oupch, oupch),
            "bn": _bn(nk(), oupch, bias=bias6),   # conv bias folded into shift
        }
    return params


# ----------------------------- forward (resnet45) ---------------------------

def basic_block(x, p, stride):
    out = conv_bn_act(x, p["conv1"], *p["bn1"], 3, 3, stride, (1, 1),
                      relu=True)
    if "ds_conv" in p:
        # 1x1 downsample conv: single-tap matmul, no padding.
        residual = conv_bn_act(x, p["ds_conv"], *p["ds_bn"], 1, 1, stride,
                               (0, 0), relu=False)
    else:
        residual = x
    # residual add + final ReLU fused into the conv2 kernel epilogue
    out = conv_bn_act(out, p["conv2"], *p["bn2"], 3, 3, (1, 1), (1, 1),
                      residual=residual, relu=True)
    return out


def feature_extractor_forward(x_nchw, params, strides, compress_layer):
    # NCHW -> NHWC, bf16 activation storage (f32 math inside the kernels)
    x = jnp.transpose(x_nchw, (0, 2, 3, 1)).astype(jnp.bfloat16)
    out_features = []
    tmp_shape = x.shape[1:3]
    x = conv_bn_act(x, params["conv1"], *params["bn1"], 3, 3,
                    tuple(strides[0]), (1, 1), relu=True)
    for li in range(1, 6):
        layer_stride = tuple(strides[li])
        for bi, blk in enumerate(params[f"layer{li}"]):
            s = layer_stride if bi == 0 else (1, 1)
            x = basic_block(x, blk, s)
        if li < 5:
            if x.shape[1:3] != tmp_shape:
                tmp_shape = x.shape[1:3]
                out_features.append(x)
        else:
            if not compress_layer:
                out_features.append(x)
            else:
                if x.shape[1:3] != tmp_shape:
                    tmp_shape = x.shape[1:3]
                    out_features.append(x)
                p6 = params["layer6"]
                x = conv_bn_act(x, p6["conv"], *p6["bn"], 3, 1, (1, 1), (0, 0),
                                relu=True)
                out_features.append(x)
    # back to NCHW (f32) to match the PyTorch feature layout
    return [jnp.transpose(f, (0, 3, 1, 2)).astype(jnp.float32)
            for f in out_features]


# ----------------------------------- main ----------------------------------

if __name__ == "__main__":
    strides = [(1, 1), (2, 2), (1, 1), (2, 2), (1, 1), (1, 1)]
    compress_layer = True
    oupch = 128                      # small oupch for a quick synthetic run
    input_shape = (3, 16, 16)        # (C, H, W); stem is Conv2d(3, 32, ...)
    batch = 2

    root = jax.random.PRNGKey(0)
    k_inp, k_par = jax.random.split(root)
    x = jax.random.uniform(k_inp, (batch,) + input_shape, jnp.float32)

    params = build_params(k_par, oupch, compress_layer)

    # Single jitted program for the whole backbone (no per-conv dispatch).
    fwd = jax.jit(functools.partial(feature_extractor_forward,
                                    strides=strides,
                                    compress_layer=compress_layer))
    feats = fwd(x, params)
    feats = [jax.block_until_ready(f) for f in feats]

    print("KERNEL_OK")
</pallas_src>

<mosaic_0001>
module attributes {stable_mosaic.version = 11 : i64} {
  func.func @_conv_bn_kernel(%arg0: i32, %arg1: memref<512x27xbf16, #tpu.memory_space<vmem>>, %arg2: memref<27x32xbf16, #tpu.memory_space<vmem>>, %arg3: memref<1x32xf32, #tpu.memory_space<vmem>>, %arg4: memref<1x32xf32, #tpu.memory_space<vmem>>, %arg5: memref<512x32xbf16, #tpu.memory_space<vmem>>) attributes {dimension_semantics = [#tpu.dimension_semantics<parallel>], iteration_bounds = array<i64: 1>, scalar_prefetch = 0 : i64, scratch_operands = 0 : i64, tpu.core_type = #tpu.core_type<tc>, window_params = [{transform_indices = @transform_0, window_bounds = array<i64: 512, 27>}, {pipeline_mode = #tpu.pipeline_mode<synchronous>, transform_indices = @transform_1, window_bounds = array<i64: 27, 32>}, {pipeline_mode = #tpu.pipeline_mode<synchronous>, transform_indices = @transform_2, window_bounds = array<i64: 1, 32>}, {pipeline_mode = #tpu.pipeline_mode<synchronous>, transform_indices = @transform_3, window_bounds = array<i64: 1, 32>}, {transform_indices = @transform_4, window_bounds = array<i64: 512, 32>}]} {
    %c0 = arith.constant 0 : index
    %c0_0 = arith.constant 0 : index
    %0 = vector.load %arg1[%c0, %c0_0] : memref<512x27xbf16, #tpu.memory_space<vmem>>, vector<512x27xbf16>
    %c0_1 = arith.constant 0 : index
    %c0_2 = arith.constant 0 : index
    %1 = vector.load %arg2[%c0_1, %c0_2] : memref<27x32xbf16, #tpu.memory_space<vmem>>, vector<27x32xbf16>
    %cst = arith.constant dense<0.000000e+00> : vector<512x32xf32>
    %2 = tpu.matmul %0, %1, %cst {dimension_numbers = #tpu.dot_dimension_numbers<[1], [0], [0], [1], [0, 0, 1, 1], [], []>} : vector<512x27xbf16>, vector<27x32xbf16>, vector<512x32xf32> -> vector<512x32xf32>
    %c0_3 = arith.constant 0 : index
    %c0_4 = arith.constant 0 : index
    %3 = vector.load %arg3[%c0_3, %c0_4] : memref<1x32xf32, #tpu.memory_space<vmem>>, vector<1x32xf32>
    %4 = vector.broadcast %3 : vector<1x32xf32> to vector<512x32xf32>
    %5 = arith.mulf %2, %4 : vector<512x32xf32>
    %c0_5 = arith.constant 0 : index
    %c0_6 = arith.constant 0 : index
    %6 = vector.load %arg4[%c0_5, %c0_6] : memref<1x32xf32, #tpu.memory_space<vmem>>, vector<1x32xf32>
    %7 = vector.broadcast %6 : vector<1x32xf32> to vector<512x32xf32>
    %8 = arith.addf %5, %7 : vector<512x32xf32>
    %cst_7 = arith.constant 0.000000e+00 : f32
    %9 = vector.broadcast %cst_7 : f32 to vector<512x32xf32>
    %10 = arith.maximumf %8, %9 : vector<512x32xf32>
    %11 = arith.truncf %10 : vector<512x32xf32> to vector<512x32xbf16>
    %c0_8 = arith.constant 0 : index
    %c0_9 = arith.constant 0 : index
    %12 = vector.load %arg5[%c0_8, %c0_9] : memref<512x32xbf16, #tpu.memory_space<vmem>>, vector<512x32xbf16>
    tpu.vector_store %arg5[%c0_8, %c0_9], %11 {strides = array<i32>} : memref<512x32xbf16, #tpu.memory_space<vmem>>, vector<512x32xbf16>,
    return
  }
  func.func @transform_0(%arg0: i32) -> (i32, i32) {
    %c0_i32 = arith.constant 0 : i32
    %c0_i32_0 = arith.constant 0 : i32
    return %arg0, %c0_i32 : i32, i32
  }
  func.func @transform_1(%arg0: i32) -> (i32, i32) {
    %c0_i32 = arith.constant 0 : i32
    %c0_i32_0 = arith.constant 0 : i32
    %c0_i32_1 = arith.constant 0 : i32
    return %c0_i32, %c0_i32_0 : i32, i32
  }
  func.func @transform_2(%arg0: i32) -> (i32, i32) {
    %c0_i32 = arith.constant 0 : i32
    %c0_i32_0 = arith.constant 0 : i32
    %c0_i32_1 = arith.constant 0 : i32
    return %c0_i32, %c0_i32_0 : i32, i32
  }
  func.func @transform_3(%arg0: i32) -> (i32, i32) {
    %c0_i32 = arith.constant 0 : i32
    %c0_i32_0 = arith.constant 0 : i32
    %c0_i32_1 = arith.constant 0 : i32
    return %c0_i32, %c0_i32_0 : i32, i32
  }
  func.func @transform_4(%arg0: i32) -> (i32, i32) {
    %c0_i32 = arith.constant 0 : i32
    %c0_i32_0 = arith.constant 0 : i32
    return %arg0, %c0_i32 : i32, i32
  }
}

module attributes {stable_mosaic.version = 11 : i64} {
  func.func @_conv_bn_kernel(%arg0: i32, %arg1: memref<128x288xbf16, #tpu.memory_space<vmem>>, %arg2: memref<288x32xbf16, #tpu.memory_space<vmem>>, %arg3: memref<1x32xf32, #tpu.memory_space<vmem>>, %arg4: memref<1x32xf32, #tpu.memory_space<vmem>>, %arg5: memref<128x32xbf16, #tpu.memory_space<vmem>>) attributes {dimension_semantics = [#tpu.dimension_semantics<parallel>], iteration_bounds = array<i64: 1>, scalar_prefetch = 0 : i64, scratch_operands = 0 : i64, tpu.core_type = #tpu.core_type<tc>, window_params = [{transform_indices = @transform_0, window_bounds = array<i64: 128, 288>}, {pipeline_mode = #tpu.pipeline_mode<synchronous>, transform_indices = @transform_1, window_bounds = array<i64: 288, 32>}, {pipeline_mode = #tpu.pipeline_mode<synchronous>, transform_indices = @transform_2, window_bounds = array<i64: 1, 32>}, {pipeline_mode = #tpu.pipeline_mode<synchronous>, transform_indices = @transform_3, window_bounds = array<i64: 1, 32>}, {transform_indices = @transform_4, window_bounds = array<i64: 128, 32>}]} {
    %c0 = arith.constant 0 : index
    %c0_0 = arith.constant 0 : index
    %0 = vector.load %arg1[%c0, %c0_0] : memref<128x288xbf16, #tpu.memory_space<vmem>>, vector<128x288xbf16>
    %c0_1 = arith.constant 0 : index
    %c0_2 = arith.constant 0 : index
    %1 = vector.load %arg2[%c0_1, %c0_2] : memref<288x32xbf16, #tpu.memory_space<vmem>>, vector<288x32xbf16>
    %cst = arith.constant dense<0.000000e+00> : vector<128x32xf32>
    %2 = tpu.matmul %0, %1, %cst {dimension_numbers = #tpu.dot_dimension_numbers<[1], [0], [0], [1], [0, 0, 1, 1], [], []>} : vector<128x288xbf16>, vector<288x32xbf16>, vector<128x32xf32> -> vector<128x32xf32>
    %c0_3 = arith.constant 0 : index
    %c0_4 = arith.constant 0 : index
    %3 = vector.load %arg3[%c0_3, %c0_4] : memref<1x32xf32, #tpu.memory_space<vmem>>, vector<1x32xf32>
    %4 = vector.broadcast %3 : vector<1x32xf32> to vector<128x32xf32>
    %5 = arith.mulf %2, %4 : vector<128x32xf32>
    %c0_5 = arith.constant 0 : index
    %c0_6 = arith.constant 0 : index
    %6 = vector.load %arg4[%c0_5, %c0_6] : memref<1x32xf32, #tpu.memory_space<vmem>>, vector<1x32xf32>
    %7 = vector.broadcast %6 : vector<1x32xf32> to vector<128x32xf32>
    %8 = arith.addf %5, %7 : vector<128x32xf32>
    %cst_7 = arith.constant 0.000000e+00 : f32
    %9 = vector.broadcast %cst_7 : f32 to vector<128x32xf32>
    %10 = arith.maximumf %8, %9 : vector<128x32xf32>
    %11 = arith.truncf %10 : vector<128x32xf32> to vector<128x32xbf16>
    %c0_8 = arith.constant 0 : index
    %c0_9 = arith.constant 0 : index
    %12 = vector.load %arg5[%c0_8, %c0_9] : memref<128x32xbf16, #tpu.memory_space<vmem>>, vector<128x32xbf16>
    tpu.vector_store %arg5[%c0_8, %c0_9], %11 {strides = array<i32>} : memref<128x32xbf16, #tpu.memory_space<vmem>>, vector<128x32xbf16>,
    return
  }
  func.func @transform_0(%arg0: i32) -> (i32, i32) {
    %c0_i32 = arith.constant 0 : i32
    %c0_i32_0 = arith.constant 0 : i32
    return %arg0, %c0_i32 : i32, i32
  }
  func.func @transform_1(%arg0: i32) -> (i32, i32) {
    %c0_i32 = arith.constant 0 : i32
    %c0_i32_0 = arith.constant 0 : i32
    %c0_i32_1 = arith.constant 0 : i32
    return %c0_i32, %c0_i32_0 : i32, i32
  }
  func.func @transform_2(%arg0: i32) -> (i32, i32) {
    %c0_i32 = arith.constant 0 : i32
    %c0_i32_0 = arith.constant 0 : i32
    %c0_i32_1 = arith.constant 0 : i32
    return %c0_i32, %c0_i32_0 : i32, i32
  }
  func.func @transform_3(%arg0: i32) -> (i32, i32) {
    %c0_i32 = arith.constant 0 : i32
    %c0_i32_0 = arith.constant 0 : i32
    %c0_i32_1 = arith.constant 0 : i32
    return %c0_i32, %c0_i32_0 : i32, i32
  }
  func.func @transform_4(%arg0: i32) -> (i32, i32) {
    %c0_i32 = arith.constant 0 : i32
    %c0_i32_0 = arith.constant 0 : i32
    return %arg0, %c0_i32 : i32, i32
  }
}

module attributes {stable_mosaic.version = 11 : i64} {
  func.func @_conv_bn_kernel(%arg0: i32, %arg1: memref<128x32xbf16, #tpu.memory_space<vmem>>, %arg2: memref<32x32xbf16, #tpu.memory_space<vmem>>, %arg3: memref<1x32xf32, #tpu.memory_space<vmem>>, %arg4: memref<1x32xf32, #tpu.memory_space<vmem>>, %arg5: memref<128x32xbf16, #tpu.memory_space<vmem>>) attributes {dimension_semantics = [#tpu.dimension_semantics<parallel>], iteration_bounds = array<i64: 1>, scalar_prefetch = 0 : i64, scratch_operands = 0 : i64, tpu.core_type = #tpu.core_type<tc>, window_params = [{transform_indices = @transform_0, window_bounds = array<i64: 128, 32>}, {pipeline_mode = #tpu.pipeline_mode<synchronous>, transform_indices = @transform_1, window_bounds = array<i64: 32, 32>}, {pipeline_mode = #tpu.pipeline_mode<synchronous>, transform_indices = @transform_2, window_bounds = array<i64: 1, 32>}, {pipeline_mode = #tpu.pipeline_mode<synchronous>, transform_indices = @transform_3, window_bounds = array<i64: 1, 32>}, {transform_indices = @transform_4, window_bounds = array<i64: 128, 32>}]} {
    %c0 = arith.constant 0 : index
    %c0_0 = arith.constant 0 : index
    %0 = vector.load %arg1[%c0, %c0_0] : memref<128x32xbf16, #tpu.memory_space<vmem>>, vector<128x32xbf16>
    %c0_1 = arith.constant 0 : index
    %c0_2 = arith.constant 0 : index
    %1 = vector.load %arg2[%c0_1, %c0_2] : memref<32x32xbf16, #tpu.memory_space<vmem>>, vector<32x32xbf16>
    %cst = arith.constant dense<0.000000e+00> : vector<128x32xf32>
    %2 = tpu.matmul %0, %1, %cst {dimension_numbers = #tpu.dot_dimension_numbers<[1], [0], [0], [1], [0, 0, 1, 1], [], []>} : vector<128x32xbf16>, vector<32x32xbf16>, vector<128x32xf32> -> vector<128x32xf32>
    %c0_3 = arith.constant 0 : index
    %c0_4 = arith.constant 0 : index
    %3 = vector.load %arg3[%c0_3, %c0_4] : memref<1x32xf32, #tpu.memory_space<vmem>>, vector<1x32xf32>
    %4 = vector.broadcast %3 : vector<1x32xf32> to vector<128x32xf32>
    %5 = arith.mulf %2, %4 : vector<128x32xf32>
    %c0_5 = arith.constant 0 : index
    %c0_6 = arith.constant 0 : index
    %6 = vector.load %arg4[%c0_5, %c0_6] : memref<1x32xf32, #tpu.memory_space<vmem>>, vector<1x32xf32>
    %7 = vector.broadcast %6 : vector<1x32xf32> to vector<128x32xf32>
    %8 = arith.addf %5, %7 : vector<128x32xf32>
    %9 = arith.truncf %8 : vector<128x32xf32> to vector<128x32xbf16>
    %c0_7 = arith.constant 0 : index
    %c0_8 = arith.constant 0 : index
    %10 = vector.load %arg5[%c0_7, %c0_8] : memref<128x32xbf16, #tpu.memory_space<vmem>>, vector<128x32xbf16>
    tpu.vector_store %arg5[%c0_7, %c0_8], %9 {strides = array<i32>} : memref<128x32xbf16, #tpu.memory_space<vmem>>, vector<128x32xbf16>,
    return
  }
  func.func @transform_0(%arg0: i32) -> (i32, i32) {
    %c0_i32 = arith.constant 0 : i32
    %c0_i32_0 = arith.constant 0 : i32
    return %arg0, %c0_i32 : i32, i32
  }
  func.func @transform_1(%arg0: i32) -> (i32, i32) {
    %c0_i32 = arith.constant 0 : i32
    %c0_i32_0 = arith.constant 0 : i32
    %c0_i32_1 = arith.constant 0 : i32
    return %c0_i32, %c0_i32_0 : i32, i32
  }
  func.func @transform_2(%arg0: i32) -> (i32, i32) {
    %c0_i32 = arith.constant 0 : i32
    %c0_i32_0 = arith.constant 0 : i32
    %c0_i32_1 = arith.constant 0 : i32
    return %c0_i32, %c0_i32_0 : i32, i32
  }
  func.func @transform_3(%arg0: i32) -> (i32, i32) {
    %c0_i32 = arith.constant 0 : i32
    %c0_i32_0 = arith.constant 0 : i32
    %c0_i32_1 = arith.constant 0 : i32
    return %c0_i32, %c0_i32_0 : i32, i32
  }
  func.func @transform_4(%arg0: i32) -> (i32, i32) {
    %c0_i32 = arith.constant 0 : i32
    %c0_i32_0 = arith.constant 0 : i32
    return %arg0, %c0_i32 : i32, i32
  }
}

module attributes {stable_mosaic.version = 11 : i64} {
  func.func @_conv_bn_res_kernel(%arg0: i32, %arg1: memref<128x288xbf16, #tpu.memory_space<vmem>>, %arg2: memref<288x32xbf16, #tpu.memory_space<vmem>>, %arg3: memref<1x32xf32, #tpu.memory_space<vmem>>, %arg4: memref<1x32xf32, #tpu.memory_space<vmem>>, %arg5: memref<128x32xbf16, #tpu.memory_space<vmem>>, %arg6: memref<128x32xbf16, #tpu.memory_space<vmem>>) attributes {dimension_semantics = [#tpu.dimension_semantics<parallel>], iteration_bounds = array<i64: 1>, scalar_prefetch = 0 : i64, scratch_operands = 0 : i64, tpu.core_type = #tpu.core_type<tc>, window_params = [{transform_indices = @transform_0, window_bounds = array<i64: 128, 288>}, {pipeline_mode = #tpu.pipeline_mode<synchronous>, transform_indices = @transform_1, window_bounds = array<i64: 288, 32>}, {pipeline_mode = #tpu.pipeline_mode<synchronous>, transform_indices = @transform_2, window_bounds = array<i64: 1, 32>}, {pipeline_mode = #tpu.pipeline_mode<synchronous>, transform_indices = @transform_3, window_bounds = array<i64: 1, 32>}, {transform_indices = @transform_4, window_bounds = array<i64: 128, 32>}, {transform_indices = @transform_5, window_bounds = array<i64: 128, 32>}]} {
    %c0 = arith.constant 0 : index
    %c0_0 = arith.constant 0 : index
    %0 = vector.load %arg1[%c0, %c0_0] : memref<128x288xbf16, #tpu.memory_space<vmem>>, vector<128x288xbf16>
    %c0_1 = arith.constant 0 : index
    %c0_2 = arith.constant 0 : index
    %1 = vector.load %arg2[%c0_1, %c0_2] : memref<288x32xbf16, #tpu.memory_space<vmem>>, vector<288x32xbf16>
    %cst = arith.constant dense<0.000000e+00> : vector<128x32xf32>
    %2 = tpu.matmul %0, %1, %cst {dimension_numbers = #tpu.dot_dimension_numbers<[1], [0], [0], [1], [0, 0, 1, 1], [], []>} : vector<128x288xbf16>, vector<288x32xbf16>, vector<128x32xf32> -> vector<128x32xf32>
    %c0_3 = arith.constant 0 : index
    %c0_4 = arith.constant 0 : index
    %3 = vector.load %arg3[%c0_3, %c0_4] : memref<1x32xf32, #tpu.memory_space<vmem>>, vector<1x32xf32>
    %4 = vector.broadcast %3 : vector<1x32xf32> to vector<128x32xf32>
    %5 = arith.mulf %2, %4 : vector<128x32xf32>
    %c0_5 = arith.constant 0 : index
    %c0_6 = arith.constant 0 : index
    %6 = vector.load %arg4[%c0_5, %c0_6] : memref<1x32xf32, #tpu.memory_space<vmem>>, vector<1x32xf32>
    %7 = vector.broadcast %6 : vector<1x32xf32> to vector<128x32xf32>
    %8 = arith.addf %5, %7 : vector<128x32xf32>
    %c0_7 = arith.constant 0 : index
    %c0_8 = arith.constant 0 : index
    %9 = vector.load %arg5[%c0_7, %c0_8] : memref<128x32xbf16, #tpu.memory_space<vmem>>, vector<128x32xbf16>
    %10 = arith.extf %9 : vector<128x32xbf16> to vector<128x32xf32>
    %11 = arith.addf %8, %10 : vector<128x32xf32>
    %cst_9 = arith.constant 0.000000e+00 : f32
    %12 = vector.broadcast %cst_9 : f32 to vector<128x32xf32>
    %13 = arith.maximumf %11, %12 : vector<128x32xf32>
    %14 = arith.truncf %13 : vector<128x32xf32> to vector<128x32xbf16>
    %c0_10 = arith.constant 0 : index
    %c0_11 = arith.constant 0 : index
    %15 = vector.load %arg6[%c0_10, %c0_11] : memref<128x32xbf16, #tpu.memory_space<vmem>>, vector<128x32xbf16>
    tpu.vector_store %arg6[%c0_10, %c0_11], %14 {strides = array<i32>} : memref<128x32xbf16, #tpu.memory_space<vmem>>, vector<128x32xbf16>,
    return
  }
  func.func @transform_0(%arg0: i32) -> (i32, i32) {
    %c0_i32 = arith.constant 0 : i32
    %c0_i32_0 = arith.constant 0 : i32
    return %arg0, %c0_i32 : i32, i32
  }
  func.func @transform_1(%arg0: i32) -> (i32, i32) {
    %c0_i32 = arith.constant 0 : i32
    %c0_i32_0 = arith.constant 0 : i32
    %c0_i32_1 = arith.constant 0 : i32
    return %c0_i32, %c0_i32_0 : i32, i32
  }
  func.func @transform_2(%arg0: i32) -> (i32, i32) {
    %c0_i32 = arith.constant 0 : i32
    %c0_i32_0 = arith.constant 0 : i32
    %c0_i32_1 = arith.constant 0 : i32
    return %c0_i32, %c0_i32_0 : i32, i32
  }
  func.func @transform_3(%arg0: i32) -> (i32, i32) {
    %c0_i32 = arith.constant 0 : i32
    %c0_i32_0 = arith.constant 0 : i32
    %c0_i32_1 = arith.constant 0 : i32
    return %c0_i32, %c0_i32_0 : i32, i32
  }
  func.func @transform_4(%arg0: i32) -> (i32, i32) {
    %c0_i32 = arith.constant 0 : i32
    %c0_i32_0 = arith.constant 0 : i32
    return %arg0, %c0_i32 : i32, i32
  }
  func.func @transform_5(%arg0: i32) -> (i32, i32) {
    %c0_i32 = arith.constant 0 : i32
    %c0_i32_0 = arith.constant 0 : i32
    return %arg0, %c0_i32 : i32, i32
  }
}

module attributes {stable_mosaic.version = 11 : i64} {
  func.func @_conv_bn_kernel(%arg0: i32, %arg1: memref<128x288xbf16, #tpu.memory_space<vmem>>, %arg2: memref<288x64xbf16, #tpu.memory_space<vmem>>, %arg3: memref<1x64xf32, #tpu.memory_space<vmem>>, %arg4: memref<1x64xf32, #tpu.memory_space<vmem>>, %arg5: memref<128x64xbf16, #tpu.memory_space<vmem>>) attributes {dimension_semantics = [#tpu.dimension_semantics<parallel>], iteration_bounds = array<i64: 1>, scalar_prefetch = 0 : i64, scratch_operands = 0 : i64, tpu.core_type = #tpu.core_type<tc>, window_params = [{transform_indices = @transform_0, window_bounds = array<i64: 128, 288>}, {pipeline_mode = #tpu.pipeline_mode<synchronous>, transform_indices = @transform_1, window_bounds = array<i64: 288, 64>}, {pipeline_mode = #tpu.pipeline_mode<synchronous>, transform_indices = @transform_2, window_bounds = array<i64: 1, 64>}, {pipeline_mode = #tpu.pipeline_mode<synchronous>, transform_indices = @transform_3, window_bounds = array<i64: 1, 64>}, {transform_indices = @transform_4, window_bounds = array<i64: 128, 64>}]} {
    %c0 = arith.constant 0 : index
    %c0_0 = arith.constant 0 : index
    %0 = vector.load %arg1[%c0, %c0_0] : memref<128x288xbf16, #tpu.memory_space<vmem>>, vector<128x288xbf16>
    %c0_1 = arith.constant 0 : index
    %c0_2 = arith.constant 0 : index
    %1 = vector.load %arg2[%c0_1, %c0_2] : memref<288x64xbf16, #tpu.memory_space<vmem>>, vector<288x64xbf16>
    %cst = arith.constant dense<0.000000e+00> : vector<128x64xf32>
    %2 = tpu.matmul %0, %1, %cst {dimension_numbers = #tpu.dot_dimension_numbers<[1], [0], [0], [1], [0, 0, 1, 1], [], []>} : vector<128x288xbf16>, vector<288x64xbf16>, vector<128x64xf32> -> vector<128x64xf32>
    %c0_3 = arith.constant 0 : index
    %c0_4 = arith.constant 0 : index
    %3 = vector.load %arg3[%c0_3, %c0_4] : memref<1x64xf32, #tpu.memory_space<vmem>>, vector<1x64xf32>
    %4 = vector.broadcast %3 : vector<1x64xf32> to vector<128x64xf32>
    %5 = arith.mulf %2, %4 : vector<128x64xf32>
    %c0_5 = arith.constant 0 : index
    %c0_6 = arith.constant 0 : index
    %6 = vector.load %arg4[%c0_5, %c0_6] : memref<1x64xf32, #tpu.memory_space<vmem>>, vector<1x64xf32>
    %7 = vector.broadcast %6 : vector<1x64xf32> to vector<128x64xf32>
    %8 = arith.addf %5, %7 : vector<128x64xf32>
    %cst_7 = arith.constant 0.000000e+00 : f32
    %9 = vector.broadcast %cst_7 : f32 to vector<128x64xf32>
    %10 = arith.maximumf %8, %9 : vector<128x64xf32>
    %11 = arith.truncf %10 : vector<128x64xf32> to vector<128x64xbf16>
    %c0_8 = arith.constant 0 : index
    %c0_9 = arith.constant 0 : index
    %12 = vector.load %arg5[%c0_8, %c0_9] : memref<128x64xbf16, #tpu.memory_space<vmem>>, vector<128x64xbf16>
    tpu.vector_store %arg5[%c0_8, %c0_9], %11 {strides = array<i32>} : memref<128x64xbf16, #tpu.memory_space<vmem>>, vector<128x64xbf16>,
    return
  }
  func.func @transform_0(%arg0: i32) -> (i32, i32) {
    %c0_i32 = arith.constant 0 : i32
    %c0_i32_0 = arith.constant 0 : i32
    return %arg0, %c0_i32 : i32, i32
  }
  func.func @transform_1(%arg0: i32) -> (i32, i32) {
    %c0_i32 = arith.constant 0 : i32
    %c0_i32_0 = arith.constant 0 : i32
    %c0_i32_1 = arith.constant 0 : i32
    return %c0_i32, %c0_i32_0 : i32, i32
  }
  func.func @transform_2(%arg0: i32) -> (i32, i32) {
    %c0_i32 = arith.constant 0 : i32
    %c0_i32_0 = arith.constant 0 : i32
    %c0_i32_1 = arith.constant 0 : i32
    return %c0_i32, %c0_i32_0 : i32, i32
  }
  func.func @transform_3(%arg0: i32) -> (i32, i32) {
    %c0_i32 = arith.constant 0 : i32
    %c0_i32_0 = arith.constant 0 : i32
    %c0_i32_1 = arith.constant 0 : i32
    return %c0_i32, %c0_i32_0 : i32, i32
  }
  func.func @transform_4(%arg0: i32) -> (i32, i32) {
    %c0_i32 = arith.constant 0 : i32
    %c0_i32_0 = arith.constant 0 : i32
    return %arg0, %c0_i32 : i32, i32
  }
}

module attributes {stable_mosaic.version = 11 : i64} {
  func.func @_conv_bn_kernel(%arg0: i32, %arg1: memref<128x32xbf16, #tpu.memory_space<vmem>>, %arg2: memref<32x64xbf16, #tpu.memory_space<vmem>>, %arg3: memref<1x64xf32, #tpu.memory_space<vmem>>, %arg4: memref<1x64xf32, #tpu.memory_space<vmem>>, %arg5: memref<128x64xbf16, #tpu.memory_space<vmem>>) attributes {dimension_semantics = [#tpu.dimension_semantics<parallel>], iteration_bounds = array<i64: 1>, scalar_prefetch = 0 : i64, scratch_operands = 0 : i64, tpu.core_type = #tpu.core_type<tc>, window_params = [{transform_indices = @transform_0, window_bounds = array<i64: 128, 32>}, {pipeline_mode = #tpu.pipeline_mode<synchronous>, transform_indices = @transform_1, window_bounds = array<i64: 32, 64>}, {pipeline_mode = #tpu.pipeline_mode<synchronous>, transform_indices = @transform_2, window_bounds = array<i64: 1, 64>}, {pipeline_mode = #tpu.pipeline_mode<synchronous>, transform_indices = @transform_3, window_bounds = array<i64: 1, 64>}, {transform_indices = @transform_4, window_bounds = array<i64: 128, 64>}]} {
    %c0 = arith.constant 0 : index
    %c0_0 = arith.constant 0 : index
    %0 = vector.load %arg1[%c0, %c0_0] : memref<128x32xbf16, #tpu.memory_space<vmem>>, vector<128x32xbf16>
    %c0_1 = arith.constant 0 : index
    %c0_2 = arith.constant 0 : index
    %1 = vector.load %arg2[%c0_1, %c0_2] : memref<32x64xbf16, #tpu.memory_space<vmem>>, vector<32x64xbf16>
    %cst = arith.constant dense<0.000000e+00> : vector<128x64xf32>
    %2 = tpu.matmul %0, %1, %cst {dimension_numbers = #tpu.dot_dimension_numbers<[1], [0], [0], [1], [0, 0, 1, 1], [], []>} : vector<128x32xbf16>, vector<32x64xbf16>, vector<128x64xf32> -> vector<128x64xf32>
    %c0_3 = arith.constant 0 : index
    %c0_4 = arith.constant 0 : index
    %3 = vector.load %arg3[%c0_3, %c0_4] : memref<1x64xf32, #tpu.memory_space<vmem>>, vector<1x64xf32>
    %4 = vector.broadcast %3 : vector<1x64xf32> to vector<128x64xf32>
    %5 = arith.mulf %2, %4 : vector<128x64xf32>
    %c0_5 = arith.constant 0 : index
    %c0_6 = arith.constant 0 : index
    %6 = vector.load %arg4[%c0_5, %c0_6] : memref<1x64xf32, #tpu.memory_space<vmem>>, vector<1x64xf32>
    %7 = vector.broadcast %6 : vector<1x64xf32> to vector<128x64xf32>
    %8 = arith.addf %5, %7 : vector<128x64xf32>
    %9 = arith.truncf %8 : vector<128x64xf32> to vector<128x64xbf16>
    %c0_7 = arith.constant 0 : index
    %c0_8 = arith.constant 0 : index
    %10 = vector.load %arg5[%c0_7, %c0_8] : memref<128x64xbf16, #tpu.memory_space<vmem>>, vector<128x64xbf16>
    tpu.vector_store %arg5[%c0_7, %c0_8], %9 {strides = array<i32>} : memref<128x64xbf16, #tpu.memory_space<vmem>>, vector<128x64xbf16>,
    return
  }
  func.func @transform_0(%arg0: i32) -> (i32, i32) {
    %c0_i32 = arith.constant 0 : i32
    %c0_i32_0 = arith.constant 0 : i32
    return %arg0, %c0_i32 : i32, i32
  }
  func.func @transform_1(%arg0: i32) -> (i32, i32) {
    %c0_i32 = arith.constant 0 : i32
    %c0_i32_0 = arith.constant 0 : i32
    %c0_i32_1 = arith.constant 0 : i32
    return %c0_i32, %c0_i32_0 : i32, i32
  }
  func.func @transform_2(%arg0: i32) -> (i32, i32) {
    %c0_i32 = arith.constant 0 : i32
    %c0_i32_0 = arith.constant 0 : i32
    %c0_i32_1 = arith.constant 0 : i32
    return %c0_i32, %c0_i32_0 : i32, i32
  }
  func.func @transform_3(%arg0: i32) -> (i32, i32) {
    %c0_i32 = arith.constant 0 : i32
    %c0_i32_0 = arith.constant 0 : i32
    %c0_i32_1 = arith.constant 0 : i32
    return %c0_i32, %c0_i32_0 : i32, i32
  }
  func.func @transform_4(%arg0: i32) -> (i32, i32) {
    %c0_i32 = arith.constant 0 : i32
    %c0_i32_0 = arith.constant 0 : i32
    return %arg0, %c0_i32 : i32, i32
  }
}

module attributes {stable_mosaic.version = 11 : i64} {
  func.func @_conv_bn_res_kernel(%arg0: i32, %arg1: memref<128x576xbf16, #tpu.memory_space<vmem>>, %arg2: memref<576x64xbf16, #tpu.memory_space<vmem>>, %arg3: memref<1x64xf32, #tpu.memory_space<vmem>>, %arg4: memref<1x64xf32, #tpu.memory_space<vmem>>, %arg5: memref<128x64xbf16, #tpu.memory_space<vmem>>, %arg6: memref<128x64xbf16, #tpu.memory_space<vmem>>) attributes {dimension_semantics = [#tpu.dimension_semantics<parallel>], iteration_bounds = array<i64: 1>, scalar_prefetch = 0 : i64, scratch_operands = 0 : i64, tpu.core_type = #tpu.core_type<tc>, window_params = [{transform_indices = @transform_0, window_bounds = array<i64: 128, 576>}, {pipeline_mode = #tpu.pipeline_mode<synchronous>, transform_indices = @transform_1, window_bounds = array<i64: 576, 64>}, {pipeline_mode = #tpu.pipeline_mode<synchronous>, transform_indices = @transform_2, window_bounds = array<i64: 1, 64>}, {pipeline_mode = #tpu.pipeline_mode<synchronous>, transform_indices = @transform_3, window_bounds = array<i64: 1, 64>}, {transform_indices = @transform_4, window_bounds = array<i64: 128, 64>}, {transform_indices = @transform_5, window_bounds = array<i64: 128, 64>}]} {
    %c0 = arith.constant 0 : index
    %c0_0 = arith.constant 0 : index
    %0 = vector.load %arg1[%c0, %c0_0] : memref<128x576xbf16, #tpu.memory_space<vmem>>, vector<128x576xbf16>
    %c0_1 = arith.constant 0 : index
    %c0_2 = arith.constant 0 : index
    %1 = vector.load %arg2[%c0_1, %c0_2] : memref<576x64xbf16, #tpu.memory_space<vmem>>, vector<576x64xbf16>
    %cst = arith.constant dense<0.000000e+00> : vector<128x64xf32>
    %2 = tpu.matmul %0, %1, %cst {dimension_numbers = #tpu.dot_dimension_numbers<[1], [0], [0], [1], [0, 0, 1, 1], [], []>} : vector<128x576xbf16>, vector<576x64xbf16>, vector<128x64xf32> -> vector<128x64xf32>
    %c0_3 = arith.constant 0 : index
    %c0_4 = arith.constant 0 : index
    %3 = vector.load %arg3[%c0_3, %c0_4] : memref<1x64xf32, #tpu.memory_space<vmem>>, vector<1x64xf32>
    %4 = vector.broadcast %3 : vector<1x64xf32> to vector<128x64xf32>
    %5 = arith.mulf %2, %4 : vector<128x64xf32>
    %c0_5 = arith.constant 0 : index
    %c0_6 = arith.constant 0 : index
    %6 = vector.load %arg4[%c0_5, %c0_6] : memref<1x64xf32, #tpu.memory_space<vmem>>, vector<1x64xf32>
    %7 = vector.broadcast %6 : vector<1x64xf32> to vector<128x64xf32>
    %8 = arith.addf %5, %7 : vector<128x64xf32>
    %c0_7 = arith.constant 0 : index
    %c0_8 = arith.constant 0 : index
    %9 = vector.load %arg5[%c0_7, %c0_8] : memref<128x64xbf16, #tpu.memory_space<vmem>>, vector<128x64xbf16>
    %10 = arith.extf %9 : vector<128x64xbf16> to vector<128x64xf32>
    %11 = arith.addf %8, %10 : vector<128x64xf32>
    %cst_9 = arith.constant 0.000000e+00 : f32
    %12 = vector.broadcast %cst_9 : f32 to vector<128x64xf32>
    %13 = arith.maximumf %11, %12 : vector<128x64xf32>
    %14 = arith.truncf %13 : vector<128x64xf32> to vector<128x64xbf16>
    %c0_10 = arith.constant 0 : index
    %c0_11 = arith.constant 0 : index
    %15 = vector.load %arg6[%c0_10, %c0_11] : memref<128x64xbf16, #tpu.memory_space<vmem>>, vector<128x64xbf16>
    tpu.vector_store %arg6[%c0_10, %c0_11], %14 {strides = array<i32>} : memref<128x64xbf16, #tpu.memory_space<vmem>>, vector<128x64xbf16>,
    return
  }
  func.func @transform_0(%arg0: i32) -> (i32, i32) {
    %c0_i32 = arith.constant 0 : i32
    %c0_i32_0 = arith.constant 0 : i32
    return %arg0, %c0_i32 : i32, i32
  }
  func.func @transform_1(%arg0: i32) -> (i32, i32) {
    %c0_i32 = arith.constant 0 : i32
    %c0_i32_0 = arith.constant 0 : i32
    %c0_i32_1 = arith.constant 0 : i32
    return %c0_i32, %c0_i32_0 : i32, i32
  }
  func.func @transform_2(%arg0: i32) -> (i32, i32) {
    %c0_i32 = arith.constant 0 : i32
    %c0_i32_0 = arith.constant 0 : i32
    %c0_i32_1 = arith.constant 0 : i32
    return %c0_i32, %c0_i32_0 : i32, i32
  }
  func.func @transform_3(%arg0: i32) -> (i32, i32) {
    %c0_i32 = arith.constant 0 : i32
    %c0_i32_0 = arith.constant 0 : i32
    %c0_i32_1 = arith.constant 0 : i32
    return %c0_i32, %c0_i32_0 : i32, i32
  }
  func.func @transform_4(%arg0: i32) -> (i32, i32) {
    %c0_i32 = arith.constant 0 : i32
    %c0_i32_0 = arith.constant 0 : i32
    return %arg0, %c0_i32 : i32, i32
  }
  func.func @transform_5(%arg0: i32) -> (i32, i32) {
    %c0_i32 = arith.constant 0 : i32
    %c0_i32_0 = arith.constant 0 : i32
    return %arg0, %c0_i32 : i32, i32
  }
}

module attributes {stable_mosaic.version = 11 : i64} {
  func.func @_conv_bn_kernel(%arg0: i32, %arg1: memref<128x576xbf16, #tpu.memory_space<vmem>>, %arg2: memref<576x64xbf16, #tpu.memory_space<vmem>>, %arg3: memref<1x64xf32, #tpu.memory_space<vmem>>, %arg4: memref<1x64xf32, #tpu.memory_space<vmem>>, %arg5: memref<128x64xbf16, #tpu.memory_space<vmem>>) attributes {dimension_semantics = [#tpu.dimension_semantics<parallel>], iteration_bounds = array<i64: 1>, scalar_prefetch = 0 : i64, scratch_operands = 0 : i64, tpu.core_type = #tpu.core_type<tc>, window_params = [{transform_indices = @transform_0, window_bounds = array<i64: 128, 576>}, {pipeline_mode = #tpu.pipeline_mode<synchronous>, transform_indices = @transform_1, window_bounds = array<i64: 576, 64>}, {pipeline_mode = #tpu.pipeline_mode<synchronous>, transform_indices = @transform_2, window_bounds = array<i64: 1, 64>}, {pipeline_mode = #tpu.pipeline_mode<synchronous>, transform_indices = @transform_3, window_bounds = array<i64: 1, 64>}, {transform_indices = @transform_4, window_bounds = array<i64: 128, 64>}]} {
    %c0 = arith.constant 0 : index
    %c0_0 = arith.constant 0 : index
    %0 = vector.load %arg1[%c0, %c0_0] : memref<128x576xbf16, #tpu.memory_space<vmem>>, vector<128x576xbf16>
    %c0_1 = arith.constant 0 : index
    %c0_2 = arith.constant 0 : index
    %1 = vector.load %arg2[%c0_1, %c0_2] : memref<576x64xbf16, #tpu.memory_space<vmem>>, vector<576x64xbf16>
    %cst = arith.constant dense<0.000000e+00> : vector<128x64xf32>
    %2 = tpu.matmul %0, %1, %cst {dimension_numbers = #tpu.dot_dimension_numbers<[1], [0], [0], [1], [0, 0, 1, 1], [], []>} : vector<128x576xbf16>, vector<576x64xbf16>, vector<128x64xf32> -> vector<128x64xf32>
    %c0_3 = arith.constant 0 : index
    %c0_4 = arith.constant 0 : index
    %3 = vector.load %arg3[%c0_3, %c0_4] : memref<1x64xf32, #tpu.memory_space<vmem>>, vector<1x64xf32>
    %4 = vector.broadcast %3 : vector<1x64xf32> to vector<128x64xf32>
    %5 = arith.mulf %2, %4 : vector<128x64xf32>
    %c0_5 = arith.constant 0 : index
    %c0_6 = arith.constant 0 : index
    %6 = vector.load %arg4[%c0_5, %c0_6] : memref<1x64xf32, #tpu.memory_space<vmem>>, vector<1x64xf32>
    %7 = vector.broadcast %6 : vector<1x64xf32> to vector<128x64xf32>
    %8 = arith.addf %5, %7 : vector<128x64xf32>
    %cst_7 = arith.constant 0.000000e+00 : f32
    %9 = vector.broadcast %cst_7 : f32 to vector<128x64xf32>
    %10 = arith.maximumf %8, %9 : vector<128x64xf32>
    %11 = arith.truncf %10 : vector<128x64xf32> to vector<128x64xbf16>
    %c0_8 = arith.constant 0 : index
    %c0_9 = arith.constant 0 : index
    %12 = vector.load %arg5[%c0_8, %c0_9] : memref<128x64xbf16, #tpu.memory_space<vmem>>, vector<128x64xbf16>
    tpu.vector_store %arg5[%c0_8, %c0_9], %11 {strides = array<i32>} : memref<128x64xbf16, #tpu.memory_space<vmem>>, vector<128x64xbf16>,
    return
  }
  func.func @transform_0(%arg0: i32) -> (i32, i32) {
    %c0_i32 = arith.constant 0 : i32
    %c0_i32_0 = arith.constant 0 : i32
    return %arg0, %c0_i32 : i32, i32
  }
  func.func @transform_1(%arg0: i32) -> (i32, i32) {
    %c0_i32 = arith.constant 0 : i32
    %c0_i32_0 = arith.constant 0 : i32
    %c0_i32_1 = arith.constant 0 : i32
    return %c0_i32, %c0_i32_0 : i32, i32
  }
  func.func @transform_2(%arg0: i32) -> (i32, i32) {
    %c0_i32 = arith.constant 0 : i32
    %c0_i32_0 = arith.constant 0 : i32
    %c0_i32_1 = arith.constant 0 : i32
    return %c0_i32, %c0_i32_0 : i32, i32
  }
  func.func @transform_3(%arg0: i32) -> (i32, i32) {
    %c0_i32 = arith.constant 0 : i32
    %c0_i32_0 = arith.constant 0 : i32
    %c0_i32_1 = arith.constant 0 : i32
    return %c0_i32, %c0_i32_0 : i32, i32
  }
  func.func @transform_4(%arg0: i32) -> (i32, i32) {
    %c0_i32 = arith.constant 0 : i32
    %c0_i32_0 = arith.constant 0 : i32
    return %arg0, %c0_i32 : i32, i32
  }
}

module attributes {stable_mosaic.version = 11 : i64} {
  func.func @_conv_bn_kernel(%arg0: i32, %arg1: memref<32x576xbf16, #tpu.memory_space<vmem>>, %arg2: memref<576x128xbf16, #tpu.memory_space<vmem>>, %arg3: memref<1x128xf32, #tpu.memory_space<vmem>>, %arg4: memref<1x128xf32, #tpu.memory_space<vmem>>, %arg5: memref<32x128xbf16, #tpu.memory_space<vmem>>) attributes {dimension_semantics = [#tpu.dimension_semantics<parallel>], iteration_bounds = array<i64: 1>, scalar_prefetch = 0 : i64, scratch_operands = 0 : i64, tpu.core_type = #tpu.core_type<tc>, window_params = [{transform_indices = @transform_0, window_bounds = array<i64: 32, 576>}, {pipeline_mode = #tpu.pipeline_mode<synchronous>, transform_indices = @transform_1, window_bounds = array<i64: 576, 128>}, {pipeline_mode = #tpu.pipeline_mode<synchronous>, transform_indices = @transform_2, window_bounds = array<i64: 1, 128>}, {pipeline_mode = #tpu.pipeline_mode<synchronous>, transform_indices = @transform_3, window_bounds = array<i64: 1, 128>}, {transform_indices = @transform_4, window_bounds = array<i64: 32, 128>}]} {
    %c0 = arith.constant 0 : index
    %c0_0 = arith.constant 0 : index
    %0 = vector.load %arg1[%c0, %c0_0] : memref<32x576xbf16, #tpu.memory_space<vmem>>, vector<32x576xbf16>
    %c0_1 = arith.constant 0 : index
    %c0_2 = arith.constant 0 : index
    %1 = vector.load %arg2[%c0_1, %c0_2] : memref<576x128xbf16, #tpu.memory_space<vmem>>, vector<576x128xbf16>
    %cst = arith.constant dense<0.000000e+00> : vector<32x128xf32>
    %2 = tpu.matmul %0, %1, %cst {dimension_numbers = #tpu.dot_dimension_numbers<[1], [0], [0], [1], [0, 0, 1, 1], [], []>} : vector<32x576xbf16>, vector<576x128xbf16>, vector<32x128xf32> -> vector<32x128xf32>
    %c0_3 = arith.constant 0 : index
    %c0_4 = arith.constant 0 : index
    %3 = vector.load %arg3[%c0_3, %c0_4] : memref<1x128xf32, #tpu.memory_space<vmem>>, vector<1x128xf32>
    %4 = vector.broadcast %3 : vector<1x128xf32> to vector<32x128xf32>
    %5 = arith.mulf %2, %4 : vector<32x128xf32>
    %c0_5 = arith.constant 0 : index
    %c0_6 = arith.constant 0 : index
    %6 = vector.load %arg4[%c0_5, %c0_6] : memref<1x128xf32, #tpu.memory_space<vmem>>, vector<1x128xf32>
    %7 = vector.broadcast %6 : vector<1x128xf32> to vector<32x128xf32>
    %8 = arith.addf %5, %7 : vector<32x128xf32>
    %cst_7 = arith.constant 0.000000e+00 : f32
    %9 = vector.broadcast %cst_7 : f32 to vector<32x128xf32>
    %10 = arith.maximumf %8, %9 : vector<32x128xf32>
    %11 = arith.truncf %10 : vector<32x128xf32> to vector<32x128xbf16>
    %c0_8 = arith.constant 0 : index
    %c0_9 = arith.constant 0 : index
    %12 = vector.load %arg5[%c0_8, %c0_9] : memref<32x128xbf16, #tpu.memory_space<vmem>>, vector<32x128xbf16>
    tpu.vector_store %arg5[%c0_8, %c0_9], %11 {strides = array<i32>} : memref<32x128xbf16, #tpu.memory_space<vmem>>, vector<32x128xbf16>,
    return
  }
  func.func @transform_0(%arg0: i32) -> (i32, i32) {
    %c0_i32 = arith.constant 0 : i32
    %c0_i32_0 = arith.constant 0 : i32
    return %arg0, %c0_i32 : i32, i32
  }
  func.func @transform_1(%arg0: i32) -> (i32, i32) {
    %c0_i32 = arith.constant 0 : i32
    %c0_i32_0 = arith.constant 0 : i32
    %c0_i32_1 = arith.constant 0 : i32
    return %c0_i32, %c0_i32_0 : i32, i32
  }
  func.func @transform_2(%arg0: i32) -> (i32, i32) {
    %c0_i32 = arith.constant 0 : i32
    %c0_i32_0 = arith.constant 0 : i32
    %c0_i32_1 = arith.constant 0 : i32
    return %c0_i32, %c0_i32_0 : i32, i32
  }
  func.func @transform_3(%arg0: i32) -> (i32, i32) {
    %c0_i32 = arith.constant 0 : i32
    %c0_i32_0 = arith.constant 0 : i32
    %c0_i32_1 = arith.constant 0 : i32
    return %c0_i32, %c0_i32_0 : i32, i32
  }
  func.func @transform_4(%arg0: i32) -> (i32, i32) {
    %c0_i32 = arith.constant 0 : i32
    %c0_i32_0 = arith.constant 0 : i32
    return %arg0, %c0_i32 : i32, i32
  }
}

module attributes {stable_mosaic.version = 11 : i64} {
  func.func @_conv_bn_kernel(%arg0: i32, %arg1: memref<32x64xbf16, #tpu.memory_space<vmem>>, %arg2: memref<64x128xbf16, #tpu.memory_space<vmem>>, %arg3: memref<1x128xf32, #tpu.memory_space<vmem>>, %arg4: memref<1x128xf32, #tpu.memory_space<vmem>>, %arg5: memref<32x128xbf16, #tpu.memory_space<vmem>>) attributes {dimension_semantics = [#tpu.dimension_semantics<parallel>], iteration_bounds = array<i64: 1>, scalar_prefetch = 0 : i64, scratch_operands = 0 : i64, tpu.core_type = #tpu.core_type<tc>, window_params = [{transform_indices = @transform_0, window_bounds = array<i64: 32, 64>}, {pipeline_mode = #tpu.pipeline_mode<synchronous>, transform_indices = @transform_1, window_bounds = array<i64: 64, 128>}, {pipeline_mode = #tpu.pipeline_mode<synchronous>, transform_indices = @transform_2, window_bounds = array<i64: 1, 128>}, {pipeline_mode = #tpu.pipeline_mode<synchronous>, transform_indices = @transform_3, window_bounds = array<i64: 1, 128>}, {transform_indices = @transform_4, window_bounds = array<i64: 32, 128>}]} {
    %c0 = arith.constant 0 : index
    %c0_0 = arith.constant 0 : index
    %0 = vector.load %arg1[%c0, %c0_0] : memref<32x64xbf16, #tpu.memory_space<vmem>>, vector<32x64xbf16>
    %c0_1 = arith.constant 0 : index
    %c0_2 = arith.constant 0 : index
    %1 = vector.load %arg2[%c0_1, %c0_2] : memref<64x128xbf16, #tpu.memory_space<vmem>>, vector<64x128xbf16>
    %cst = arith.constant dense<0.000000e+00> : vector<32x128xf32>
    %2 = tpu.matmul %0, %1, %cst {dimension_numbers = #tpu.dot_dimension_numbers<[1], [0], [0], [1], [0, 0, 1, 1], [], []>} : vector<32x64xbf16>, vector<64x128xbf16>, vector<32x128xf32> -> vector<32x128xf32>
    %c0_3 = arith.constant 0 : index
    %c0_4 = arith.constant 0 : index
    %3 = vector.load %arg3[%c0_3, %c0_4] : memref<1x128xf32, #tpu.memory_space<vmem>>, vector<1x128xf32>
    %4 = vector.broadcast %3 : vector<1x128xf32> to vector<32x128xf32>
    %5 = arith.mulf %2, %4 : vector<32x128xf32>
    %c0_5 = arith.constant 0 : index
    %c0_6 = arith.constant 0 : index
    %6 = vector.load %arg4[%c0_5, %c0_6] : memref<1x128xf32, #tpu.memory_space<vmem>>, vector<1x128xf32>
    %7 = vector.broadcast %6 : vector<1x128xf32> to vector<32x128xf32>
    %8 = arith.addf %5, %7 : vector<32x128xf32>
    %9 = arith.truncf %8 : vector<32x128xf32> to vector<32x128xbf16>
    %c0_7 = arith.constant 0 : index
    %c0_8 = arith.constant 0 : index
    %10 = vector.load %arg5[%c0_7, %c0_8] : memref<32x128xbf16, #tpu.memory_space<vmem>>, vector<32x128xbf16>
    tpu.vector_store %arg5[%c0_7, %c0_8], %9 {strides = array<i32>} : memref<32x128xbf16, #tpu.memory_space<vmem>>, vector<32x128xbf16>,
    return
  }
  func.func @transform_0(%arg0: i32) -> (i32, i32) {
    %c0_i32 = arith.constant 0 : i32
    %c0_i32_0 = arith.constant 0 : i32
    return %arg0, %c0_i32 : i32, i32
  }
  func.func @transform_1(%arg0: i32) -> (i32, i32) {
    %c0_i32 = arith.constant 0 : i32
    %c0_i32_0 = arith.constant 0 : i32
    %c0_i32_1 = arith.constant 0 : i32
    return %c0_i32, %c0_i32_0 : i32, i32
  }
  func.func @transform_2(%arg0: i32) -> (i32, i32) {
    %c0_i32 = arith.constant 0 : i32
    %c0_i32_0 = arith.constant 0 : i32
    %c0_i32_1 = arith.constant 0 : i32
    return %c0_i32, %c0_i32_0 : i32, i32
  }
  func.func @transform_3(%arg0: i32) -> (i32, i32) {
    %c0_i32 = arith.constant 0 : i32
    %c0_i32_0 = arith.constant 0 : i32
    %c0_i32_1 = arith.constant 0 : i32
    return %c0_i32, %c0_i32_0 : i32, i32
  }
  func.func @transform_4(%arg0: i32) -> (i32, i32) {
    %c0_i32 = arith.constant 0 : i32
    %c0_i32_0 = arith.constant 0 : i32
    return %arg0, %c0_i32 : i32, i32
  }
}

module attributes {stable_mosaic.version = 11 : i64} {
  func.func @_conv_bn_kernel(%arg0: i32, %arg1: memref<32x1152xbf16, #tpu.memory_space<vmem>>, %arg2: memref<1152x128xbf16, #tpu.memory_space<vmem>>, %arg3: memref<1x128xf32, #tpu.memory_space<vmem>>, %arg4: memref<1x128xf32, #tpu.memory_space<vmem>>, %arg5: memref<32x128xbf16, #tpu.memory_space<vmem>>) attributes {dimension_semantics = [#tpu.dimension_semantics<parallel>], iteration_bounds = array<i64: 1>, scalar_prefetch = 0 : i64, scratch_operands = 0 : i64, tpu.core_type = #tpu.core_type<tc>, window_params = [{transform_indices = @transform_0, window_bounds = array<i64: 32, 1152>}, {pipeline_mode = #tpu.pipeline_mode<synchronous>, transform_indices = @transform_1, window_bounds = array<i64: 1152, 128>}, {pipeline_mode = #tpu.pipeline_mode<synchronous>, transform_indices = @transform_2, window_bounds = array<i64: 1, 128>}, {pipeline_mode = #tpu.pipeline_mode<synchronous>, transform_indices = @transform_3, window_bounds = array<i64: 1, 128>}, {transform_indices = @transform_4, window_bounds = array<i64: 32, 128>}]} {
    %c0 = arith.constant 0 : index
    %c0_0 = arith.constant 0 : index
    %0 = vector.load %arg1[%c0, %c0_0] : memref<32x1152xbf16, #tpu.memory_space<vmem>>, vector<32x1152xbf16>
    %c0_1 = arith.constant 0 : index
    %c0_2 = arith.constant 0 : index
    %1 = vector.load %arg2[%c0_1, %c0_2] : memref<1152x128xbf16, #tpu.memory_space<vmem>>, vector<1152x128xbf16>
    %cst = arith.constant dense<0.000000e+00> : vector<32x128xf32>
    %2 = tpu.matmul %0, %1, %cst {dimension_numbers = #tpu.dot_dimension_numbers<[1], [0], [0], [1], [0, 0, 1, 1], [], []>} : vector<32x1152xbf16>, vector<1152x128xbf16>, vector<32x128xf32> -> vector<32x128xf32>
    %c0_3 = arith.constant 0 : index
    %c0_4 = arith.constant 0 : index
    %3 = vector.load %arg3[%c0_3, %c0_4] : memref<1x128xf32, #tpu.memory_space<vmem>>, vector<1x128xf32>
    %4 = vector.broadcast %3 : vector<1x128xf32> to vector<32x128xf32>
    %5 = arith.mulf %2, %4 : vector<32x128xf32>
    %c0_5 = arith.constant 0 : index
    %c0_6 = arith.constant 0 : index
    %6 = vector.load %arg4[%c0_5, %c0_6] : memref<1x128xf32, #tpu.memory_space<vmem>>, vector<1x128xf32>
    %7 = vector.broadcast %6 : vector<1x128xf32> to vector<32x128xf32>
    %8 = arith.addf %5, %7 : vector<32x128xf32>
    %cst_7 = arith.constant 0.000000e+00 : f32
    %9 = vector.broadcast %cst_7 : f32 to vector<32x128xf32>
    %10 = arith.maximumf %8, %9 : vector<32x128xf32>
    %11 = arith.truncf %10 : vector<32x128xf32> to vector<32x128xbf16>
    %c0_8 = arith.constant 0 : index
    %c0_9 = arith.constant 0 : index
    %12 = vector.load %arg5[%c0_8, %c0_9] : memref<32x128xbf16, #tpu.memory_space<vmem>>, vector<32x128xbf16>
    tpu.vector_store %arg5[%c0_8, %c0_9], %11 {strides = array<i32>} : memref<32x128xbf16, #tpu.memory_space<vmem>>, vector<32x128xbf16>,
    return
  }
  func.func @transform_0(%arg0: i32) -> (i32, i32) {
    %c0_i32 = arith.constant 0 : i32
    %c0_i32_0 = arith.constant 0 : i32
    return %arg0, %c0_i32 : i32, i32
  }
  func.func @transform_1(%arg0: i32) -> (i32, i32) {
    %c0_i32 = arith.constant 0 : i32
    %c0_i32_0 = arith.constant 0 : i32
    %c0_i32_1 = arith.constant 0 : i32
    return %c0_i32, %c0_i32_0 : i32, i32
  }
  func.func @transform_2(%arg0: i32) -> (i32, i32) {
    %c0_i32 = arith.constant 0 : i32
    %c0_i32_0 = arith.constant 0 : i32
    %c0_i32_1 = arith.constant 0 : i32
    return %c0_i32, %c0_i32_0 : i32, i32
  }
  func.func @transform_3(%arg0: i32) -> (i32, i32) {
    %c0_i32 = arith.constant 0 : i32
    %c0_i32_0 = arith.constant 0 : i32
    %c0_i32_1 = arith.constant 0 : i32
    return %c0_i32, %c0_i32_0 : i32, i32
  }
  func.func @transform_4(%arg0: i32) -> (i32, i32) {
    %c0_i32 = arith.constant 0 : i32
    %c0_i32_0 = arith.constant 0 : i32
    return %arg0, %c0_i32 : i32, i32
  }
}

module attributes {stable_mosaic.version = 11 : i64} {
  func.func @_conv_bn_res_kernel(%arg0: i32, %arg1: memref<32x1152xbf16, #tpu.memory_space<vmem>>, %arg2: memref<1152x128xbf16, #tpu.memory_space<vmem>>, %arg3: memref<1x128xf32, #tpu.memory_space<vmem>>, %arg4: memref<1x128xf32, #tpu.memory_space<vmem>>, %arg5: memref<32x128xbf16, #tpu.memory_space<vmem>>, %arg6: memref<32x128xbf16, #tpu.memory_space<vmem>>) attributes {dimension_semantics = [#tpu.dimension_semantics<parallel>], iteration_bounds = array<i64: 1>, scalar_prefetch = 0 : i64, scratch_operands = 0 : i64, tpu.core_type = #tpu.core_type<tc>, window_params = [{transform_indices = @transform_0, window_bounds = array<i64: 32, 1152>}, {pipeline_mode = #tpu.pipeline_mode<synchronous>, transform_indices = @transform_1, window_bounds = array<i64: 1152, 128>}, {pipeline_mode = #tpu.pipeline_mode<synchronous>, transform_indices = @transform_2, window_bounds = array<i64: 1, 128>}, {pipeline_mode = #tpu.pipeline_mode<synchronous>, transform_indices = @transform_3, window_bounds = array<i64: 1, 128>}, {transform_indices = @transform_4, window_bounds = array<i64: 32, 128>}, {transform_indices = @transform_5, window_bounds = array<i64: 32, 128>}]} {
    %c0 = arith.constant 0 : index
    %c0_0 = arith.constant 0 : index
    %0 = vector.load %arg1[%c0, %c0_0] : memref<32x1152xbf16, #tpu.memory_space<vmem>>, vector<32x1152xbf16>
    %c0_1 = arith.constant 0 : index
    %c0_2 = arith.constant 0 : index
    %1 = vector.load %arg2[%c0_1, %c0_2] : memref<1152x128xbf16, #tpu.memory_space<vmem>>, vector<1152x128xbf16>
    %cst = arith.constant dense<0.000000e+00> : vector<32x128xf32>
    %2 = tpu.matmul %0, %1, %cst {dimension_numbers = #tpu.dot_dimension_numbers<[1], [0], [0], [1], [0, 0, 1, 1], [], []>} : vector<32x1152xbf16>, vector<1152x128xbf16>, vector<32x128xf32> -> vector<32x128xf32>
    %c0_3 = arith.constant 0 : index
    %c0_4 = arith.constant 0 : index
    %3 = vector.load %arg3[%c0_3, %c0_4] : memref<1x128xf32, #tpu.memory_space<vmem>>, vector<1x128xf32>
    %4 = vector.broadcast %3 : vector<1x128xf32> to vector<32x128xf32>
    %5 = arith.mulf %2, %4 : vector<32x128xf32>
    %c0_5 = arith.constant 0 : index
    %c0_6 = arith.constant 0 : index
    %6 = vector.load %arg4[%c0_5, %c0_6] : memref<1x128xf32, #tpu.memory_space<vmem>>, vector<1x128xf32>
    %7 = vector.broadcast %6 : vector<1x128xf32> to vector<32x128xf32>
    %8 = arith.addf %5, %7 : vector<32x128xf32>
    %c0_7 = arith.constant 0 : index
    %c0_8 = arith.constant 0 : index
    %9 = vector.load %arg5[%c0_7, %c0_8] : memref<32x128xbf16, #tpu.memory_space<vmem>>, vector<32x128xbf16>
    %10 = arith.extf %9 : vector<32x128xbf16> to vector<32x128xf32>
    %11 = arith.addf %8, %10 : vector<32x128xf32>
    %cst_9 = arith.constant 0.000000e+00 : f32
    %12 = vector.broadcast %cst_9 : f32 to vector<32x128xf32>
    %13 = arith.maximumf %11, %12 : vector<32x128xf32>
    %14 = arith.truncf %13 : vector<32x128xf32> to vector<32x128xbf16>
    %c0_10 = arith.constant 0 : index
    %c0_11 = arith.constant 0 : index
    %15 = vector.load %arg6[%c0_10, %c0_11] : memref<32x128xbf16, #tpu.memory_space<vmem>>, vector<32x128xbf16>
    tpu.vector_store %arg6[%c0_10, %c0_11], %14 {strides = array<i32>} : memref<32x128xbf16, #tpu.memory_space<vmem>>, vector<32x128xbf16>,
    return
  }
  func.func @transform_0(%arg0: i32) -> (i32, i32) {
    %c0_i32 = arith.constant 0 : i32
    %c0_i32_0 = arith.constant 0 : i32
    return %arg0, %c0_i32 : i32, i32
  }
  func.func @transform_1(%arg0: i32) -> (i32, i32) {
    %c0_i32 = arith.constant 0 : i32
    %c0_i32_0 = arith.constant 0 : i32
    %c0_i32_1 = arith.constant 0 : i32
    return %c0_i32, %c0_i32_0 : i32, i32
  }
  func.func @transform_2(%arg0: i32) -> (i32, i32) {
    %c0_i32 = arith.constant 0 : i32
    %c0_i32_0 = arith.constant 0 : i32
    %c0_i32_1 = arith.constant 0 : i32
    return %c0_i32, %c0_i32_0 : i32, i32
  }
  func.func @transform_3(%arg0: i32) -> (i32, i32) {
    %c0_i32 = arith.constant 0 : i32
    %c0_i32_0 = arith.constant 0 : i32
    %c0_i32_1 = arith.constant 0 : i32
    return %c0_i32, %c0_i32_0 : i32, i32
  }
  func.func @transform_4(%arg0: i32) -> (i32, i32) {
    %c0_i32 = arith.constant 0 : i32
    %c0_i32_0 = arith.constant 0 : i32
    return %arg0, %c0_i32 : i32, i32
  }
  func.func @transform_5(%arg0: i32) -> (i32, i32) {
    %c0_i32 = arith.constant 0 : i32
    %c0_i32_0 = arith.constant 0 : i32
    return %arg0, %c0_i32 : i32, i32
  }
}

module attributes {stable_mosaic.version = 11 : i64} {
  func.func @_conv_bn_kernel(%arg0: i32, %arg1: memref<32x1152xbf16, #tpu.memory_space<vmem>>, %arg2: memref<1152x256xbf16, #tpu.memory_space<vmem>>, %arg3: memref<1x256xf32, #tpu.memory_space<vmem>>, %arg4: memref<1x256xf32, #tpu.memory_space<vmem>>, %arg5: memref<32x256xbf16, #tpu.memory_space<vmem>>) attributes {dimension_semantics = [#tpu.dimension_semantics<parallel>], iteration_bounds = array<i64: 1>, scalar_prefetch = 0 : i64, scratch_operands = 0 : i64, tpu.core_type = #tpu.core_type<tc>, window_params = [{transform_indices = @transform_0, window_bounds = array<i64: 32, 1152>}, {pipeline_mode = #tpu.pipeline_mode<synchronous>, transform_indices = @transform_1, window_bounds = array<i64: 1152, 256>}, {pipeline_mode = #tpu.pipeline_mode<synchronous>, transform_indices = @transform_2, window_bounds = array<i64: 1, 256>}, {pipeline_mode = #tpu.pipeline_mode<synchronous>, transform_indices = @transform_3, window_bounds = array<i64: 1, 256>}, {transform_indices = @transform_4, window_bounds = array<i64: 32, 256>}]} {
    %c0 = arith.constant 0 : index
    %c0_0 = arith.constant 0 : index
    %0 = vector.load %arg1[%c0, %c0_0] : memref<32x1152xbf16, #tpu.memory_space<vmem>>, vector<32x1152xbf16>
    %c0_1 = arith.constant 0 : index
    %c0_2 = arith.constant 0 : index
    %1 = vector.load %arg2[%c0_1, %c0_2] : memref<1152x256xbf16, #tpu.memory_space<vmem>>, vector<1152x256xbf16>
    %cst = arith.constant dense<0.000000e+00> : vector<32x256xf32>
    %2 = tpu.matmul %0, %1, %cst {dimension_numbers = #tpu.dot_dimension_numbers<[1], [0], [0], [1], [0, 0, 1, 1], [], []>} : vector<32x1152xbf16>, vector<1152x256xbf16>, vector<32x256xf32> -> vector<32x256xf32>
    %c0_3 = arith.constant 0 : index
    %c0_4 = arith.constant 0 : index
    %3 = vector.load %arg3[%c0_3, %c0_4] : memref<1x256xf32, #tpu.memory_space<vmem>>, vector<1x256xf32>
    %4 = vector.broadcast %3 : vector<1x256xf32> to vector<32x256xf32>
    %5 = arith.mulf %2, %4 : vector<32x256xf32>
    %c0_5 = arith.constant 0 : index
    %c0_6 = arith.constant 0 : index
    %6 = vector.load %arg4[%c0_5, %c0_6] : memref<1x256xf32, #tpu.memory_space<vmem>>, vector<1x256xf32>
    %7 = vector.broadcast %6 : vector<1x256xf32> to vector<32x256xf32>
    %8 = arith.addf %5, %7 : vector<32x256xf32>
    %cst_7 = arith.constant 0.000000e+00 : f32
    %9 = vector.broadcast %cst_7 : f32 to vector<32x256xf32>
    %10 = arith.maximumf %8, %9 : vector<32x256xf32>
    %11 = arith.truncf %10 : vector<32x256xf32> to vector<32x256xbf16>
    %c0_8 = arith.constant 0 : index
    %c0_9 = arith.constant 0 : index
    %12 = vector.load %arg5[%c0_8, %c0_9] : memref<32x256xbf16, #tpu.memory_space<vmem>>, vector<32x256xbf16>
    tpu.vector_store %arg5[%c0_8, %c0_9], %11 {strides = array<i32>} : memref<32x256xbf16, #tpu.memory_space<vmem>>, vector<32x256xbf16>,
    return
  }
  func.func @transform_0(%arg0: i32) -> (i32, i32) {
    %c0_i32 = arith.constant 0 : i32
    %c0_i32_0 = arith.constant 0 : i32
    return %arg0, %c0_i32 : i32, i32
  }
  func.func @transform_1(%arg0: i32) -> (i32, i32) {
    %c0_i32 = arith.constant 0 : i32
    %c0_i32_0 = arith.constant 0 : i32
    %c0_i32_1 = arith.constant 0 : i32
    return %c0_i32, %c0_i32_0 : i32, i32
  }
  func.func @transform_2(%arg0: i32) -> (i32, i32) {
    %c0_i32 = arith.constant 0 : i32
    %c0_i32_0 = arith.constant 0 : i32
    %c0_i32_1 = arith.constant 0 : i32
    return %c0_i32, %c0_i32_0 : i32, i32
  }
  func.func @transform_3(%arg0: i32) -> (i32, i32) {
    %c0_i32 = arith.constant 0 : i32
    %c0_i32_0 = arith.constant 0 : i32
    %c0_i32_1 = arith.constant 0 : i32
    return %c0_i32, %c0_i32_0 : i32, i32
  }
  func.func @transform_4(%arg0: i32) -> (i32, i32) {
    %c0_i32 = arith.constant 0 : i32
    %c0_i32_0 = arith.constant 0 : i32
    return %arg0, %c0_i32 : i32, i32
  }
}

module attributes {stable_mosaic.version = 11 : i64} {
  func.func @_conv_bn_kernel(%arg0: i32, %arg1: memref<32x128xbf16, #tpu.memory_space<vmem>>, %arg2: memref<128x256xbf16, #tpu.memory_space<vmem>>, %arg3: memref<1x256xf32, #tpu.memory_space<vmem>>, %arg4: memref<1x256xf32, #tpu.memory_space<vmem>>, %arg5: memref<32x256xbf16, #tpu.memory_space<vmem>>) attributes {dimension_semantics = [#tpu.dimension_semantics<parallel>], iteration_bounds = array<i64: 1>, scalar_prefetch = 0 : i64, scratch_operands = 0 : i64, tpu.core_type = #tpu.core_type<tc>, window_params = [{transform_indices = @transform_0, window_bounds = array<i64: 32, 128>}, {pipeline_mode = #tpu.pipeline_mode<synchronous>, transform_indices = @transform_1, window_bounds = array<i64: 128, 256>}, {pipeline_mode = #tpu.pipeline_mode<synchronous>, transform_indices = @transform_2, window_bounds = array<i64: 1, 256>}, {pipeline_mode = #tpu.pipeline_mode<synchronous>, transform_indices = @transform_3, window_bounds = array<i64: 1, 256>}, {transform_indices = @transform_4, window_bounds = array<i64: 32, 256>}]} {
    %c0 = arith.constant 0 : index
    %c0_0 = arith.constant 0 : index
    %0 = vector.load %arg1[%c0, %c0_0] : memref<32x128xbf16, #tpu.memory_space<vmem>>, vector<32x128xbf16>
    %c0_1 = arith.constant 0 : index
    %c0_2 = arith.constant 0 : index
    %1 = vector.load %arg2[%c0_1, %c0_2] : memref<128x256xbf16, #tpu.memory_space<vmem>>, vector<128x256xbf16>
    %cst = arith.constant dense<0.000000e+00> : vector<32x256xf32>
    %2 = tpu.matmul %0, %1, %cst {dimension_numbers = #tpu.dot_dimension_numbers<[1], [0], [0], [1], [0, 0, 1, 1], [], []>} : vector<32x128xbf16>, vector<128x256xbf16>, vector<32x256xf32> -> vector<32x256xf32>
    %c0_3 = arith.constant 0 : index
    %c0_4 = arith.constant 0 : index
    %3 = vector.load %arg3[%c0_3, %c0_4] : memref<1x256xf32, #tpu.memory_space<vmem>>, vector<1x256xf32>
    %4 = vector.broadcast %3 : vector<1x256xf32> to vector<32x256xf32>
    %5 = arith.mulf %2, %4 : vector<32x256xf32>
    %c0_5 = arith.constant 0 : index
    %c0_6 = arith.constant 0 : index
    %6 = vector.load %arg4[%c0_5, %c0_6] : memref<1x256xf32, #tpu.memory_space<vmem>>, vector<1x256xf32>
    %7 = vector.broadcast %6 : vector<1x256xf32> to vector<32x256xf32>
    %8 = arith.addf %5, %7 : vector<32x256xf32>
    %9 = arith.truncf %8 : vector<32x256xf32> to vector<32x256xbf16>
    %c0_7 = arith.constant 0 : index
    %c0_8 = arith.constant 0 : index
    %10 = vector.load %arg5[%c0_7, %c0_8] : memref<32x256xbf16, #tpu.memory_space<vmem>>, vector<32x256xbf16>
    tpu.vector_store %arg5[%c0_7, %c0_8], %9 {strides = array<i32>} : memref<32x256xbf16, #tpu.memory_space<vmem>>, vector<32x256xbf16>,
    return
  }
  func.func @transform_0(%arg0: i32) -> (i32, i32) {
    %c0_i32 = arith.constant 0 : i32
    %c0_i32_0 = arith.constant 0 : i32
    return %arg0, %c0_i32 : i32, i32
  }
  func.func @transform_1(%arg0: i32) -> (i32, i32) {
    %c0_i32 = arith.constant 0 : i32
    %c0_i32_0 = arith.constant 0 : i32
    %c0_i32_1 = arith.constant 0 : i32
    return %c0_i32, %c0_i32_0 : i32, i32
  }
  func.func @transform_2(%arg0: i32) -> (i32, i32) {
    %c0_i32 = arith.constant 0 : i32
    %c0_i32_0 = arith.constant 0 : i32
    %c0_i32_1 = arith.constant 0 : i32
    return %c0_i32, %c0_i32_0 : i32, i32
  }
  func.func @transform_3(%arg0: i32) -> (i32, i32) {
    %c0_i32 = arith.constant 0 : i32
    %c0_i32_0 = arith.constant 0 : i32
    %c0_i32_1 = arith.constant 0 : i32
    return %c0_i32, %c0_i32_0 : i32, i32
  }
  func.func @transform_4(%arg0: i32) -> (i32, i32) {
    %c0_i32 = arith.constant 0 : i32
    %c0_i32_0 = arith.constant 0 : i32
    return %arg0, %c0_i32 : i32, i32
  }
}

module attributes {stable_mosaic.version = 11 : i64} {
  func.func @_conv_bn_kernel(%arg0: i32, %arg1: memref<32x2304xbf16, #tpu.memory_space<vmem>>, %arg2: memref<2304x256xbf16, #tpu.memory_space<vmem>>, %arg3: memref<1x256xf32, #tpu.memory_space<vmem>>, %arg4: memref<1x256xf32, #tpu.memory_space<vmem>>, %arg5: memref<32x256xbf16, #tpu.memory_space<vmem>>) attributes {dimension_semantics = [#tpu.dimension_semantics<parallel>], iteration_bounds = array<i64: 1>, scalar_prefetch = 0 : i64, scratch_operands = 0 : i64, tpu.core_type = #tpu.core_type<tc>, window_params = [{transform_indices = @transform_0, window_bounds = array<i64: 32, 2304>}, {pipeline_mode = #tpu.pipeline_mode<synchronous>, transform_indices = @transform_1, window_bounds = array<i64: 2304, 256>}, {pipeline_mode = #tpu.pipeline_mode<synchronous>, transform_indices = @transform_2, window_bounds = array<i64: 1, 256>}, {pipeline_mode = #tpu.pipeline_mode<synchronous>, transform_indices = @transform_3, window_bounds = array<i64: 1, 256>}, {transform_indices = @transform_4, window_bounds = array<i64: 32, 256>}]} {
    %c0 = arith.constant 0 : index
    %c0_0 = arith.constant 0 : index
    %0 = vector.load %arg1[%c0, %c0_0] : memref<32x2304xbf16, #tpu.memory_space<vmem>>, vector<32x2304xbf16>
    %c0_1 = arith.constant 0 : index
    %c0_2 = arith.constant 0 : index
    %1 = vector.load %arg2[%c0_1, %c0_2] : memref<2304x256xbf16, #tpu.memory_space<vmem>>, vector<2304x256xbf16>
    %cst = arith.constant dense<0.000000e+00> : vector<32x256xf32>
    %2 = tpu.matmul %0, %1, %cst {dimension_numbers = #tpu.dot_dimension_numbers<[1], [0], [0], [1], [0, 0, 1, 1], [], []>} : vector<32x2304xbf16>, vector<2304x256xbf16>, vector<32x256xf32> -> vector<32x256xf32>
    %c0_3 = arith.constant 0 : index
    %c0_4 = arith.constant 0 : index
    %3 = vector.load %arg3[%c0_3, %c0_4] : memref<1x256xf32, #tpu.memory_space<vmem>>, vector<1x256xf32>
    %4 = vector.broadcast %3 : vector<1x256xf32> to vector<32x256xf32>
    %5 = arith.mulf %2, %4 : vector<32x256xf32>
    %c0_5 = arith.constant 0 : index
    %c0_6 = arith.constant 0 : index
    %6 = vector.load %arg4[%c0_5, %c0_6] : memref<1x256xf32, #tpu.memory_space<vmem>>, vector<1x256xf32>
    %7 = vector.broadcast %6 : vector<1x256xf32> to vector<32x256xf32>
    %8 = arith.addf %5, %7 : vector<32x256xf32>
    %cst_7 = arith.constant 0.000000e+00 : f32
    %9 = vector.broadcast %cst_7 : f32 to vector<32x256xf32>
    %10 = arith.maximumf %8, %9 : vector<32x256xf32>
    %11 = arith.truncf %10 : vector<32x256xf32> to vector<32x256xbf16>
    %c0_8 = arith.constant 0 : index
    %c0_9 = arith.constant 0 : index
    %12 = vector.load %arg5[%c0_8, %c0_9] : memref<32x256xbf16, #tpu.memory_space<vmem>>, vector<32x256xbf16>
    tpu.vector_store %arg5[%c0_8, %c0_9], %11 {strides = array<i32>} : memref<32x256xbf16, #tpu.memory_space<vmem>>, vector<32x256xbf16>,
    return
  }
  func.func @transform_0(%arg0: i32) -> (i32, i32) {
    %c0_i32 = arith.constant 0 : i32
    %c0_i32_0 = arith.constant 0 : i32
    return %arg0, %c0_i32 : i32, i32
  }
  func.func @transform_1(%arg0: i32) -> (i32, i32) {
    %c0_i32 = arith.constant 0 : i32
    %c0_i32_0 = arith.constant 0 : i32
    %c0_i32_1 = arith.constant 0 : i32
    return %c0_i32, %c0_i32_0 : i32, i32
  }
  func.func @transform_2(%arg0: i32) -> (i32, i32) {
    %c0_i32 = arith.constant 0 : i32
    %c0_i32_0 = arith.constant 0 : i32
    %c0_i32_1 = arith.constant 0 : i32
    return %c0_i32, %c0_i32_0 : i32, i32
  }
  func.func @transform_3(%arg0: i32) -> (i32, i32) {
    %c0_i32 = arith.constant 0 : i32
    %c0_i32_0 = arith.constant 0 : i32
    %c0_i32_1 = arith.constant 0 : i32
    return %c0_i32, %c0_i32_0 : i32, i32
  }
  func.func @transform_4(%arg0: i32) -> (i32, i32) {
    %c0_i32 = arith.constant 0 : i32
    %c0_i32_0 = arith.constant 0 : i32
    return %arg0, %c0_i32 : i32, i32
  }
}

module attributes {stable_mosaic.version = 11 : i64} {
  func.func @_conv_bn_res_kernel(%arg0: i32, %arg1: memref<32x2304xbf16, #tpu.memory_space<vmem>>, %arg2: memref<2304x256xbf16, #tpu.memory_space<vmem>>, %arg3: memref<1x256xf32, #tpu.memory_space<vmem>>, %arg4: memref<1x256xf32, #tpu.memory_space<vmem>>, %arg5: memref<32x256xbf16, #tpu.memory_space<vmem>>, %arg6: memref<32x256xbf16, #tpu.memory_space<vmem>>) attributes {dimension_semantics = [#tpu.dimension_semantics<parallel>], iteration_bounds = array<i64: 1>, scalar_prefetch = 0 : i64, scratch_operands = 0 : i64, tpu.core_type = #tpu.core_type<tc>, window_params = [{transform_indices = @transform_0, window_bounds = array<i64: 32, 2304>}, {pipeline_mode = #tpu.pipeline_mode<synchronous>, transform_indices = @transform_1, window_bounds = array<i64: 2304, 256>}, {pipeline_mode = #tpu.pipeline_mode<synchronous>, transform_indices = @transform_2, window_bounds = array<i64: 1, 256>}, {pipeline_mode = #tpu.pipeline_mode<synchronous>, transform_indices = @transform_3, window_bounds = array<i64: 1, 256>}, {transform_indices = @transform_4, window_bounds = array<i64: 32, 256>}, {transform_indices = @transform_5, window_bounds = array<i64: 32, 256>}]} {
    %c0 = arith.constant 0 : index
    %c0_0 = arith.constant 0 : index
    %0 = vector.load %arg1[%c0, %c0_0] : memref<32x2304xbf16, #tpu.memory_space<vmem>>, vector<32x2304xbf16>
    %c0_1 = arith.constant 0 : index
    %c0_2 = arith.constant 0 : index
    %1 = vector.load %arg2[%c0_1, %c0_2] : memref<2304x256xbf16, #tpu.memory_space<vmem>>, vector<2304x256xbf16>
    %cst = arith.constant dense<0.000000e+00> : vector<32x256xf32>
    %2 = tpu.matmul %0, %1, %cst {dimension_numbers = #tpu.dot_dimension_numbers<[1], [0], [0], [1], [0, 0, 1, 1], [], []>} : vector<32x2304xbf16>, vector<2304x256xbf16>, vector<32x256xf32> -> vector<32x256xf32>
    %c0_3 = arith.constant 0 : index
    %c0_4 = arith.constant 0 : index
    %3 = vector.load %arg3[%c0_3, %c0_4] : memref<1x256xf32, #tpu.memory_space<vmem>>, vector<1x256xf32>
    %4 = vector.broadcast %3 : vector<1x256xf32> to vector<32x256xf32>
    %5 = arith.mulf %2, %4 : vector<32x256xf32>
    %c0_5 = arith.constant 0 : index
    %c0_6 = arith.constant 0 : index
    %6 = vector.load %arg4[%c0_5, %c0_6] : memref<1x256xf32, #tpu.memory_space<vmem>>, vector<1x256xf32>
    %7 = vector.broadcast %6 : vector<1x256xf32> to vector<32x256xf32>
    %8 = arith.addf %5, %7 : vector<32x256xf32>
    %c0_7 = arith.constant 0 : index
    %c0_8 = arith.constant 0 : index
    %9 = vector.load %arg5[%c0_7, %c0_8] : memref<32x256xbf16, #tpu.memory_space<vmem>>, vector<32x256xbf16>
    %10 = arith.extf %9 : vector<32x256xbf16> to vector<32x256xf32>
    %11 = arith.addf %8, %10 : vector<32x256xf32>
    %cst_9 = arith.constant 0.000000e+00 : f32
    %12 = vector.broadcast %cst_9 : f32 to vector<32x256xf32>
    %13 = arith.maximumf %11, %12 : vector<32x256xf32>
    %14 = arith.truncf %13 : vector<32x256xf32> to vector<32x256xbf16>
    %c0_10 = arith.constant 0 : index
    %c0_11 = arith.constant 0 : index
    %15 = vector.load %arg6[%c0_10, %c0_11] : memref<32x256xbf16, #tpu.memory_space<vmem>>, vector<32x256xbf16>
    tpu.vector_store %arg6[%c0_10, %c0_11], %14 {strides = array<i32>} : memref<32x256xbf16, #tpu.memory_space<vmem>>, vector<32x256xbf16>,
    return
  }
  func.func @transform_0(%arg0: i32) -> (i32, i32) {
    %c0_i32 = arith.constant 0 : i32
    %c0_i32_0 = arith.constant 0 : i32
    return %arg0, %c0_i32 : i32, i32
  }
  func.func @transform_1(%arg0: i32) -> (i32, i32) {
    %c0_i32 = arith.constant 0 : i32
    %c0_i32_0 = arith.constant 0 : i32
    %c0_i32_1 = arith.constant 0 : i32
    return %c0_i32, %c0_i32_0 : i32, i32
  }
  func.func @transform_2(%arg0: i32) -> (i32, i32) {
    %c0_i32 = arith.constant 0 : i32
    %c0_i32_0 = arith.constant 0 : i32
    %c0_i32_1 = arith.constant 0 : i32
    return %c0_i32, %c0_i32_0 : i32, i32
  }
  func.func @transform_3(%arg0: i32) -> (i32, i32) {
    %c0_i32 = arith.constant 0 : i32
    %c0_i32_0 = arith.constant 0 : i32
    %c0_i32_1 = arith.constant 0 : i32
    return %c0_i32, %c0_i32_0 : i32, i32
  }
  func.func @transform_4(%arg0: i32) -> (i32, i32) {
    %c0_i32 = arith.constant 0 : i32
    %c0_i32_0 = arith.constant 0 : i32
    return %arg0, %c0_i32 : i32, i32
  }
  func.func @transform_5(%arg0: i32) -> (i32, i32) {
    %c0_i32 = arith.constant 0 : i32
    %c0_i32_0 = arith.constant 0 : i32
    return %arg0, %c0_i32 : i32, i32
  }
}

module attributes {stable_mosaic.version = 11 : i64} {
  func.func @_conv_bn_kernel(%arg0: i32, %arg1: memref<32x2304xbf16, #tpu.memory_space<vmem>>, %arg2: memref<2304x128xbf16, #tpu.memory_space<vmem>>, %arg3: memref<1x128xf32, #tpu.memory_space<vmem>>, %arg4: memref<1x128xf32, #tpu.memory_space<vmem>>, %arg5: memref<32x128xbf16, #tpu.memory_space<vmem>>) attributes {dimension_semantics = [#tpu.dimension_semantics<parallel>], iteration_bounds = array<i64: 1>, scalar_prefetch = 0 : i64, scratch_operands = 0 : i64, tpu.core_type = #tpu.core_type<tc>, window_params = [{transform_indices = @transform_0, window_bounds = array<i64: 32, 2304>}, {pipeline_mode = #tpu.pipeline_mode<synchronous>, transform_indices = @transform_1, window_bounds = array<i64: 2304, 128>}, {pipeline_mode = #tpu.pipeline_mode<synchronous>, transform_indices = @transform_2, window_bounds = array<i64: 1, 128>}, {pipeline_mode = #tpu.pipeline_mode<synchronous>, transform_indices = @transform_3, window_bounds = array<i64: 1, 128>}, {transform_indices = @transform_4, window_bounds = array<i64: 32, 128>}]} {
    %c0 = arith.constant 0 : index
    %c0_0 = arith.constant 0 : index
    %0 = vector.load %arg1[%c0, %c0_0] : memref<32x2304xbf16, #tpu.memory_space<vmem>>, vector<32x2304xbf16>
    %c0_1 = arith.constant 0 : index
    %c0_2 = arith.constant 0 : index
    %1 = vector.load %arg2[%c0_1, %c0_2] : memref<2304x128xbf16, #tpu.memory_space<vmem>>, vector<2304x128xbf16>
    %cst = arith.constant dense<0.000000e+00> : vector<32x128xf32>
    %2 = tpu.matmul %0, %1, %cst {dimension_numbers = #tpu.dot_dimension_numbers<[1], [0], [0], [1], [0, 0, 1, 1], [], []>} : vector<32x2304xbf16>, vector<2304x128xbf16>, vector<32x128xf32> -> vector<32x128xf32>
    %c0_3 = arith.constant 0 : index
    %c0_4 = arith.constant 0 : index
    %3 = vector.load %arg3[%c0_3, %c0_4] : memref<1x128xf32, #tpu.memory_space<vmem>>, vector<1x128xf32>
    %4 = vector.broadcast %3 : vector<1x128xf32> to vector<32x128xf32>
    %5 = arith.mulf %2, %4 : vector<32x128xf32>
    %c0_5 = arith.constant 0 : index
    %c0_6 = arith.constant 0 : index
    %6 = vector.load %arg4[%c0_5, %c0_6] : memref<1x128xf32, #tpu.memory_space<vmem>>, vector<1x128xf32>
    %7 = vector.broadcast %6 : vector<1x128xf32> to vector<32x128xf32>
    %8 = arith.addf %5, %7 : vector<32x128xf32>
    %cst_7 = arith.constant 0.000000e+00 : f32
    %9 = vector.broadcast %cst_7 : f32 to vector<32x128xf32>
    %10 = arith.maximumf %8, %9 : vector<32x128xf32>
    %11 = arith.truncf %10 : vector<32x128xf32> to vector<32x128xbf16>
    %c0_8 = arith.constant 0 : index
    %c0_9 = arith.constant 0 : index
    %12 = vector.load %arg5[%c0_8, %c0_9] : memref<32x128xbf16, #tpu.memory_space<vmem>>, vector<32x128xbf16>
    tpu.vector_store %arg5[%c0_8, %c0_9], %11 {strides = array<i32>} : memref<32x128xbf16, #tpu.memory_space<vmem>>, vector<32x128xbf16>,
    return
  }
  func.func @transform_0(%arg0: i32) -> (i32, i32) {
    %c0_i32 = arith.constant 0 : i32
    %c0_i32_0 = arith.constant 0 : i32
    return %arg0, %c0_i32 : i32, i32
  }
  func.func @transform_1(%arg0: i32) -> (i32, i32) {
    %c0_i32 = arith.constant 0 : i32
    %c0_i32_0 = arith.constant 0 : i32
    %c0_i32_1 = arith.constant 0 : i32
    return %c0_i32, %c0_i32_0 : i32, i32
  }
  func.func @transform_2(%arg0: i32) -> (i32, i32) {
    %c0_i32 = arith.constant 0 : i32
    %c0_i32_0 = arith.constant 0 : i32
    %c0_i32_1 = arith.constant 0 : i32
    return %c0_i32, %c0_i32_0 : i32, i32
  }
  func.func @transform_3(%arg0: i32) -> (i32, i32) {
    %c0_i32 = arith.constant 0 : i32
    %c0_i32_0 = arith.constant 0 : i32
    %c0_i32_1 = arith.constant 0 : i32
    return %c0_i32, %c0_i32_0 : i32, i32
  }
  func.func @transform_4(%arg0: i32) -> (i32, i32) {
    %c0_i32 = arith.constant 0 : i32
    %c0_i32_0 = arith.constant 0 : i32
    return %arg0, %c0_i32 : i32, i32
  }
}

module attributes {stable_mosaic.version = 11 : i64} {
  func.func @_conv_bn_kernel(%arg0: i32, %arg1: memref<32x256xbf16, #tpu.memory_space<vmem>>, %arg2: memref<256x128xbf16, #tpu.memory_space<vmem>>, %arg3: memref<1x128xf32, #tpu.memory_space<vmem>>, %arg4: memref<1x128xf32, #tpu.memory_space<vmem>>, %arg5: memref<32x128xbf16, #tpu.memory_space<vmem>>) attributes {dimension_semantics = [#tpu.dimension_semantics<parallel>], iteration_bounds = array<i64: 1>, scalar_prefetch = 0 : i64, scratch_operands = 0 : i64, tpu.core_type = #tpu.core_type<tc>, window_params = [{transform_indices = @transform_0, window_bounds = array<i64: 32, 256>}, {pipeline_mode = #tpu.pipeline_mode<synchronous>, transform_indices = @transform_1, window_bounds = array<i64: 256, 128>}, {pipeline_mode = #tpu.pipeline_mode<synchronous>, transform_indices = @transform_2, window_bounds = array<i64: 1, 128>}, {pipeline_mode = #tpu.pipeline_mode<synchronous>, transform_indices = @transform_3, window_bounds = array<i64: 1, 128>}, {transform_indices = @transform_4, window_bounds = array<i64: 32, 128>}]} {
    %c0 = arith.constant 0 : index
    %c0_0 = arith.constant 0 : index
    %0 = vector.load %arg1[%c0, %c0_0] : memref<32x256xbf16, #tpu.memory_space<vmem>>, vector<32x256xbf16>
    %c0_1 = arith.constant 0 : index
    %c0_2 = arith.constant 0 : index
    %1 = vector.load %arg2[%c0_1, %c0_2] : memref<256x128xbf16, #tpu.memory_space<vmem>>, vector<256x128xbf16>
    %cst = arith.constant dense<0.000000e+00> : vector<32x128xf32>
    %2 = tpu.matmul %0, %1, %cst {dimension_numbers = #tpu.dot_dimension_numbers<[1], [0], [0], [1], [0, 0, 1, 1], [], []>} : vector<32x256xbf16>, vector<256x128xbf16>, vector<32x128xf32> -> vector<32x128xf32>
    %c0_3 = arith.constant 0 : index
    %c0_4 = arith.constant 0 : index
    %3 = vector.load %arg3[%c0_3, %c0_4] : memref<1x128xf32, #tpu.memory_space<vmem>>, vector<1x128xf32>
    %4 = vector.broadcast %3 : vector<1x128xf32> to vector<32x128xf32>
    %5 = arith.mulf %2, %4 : vector<32x128xf32>
    %c0_5 = arith.constant 0 : index
    %c0_6 = arith.constant 0 : index
    %6 = vector.load %arg4[%c0_5, %c0_6] : memref<1x128xf32, #tpu.memory_space<vmem>>, vector<1x128xf32>
    %7 = vector.broadcast %6 : vector<1x128xf32> to vector<32x128xf32>
    %8 = arith.addf %5, %7 : vector<32x128xf32>
    %9 = arith.truncf %8 : vector<32x128xf32> to vector<32x128xbf16>
    %c0_7 = arith.constant 0 : index
    %c0_8 = arith.constant 0 : index
    %10 = vector.load %arg5[%c0_7, %c0_8] : memref<32x128xbf16, #tpu.memory_space<vmem>>, vector<32x128xbf16>
    tpu.vector_store %arg5[%c0_7, %c0_8], %9 {strides = array<i32>} : memref<32x128xbf16, #tpu.memory_space<vmem>>, vector<32x128xbf16>,
    return
  }
  func.func @transform_0(%arg0: i32) -> (i32, i32) {
    %c0_i32 = arith.constant 0 : i32
    %c0_i32_0 = arith.constant 0 : i32
    return %arg0, %c0_i32 : i32, i32
  }
  func.func @transform_1(%arg0: i32) -> (i32, i32) {
    %c0_i32 = arith.constant 0 : i32
    %c0_i32_0 = arith.constant 0 : i32
    %c0_i32_1 = arith.constant 0 : i32
    return %c0_i32, %c0_i32_0 : i32, i32
  }
  func.func @transform_2(%arg0: i32) -> (i32, i32) {
    %c0_i32 = arith.constant 0 : i32
    %c0_i32_0 = arith.constant 0 : i32
    %c0_i32_1 = arith.constant 0 : i32
    return %c0_i32, %c0_i32_0 : i32, i32
  }
  func.func @transform_3(%arg0: i32) -> (i32, i32) {
    %c0_i32 = arith.constant 0 : i32
    %c0_i32_0 = arith.constant 0 : i32
    %c0_i32_1 = arith.constant 0 : i32
    return %c0_i32, %c0_i32_0 : i32, i32
  }
  func.func @transform_4(%arg0: i32) -> (i32, i32) {
    %c0_i32 = arith.constant 0 : i32
    %c0_i32_0 = arith.constant 0 : i32
    return %arg0, %c0_i32 : i32, i32
  }
}

module attributes {stable_mosaic.version = 11 : i64} {
  func.func @_conv_bn_kernel(%arg0: i32, %arg1: memref<16x384xbf16, #tpu.memory_space<vmem>>, %arg2: memref<384x128xbf16, #tpu.memory_space<vmem>>, %arg3: memref<1x128xf32, #tpu.memory_space<vmem>>, %arg4: memref<1x128xf32, #tpu.memory_space<vmem>>, %arg5: memref<16x128xbf16, #tpu.memory_space<vmem>>) attributes {dimension_semantics = [#tpu.dimension_semantics<parallel>], iteration_bounds = array<i64: 1>, scalar_prefetch = 0 : i64, scratch_operands = 0 : i64, tpu.core_type = #tpu.core_type<tc>, window_params = [{transform_indices = @transform_0, window_bounds = array<i64: 16, 384>}, {pipeline_mode = #tpu.pipeline_mode<synchronous>, transform_indices = @transform_1, window_bounds = array<i64: 384, 128>}, {pipeline_mode = #tpu.pipeline_mode<synchronous>, transform_indices = @transform_2, window_bounds = array<i64: 1, 128>}, {pipeline_mode = #tpu.pipeline_mode<synchronous>, transform_indices = @transform_3, window_bounds = array<i64: 1, 128>}, {transform_indices = @transform_4, window_bounds = array<i64: 16, 128>}]} {
    %c0 = arith.constant 0 : index
    %c0_0 = arith.constant 0 : index
    %0 = vector.load %arg1[%c0, %c0_0] : memref<16x384xbf16, #tpu.memory_space<vmem>>, vector<16x384xbf16>
    %c0_1 = arith.constant 0 : index
    %c0_2 = arith.constant 0 : index
    %1 = vector.load %arg2[%c0_1, %c0_2] : memref<384x128xbf16, #tpu.memory_space<vmem>>, vector<384x128xbf16>
    %cst = arith.constant dense<0.000000e+00> : vector<16x128xf32>
    %2 = tpu.matmul %0, %1, %cst {dimension_numbers = #tpu.dot_dimension_numbers<[1], [0], [0], [1], [0, 0, 1, 1], [], []>} : vector<16x384xbf16>, vector<384x128xbf16>, vector<16x128xf32> -> vector<16x128xf32>
    %c0_3 = arith.constant 0 : index
    %c0_4 = arith.constant 0 : index
    %3 = vector.load %arg3[%c0_3, %c0_4] : memref<1x128xf32, #tpu.memory_space<vmem>>, vector<1x128xf32>
    %4 = vector.broadcast %3 : vector<1x128xf32> to vector<16x128xf32>
    %5 = arith.mulf %2, %4 : vector<16x128xf32>
    %c0_5 = arith.constant 0 : index
    %c0_6 = arith.constant 0 : index
    %6 = vector.load %arg4[%c0_5, %c0_6] : memref<1x128xf32, #tpu.memory_space<vmem>>, vector<1x128xf32>
    %7 = vector.broadcast %6 : vector<1x128xf32> to vector<16x128xf32>
    %8 = arith.addf %5, %7 : vector<16x128xf32>
    %cst_7 = arith.constant 0.000000e+00 : f32
    %9 = vector.broadcast %cst_7 : f32 to vector<16x128xf32>
    %10 = arith.maximumf %8, %9 : vector<16x128xf32>
    %11 = arith.truncf %10 : vector<16x128xf32> to vector<16x128xbf16>
    %c0_8 = arith.constant 0 : index
    %c0_9 = arith.constant 0 : index
    %12 = vector.load %arg5[%c0_8, %c0_9] : memref<16x128xbf16, #tpu.memory_space<vmem>>, vector<16x128xbf16>
    tpu.vector_store %arg5[%c0_8, %c0_9], %11 {strides = array<i32>} : memref<16x128xbf16, #tpu.memory_space<vmem>>, vector<16x128xbf16>,
    return
  }
  func.func @transform_0(%arg0: i32) -> (i32, i32) {
    %c0_i32 = arith.constant 0 : i32
    %c0_i32_0 = arith.constant 0 : i32
    return %arg0, %c0_i32 : i32, i32
  }
  func.func @transform_1(%arg0: i32) -> (i32, i32) {
    %c0_i32 = arith.constant 0 : i32
    %c0_i32_0 = arith.constant 0 : i32
    %c0_i32_1 = arith.constant 0 : i32
    return %c0_i32, %c0_i32_0 : i32, i32
  }
  func.func @transform_2(%arg0: i32) -> (i32, i32) {
    %c0_i32 = arith.constant 0 : i32
    %c0_i32_0 = arith.constant 0 : i32
    %c0_i32_1 = arith.constant 0 : i32
    return %c0_i32, %c0_i32_0 : i32, i32
  }
  func.func @transform_3(%arg0: i32) -> (i32, i32) {
    %c0_i32 = arith.constant 0 : i32
    %c0_i32_0 = arith.constant 0 : i32
    %c0_i32_1 = arith.constant 0 : i32
    return %c0_i32, %c0_i32_0 : i32, i32
  }
  func.func @transform_4(%arg0: i32) -> (i32, i32) {
    %c0_i32 = arith.constant 0 : i32
    %c0_i32_0 = arith.constant 0 : i32
    return %arg0, %c0_i32 : i32, i32
  }
}

</mosaic_0001>

<bundles_post_ra>
// kernel: feature_extractor_forward.51
= control target key start
LH: loop header
LB: loop body
LE: loop exit
PB: predicated region body
PF: predicated region fallthrough
CT: control target
= control target key end

     0   :  { %vm354_vm0 = vcmask 1044480   ;;  %vm355_vm1 = vcmask 1045504   ;;  %vm257_vm2 = vcmask 220160   ;;  %v1518_v1 = vmov 65535   ;;  %s2072_s1 = inlined_call_operand.vmem [shape: bf16[27,32], index: 1, kind: input, shape index: {}]   ;;  %s2073_s0 = inlined_call_operand.vmem [shape: bf16[512,27], index: 0, kind: input, shape index: {}]   ;;  %s2074_s2 = inlined_call_operand.vmem [shape: f32[1,32], index: 2, kind: input, shape index: {}]   ;;  %s2075_s3 = inlined_call_operand.vmem [shape: f32[1,32], index: 3, kind: input, shape index: {}]   ;;  %s2076_s4 = inlined_call_operand.vmem [shape: bf16[512,32], index: 4, kind: output, shape index: {}]  }
   0x1   :  { %v1484_v0 = vld [vmem:[%s2072_s1] sm:$0xff]   ;;  %v356_v2 = vsel %vm354_vm0, 4294967295, %v1518_v1  ;;  %v1485_v3 = vld [vmem:[%s2072_s1 + $0x8] sm:$0x3f]   ;;  %v1490_v10 = vld [vmem:[%s2073_s0 + $0x10] sm:$0xff]   ;;  %vm1112_vm3 = vcmask 257024  }
   0x2   :  { %1411 = vmatprep.subr.bf16.mxu0 %v1484_v0  ;;  %1479 = vmatprep.subr.bf16.mxu1 %v1484_v0  ;;  %v357_v4 = vsel %vm355_vm1, %v356_v2, 0  ;;  %v1486_v5 = vld [vmem:[%s2073_s0] sm:$0xff]   ;;  %v1488_v8 = vld [vmem:[%s2073_s0 + $0x8] sm:$0xff]   ;;  %v1491_v11 = vld [vmem:[%s2073_s0 + $0x90] sm:$0xff]  }
   0x3   :  { %1412 = vmatpush3.bf16.msra.mxu0 %v1484_v0  ;;  %1481 = vmatpush3.bf16.msra.mxu1 %v1484_v0  ;;  %v359_v6 = vand.u32 %v1485_v3, %v357_v4  ;;  %v1487_v7 = vld [vmem:[%s2073_s0 + $0x80] sm:$0xff]   ;;  %v1489_v9 = vld [vmem:[%s2073_s0 + $0x88] sm:$0xff]   ;;  %v1492_v12 = vld [vmem:[%s2073_s0 + $0x18] sm:$0xff]  }
   0x4   :  { %1415 = vmatprep.mubr.msk.bf16.mxu0 %vm257_vm2, %v1486_v5  ;;  %1447 = vmatprep.mubr.msk.bf16.mxu1 %vm257_vm2, %v1487_v7  ;;  %v1493_v13 = vld [vmem:[%s2073_s0 + $0x98] sm:$0xff]   ;;  %v1494_v14 = vld [vmem:[%s2073_s0 + $0x20] sm:$0xff]   ;;  %v1496_v16 = vld [vmem:[%s2073_s0 + $0x28] sm:$0xff]  }
   0x5   :  { %1413 = vmatprep.subr.bf16.mxu0 %v359_v6  ;;  %1480 = vmatprep.subr.bf16.mxu1 %v359_v6  ;;  %v1495_v15 = vld [vmem:[%s2073_s0 + $0xa0] sm:$0xff]   ;;  %v1497_v17 = vld [vmem:[%s2073_s0 + $0xa8] sm:$0xff]   ;;  %v1498_v18 = vld [vmem:[%s2073_s0 + $0x30] sm:$0xff]  }
   0x6   :  { %v1499_v19 = vld [vmem:[%s2073_s0 + $0xb0] sm:$0xff]   ;;  %v1500_v20 = vld [vmem:[%s2073_s0 + $0x38] sm:$0xff]   ;;  %v1502_v22 = vld [vmem:[%s2073_s0 + $0x40] sm:$0xff]  }
   0x7   :  { %1414 = vmatpush3.bf16.msra.mxu0 %v359_v6  ;;  %1482 = vmatpush3.bf16.msra.mxu1 %v359_v6  ;;  %v1501_v21 = vld [vmem:[%s2073_s0 + $0xb8] sm:$0xff]   ;;  %v1503_v23 = vld [vmem:[%s2073_s0 + $0xc0] sm:$0xff]   ;;  %v1504_v24 = vld [vmem:[%s2073_s0 + $0x48] sm:$0xff]  }
   0x8   :  { %v1505_v25 = vld [vmem:[%s2073_s0 + $0xc8] sm:$0xff]   ;;  %v1506_v26 = vld [vmem:[%s2073_s0 + $0x50] sm:$0xff]   ;;  %v1508_v28 = vld [vmem:[%s2073_s0 + $0x58] sm:$0xff]  }
   0x9   :  { %v1507_v27 = vld [vmem:[%s2073_s0 + $0xd0] sm:$0xff]   ;;  %v1509_v29 = vld [vmem:[%s2073_s0 + $0xd8] sm:$0xff]   ;;  %v1510_v30 = vld [vmem:[%s2073_s0 + $0x60] sm:$0xff]  }
   0xa   :  { %1416 = vmatmul.mubr.msk.bf16.vlgmr.msra.gmra.mrb[0].mxu0 %vm257_vm2, %v1488_v8  ;;  %1448 = vmatmul.mubr.msk.bf16.vlgmr.msra.gmra.mrb[0].mxu1 %vm257_vm2, %v1489_v9  ;;  %v1511_v31 = vld [vmem:[%s2073_s0 + $0xe0] sm:$0xff]   ;;  %v1512_v32 = vld [vmem:[%s2073_s0 + $0x68] sm:$0xff]   ;;  %v1514_v34 = vld [vmem:[%s2073_s0 + $0x70] sm:$0xff]  }
   0xb   :  { %1419 = vmatprep.mubr.msk.bf16.mxu0 %vm257_vm2, %v1490_v10  ;;  %1451 = vmatprep.mubr.msk.bf16.mxu1 %vm257_vm2, %v1491_v11  ;;  %v1513_v33 = vld [vmem:[%s2073_s0 + $0xe8] sm:$0xff]   ;;  %v1515_v35 = vld [vmem:[%s2073_s0 + $0xf0] sm:$0xff]   ;;  %v1516_v36 = vld [vmem:[%s2073_s0 + $0x78] sm:$0xff]  }
   0xc   :  { %v1517_v37 = vld [vmem:[%s2073_s0 + $0xf8] sm:$0xff]   ;;  %v1681_v38 = vld [vmem:[%s2074_s2] ss:$0 sm:$0xff] }
   0xd   :  { %v1686_v40 = vld [vmem:[%s2075_s3] ss:$0 sm:$0xff] }
  0x12   :  { %1420 = vmatmul.mubr.msk.bf16.gmra.mrb[4].mxu0 %vm257_vm2, %v1492_v12  ;;  %1452 = vmatmul.mubr.msk.bf16.gmra.mrb[4].mxu1 %vm257_vm2, %v1493_v13 }
  0x13   :  { %1423 = vmatprep.mubr.msk.bf16.mxu0 %vm257_vm2, %v1494_v14  ;;  %1455 = vmatprep.mubr.msk.bf16.mxu1 %vm257_vm2, %v1495_v15 }
  0x1a   :  { %1424 = vmatmul.mubr.msk.bf16.gmra.mrb[8].mxu0 %vm257_vm2, %v1496_v16  ;;  %1456 = vmatmul.mubr.msk.bf16.gmra.mrb[8].mxu1 %vm257_vm2, %v1497_v17 }
  0x1b   :  { %1427 = vmatprep.mubr.msk.bf16.mxu0 %vm257_vm2, %v1498_v18  ;;  %1459 = vmatprep.mubr.msk.bf16.mxu1 %vm257_vm2, %v1499_v19 }
  0x22   :  { %1428 = vmatmul.mubr.msk.bf16.gmra.mrb[12].mxu0 %vm257_vm2, %v1500_v20  ;;  %1460 = vmatmul.mubr.msk.bf16.gmra.mrb[12].mxu1 %vm257_vm2, %v1501_v21 }
  0x23   :  { %1431 = vmatprep.mubr.msk.bf16.mxu0 %vm257_vm2, %v1502_v22  ;;  %1463 = vmatprep.mubr.msk.bf16.mxu1 %vm257_vm2, %v1503_v23 }
  0x2a   :  { %1432 = vmatmul.mubr.msk.bf16.gmra.mrb[16].mxu0 %vm257_vm2, %v1504_v24  ;;  %1464 = vmatmul.mubr.msk.bf16.gmra.mrb[16].mxu1 %vm257_vm2, %v1505_v25 }
  0x2b   :  { %1435 = vmatprep.mubr.msk.bf16.mxu0 %vm257_vm2, %v1506_v26  ;;  %1467 = vmatprep.mubr.msk.bf16.mxu1 %vm257_vm2, %v1507_v27 }
  0x32   :  { %1436 = vmatmul.mubr.msk.bf16.gmra.mrb[20].mxu0 %vm257_vm2, %v1508_v28  ;;  %1468 = vmatmul.mubr.msk.bf16.gmra.mrb[20].mxu1 %vm257_vm2, %v1509_v29 }
  0x33   :  { %1439 = vmatprep.mubr.msk.bf16.mxu0 %vm257_vm2, %v1510_v30  ;;  %1471 = vmatprep.mubr.msk.bf16.mxu1 %vm257_vm2, %v1511_v31 }
  0x3a   :  { %1440 = vmatmul.mubr.msk.bf16.gmra.mrb[24].mxu0 %vm257_vm2, %v1512_v32  ;;  %1472 = vmatmul.mubr.msk.bf16.gmra.mrb[24].mxu1 %vm257_vm2, %v1513_v33 }
  0x3b   :  { %1443 = vmatprep.mubr.msk.bf16.mxu0 %vm257_vm2, %v1514_v34  ;;  %1475 = vmatprep.mubr.msk.bf16.mxu1 %vm257_vm2, %v1515_v35 }
  0x42   :  { %1444 = vmatmul.mubr.msk.bf16.gmra.mrb[28].mxu0 %vm257_vm2, %v1516_v36  ;;  %1476 = vmatmul.mubr.msk.bf16.gmra.mrb[28].mxu1 %vm257_vm2, %v1517_v37 }
  0xdd   :  { %v1417_v39 = vpop.f32.mrb[0].mxu0  ;;  %v1449_v41 = vpop.f32.mrb[0].mxu1 }
  0xde   :  { %v659_v42 = vmul.f32 %v1417_v39, %v1681_v38  ;;  %v691_v43 = vmul.f32 %v1449_v41, %v1681_v38  ;;  %v395_v44 = vpop.f32.mrb[1].mxu0  ;;  %v523_v45 = vpop.f32.mrb[1].mxu1 }
  0xdf   :  { %v657_v46 = vmul.f32 %v1681_v38, %v395_v44  ;;  %v689_v47 = vmul.f32 %v1681_v38, %v523_v45  ;;  %v1418_v48 = vpop.f32.mrb[2].mxu0  ;;  %v1450_v49 = vpop.f32.mrb[2].mxu1 }
  0xe0   :  { %v730_v50 = vadd.f32 %v1686_v40, %v659_v42  ;;  %v762_v51 = vadd.f32 %v1686_v40, %v691_v43  ;;  %v660_v52 = vmul.f32 %v1418_v48, %v1681_v38  ;;  %v692_v53 = vmul.f32 %v1450_v49, %v1681_v38  ;;  %v398_v54 = vpop.f32.mrb[3].mxu0  ;;  %v526_v55 = vpop.f32.mrb[3].mxu1 }
  0xe1   :  { %v728_v56 = vadd.f32 %v1686_v40, %v657_v46  ;;  %v760_v57 = vadd.f32 %v1686_v40, %v689_v47  ;;  %v658_v58 = vmul.f32 %v1681_v38, %v398_v54  ;;  %v690_v59 = vmul.f32 %v1681_v38, %v526_v55 }
  0xe2   :  { %v794_v60 = vmax.f32 %v730_v50, 0.0  ;;  %v826_v61 = vmax.f32 %v762_v51, 0.0  ;;  %v731_v62 = vadd.f32 %v1686_v40, %v660_v52  ;;  %v763_v63 = vadd.f32 %v1686_v40, %v692_v53 }
  0xe3   :  { %v792_v0 = vmax.f32 %v728_v56, 0.0  ;;  %v824_v1 = vmax.f32 %v760_v57, 0.0  ;;  %v729_v2 = vadd.f32 %v1686_v40, %v658_v58  ;;  %v761_v3 = vadd.f32 %v1686_v40, %v690_v59 }
  0xe4   :  { %v1315_v4 = vpack.c.bf16 %v794_v60, %v794_v60  ;;  %v1347_v5 = vpack.c.bf16 %v826_v61, %v826_v61  ;;  %v795_v6 = vmax.f32 %v731_v62, 0.0  ;;  %v827_v7 = vmax.f32 %v763_v63, 0.0 }
  0xe5   :  { %v1313_v8 = vpack.c.bf16 %v792_v0, %v792_v0  ;;  %v1345_v9 = vpack.c.bf16 %v824_v1, %v824_v1  ;;  %v793_v10 = vmax.f32 %v729_v2, 0.0  ;;  %v825_v11 = vmax.f32 %v761_v3, 0.0  ;;  %v1421_v12 = vpop.f32.mrb[4].mxu0  ;;  %v1453_v13 = vpop.f32.mrb[4].mxu1 }
  0xe6   :  { %1115 = vst.msk [vmem:[%s2076_s4 + $0x8] sm:$0xf] %vm1112_vm3, %v1315_v4  ;;  %1147 = vst.msk [vmem:[%s2076_s4 + $0x88] sm:$0xf] %vm1112_vm3, %v1347_v5  ;;  %v1316_v14 = vpack.c.bf16 %v795_v6, %v795_v6  ;;  %v1348_v15 = vpack.c.bf16 %v827_v7, %v827_v7  ;;  %v663_v16 = vmul.f32 %v1421_v12, %v1681_v38  ;;  %v411_v18 = vpop.f32.mrb[5].mxu0  ;;  %v539_v19 = vpop.f32.mrb[5].mxu1 }
  0xe7   :  { %v695_v17 = vmul.f32 %v1453_v13, %v1681_v38  ;;  %1113 = vst.msk [vmem:[%s2076_s4] sm:$0xf] %vm1112_vm3, %v1313_v8  ;;  %1145 = vst.msk [vmem:[%s2076_s4 + $0x80] sm:$0xf] %vm1112_vm3, %v1345_v9  ;;  %v1314_v20 = vpack.c.bf16 %v793_v10, %v793_v10  ;;  %v1346_v21 = vpack.c.bf16 %v825_v11, %v825_v11  ;;  %v1422_v24 = vpop.f32.mrb[6].mxu0  ;;  %v1454_v25 = vpop.f32.mrb[6].mxu1 }
  0xe8   :  { %v661_v22 = vmul.f32 %v1681_v38, %v411_v18  ;;  %v693_v23 = vmul.f32 %v1681_v38, %v539_v19  ;;  %1116 = vst.msk [vmem:[%s2076_s4 + $0xc] sm:$0xf] %vm1112_vm3, %v1316_v14  ;;  %1148 = vst.msk [vmem:[%s2076_s4 + $0x8c] sm:$0xf] %vm1112_vm3, %v1348_v15  ;;  %v734_v26 = vadd.f32 %v1686_v40, %v663_v16  ;;  %v414_v30 = vpop.f32.mrb[7].mxu0  ;;  %v542_v31 = vpop.f32.mrb[7].mxu1 }
  0xe9   :  { %v766_v27 = vadd.f32 %v1686_v40, %v695_v17  ;;  %v664_v28 = vmul.f32 %v1422_v24, %v1681_v38  ;;  %v696_v29 = vmul.f32 %v1454_v25, %v1681_v38  ;;  %1114 = vst.msk [vmem:[%s2076_s4 + $0x4] sm:$0xf] %vm1112_vm3, %v1314_v20  ;;  %1146 = vst.msk [vmem:[%s2076_s4 + $0x84] sm:$0xf] %vm1112_vm3, %v1346_v21 }
  0xea   :  { %v732_v32 = vadd.f32 %v1686_v40, %v661_v22  ;;  %v764_v33 = vadd.f32 %v1686_v40, %v693_v23  ;;  %v662_v34 = vmul.f32 %v1681_v38, %v414_v30  ;;  %v694_v35 = vmul.f32 %v1681_v38, %v542_v31 }
  0xeb   :  { %v798_v36 = vmax.f32 %v734_v26, 0.0  ;;  %v830_v37 = vmax.f32 %v766_v27, 0.0  ;;  %v735_v39 = vadd.f32 %v1686_v40, %v664_v28  ;;  %v767_v41 = vadd.f32 %v1686_v40, %v696_v29 }
  0xec   :  { %v796_v42 = vmax.f32 %v732_v32, 0.0  ;;  %v828_v43 = vmax.f32 %v764_v33, 0.0  ;;  %v733_v44 = vadd.f32 %v1686_v40, %v662_v34  ;;  %v765_v45 = vadd.f32 %v1686_v40, %v694_v35 }
  0xed   :  { %v1319_v46 = vpack.c.bf16 %v798_v36, %v798_v36  ;;  %v1351_v47 = vpack.c.bf16 %v830_v37, %v830_v37  ;;  %v799_v48 = vmax.f32 %v735_v39, 0.0  ;;  %v831_v49 = vmax.f32 %v767_v41, 0.0  ;;  %v1425_v54 = vpop.f32.mrb[8].mxu0  ;;  %v1457_v55 = vpop.f32.mrb[8].mxu1 }
  0xee   :  { %v1317_v50 = vpack.c.bf16 %v796_v42, %v796_v42  ;;  %v1349_v51 = vpack.c.bf16 %v828_v43, %v828_v43  ;;  %v797_v52 = vmax.f32 %v733_v44, 0.0  ;;  %v829_v53 = vmax.f32 %v765_v45, 0.0  ;;  %v427_v60 = vpop.f32.mrb[9].mxu0  ;;  %v555_v61 = vpop.f32.mrb[9].mxu1 }
  0xef   :  { %1119 = vst.msk [vmem:[%s2076_s4 + $0x18] sm:$0xf] %vm1112_vm3, %v1319_v46  ;;  %1151 = vst.msk [vmem:[%s2076_s4 + $0x98] sm:$0xf] %vm1112_vm3, %v1351_v47  ;;  %v1320_v56 = vpack.c.bf16 %v799_v48, %v799_v48  ;;  %v1352_v57 = vpack.c.bf16 %v831_v49, %v831_v49  ;;  %v667_v58 = vmul.f32 %v1425_v54, %v1681_v38  ;;  %v1426_v2 = vpop.f32.mrb[10].mxu0  ;;  %v1458_v3 = vpop.f32.mrb[10].mxu1 }
  0xf0   :  { %v699_v59 = vmul.f32 %v1457_v55, %v1681_v38  ;;  %1117 = vst.msk [vmem:[%s2076_s4 + $0x10] sm:$0xf] %vm1112_vm3, %v1317_v50  ;;  %1149 = vst.msk [vmem:[%s2076_s4 + $0x90] sm:$0xf] %vm1112_vm3, %v1349_v51  ;;  %v1318_v62 = vpack.c.bf16 %v797_v52, %v797_v52  ;;  %v1350_v63 = vpack.c.bf16 %v829_v53, %v829_v53  ;;  %v430_v8 = vpop.f32.mrb[11].mxu0  ;;  %v558_v9 = vpop.f32.mrb[11].mxu1 }
  0xf1   :  { %v665_v0 = vmul.f32 %v1681_v38, %v427_v60  ;;  %v697_v1 = vmul.f32 %v1681_v38, %v555_v61  ;;  %1120 = vst.msk [vmem:[%s2076_s4 + $0x1c] sm:$0xf] %vm1112_vm3, %v1320_v56  ;;  %1152 = vst.msk [vmem:[%s2076_s4 + $0x9c] sm:$0xf] %vm1112_vm3, %v1352_v57  ;;  %v738_v4 = vadd.f32 %v1686_v40, %v667_v58 }
  0xf2   :  { %v770_v5 = vadd.f32 %v1686_v40, %v699_v59  ;;  %v668_v6 = vmul.f32 %v1426_v2, %v1681_v38  ;;  %v700_v7 = vmul.f32 %v1458_v3, %v1681_v38  ;;  %1118 = vst.msk [vmem:[%s2076_s4 + $0x14] sm:$0xf] %vm1112_vm3, %v1318_v62  ;;  %1150 = vst.msk [vmem:[%s2076_s4 + $0x94] sm:$0xf] %vm1112_vm3, %v1350_v63 }
  0xf3   :  { %v736_v10 = vadd.f32 %v1686_v40, %v665_v0  ;;  %v768_v11 = vadd.f32 %v1686_v40, %v697_v1  ;;  %v666_v12 = vmul.f32 %v1681_v38, %v430_v8  ;;  %v698_v13 = vmul.f32 %v1681_v38, %v558_v9 }
  0xf4   :  { %v802_v14 = vmax.f32 %v738_v4, 0.0  ;;  %v834_v15 = vmax.f32 %v770_v5, 0.0  ;;  %v739_v16 = vadd.f32 %v1686_v40, %v668_v6  ;;  %v771_v17 = vadd.f32 %v1686_v40, %v700_v7 }
  0xf5   :  { %v800_v18 = vmax.f32 %v736_v10, 0.0  ;;  %v832_v19 = vmax.f32 %v768_v11, 0.0  ;;  %v737_v20 = vadd.f32 %v1686_v40, %v666_v12  ;;  %v769_v21 = vadd.f32 %v1686_v40, %v698_v13  ;;  %v1429_v30 = vpop.f32.mrb[12].mxu0  ;;  %v1461_v31 = vpop.f32.mrb[12].mxu1 }
  0xf6   :  { %v1323_v22 = vpack.c.bf16 %v802_v14, %v802_v14  ;;  %v1355_v23 = vpack.c.bf16 %v834_v15, %v834_v15  ;;  %v803_v24 = vmax.f32 %v739_v16, 0.0  ;;  %v835_v25 = vmax.f32 %v771_v17, 0.0  ;;  %v443_v36 = vpop.f32.mrb[13].mxu0  ;;  %v571_v37 = vpop.f32.mrb[13].mxu1 }
  0xf7   :  { %v1321_v26 = vpack.c.bf16 %v800_v18, %v800_v18  ;;  %v1353_v27 = vpack.c.bf16 %v832_v19, %v832_v19  ;;  %v801_v28 = vmax.f32 %v737_v20, 0.0  ;;  %v833_v29 = vmax.f32 %v769_v21, 0.0  ;;  %v1430_v44 = vpop.f32.mrb[14].mxu0  ;;  %v1462_v45 = vpop.f32.mrb[14].mxu1 }
  0xf8   :  { %1123 = vst.msk [vmem:[%s2076_s4 + $0x28] sm:$0xf] %vm1112_vm3, %v1323_v22  ;;  %1155 = vst.msk [vmem:[%s2076_s4 + $0xa8] sm:$0xf] %vm1112_vm3, %v1355_v23  ;;  %v1324_v32 = vpack.c.bf16 %v803_v24, %v803_v24  ;;  %v1356_v33 = vpack.c.bf16 %v835_v25, %v835_v25  ;;  %v671_v34 = vmul.f32 %v1429_v30, %v1681_v38  ;;  %v446_v50 = vpop.f32.mrb[15].mxu0  ;;  %v574_v51 = vpop.f32.mrb[15].mxu1 }
  0xf9   :  { %v703_v35 = vmul.f32 %v1461_v31, %v1681_v38  ;;  %1121 = vst.msk [vmem:[%s2076_s4 + $0x20] sm:$0xf] %vm1112_vm3, %v1321_v26  ;;  %1153 = vst.msk [vmem:[%s2076_s4 + $0xa0] sm:$0xf] %vm1112_vm3, %v1353_v27  ;;  %v1322_v39 = vpack.c.bf16 %v801_v28, %v801_v28  ;;  %v1354_v41 = vpack.c.bf16 %v833_v29, %v833_v29 }
  0xfa   :  { %v669_v42 = vmul.f32 %v1681_v38, %v443_v36  ;;  %v701_v43 = vmul.f32 %v1681_v38, %v571_v37  ;;  %1124 = vst.msk [vmem:[%s2076_s4 + $0x2c] sm:$0xf] %vm1112_vm3, %v1324_v32  ;;  %1156 = vst.msk [vmem:[%s2076_s4 + $0xac] sm:$0xf] %vm1112_vm3, %v1356_v33  ;;  %v742_v46 = vadd.f32 %v1686_v40, %v671_v34 }
  0xfb   :  { %v774_v47 = vadd.f32 %v1686_v40, %v703_v35  ;;  %v672_v48 = vmul.f32 %v1430_v44, %v1681_v38  ;;  %v704_v49 = vmul.f32 %v1462_v45, %v1681_v38  ;;  %1122 = vst.msk [vmem:[%s2076_s4 + $0x24] sm:$0xf] %vm1112_vm3, %v1322_v39  ;;  %1154 = vst.msk [vmem:[%s2076_s4 + $0xa4] sm:$0xf] %vm1112_vm3, %v1354_v41 }
  0xfc   :  { %v740_v52 = vadd.f32 %v1686_v40, %v669_v42  ;;  %v772_v53 = vadd.f32 %v1686_v40, %v701_v43  ;;  %v670_v54 = vmul.f32 %v1681_v38, %v446_v50  ;;  %v702_v55 = vmul.f32 %v1681_v38, %v574_v51 }
  0xfd   :  { %v806_v56 = vmax.f32 %v742_v46, 0.0  ;;  %v838_v57 = vmax.f32 %v774_v47, 0.0  ;;  %v743_v58 = vadd.f32 %v1686_v40, %v672_v48  ;;  %v775_v59 = vadd.f32 %v1686_v40, %v704_v49  ;;  %v1433_v8 = vpop.f32.mrb[16].mxu0  ;;  %v1465_v9 = vpop.f32.mrb[16].mxu1 }
  0xfe   :  { %v804_v60 = vmax.f32 %v740_v52, 0.0  ;;  %v836_v61 = vmax.f32 %v772_v53, 0.0  ;;  %v741_v62 = vadd.f32 %v1686_v40, %v670_v54  ;;  %v773_v63 = vadd.f32 %v1686_v40, %v702_v55  ;;  %v459_v14 = vpop.f32.mrb[17].mxu0  ;;  %v587_v15 = vpop.f32.mrb[17].mxu1 }
  0xff   :  { %v1327_v0 = vpack.c.bf16 %v806_v56, %v806_v56  ;;  %v1359_v1 = vpack.c.bf16 %v838_v57, %v838_v57  ;;  %v807_v2 = vmax.f32 %v743_v58, 0.0  ;;  %v839_v3 = vmax.f32 %v775_v59, 0.0  ;;  %v1434_v20 = vpop.f32.mrb[18].mxu0  ;;  %v1466_v21 = vpop.f32.mrb[18].mxu1 }
 0x100   :  { %v1325_v4 = vpack.c.bf16 %v804_v60, %v804_v60  ;;  %v1357_v5 = vpack.c.bf16 %v836_v61, %v836_v61  ;;  %v805_v6 = vmax.f32 %v741_v62, 0.0  ;;  %v837_v7 = vmax.f32 %v773_v63, 0.0  ;;  %v462_v26 = vpop.f32.mrb[19].mxu0  ;;  %v590_v27 = vpop.f32.mrb[19].mxu1 }
 0x101   :  { %1127 = vst.msk [vmem:[%s2076_s4 + $0x38] sm:$0xf] %vm1112_vm3, %v1327_v0  ;;  %1159 = vst.msk [vmem:[%s2076_s4 + $0xb8] sm:$0xf] %vm1112_vm3, %v1359_v1  ;;  %v1328_v10 = vpack.c.bf16 %v807_v2, %v807_v2  ;;  %v1360_v11 = vpack.c.bf16 %v839_v3, %v839_v3  ;;  %v675_v12 = vmul.f32 %v1433_v8, %v1681_v38 }
 0x102   :  { %v707_v13 = vmul.f32 %v1465_v9, %v1681_v38  ;;  %1125 = vst.msk [vmem:[%s2076_s4 + $0x30] sm:$0xf] %vm1112_vm3, %v1325_v4  ;;  %1157 = vst.msk [vmem:[%s2076_s4 + $0xb0] sm:$0xf] %vm1112_vm3, %v1357_v5  ;;  %v1326_v16 = vpack.c.bf16 %v805_v6, %v805_v6  ;;  %v1358_v17 = vpack.c.bf16 %v837_v7, %v837_v7 }
 0x103   :  { %v673_v18 = vmul.f32 %v1681_v38, %v459_v14  ;;  %v705_v19 = vmul.f32 %v1681_v38, %v587_v15  ;;  %1128 = vst.msk [vmem:[%s2076_s4 + $0x3c] sm:$0xf] %vm1112_vm3, %v1328_v10  ;;  %1160 = vst.msk [vmem:[%s2076_s4 + $0xbc] sm:$0xf] %vm1112_vm3, %v1360_v11  ;;  %v746_v22 = vadd.f32 %v1686_v40, %v675_v12 }
 0x104   :  { %v778_v23 = vadd.f32 %v1686_v40, %v707_v13  ;;  %v676_v24 = vmul.f32 %v1434_v20, %v1681_v38  ;;  %v708_v25 = vmul.f32 %v1466_v21, %v1681_v38  ;;  %1126 = vst.msk [vmem:[%s2076_s4 + $0x34] sm:$0xf] %vm1112_vm3, %v1326_v16  ;;  %1158 = vst.msk [vmem:[%s2076_s4 + $0xb4] sm:$0xf] %vm1112_vm3, %v1358_v17 }
 0x105   :  { %v744_v28 = vadd.f32 %v1686_v40, %v673_v18  ;;  %v776_v29 = vadd.f32 %v1686_v40, %v705_v19  ;;  %v674_v30 = vmul.f32 %v1681_v38, %v462_v26  ;;  %v706_v31 = vmul.f32 %v1681_v38, %v590_v27  ;;  %v1437_v50 = vpop.f32.mrb[20].mxu0  ;;  %v1469_v51 = vpop.f32.mrb[20].mxu1 }
 0x106   :  { %v810_v32 = vmax.f32 %v746_v22, 0.0  ;;  %v842_v33 = vmax.f32 %v778_v23, 0.0  ;;  %v747_v34 = vadd.f32 %v1686_v40, %v676_v24  ;;  %v779_v35 = vadd.f32 %v1686_v40, %v708_v25  ;;  %v475_v56 = vpop.f32.mrb[21].mxu0  ;;  %v603_v57 = vpop.f32.mrb[21].mxu1 }
 0x107   :  { %v808_v36 = vmax.f32 %v744_v28, 0.0  ;;  %v840_v37 = vmax.f32 %v776_v29, 0.0  ;;  %v745_v39 = vadd.f32 %v1686_v40, %v674_v30  ;;  %v777_v41 = vadd.f32 %v1686_v40, %v706_v31  ;;  %v1438_v62 = vpop.f32.mrb[22].mxu0  ;;  %v1470_v63 = vpop.f32.mrb[22].mxu1 }
 0x108   :  { %v1331_v42 = vpack.c.bf16 %v810_v32, %v810_v32  ;;  %v1363_v43 = vpack.c.bf16 %v842_v33, %v842_v33  ;;  %v811_v44 = vmax.f32 %v747_v34, 0.0  ;;  %v843_v45 = vmax.f32 %v779_v35, 0.0  ;;  %v478_v4 = vpop.f32.mrb[23].mxu0  ;;  %v606_v5 = vpop.f32.mrb[23].mxu1 }
 0x109   :  { %v1329_v46 = vpack.c.bf16 %v808_v36, %v808_v36  ;;  %v1361_v47 = vpack.c.bf16 %v840_v37, %v840_v37  ;;  %v809_v48 = vmax.f32 %v745_v39, 0.0  ;;  %v841_v49 = vmax.f32 %v777_v41, 0.0 }
 0x10a   :  { %1131 = vst.msk [vmem:[%s2076_s4 + $0x48] sm:$0xf] %vm1112_vm3, %v1331_v42  ;;  %1163 = vst.msk [vmem:[%s2076_s4 + $0xc8] sm:$0xf] %vm1112_vm3, %v1363_v43  ;;  %v1332_v52 = vpack.c.bf16 %v811_v44, %v811_v44  ;;  %v1364_v53 = vpack.c.bf16 %v843_v45, %v843_v45  ;;  %v679_v54 = vmul.f32 %v1437_v50, %v1681_v38 }
 0x10b   :  { %v711_v55 = vmul.f32 %v1469_v51, %v1681_v38  ;;  %1129 = vst.msk [vmem:[%s2076_s4 + $0x40] sm:$0xf] %vm1112_vm3, %v1329_v46  ;;  %1161 = vst.msk [vmem:[%s2076_s4 + $0xc0] sm:$0xf] %vm1112_vm3, %v1361_v47  ;;  %v1330_v58 = vpack.c.bf16 %v809_v48, %v809_v48  ;;  %v1362_v59 = vpack.c.bf16 %v841_v49, %v841_v49 }
 0x10c   :  { %v677_v60 = vmul.f32 %v1681_v38, %v475_v56  ;;  %v709_v61 = vmul.f32 %v1681_v38, %v603_v57  ;;  %1132 = vst.msk [vmem:[%s2076_s4 + $0x4c] sm:$0xf] %vm1112_vm3, %v1332_v52  ;;  %1164 = vst.msk [vmem:[%s2076_s4 + $0xcc] sm:$0xf] %vm1112_vm3, %v1364_v53  ;;  %v750_v0 = vadd.f32 %v1686_v40, %v679_v54 }
 0x10d   :  { %v782_v1 = vadd.f32 %v1686_v40, %v711_v55  ;;  %v680_v2 = vmul.f32 %v1438_v62, %v1681_v38  ;;  %v712_v3 = vmul.f32 %v1470_v63, %v1681_v38  ;;  %1130 = vst.msk [vmem:[%s2076_s4 + $0x44] sm:$0xf] %vm1112_vm3, %v1330_v58  ;;  %1162 = vst.msk [vmem:[%s2076_s4 + $0xc4] sm:$0xf] %vm1112_vm3, %v1362_v59  ;;  %v1441_v26 = vpop.f32.mrb[24].mxu0  ;;  %v1473_v27 = vpop.f32.mrb[24].mxu1 }
 0x10e   :  { %v748_v6 = vadd.f32 %v1686_v40, %v677_v60  ;;  %v780_v7 = vadd.f32 %v1686_v40, %v709_v61  ;;  %v678_v8 = vmul.f32 %v1681_v38, %v478_v4  ;;  %v710_v9 = vmul.f32 %v1681_v38, %v606_v5  ;;  %v491_v32 = vpop.f32.mrb[25].mxu0  ;;  %v619_v33 = vpop.f32.mrb[25].mxu1 }
 0x10f   :  { %v814_v10 = vmax.f32 %v750_v0, 0.0  ;;  %v846_v11 = vmax.f32 %v782_v1, 0.0  ;;  %v751_v12 = vadd.f32 %v1686_v40, %v680_v2  ;;  %v783_v13 = vadd.f32 %v1686_v40, %v712_v3  ;;  %v1442_v39 = vpop.f32.mrb[26].mxu0  ;;  %v1474_v41 = vpop.f32.mrb[26].mxu1 }
 0x110   :  { %v812_v14 = vmax.f32 %v748_v6, 0.0  ;;  %v844_v15 = vmax.f32 %v780_v7, 0.0  ;;  %v749_v16 = vadd.f32 %v1686_v40, %v678_v8  ;;  %v781_v17 = vadd.f32 %v1686_v40, %v710_v9  ;;  %v494_v46 = vpop.f32.mrb[27].mxu0  ;;  %v622_v47 = vpop.f32.mrb[27].mxu1 }
 0x111   :  { %v1335_v18 = vpack.c.bf16 %v814_v10, %v814_v10  ;;  %v1367_v19 = vpack.c.bf16 %v846_v11, %v846_v11  ;;  %v815_v20 = vmax.f32 %v751_v12, 0.0  ;;  %v847_v21 = vmax.f32 %v783_v13, 0.0 }
 0x112   :  { %v1333_v22 = vpack.c.bf16 %v812_v14, %v812_v14  ;;  %v1365_v23 = vpack.c.bf16 %v844_v15, %v844_v15  ;;  %v813_v24 = vmax.f32 %v749_v16, 0.0  ;;  %v845_v25 = vmax.f32 %v781_v17, 0.0 }
 0x113   :  { %1135 = vst.msk [vmem:[%s2076_s4 + $0x58] sm:$0xf] %vm1112_vm3, %v1335_v18  ;;  %1167 = vst.msk [vmem:[%s2076_s4 + $0xd8] sm:$0xf] %vm1112_vm3, %v1367_v19  ;;  %v1336_v28 = vpack.c.bf16 %v815_v20, %v815_v20  ;;  %v1368_v29 = vpack.c.bf16 %v847_v21, %v847_v21  ;;  %v683_v30 = vmul.f32 %v1441_v26, %v1681_v38 }
 0x114   :  { %v715_v31 = vmul.f32 %v1473_v27, %v1681_v38  ;;  %1133 = vst.msk [vmem:[%s2076_s4 + $0x50] sm:$0xf] %vm1112_vm3, %v1333_v22  ;;  %1165 = vst.msk [vmem:[%s2076_s4 + $0xd0] sm:$0xf] %vm1112_vm3, %v1365_v23  ;;  %v1334_v34 = vpack.c.bf16 %v813_v24, %v813_v24  ;;  %v1366_v35 = vpack.c.bf16 %v845_v25, %v845_v25 }
 0x115   :  { %v681_v36 = vmul.f32 %v1681_v38, %v491_v32  ;;  %v713_v37 = vmul.f32 %v1681_v38, %v619_v33  ;;  %1136 = vst.msk [vmem:[%s2076_s4 + $0x5c] sm:$0xf] %vm1112_vm3, %v1336_v28  ;;  %1168 = vst.msk [vmem:[%s2076_s4 + $0xdc] sm:$0xf] %vm1112_vm3, %v1368_v29  ;;  %v754_v42 = vadd.f32 %v1686_v40, %v683_v30  ;;  %v1445_v4 = vpop.f32.mrb[28].mxu0  ;;  %v1477_v5 = vpop.f32.mrb[28].mxu1 }
 0x116   :  { %v786_v43 = vadd.f32 %v1686_v40, %v715_v31  ;;  %v684_v44 = vmul.f32 %v1442_v39, %v1681_v38  ;;  %v716_v45 = vmul.f32 %v1474_v41, %v1681_v38  ;;  %1134 = vst.msk [vmem:[%s2076_s4 + $0x54] sm:$0xf] %vm1112_vm3, %v1334_v34  ;;  %1166 = vst.msk [vmem:[%s2076_s4 + $0xd4] sm:$0xf] %vm1112_vm3, %v1366_v35  ;;  %v507_v10 = vpop.f32.mrb[29].mxu0  ;;  %v635_v11 = vpop.f32.mrb[29].mxu1 }
 0x117   :  { %v752_v48 = vadd.f32 %v1686_v40, %v681_v36  ;;  %v784_v49 = vadd.f32 %v1686_v40, %v713_v37  ;;  %v682_v50 = vmul.f32 %v1681_v38, %v494_v46  ;;  %v714_v51 = vmul.f32 %v1681_v38, %v622_v47  ;;  %v1446_v16 = vpop.f32.mrb[30].mxu0  ;;  %v1478_v17 = vpop.f32.mrb[30].mxu1 }
 0x118   :  { %v818_v52 = vmax.f32 %v754_v42, 0.0  ;;  %v850_v53 = vmax.f32 %v786_v43, 0.0  ;;  %v755_v54 = vadd.f32 %v1686_v40, %v684_v44  ;;  %v787_v55 = vadd.f32 %v1686_v40, %v716_v45  ;;  %v510_v22 = vpop.f32.mrb[31].mxu0  ;;  %v638_v23 = vpop.f32.mrb[31].mxu1 }
 0x119   :  { %v816_v56 = vmax.f32 %v752_v48, 0.0  ;;  %v848_v57 = vmax.f32 %v784_v49, 0.0  ;;  %v753_v58 = vadd.f32 %v1686_v40, %v682_v50  ;;  %v785_v59 = vadd.f32 %v1686_v40, %v714_v51 }
 0x11a   :  { %v1339_v60 = vpack.c.bf16 %v818_v52, %v818_v52  ;;  %v1371_v61 = vpack.c.bf16 %v850_v53, %v850_v53  ;;  %v819_v62 = vmax.f32 %v755_v54, 0.0  ;;  %v851_v63 = vmax.f32 %v787_v55, 0.0 }
 0x11b   :  { %v1337_v0 = vpack.c.bf16 %v816_v56, %v816_v56  ;;  %v1369_v1 = vpack.c.bf16 %v848_v57, %v848_v57  ;;  %v817_v2 = vmax.f32 %v753_v58, 0.0  ;;  %v849_v3 = vmax.f32 %v785_v59, 0.0 }
 0x11c   :  { %1139 = vst.msk [vmem:[%s2076_s4 + $0x68] sm:$0xf] %vm1112_vm3, %v1339_v60  ;;  %1171 = vst.msk [vmem:[%s2076_s4 + $0xe8] sm:$0xf] %vm1112_vm3, %v1371_v61  ;;  %v1340_v6 = vpack.c.bf16 %v819_v62, %v819_v62  ;;  %v1372_v7 = vpack.c.bf16 %v851_v63, %v851_v63  ;;  %v687_v8 = vmul.f32 %v1445_v4, %v1681_v38 }
 0x11d   :  { %v719_v9 = vmul.f32 %v1477_v5, %v1681_v38  ;;  %1137 = vst.msk [vmem:[%s2076_s4 + $0x60] sm:$0xf] %vm1112_vm3, %v1337_v0  ;;  %1169 = vst.msk [vmem:[%s2076_s4 + $0xe0] sm:$0xf] %vm1112_vm3, %v1369_v1  ;;  %v1338_v12 = vpack.c.bf16 %v817_v2, %v817_v2  ;;  %v1370_v13 = vpack.c.bf16 %v849_v3, %v849_v3 }
 0x11e   :  { %v685_v14 = vmul.f32 %v1681_v38, %v507_v10  ;;  %v717_v15 = vmul.f32 %v1681_v38, %v635_v11  ;;  %1140 = vst.msk [vmem:[%s2076_s4 + $0x6c] sm:$0xf] %vm1112_vm3, %v1340_v6  ;;  %1172 = vst.msk [vmem:[%s2076_s4 + $0xec] sm:$0xf] %vm1112_vm3, %v1372_v7  ;;  %v758_v18 = vadd.f32 %v1686_v40, %v687_v8 }
 0x11f   :  { %v790_v19 = vadd.f32 %v1686_v40, %v719_v9  ;;  %v688_v20 = vmul.f32 %v1446_v16, %v1681_v38  ;;  %v720_v21 = vmul.f32 %v1478_v17, %v1681_v38  ;;  %1138 = vst.msk [vmem:[%s2076_s4 + $0x64] sm:$0xf] %vm1112_vm3, %v1338_v12  ;;  %1170 = vst.msk [vmem:[%s2076_s4 + $0xe4] sm:$0xf] %vm1112_vm3, %v1370_v13 }
 0x120   :  { %v756_v24 = vadd.f32 %v1686_v40, %v685_v14  ;;  %v788_v25 = vadd.f32 %v1686_v40, %v717_v15  ;;  %v686_v26 = vmul.f32 %v1681_v38, %v510_v22  ;;  %v718_v27 = vmul.f32 %v1681_v38, %v638_v23 }
 0x121   :  { %v822_v28 = vmax.f32 %v758_v18, 0.0  ;;  %v854_v29 = vmax.f32 %v790_v19, 0.0  ;;  %v759_v30 = vadd.f32 %v1686_v40, %v688_v20  ;;  %v791_v31 = vadd.f32 %v1686_v40, %v720_v21 }
 0x122   :  { %v820_v32 = vmax.f32 %v756_v24, 0.0  ;;  %v852_v33 = vmax.f32 %v788_v25, 0.0  ;;  %v757_v34 = vadd.f32 %v1686_v40, %v686_v26  ;;  %v789_v35 = vadd.f32 %v1686_v40, %v718_v27 }
 0x123   :  { %v1343_v36 = vpack.c.bf16 %v822_v28, %v822_v28  ;;  %v1375_v37 = vpack.c.bf16 %v854_v29, %v854_v29  ;;  %v823_v39 = vmax.f32 %v759_v30, 0.0  ;;  %v855_v41 = vmax.f32 %v791_v31, 0.0 }
 0x124   :  { %v1341_v42 = vpack.c.bf16 %v820_v32, %v820_v32  ;;  %v1373_v43 = vpack.c.bf16 %v852_v33, %v852_v33  ;;  %v821_v44 = vmax.f32 %v757_v34, 0.0  ;;  %v853_v38 = vmax.f32 %v789_v35, 0.0 }
 0x125   :  { %1143 = vst.msk [vmem:[%s2076_s4 + $0x78] sm:$0xf] %vm1112_vm3, %v1343_v36  ;;  %1175 = vst.msk [vmem:[%s2076_s4 + $0xf8] sm:$0xf] %vm1112_vm3, %v1375_v37  ;;  %v1344_v45 = vpack.c.bf16 %v823_v39, %v823_v39  ;;  %v1376_v40 = vpack.c.bf16 %v855_v41, %v855_v41 }
 0x126   :  { %1141 = vst.msk [vmem:[%s2076_s4 + $0x70] sm:$0xf] %vm1112_vm3, %v1341_v42  ;;  %1173 = vst.msk [vmem:[%s2076_s4 + $0xf0] sm:$0xf] %vm1112_vm3, %v1373_v43  ;;  %v1342_v46 = vpack.c.bf16 %v821_v44, %v821_v44  ;;  %v1374_v47 = vpack.c.bf16 %v853_v38, %v853_v38 }
 0x127   :  { %1144 = vst.msk [vmem:[%s2076_s4 + $0x7c] sm:$0xf] %vm1112_vm3, %v1344_v45  ;;  %1176 = vst.msk [vmem:[%s2076_s4 + $0xfc] sm:$0xf] %vm1112_vm3, %v1376_v40 }
 0x128   :  { %1142 = vst.msk [vmem:[%s2076_s4 + $0x74] sm:$0xf] %vm1112_vm3, %v1342_v46  ;;  %1174 = vst.msk [vmem:[%s2076_s4 + $0xf4] sm:$0xf] %vm1112_vm3, %v1374_v47 }

// kernel: feature_extractor_forward.52
= control target key start
LH: loop header
LB: loop body
LE: loop exit
PB: predicated region body
PF: predicated region fallthrough
CT: control target
= control target key end

     0   :  { %vm314_vm0 = vcmask 261120   ;;  %vm659_vm1 = vcmask 257024   ;;  %s1201_s1 = inlined_call_operand.vmem [shape: bf16[288,32], index: 1, kind: input, shape index: {}]   ;;  %s1202_s0 = inlined_call_operand.vmem [shape: bf16[128,288], index: 0, kind: input, shape index: {}]   ;;  %s1203_s2 = inlined_call_operand.vmem [shape: f32[1,32], index: 2, kind: input, shape index: {}]   ;;  %s1204_s3 = inlined_call_operand.vmem [shape: f32[1,32], index: 3, kind: input, shape index: {}]   ;;  %s1205_s4 = inlined_call_operand.vmem [shape: bf16[128,32], index: 4, kind: output, shape index: {}]  }
   0x1   :  { %v874_v0 = vld [vmem:[%s1201_s1 + $0x40] sm:$0xff]   ;;  %v876_v2 = vld [vmem:[%s1201_s1 + $0x48] sm:$0xff]   ;;  %v878_v4 = vld [vmem:[%s1201_s1 + $0x50] sm:$0xff]  }
   0x2   :  { %v875_v1 = vld [vmem:[%s1201_s1] sm:$0xff]   ;;  %764 = vmatprep.subr.bf16.mxu0 %v874_v0  ;;  %858 = vmatprep.subr.bf16.mxu1 %v874_v0  ;;  %v877_v3 = vld [vmem:[%s1201_s1 + $0x8] sm:$0xff]   ;;  %v879_v5 = vld [vmem:[%s1201_s1 + $0x10] sm:$0xff]  }
   0x3   :  { %765 = vmatpush3.bf16.msra.mxu0 %v875_v1  ;;  %866 = vmatpush3.bf16.msra.mxu1 %v875_v1  ;;  %v880_v6 = vld [vmem:[%s1201_s1 + $0x58] sm:$0xff]   ;;  %v882_v8 = vld [vmem:[%s1201_s1 + $0x60] sm:$0xff]   ;;  %v884_v10 = vld [vmem:[%s1201_s1 + $0x68] sm:$0xff]  }
   0x4   :  { %766 = vmatprep.subr.bf16.mxu0 %v876_v2  ;;  %859 = vmatprep.subr.bf16.mxu1 %v876_v2  ;;  %v881_v7 = vld [vmem:[%s1201_s1 + $0x18] sm:$0xff]   ;;  %v883_v9 = vld [vmem:[%s1201_s1 + $0x20] sm:$0xff]   ;;  %v885_v13 = vld [vmem:[%s1201_s1 + $0x28] sm:$0xff]  }
   0x5   :  { %v892_v11 = vld [vmem:[%s1202_s0 + $0x4] ss:$12 sps:$4 sm:$0xff]   ;;  %v895_v12 = vld [vmem:[%s1202_s0 + $0x94] ss:$12 sps:$4 sm:$0xff]   ;;  %v888_v16 = vld [vmem:[%s1201_s1 + $0x78] sm:$0xff]  }
   0x6   :  { %v886_v14 = vld [vmem:[%s1201_s1 + $0x70] sm:$0xff]   ;;  %371 = vmatprep.mubr.bf16.mxu0 %v892_v11  ;;  %419 = vmatprep.mubr.bf16.mxu1 %v895_v12  ;;  %v889_v17 = vld [vmem:[%s1201_s1 + $0x38] sm:$0xff]   ;;  %v890_v18 = vld [vmem:[%s1202_s0] ss:$12 sps:$4 sm:$0xff]  }
   0x7   :  { %767 = vmatpush3.bf16.msra.mxu0 %v877_v3  ;;  %867 = vmatpush3.bf16.msra.mxu1 %v877_v3  ;;  %v887_v15 = vld [vmem:[%s1201_s1 + $0x30] sm:$0xff]   ;;  %v896_v19 = vld [vmem:[%s1201_s1 + $0x80] sm:$0xff]   ;;  %v897_v21 = vld [vmem:[%s1202_s0 + $0x1c] ss:$12 sps:$4 sm:$0xff]  }
   0x8   :  { %768 = vmatprep.subr.bf16.mxu0 %v878_v4  ;;  %860 = vmatprep.subr.bf16.mxu1 %v878_v4  ;;  %v893_v20 = vld [vmem:[%s1202_s0 + $0x90] ss:$12 sps:$4 sm:$0xff]   ;;  %v899_v22 = vld [vmem:[%s1202_s0 + $0xac] ss:$12 sps:$4 sm:$0xff]   ;;  %v902_v25 = vld [vmem:[%s1202_s0 + $0xa8] ss:$12 sps:$4 sm:$0xff]  }
   0x9   :  { %v903_v23 = vld [vmem:[%s1201_s1 + $0x88] sm:$0xff]   ;;  %v901_v24 = vld [vmem:[%s1202_s0 + $0x18] ss:$12 sps:$4 sm:$0xff]   ;;  %v904_v26 = vld [vmem:[%s1202_s0 + $0x34] ss:$12 sps:$4 sm:$0xff]  }
   0xa   :  { %v906_v27 = vld [vmem:[%s1202_s0 + $0x8] ss:$12 sps:$4 sm:$0xff]   ;;  %v907_v28 = vld [vmem:[%s1202_s0 + $0x30] ss:$12 sps:$4 sm:$0xff]   ;;  %v908_v29 = vld [vmem:[%s1202_s0 + $0x20] ss:$12 sps:$4 sm:$0xff]  }
   0xb   :  { %769 = vmatpush3.bf16.msra.mxu0 %v879_v5  ;;  %868 = vmatpush3.bf16.msra.mxu1 %v879_v5  ;;  %v909_v30 = vld [vmem:[%s1202_s0 + $0x4c] ss:$12 sps:$4 sm:$0xff]   ;;  %v912_v32 = vld [vmem:[%s1202_s0 + $0x48] ss:$12 sps:$4 sm:$0xff]   ;;  %v913_v33 = vld [vmem:[%s1202_s0 + $0x50] ss:$12 sps:$4 sm:$0xff]  }
   0xc   :  { %770 = vmatprep.subr.bf16.mxu0 %v880_v6  ;;  %861 = vmatprep.subr.bf16.mxu1 %v880_v6  ;;  %v911_v31 = vld [vmem:[%s1202_s0 + $0x38] ss:$12 sps:$4 sm:$0xff]   ;;  %v916_v35 = vld [vmem:[%s1202_s0 + $0x68] ss:$12 sps:$4 sm:$0xff]   ;;  %v917_v36 = vld [vmem:[%s1202_s0 + $0x60] ss:$12 sps:$4 sm:$0xff]  }
   0xd   :  { %v914_v34 = vld [vmem:[%s1202_s0 + $0x64] ss:$12 sps:$4 sm:$0xff]   ;;  %v918_v37 = vld [vmem:[%s1202_s0 + $0x80] ss:$12 sps:$4 sm:$0xff]   ;;  %v919_v38 = vld [vmem:[%s1202_s0 + $0x7c] ss:$12 sps:$4 sm:$0xff]  }
   0xe   :  { %v921_v39 = vld [vmem:[%s1202_s0 + $0x98] ss:$12 sps:$4 sm:$0xff]   ;;  %v923_v41 = vld [vmem:[%s1202_s0 + $0xb0] ss:$12 sps:$4 sm:$0xff]   ;;  %v1094_v4 = vld [vmem:[%s1203_s2] ss:$0 sm:$0xff] }
   0xf   :  { %771 = vmatpush3.bf16.msra.mxu0 %v881_v7  ;;  %869 = vmatpush3.bf16.msra.mxu1 %v881_v7  ;;  %v922_v40 = vld [vmem:[%s1202_s0 + $0x78] ss:$12 sps:$4 sm:$0xff]  }
  0x10   :  { %772 = vmatprep.subr.bf16.mxu0 %v882_v8  ;;  %862 = vmatprep.subr.bf16.mxu1 %v882_v8  ;;  %v1099_v8 = vld [vmem:[%s1204_s3] ss:$0 sm:$0xff] }
  0x13   :  { %773 = vmatpush3.bf16.msra.mxu0 %v883_v9  ;;  %870 = vmatpush3.bf16.msra.mxu1 %v883_v9 }
  0x14   :  { %774 = vmatprep.subr.bf16.mxu0 %v884_v10  ;;  %863 = vmatprep.subr.bf16.mxu1 %v884_v10 }
  0x17   :  { %775 = vmatpush3.bf16.msra.mxu0 %v885_v13  ;;  %871 = vmatpush3.bf16.msra.mxu1 %v885_v13 }
  0x18   :  { %776 = vmatprep.subr.bf16.mxu0 %v886_v14  ;;  %864 = vmatprep.subr.bf16.mxu1 %v886_v14 }
  0x1b   :  { %777 = vmatpush3.bf16.msra.mxu0 %v887_v15  ;;  %872 = vmatpush3.bf16.msra.mxu1 %v887_v15 }
  0x1c   :  { %778 = vmatprep.subr.bf16.mxu0 %v888_v16  ;;  %865 = vmatprep.subr.bf16.mxu1 %v888_v16 }
  0x1f   :  { %779 = vmatpush3.bf16.msra.mxu0 %v889_v17  ;;  %873 = vmatpush3.bf16.msra.mxu1 %v889_v17 }
  0x20   :  { %838 = vmatprep.subr.bf16.mxu1 %v896_v19 }
  0x22   :  { %372 = vmatmul.mubr.bf16.vlgmr.msra.gmra.mrb[0].mxu0 %v890_v18  ;;  %420 = vmatmul.mubr.bf16.vlgmr.msra.gmra.mrb[0].mxu1 %v893_v20 }
  0x23   :  { %839 = vmatpush3.bf16.msra.mxu1 %v896_v19  ;;  %379 = vmatprep.mubr.bf16.mxu0 %v897_v21 }
  0x24   :  { %427 = vmatprep.mubr.bf16.mxu1 %v899_v22  ;;  %840 = vmatprep.subr.bf16.mxu1 %v903_v23 }
  0x27   :  { %841 = vmatpush3.bf16.msra.mxu1 %v903_v23 }
  0x2a   :  { %380 = vmatmul.mubr.bf16.gmra.mrb[4].mxu0 %v901_v24  ;;  %428 = vmatmul.mubr.bf16.gmra.mrb[4].mxu1 %v902_v25 }
  0x2b   :  { %387 = vmatprep.mubr.bf16.mxu0 %v904_v26  ;;  %842 = vmatprep.mubr.msk.bf16.mxu1 %vm314_vm0, %v906_v27 }
  0x32   :  { %388 = vmatmul.mubr.bf16.gmra.mrb[8].mxu0 %v907_v28  ;;  %843 = vmatmul.mubr.msk.bf16.vlgmr.msra.gmra.mrb[8].mxu1 %vm314_vm0, %v908_v29 }
  0x33   :  { %395 = vmatprep.mubr.bf16.mxu0 %v909_v30  ;;  %846 = vmatprep.mubr.msk.bf16.mxu1 %vm314_vm0, %v911_v31 }
  0x3a   :  { %396 = vmatmul.mubr.bf16.gmra.mrb[12].mxu0 %v912_v32  ;;  %847 = vmatmul.mubr.msk.bf16.gmra.mrb[12].mxu1 %vm314_vm0, %v913_v33 }
  0x3b   :  { %403 = vmatprep.mubr.bf16.mxu0 %v914_v34  ;;  %850 = vmatprep.mubr.msk.bf16.mxu1 %vm314_vm0, %v916_v35 }
  0x42   :  { %404 = vmatmul.mubr.bf16.gmra.mrb[16].mxu0 %v917_v36  ;;  %851 = vmatmul.mubr.msk.bf16.gmra.mrb[16].mxu1 %vm314_vm0, %v918_v37 }
  0x43   :  { %411 = vmatprep.mubr.bf16.mxu0 %v919_v38  ;;  %854 = vmatprep.mubr.msk.bf16.mxu1 %vm314_vm0, %v921_v39 }
  0x4a   :  { %412 = vmatmul.mubr.bf16.gmra.mrb[20].mxu0 %v922_v40  ;;  %855 = vmatmul.mubr.msk.bf16.gmra.mrb[20].mxu1 %vm314_vm0, %v923_v41 }
  0xf5   :  { %v780_v42 = vpop.f32.mrb[0].mxu0  ;;  %v816_v43 = vpop.f32.mrb[0].mxu1 }
  0xf6   :  { %v781_v44 = vpop.f32.mrb[1].mxu0  ;;  %v817_v45 = vpop.f32.mrb[1].mxu1 }
  0xf7   :  { %v782_v46 = vadd.f32 %v781_v44, %v780_v42  ;;  %v1083_v47 = vadd.f32 %v817_v45, %v816_v43  ;;  %v783_v48 = vpop.f32.mrb[2].mxu0  ;;  %v819_v49 = vpop.f32.mrb[2].mxu1 }
  0xf8   :  { %v784_v50 = vpop.f32.mrb[3].mxu0  ;;  %v820_v51 = vpop.f32.mrb[3].mxu1 }
  0xf9   :  { %v785_v52 = vadd.f32 %v784_v50, %v783_v48  ;;  %v1085_v53 = vadd.f32 %v820_v51, %v819_v49 }
  0xfd   :  { %v786_v54 = vpop.f32.mrb[4].mxu0  ;;  %v822_v55 = vpop.f32.mrb[4].mxu1 }
  0xfe   :  { %v787_v56 = vpop.f32.mrb[5].mxu0  ;;  %v823_v57 = vpop.f32.mrb[5].mxu1 }
  0xff   :  { %v788_v58 = vadd.f32 %v787_v56, %v786_v54  ;;  %v1087_v59 = vadd.f32 %v823_v57, %v822_v55  ;;  %v789_v60 = vpop.f32.mrb[6].mxu0  ;;  %v825_v61 = vpop.f32.mrb[6].mxu1 }
 0x100   :  { %v790_v62 = vpop.f32.mrb[7].mxu0  ;;  %v826_v63 = vpop.f32.mrb[7].mxu1 }
 0x101   :  { %v791_v0 = vadd.f32 %v790_v62, %v789_v60  ;;  %v1089_v1 = vadd.f32 %v826_v63, %v825_v61 }
 0x105   :  { %v792_v2 = vpop.f32.mrb[8].mxu0  ;;  %v844_v3 = vpop.f32.mrb[8].mxu1 }
 0x106   :  { %v479_v5 = vadd.f32 %v844_v3, %v788_v58  ;;  %v793_v6 = vpop.f32.mrb[9].mxu0  ;;  %v470_v7 = vpop.f32.mrb[9].mxu1 }
 0x107   :  { %v794_v9 = vadd.f32 %v793_v6, %v792_v2  ;;  %v471_v10 = vadd.f32 %v782_v46, %v470_v7  ;;  %v795_v11 = vpop.f32.mrb[10].mxu0  ;;  %v845_v12 = vpop.f32.mrb[10].mxu1 }
 0x108   :  { %v542_v13 = vmul.f32 %v1094_v4, %v479_v5  ;;  %v482_v14 = vadd.f32 %v845_v12, %v791_v0  ;;  %v796_v15 = vpop.f32.mrb[11].mxu0  ;;  %v473_v16 = vpop.f32.mrb[11].mxu1 }
 0x109   :  { %v540_v17 = vmul.f32 %v1094_v4, %v471_v10  ;;  %v797_v18 = vadd.f32 %v796_v15, %v795_v11  ;;  %v474_v19 = vadd.f32 %v785_v52, %v473_v16 }
 0x10a   :  { %v565_v20 = vadd.f32 %v1099_v8, %v542_v13  ;;  %v543_v21 = vmul.f32 %v1094_v4, %v482_v14 }
 0x10b   :  { %v563_v22 = vadd.f32 %v1099_v8, %v540_v17  ;;  %v541_v23 = vmul.f32 %v1094_v4, %v474_v19 }
 0x10c   :  { %v581_v24 = vmax.f32 %v565_v20, 0.0  ;;  %v566_v25 = vadd.f32 %v1099_v8, %v543_v21 }
 0x10d   :  { %v579_v26 = vmax.f32 %v563_v22, 0.0  ;;  %v564_v27 = vadd.f32 %v1099_v8, %v541_v23  ;;  %v798_v28 = vpop.f32.mrb[12].mxu0  ;;  %v848_v29 = vpop.f32.mrb[12].mxu1 }
 0x10e   :  { %v750_v30 = vpack.c.bf16 %v581_v24, %v581_v24  ;;  %v582_v31 = vmax.f32 %v566_v25, 0.0  ;;  %v799_v32 = vpop.f32.mrb[13].mxu0  ;;  %v486_v33 = vpop.f32.mrb[13].mxu1 }
 0x10f   :  { %v748_v34 = vpack.c.bf16 %v579_v26, %v579_v26  ;;  %v580_v35 = vmax.f32 %v564_v27, 0.0  ;;  %v800_v36 = vadd.f32 %v799_v32, %v798_v28  ;;  %v487_v37 = vadd.f32 %v794_v9, %v486_v33  ;;  %v801_v38 = vpop.f32.mrb[14].mxu0  ;;  %v849_v39 = vpop.f32.mrb[14].mxu1 }
 0x110   :  { %662 = vst.msk [vmem:[%s1205_s4 + $0x8] sm:$0xf] %vm659_vm1, %v750_v30  ;;  %v751_v40 = vpack.c.bf16 %v582_v31, %v582_v31  ;;  %v802_v41 = vpop.f32.mrb[15].mxu0  ;;  %v489_v42 = vpop.f32.mrb[15].mxu1 }
 0x111   :  { %660 = vst.msk [vmem:[%s1205_s4] sm:$0xf] %vm659_vm1, %v748_v34  ;;  %v749_v43 = vpack.c.bf16 %v580_v35, %v580_v35  ;;  %v495_v44 = vadd.f32 %v848_v29, %v800_v36  ;;  %v544_v45 = vmul.f32 %v1094_v4, %v487_v37  ;;  %v803_v46 = vadd.f32 %v802_v41, %v801_v38 }
 0x112   :  { %663 = vst.msk [vmem:[%s1205_s4 + $0xc] sm:$0xf] %vm659_vm1, %v751_v40  ;;  %v490_v48 = vadd.f32 %v797_v18, %v489_v42 }
 0x113   :  { %661 = vst.msk [vmem:[%s1205_s4 + $0x4] sm:$0xf] %vm659_vm1, %v749_v43  ;;  %v546_v49 = vmul.f32 %v1094_v4, %v495_v44  ;;  %v567_v50 = vadd.f32 %v1099_v8, %v544_v45  ;;  %v498_v51 = vadd.f32 %v849_v39, %v803_v46 }
 0x114   :  { %v545_v52 = vmul.f32 %v1094_v4, %v490_v48 }
 0x115   :  { %v569_v54 = vadd.f32 %v1099_v8, %v546_v49  ;;  %v583_v55 = vmax.f32 %v567_v50, 0.0  ;;  %v547_v56 = vmul.f32 %v1094_v4, %v498_v51  ;;  %v804_v57 = vpop.f32.mrb[16].mxu0  ;;  %v852_v58 = vpop.f32.mrb[16].mxu1 }
 0x116   :  { %v568_v60 = vadd.f32 %v1099_v8, %v545_v52  ;;  %v805_v61 = vpop.f32.mrb[17].mxu0  ;;  %v502_v62 = vpop.f32.mrb[17].mxu1 }
 0x117   :  { %v585_v63 = vmax.f32 %v569_v54, 0.0  ;;  %v752_v0 = vpack.c.bf16 %v583_v55, %v583_v55  ;;  %v570_v2 = vadd.f32 %v1099_v8, %v547_v56  ;;  %v806_v3 = vadd.f32 %v805_v61, %v804_v57  ;;  %v807_v5 = vpop.f32.mrb[18].mxu0  ;;  %v853_v6 = vpop.f32.mrb[18].mxu1 }
 0x118   :  { %v584_v7 = vmax.f32 %v568_v60, 0.0  ;;  %v808_v9 = vpop.f32.mrb[19].mxu0  ;;  %v505_v10 = vpop.f32.mrb[19].mxu1 }
 0x119   :  { %v754_v11 = vpack.c.bf16 %v585_v63, %v585_v63  ;;  %664 = vst.msk [vmem:[%s1205_s4 + $0x10] sm:$0xf] %vm659_vm1, %v752_v0  ;;  %v586_v12 = vmax.f32 %v570_v2, 0.0  ;;  %v503_v13 = vadd.f32 %v806_v3, %v502_v62  ;;  %v809_v14 = vadd.f32 %v808_v9, %v807_v5 }
 0x11a   :  { %v753_v15 = vpack.c.bf16 %v584_v7, %v584_v7 }
 0x11b   :  { %666 = vst.msk [vmem:[%s1205_s4 + $0x18] sm:$0xf] %vm659_vm1, %v754_v11  ;;  %v755_v16 = vpack.c.bf16 %v586_v12, %v586_v12  ;;  %v548_v17 = vmul.f32 %v1094_v4, %v503_v13  ;;  %v506_v18 = vadd.f32 %v809_v14, %v505_v10 }
 0x11c   :  { %665 = vst.msk [vmem:[%s1205_s4 + $0x14] sm:$0xf] %vm659_vm1, %v753_v15 }
 0x11d   :  { %667 = vst.msk [vmem:[%s1205_s4 + $0x1c] sm:$0xf] %vm659_vm1, %v755_v16  ;;  %v571_v19 = vadd.f32 %v1099_v8, %v548_v17  ;;  %v549_v20 = vmul.f32 %v1094_v4, %v506_v18  ;;  %v810_v21 = vpop.f32.mrb[20].mxu0  ;;  %v856_v22 = vpop.f32.mrb[20].mxu1 }
 0x11e   :  { %v527_v23 = vadd.f32 %v856_v22, %v1087_v59  ;;  %v811_v24 = vpop.f32.mrb[21].mxu0  ;;  %v518_v25 = vpop.f32.mrb[21].mxu1 }
 0x11f   :  { %v587_v26 = vmax.f32 %v571_v19, 0.0  ;;  %v572_v27 = vadd.f32 %v1099_v8, %v549_v20  ;;  %v812_v28 = vadd.f32 %v811_v24, %v810_v21  ;;  %v519_v29 = vadd.f32 %v1083_v47, %v518_v25  ;;  %v813_v30 = vpop.f32.mrb[22].mxu0  ;;  %v857_v31 = vpop.f32.mrb[22].mxu1 }
 0x120   :  { %v554_v32 = vmul.f32 %v1094_v4, %v527_v23  ;;  %v530_v33 = vadd.f32 %v857_v31, %v1089_v1  ;;  %v814_v34 = vpop.f32.mrb[23].mxu0  ;;  %v521_v35 = vpop.f32.mrb[23].mxu1 }
 0x121   :  { %v756_v36 = vpack.c.bf16 %v587_v26, %v587_v26  ;;  %v588_v37 = vmax.f32 %v572_v27, 0.0  ;;  %v511_v38 = vadd.f32 %v852_v58, %v812_v28  ;;  %v552_v59 = vmul.f32 %v1094_v4, %v519_v29 }
 0x122   :  { %v577_v39 = vadd.f32 %v1099_v8, %v554_v32  ;;  %v555_v40 = vmul.f32 %v1094_v4, %v530_v33  ;;  %v815_v41 = vadd.f32 %v814_v34, %v813_v30  ;;  %v522_v47 = vadd.f32 %v1085_v53, %v521_v35 }
 0x123   :  { %668 = vst.msk [vmem:[%s1205_s4 + $0x20] sm:$0xf] %vm659_vm1, %v756_v36  ;;  %v757_v1 = vpack.c.bf16 %v588_v37, %v588_v37  ;;  %v550_v42 = vmul.f32 %v1094_v4, %v511_v38  ;;  %v575_v43 = vadd.f32 %v1099_v8, %v552_v59 }
 0x124   :  { %v593_v44 = vmax.f32 %v577_v39, 0.0  ;;  %v578_v45 = vadd.f32 %v1099_v8, %v555_v40  ;;  %v514_v46 = vadd.f32 %v853_v6, %v815_v41  ;;  %v553_v48 = vmul.f32 %v1094_v4, %v522_v47 }
 0x125   :  { %669 = vst.msk [vmem:[%s1205_s4 + $0x24] sm:$0xf] %vm659_vm1, %v757_v1  ;;  %v573_v53 = vadd.f32 %v1099_v8, %v550_v42  ;;  %v591_v49 = vmax.f32 %v575_v43, 0.0 }
 0x126   :  { %v762_v50 = vpack.c.bf16 %v593_v44, %v593_v44  ;;  %v594_v51 = vmax.f32 %v578_v45, 0.0  ;;  %v551_v52 = vmul.f32 %v1094_v4, %v514_v46  ;;  %v576_v54 = vadd.f32 %v1099_v8, %v553_v48 }
 0x127   :  { %v589_v55 = vmax.f32 %v573_v53, 0.0  ;;  %v760_v56 = vpack.c.bf16 %v591_v49, %v591_v49 }
 0x128   :  { %674 = vst.msk [vmem:[%s1205_s4 + $0x38] sm:$0xf] %vm659_vm1, %v762_v50  ;;  %v763_v57 = vpack.c.bf16 %v594_v51, %v594_v51  ;;  %v574_v58 = vadd.f32 %v1099_v8, %v551_v52  ;;  %v592_v60 = vmax.f32 %v576_v54, 0.0 }
 0x129   :  { %v758_v61 = vpack.c.bf16 %v589_v55, %v589_v55  ;;  %672 = vst.msk [vmem:[%s1205_s4 + $0x30] sm:$0xf] %vm659_vm1, %v760_v56 }
 0x12a   :  { %675 = vst.msk [vmem:[%s1205_s4 + $0x3c] sm:$0xf] %vm659_vm1, %v763_v57  ;;  %v590_v4 = vmax.f32 %v574_v58, 0.0  ;;  %v761_v62 = vpack.c.bf16 %v592_v60, %v592_v60 }
 0x12b   :  { %670 = vst.msk [vmem:[%s1205_s4 + $0x28] sm:$0xf] %vm659_vm1, %v758_v61 }
 0x12c   :  { %v759_v8 = vpack.c.bf16 %v590_v4, %v590_v4  ;;  %673 = vst.msk [vmem:[%s1205_s4 + $0x34] sm:$0xf] %vm659_vm1, %v761_v62 }
 0x12e   :  { %671 = vst.msk [vmem:[%s1205_s4 + $0x2c] sm:$0xf] %vm659_vm1, %v759_v8 }

// kernel: feature_extractor_forward.53
= control target key start
LH: loop header
LB: loop body
LE: loop exit
PB: predicated region body
PF: predicated region fallthrough
CT: control target
= control target key end

     0   :  { %vm90_vm0 = vcmask 261120   ;;  %vm322_vm1 = vcmask 257024   ;;  %s608_s1 = inlined_call_operand.vmem [shape: bf16[32,32], index: 1, kind: input, shape index: {}]   ;;  %s609_s0 = inlined_call_operand.vmem [shape: bf16[128,32], index: 0, kind: input, shape index: {}]   ;;  %s610_s2 = inlined_call_operand.vmem [shape: f32[1,32], index: 2, kind: input, shape index: {}]   ;;  %s611_s3 = inlined_call_operand.vmem [shape: f32[1,32], index: 3, kind: input, shape index: {}]   ;;  %s612_s4 = inlined_call_operand.vmem [shape: bf16[128,32], index: 4, kind: output, shape index: {}]  }
   0x1   :  { %v429_v0 = vld [vmem:[%s608_s1] sm:$0xff]   ;;  %v430_v1 = vld [vmem:[%s608_s1 + $0x8] sm:$0xff]   ;;  %v435_v6 = vld [vmem:[%s609_s0 + $0x10] sm:$0xff]  }
   0x2   :  { %405 = vmatprep.subr.bf16.mxu0 %v429_v0  ;;  %425 = vmatprep.subr.bf16.mxu1 %v429_v0  ;;  %v431_v2 = vld [vmem:[%s609_s0] sm:$0xff]   ;;  %v433_v4 = vld [vmem:[%s609_s0 + $0x8] sm:$0xff]   ;;  %v436_v7 = vld [vmem:[%s609_s0 + $0x30] sm:$0xff]  }
   0x3   :  { %406 = vmatpush3.bf16.msra.mxu0 %v429_v0  ;;  %427 = vmatpush3.bf16.msra.mxu1 %v429_v0  ;;  %v432_v3 = vld [vmem:[%s609_s0 + $0x20] sm:$0xff]   ;;  %v434_v5 = vld [vmem:[%s609_s0 + $0x28] sm:$0xff]   ;;  %v437_v8 = vld [vmem:[%s609_s0 + $0x18] sm:$0xff]  }
   0x4   :  { %407 = vmatprep.subr.bf16.mxu0 %v430_v1  ;;  %426 = vmatprep.subr.bf16.mxu1 %v430_v1  ;;  %v438_v9 = vld [vmem:[%s609_s0 + $0x38] sm:$0xff]   ;;  %v505_v10 = vld [vmem:[%s610_s2] ss:$0 sm:$0xff] }
   0x5   :  { %409 = vmatprep.mubr.msk.bf16.mxu0 %vm90_vm0, %v431_v2  ;;  %417 = vmatprep.mubr.msk.bf16.mxu1 %vm90_vm0, %v432_v3  ;;  %v510_v12 = vld [vmem:[%s611_s3] ss:$0 sm:$0xff] }
   0x7   :  { %408 = vmatpush3.bf16.msra.mxu0 %v430_v1  ;;  %428 = vmatpush3.bf16.msra.mxu1 %v430_v1 }
   0xa   :  { %410 = vmatmul.mubr.msk.bf16.vlgmr.msra.gmra.mrb[0].mxu0 %vm90_vm0, %v433_v4  ;;  %418 = vmatmul.mubr.msk.bf16.vlgmr.msra.gmra.mrb[0].mxu1 %vm90_vm0, %v434_v5 }
   0xb   :  { %413 = vmatprep.mubr.msk.bf16.mxu0 %vm90_vm0, %v435_v6  ;;  %421 = vmatprep.mubr.msk.bf16.mxu1 %vm90_vm0, %v436_v7 }
  0x12   :  { %414 = vmatmul.mubr.msk.bf16.gmra.mrb[4].mxu0 %vm90_vm0, %v437_v8  ;;  %422 = vmatmul.mubr.msk.bf16.gmra.mrb[4].mxu1 %vm90_vm0, %v438_v9 }
  0xdd   :  { %v411_v11 = vpop.f32.mrb[0].mxu0  ;;  %v419_v13 = vpop.f32.mrb[0].mxu1 }
  0xde   :  { %v221_v14 = vmul.f32 %v411_v11, %v505_v10  ;;  %v229_v15 = vmul.f32 %v419_v13, %v505_v10  ;;  %v149_v16 = vpop.f32.mrb[1].mxu0  ;;  %v181_v17 = vpop.f32.mrb[1].mxu1 }
  0xdf   :  { %v219_v18 = vmul.f32 %v505_v10, %v149_v16  ;;  %v227_v19 = vmul.f32 %v505_v10, %v181_v17  ;;  %v412_v20 = vpop.f32.mrb[2].mxu0  ;;  %v420_v21 = vpop.f32.mrb[2].mxu1 }
  0xe0   :  { %v244_v22 = vadd.f32 %v510_v12, %v221_v14  ;;  %v252_v23 = vadd.f32 %v510_v12, %v229_v15  ;;  %v222_v24 = vmul.f32 %v412_v20, %v505_v10  ;;  %v230_v25 = vmul.f32 %v420_v21, %v505_v10  ;;  %v152_v26 = vpop.f32.mrb[3].mxu0  ;;  %v184_v27 = vpop.f32.mrb[3].mxu1 }
  0xe1   :  { %v242_v28 = vadd.f32 %v510_v12, %v219_v18  ;;  %v250_v29 = vadd.f32 %v510_v12, %v227_v19  ;;  %v220_v30 = vmul.f32 %v505_v10, %v152_v26  ;;  %v228_v31 = vmul.f32 %v505_v10, %v184_v27 }
  0xe2   :  { %v381_v32 = vpack.c.bf16 %v244_v22, %v244_v22  ;;  %v389_v33 = vpack.c.bf16 %v252_v23, %v252_v23  ;;  %v245_v34 = vadd.f32 %v510_v12, %v222_v24  ;;  %v253_v35 = vadd.f32 %v510_v12, %v230_v25 }
  0xe3   :  { %v379_v36 = vpack.c.bf16 %v242_v28, %v242_v28  ;;  %v387_v37 = vpack.c.bf16 %v250_v29, %v250_v29  ;;  %v243_v38 = vadd.f32 %v510_v12, %v220_v30  ;;  %v251_v39 = vadd.f32 %v510_v12, %v228_v31 }
  0xe4   :  { %325 = vst.msk [vmem:[%s612_s4 + $0x8] sm:$0xf] %vm322_vm1, %v381_v32  ;;  %333 = vst.msk [vmem:[%s612_s4 + $0x28] sm:$0xf] %vm322_vm1, %v389_v33  ;;  %v382_v40 = vpack.c.bf16 %v245_v34, %v245_v34  ;;  %v390_v41 = vpack.c.bf16 %v253_v35, %v253_v35 }
  0xe5   :  { %323 = vst.msk [vmem:[%s612_s4] sm:$0xf] %vm322_vm1, %v379_v36  ;;  %331 = vst.msk [vmem:[%s612_s4 + $0x20] sm:$0xf] %vm322_vm1, %v387_v37  ;;  %v380_v42 = vpack.c.bf16 %v243_v38, %v243_v38  ;;  %v388_v43 = vpack.c.bf16 %v251_v39, %v251_v39  ;;  %v415_v44 = vpop.f32.mrb[4].mxu0  ;;  %v423_v45 = vpop.f32.mrb[4].mxu1 }
  0xe6   :  { %326 = vst.msk [vmem:[%s612_s4 + $0xc] sm:$0xf] %vm322_vm1, %v382_v40  ;;  %334 = vst.msk [vmem:[%s612_s4 + $0x2c] sm:$0xf] %vm322_vm1, %v390_v41  ;;  %v225_v46 = vmul.f32 %v415_v44, %v505_v10  ;;  %v233_v47 = vmul.f32 %v423_v45, %v505_v10  ;;  %v165_v48 = vpop.f32.mrb[5].mxu0  ;;  %v197_v49 = vpop.f32.mrb[5].mxu1 }
  0xe7   :  { %324 = vst.msk [vmem:[%s612_s4 + $0x4] sm:$0xf] %vm322_vm1, %v380_v42  ;;  %332 = vst.msk [vmem:[%s612_s4 + $0x24] sm:$0xf] %vm322_vm1, %v388_v43  ;;  %v223_v50 = vmul.f32 %v505_v10, %v165_v48  ;;  %v231_v51 = vmul.f32 %v505_v10, %v197_v49  ;;  %v416_v52 = vpop.f32.mrb[6].mxu0  ;;  %v424_v53 = vpop.f32.mrb[6].mxu1 }
  0xe8   :  { %v248_v54 = vadd.f32 %v510_v12, %v225_v46  ;;  %v256_v55 = vadd.f32 %v510_v12, %v233_v47  ;;  %v226_v56 = vmul.f32 %v416_v52, %v505_v10  ;;  %v234_v57 = vmul.f32 %v424_v53, %v505_v10  ;;  %v168_v58 = vpop.f32.mrb[7].mxu0  ;;  %v200_v59 = vpop.f32.mrb[7].mxu1 }
  0xe9   :  { %v246_v60 = vadd.f32 %v510_v12, %v223_v50  ;;  %v254_v61 = vadd.f32 %v510_v12, %v231_v51  ;;  %v224_v62 = vmul.f32 %v505_v10, %v168_v58  ;;  %v232_v63 = vmul.f32 %v505_v10, %v200_v59 }
  0xea   :  { %v385_v0 = vpack.c.bf16 %v248_v54, %v248_v54  ;;  %v393_v1 = vpack.c.bf16 %v256_v55, %v256_v55  ;;  %v249_v2 = vadd.f32 %v510_v12, %v226_v56  ;;  %v257_v3 = vadd.f32 %v510_v12, %v234_v57 }
  0xeb   :  { %v383_v4 = vpack.c.bf16 %v246_v60, %v246_v60  ;;  %v391_v5 = vpack.c.bf16 %v254_v61, %v254_v61  ;;  %v247_v6 = vadd.f32 %v510_v12, %v224_v62  ;;  %v255_v7 = vadd.f32 %v510_v12, %v232_v63 }
  0xec   :  { %329 = vst.msk [vmem:[%s612_s4 + $0x18] sm:$0xf] %vm322_vm1, %v385_v0  ;;  %337 = vst.msk [vmem:[%s612_s4 + $0x38] sm:$0xf] %vm322_vm1, %v393_v1  ;;  %v386_v8 = vpack.c.bf16 %v249_v2, %v249_v2  ;;  %v394_v9 = vpack.c.bf16 %v257_v3, %v257_v3 }
  0xed   :  { %327 = vst.msk [vmem:[%s612_s4 + $0x10] sm:$0xf] %vm322_vm1, %v383_v4  ;;  %335 = vst.msk [vmem:[%s612_s4 + $0x30] sm:$0xf] %vm322_vm1, %v391_v5  ;;  %v384_v10 = vpack.c.bf16 %v247_v6, %v247_v6  ;;  %v392_v11 = vpack.c.bf16 %v255_v7, %v255_v7 }
  0xee   :  { %330 = vst.msk [vmem:[%s612_s4 + $0x1c] sm:$0xf] %vm322_vm1, %v386_v8  ;;  %338 = vst.msk [vmem:[%s612_s4 + $0x3c] sm:$0xf] %vm322_vm1, %v394_v9 }
  0xef   :  { %328 = vst.msk [vmem:[%s612_s4 + $0x14] sm:$0xf] %vm322_vm1, %v384_v10  ;;  %336 = vst.msk [vmem:[%s612_s4 + $0x34] sm:$0xf] %vm322_vm1, %v392_v11 }

// kernel: feature_extractor_forward.54
= control target key start
LH: loop header
LB: loop body
LE: loop exit
PB: predicated region body
PF: predicated region fallthrough
CT: control target
= control target key end

     0   :  { %vm317_vm0 = vcmask 261120   ;;  %vm710_vm1 = vcmask 257024   ;;  %s1327_s1 = inlined_call_operand.vmem [shape: bf16[288,32], index: 1, kind: input, shape index: {}]   ;;  %s1328_s0 = inlined_call_operand.vmem [shape: bf16[128,288], index: 0, kind: input, shape index: {}]   ;;  %s1329_s2 = inlined_call_operand.vmem [shape: f32[1,32], index: 2, kind: input, shape index: {}]   ;;  %s1330_s4 = inlined_call_operand.vmem [shape: bf16[128,32], index: 4, kind: input, shape index: {}]   ;;  %s1331_s3 = inlined_call_operand.vmem [shape: f32[1,32], index: 3, kind: input, shape index: {}]   ;;  %s1332_s5 = inlined_call_operand.vmem [shape: bf16[128,32], index: 5, kind: output, shape index: {}]  }
   0x1   :  { %v964_v0 = vld [vmem:[%s1327_s1 + $0x40] sm:$0xff]   ;;  %v966_v2 = vld [vmem:[%s1327_s1 + $0x48] sm:$0xff]   ;;  %v968_v4 = vld [vmem:[%s1327_s1 + $0x50] sm:$0xff]  }
   0x2   :  { %v965_v1 = vld [vmem:[%s1327_s1] sm:$0xff]   ;;  %854 = vmatprep.subr.bf16.mxu0 %v964_v0  ;;  %948 = vmatprep.subr.bf16.mxu1 %v964_v0  ;;  %v967_v3 = vld [vmem:[%s1327_s1 + $0x8] sm:$0xff]   ;;  %v969_v5 = vld [vmem:[%s1327_s1 + $0x10] sm:$0xff]  }
   0x3   :  { %855 = vmatpush3.bf16.msra.mxu0 %v965_v1  ;;  %956 = vmatpush3.bf16.msra.mxu1 %v965_v1  ;;  %v970_v6 = vld [vmem:[%s1327_s1 + $0x58] sm:$0xff]   ;;  %v972_v8 = vld [vmem:[%s1327_s1 + $0x60] sm:$0xff]   ;;  %v974_v10 = vld [vmem:[%s1327_s1 + $0x68] sm:$0xff]  }
   0x4   :  { %856 = vmatprep.subr.bf16.mxu0 %v966_v2  ;;  %949 = vmatprep.subr.bf16.mxu1 %v966_v2  ;;  %v971_v7 = vld [vmem:[%s1327_s1 + $0x18] sm:$0xff]   ;;  %v973_v9 = vld [vmem:[%s1327_s1 + $0x20] sm:$0xff]   ;;  %v975_v13 = vld [vmem:[%s1327_s1 + $0x28] sm:$0xff]  }
   0x5   :  { %v982_v11 = vld [vmem:[%s1328_s0 + $0x4] ss:$12 sps:$4 sm:$0xff]   ;;  %v985_v12 = vld [vmem:[%s1328_s0 + $0x94] ss:$12 sps:$4 sm:$0xff]   ;;  %v978_v16 = vld [vmem:[%s1327_s1 + $0x78] sm:$0xff]  }
   0x6   :  { %v976_v14 = vld [vmem:[%s1327_s1 + $0x70] sm:$0xff]   ;;  %374 = vmatprep.mubr.bf16.mxu0 %v982_v11  ;;  %422 = vmatprep.mubr.bf16.mxu1 %v985_v12  ;;  %v979_v17 = vld [vmem:[%s1327_s1 + $0x38] sm:$0xff]   ;;  %v980_v18 = vld [vmem:[%s1328_s0] ss:$12 sps:$4 sm:$0xff]  }
   0x7   :  { %857 = vmatpush3.bf16.msra.mxu0 %v967_v3  ;;  %957 = vmatpush3.bf16.msra.mxu1 %v967_v3  ;;  %v977_v15 = vld [vmem:[%s1327_s1 + $0x30] sm:$0xff]   ;;  %v986_v19 = vld [vmem:[%s1327_s1 + $0x80] sm:$0xff]   ;;  %v987_v21 = vld [vmem:[%s1328_s0 + $0x1c] ss:$12 sps:$4 sm:$0xff]  }
   0x8   :  { %858 = vmatprep.subr.bf16.mxu0 %v968_v4  ;;  %950 = vmatprep.subr.bf16.mxu1 %v968_v4  ;;  %v983_v20 = vld [vmem:[%s1328_s0 + $0x90] ss:$12 sps:$4 sm:$0xff]   ;;  %v989_v22 = vld [vmem:[%s1328_s0 + $0xac] ss:$12 sps:$4 sm:$0xff]   ;;  %v992_v25 = vld [vmem:[%s1328_s0 + $0xa8] ss:$12 sps:$4 sm:$0xff]  }
   0x9   :  { %v993_v23 = vld [vmem:[%s1327_s1 + $0x88] sm:$0xff]   ;;  %v991_v24 = vld [vmem:[%s1328_s0 + $0x18] ss:$12 sps:$4 sm:$0xff]   ;;  %v994_v26 = vld [vmem:[%s1328_s0 + $0x34] ss:$12 sps:$4 sm:$0xff]  }
   0xa   :  { %v996_v27 = vld [vmem:[%s1328_s0 + $0x8] ss:$12 sps:$4 sm:$0xff]   ;;  %v997_v28 = vld [vmem:[%s1328_s0 + $0x30] ss:$12 sps:$4 sm:$0xff]   ;;  %v998_v29 = vld [vmem:[%s1328_s0 + $0x20] ss:$12 sps:$4 sm:$0xff]  }
   0xb   :  { %859 = vmatpush3.bf16.msra.mxu0 %v969_v5  ;;  %958 = vmatpush3.bf16.msra.mxu1 %v969_v5  ;;  %v999_v30 = vld [vmem:[%s1328_s0 + $0x4c] ss:$12 sps:$4 sm:$0xff]   ;;  %v1002_v32 = vld [vmem:[%s1328_s0 + $0x48] ss:$12 sps:$4 sm:$0xff]   ;;  %v1003_v33 = vld [vmem:[%s1328_s0 + $0x50] ss:$12 sps:$4 sm:$0xff]  }
   0xc   :  { %860 = vmatprep.subr.bf16.mxu0 %v970_v6  ;;  %951 = vmatprep.subr.bf16.mxu1 %v970_v6  ;;  %v1001_v31 = vld [vmem:[%s1328_s0 + $0x38] ss:$12 sps:$4 sm:$0xff]   ;;  %v1006_v35 = vld [vmem:[%s1328_s0 + $0x68] ss:$12 sps:$4 sm:$0xff]   ;;  %v1007_v36 = vld [vmem:[%s1328_s0 + $0x60] ss:$12 sps:$4 sm:$0xff]  }
   0xd   :  { %v1004_v34 = vld [vmem:[%s1328_s0 + $0x64] ss:$12 sps:$4 sm:$0xff]   ;;  %v1008_v37 = vld [vmem:[%s1328_s0 + $0x80] ss:$12 sps:$4 sm:$0xff]   ;;  %v1009_v38 = vld [vmem:[%s1328_s0 + $0x7c] ss:$12 sps:$4 sm:$0xff]  }
   0xe   :  { %v1011_v39 = vld [vmem:[%s1328_s0 + $0x98] ss:$12 sps:$4 sm:$0xff]   ;;  %v1013_v41 = vld [vmem:[%s1328_s0 + $0xb0] ss:$12 sps:$4 sm:$0xff]   ;;  %v1189_v4 = vld [vmem:[%s1329_s2] ss:$0 sm:$0xff] }
   0xf   :  { %861 = vmatpush3.bf16.msra.mxu0 %v971_v7  ;;  %959 = vmatpush3.bf16.msra.mxu1 %v971_v7  ;;  %v1012_v40 = vld [vmem:[%s1328_s0 + $0x78] ss:$12 sps:$4 sm:$0xff]   ;;  %v847_v5 = vld [vmem:[%s1330_s4 + $0x8] sm:$0xff]  }
  0x10   :  { %862 = vmatprep.subr.bf16.mxu0 %v972_v8  ;;  %952 = vmatprep.subr.bf16.mxu1 %v972_v8 }
  0x13   :  { %863 = vmatpush3.bf16.msra.mxu0 %v973_v9  ;;  %960 = vmatpush3.bf16.msra.mxu1 %v973_v9  ;;  %v816_v9 = vld [vmem:[%s1330_s4] sm:$0xff]  }
  0x14   :  { %864 = vmatprep.subr.bf16.mxu0 %v974_v10  ;;  %953 = vmatprep.subr.bf16.mxu1 %v974_v10  ;;  %v1200_v10 = vld [vmem:[%s1331_s3] ss:$0 sm:$0xff] }
  0x17   :  { %865 = vmatpush3.bf16.msra.mxu0 %v975_v13  ;;  %961 = vmatpush3.bf16.msra.mxu1 %v975_v13 }
  0x18   :  { %866 = vmatprep.subr.bf16.mxu0 %v976_v14  ;;  %954 = vmatprep.subr.bf16.mxu1 %v976_v14 }
  0x1b   :  { %867 = vmatpush3.bf16.msra.mxu0 %v977_v15  ;;  %962 = vmatpush3.bf16.msra.mxu1 %v977_v15 }
  0x1c   :  { %868 = vmatprep.subr.bf16.mxu0 %v978_v16  ;;  %955 = vmatprep.subr.bf16.mxu1 %v978_v16  ;;  %v821_v16 = vunpack.c.l.bf16 %v847_v5 }
  0x1f   :  { %869 = vmatpush3.bf16.msra.mxu0 %v979_v17  ;;  %963 = vmatpush3.bf16.msra.mxu1 %v979_v17 }
  0x20   :  { %928 = vmatprep.subr.bf16.mxu1 %v986_v19 }
  0x22   :  { %375 = vmatmul.mubr.bf16.vlgmr.msra.gmra.mrb[0].mxu0 %v980_v18  ;;  %423 = vmatmul.mubr.bf16.vlgmr.msra.gmra.mrb[0].mxu1 %v983_v20 }
  0x23   :  { %929 = vmatpush3.bf16.msra.mxu1 %v986_v19  ;;  %382 = vmatprep.mubr.bf16.mxu0 %v987_v21  ;;  %v817_v21 = vunpack.c.l.bf16 %v816_v9 }
  0x24   :  { %430 = vmatprep.mubr.bf16.mxu1 %v989_v22  ;;  %930 = vmatprep.subr.bf16.mxu1 %v993_v23 }
  0x27   :  { %931 = vmatpush3.bf16.msra.mxu1 %v993_v23 }
  0x2a   :  { %383 = vmatmul.mubr.bf16.gmra.mrb[4].mxu0 %v991_v24  ;;  %431 = vmatmul.mubr.bf16.gmra.mrb[4].mxu1 %v992_v25 }
  0x2b   :  { %390 = vmatprep.mubr.bf16.mxu0 %v994_v26  ;;  %932 = vmatprep.mubr.msk.bf16.mxu1 %vm317_vm0, %v996_v27  ;;  %v822_v26 = vunpack.c.h.bf16 %v847_v5 }
  0x32   :  { %391 = vmatmul.mubr.bf16.gmra.mrb[8].mxu0 %v997_v28  ;;  %933 = vmatmul.mubr.msk.bf16.vlgmr.msra.gmra.mrb[8].mxu1 %vm317_vm0, %v998_v29  ;;  %v818_v29 = vunpack.c.h.bf16 %v816_v9 }
  0x33   :  { %398 = vmatprep.mubr.bf16.mxu0 %v999_v30  ;;  %936 = vmatprep.mubr.msk.bf16.mxu1 %vm317_vm0, %v1001_v31 }
  0x3a   :  { %399 = vmatmul.mubr.bf16.gmra.mrb[12].mxu0 %v1002_v32  ;;  %937 = vmatmul.mubr.msk.bf16.gmra.mrb[12].mxu1 %vm317_vm0, %v1003_v33 }
  0x3b   :  { %406 = vmatprep.mubr.bf16.mxu0 %v1004_v34  ;;  %940 = vmatprep.mubr.msk.bf16.mxu1 %vm317_vm0, %v1006_v35 }
  0x42   :  { %407 = vmatmul.mubr.bf16.gmra.mrb[16].mxu0 %v1007_v36  ;;  %941 = vmatmul.mubr.msk.bf16.gmra.mrb[16].mxu1 %vm317_vm0, %v1008_v37  ;;  %v848_v36 = vld [vmem:[%s1330_s4 + $0x10] sm:$0xff]  }
  0x43   :  { %414 = vmatprep.mubr.bf16.mxu0 %v1009_v38  ;;  %944 = vmatprep.mubr.msk.bf16.mxu1 %vm317_vm0, %v1011_v39 }
  0x4a   :  { %415 = vmatmul.mubr.bf16.gmra.mrb[20].mxu0 %v1012_v40  ;;  %945 = vmatmul.mubr.msk.bf16.gmra.mrb[20].mxu1 %vm317_vm0, %v1013_v41 }
  0xf5   :  { %v870_v42 = vpop.f32.mrb[0].mxu0  ;;  %v906_v43 = vpop.f32.mrb[0].mxu1 }
  0xf6   :  { %v871_v44 = vpop.f32.mrb[1].mxu0  ;;  %v907_v45 = vpop.f32.mrb[1].mxu1 }
  0xf7   :  { %v872_v46 = vadd.f32 %v871_v44, %v870_v42  ;;  %v1178_v47 = vadd.f32 %v907_v45, %v906_v43  ;;  %v873_v48 = vpop.f32.mrb[2].mxu0  ;;  %v909_v49 = vpop.f32.mrb[2].mxu1 }
  0xf8   :  { %v874_v50 = vpop.f32.mrb[3].mxu0  ;;  %v910_v51 = vpop.f32.mrb[3].mxu1 }
  0xf9   :  { %v875_v52 = vadd.f32 %v874_v50, %v873_v48  ;;  %v1180_v53 = vadd.f32 %v910_v51, %v909_v49  ;;  %v849_v50 = vld [vmem:[%s1330_s4 + $0x18] sm:$0xff]   ;;  %v825_v51 = vunpack.c.l.bf16 %v848_v36 }
  0xfd   :  { %v876_v54 = vpop.f32.mrb[4].mxu0  ;;  %v912_v55 = vpop.f32.mrb[4].mxu1 }
  0xfe   :  { %v877_v56 = vpop.f32.mrb[5].mxu0  ;;  %v913_v57 = vpop.f32.mrb[5].mxu1 }
  0xff   :  { %v878_v58 = vadd.f32 %v877_v56, %v876_v54  ;;  %v1182_v59 = vadd.f32 %v913_v57, %v912_v55  ;;  %v879_v60 = vpop.f32.mrb[6].mxu0  ;;  %v915_v61 = vpop.f32.mrb[6].mxu1 }
 0x100   :  { %v880_v62 = vpop.f32.mrb[7].mxu0  ;;  %v916_v63 = vpop.f32.mrb[7].mxu1 }
 0x101   :  { %v881_v0 = vadd.f32 %v880_v62, %v879_v60  ;;  %v1184_v1 = vadd.f32 %v916_v63, %v915_v61 }
 0x105   :  { %v882_v2 = vpop.f32.mrb[8].mxu0  ;;  %v934_v3 = vpop.f32.mrb[8].mxu1 }
 0x106   :  { %v482_v6 = vadd.f32 %v934_v3, %v878_v58  ;;  %v883_v7 = vpop.f32.mrb[9].mxu0  ;;  %v473_v8 = vpop.f32.mrb[9].mxu1 }
 0x107   :  { %v884_v11 = vadd.f32 %v883_v7, %v882_v2  ;;  %v474_v12 = vadd.f32 %v872_v46, %v473_v8  ;;  %v885_v13 = vpop.f32.mrb[10].mxu0  ;;  %v935_v14 = vpop.f32.mrb[10].mxu1  ;;  %v829_v2 = vunpack.c.l.bf16 %v849_v50  ;;  %v826_v7 = vunpack.c.h.bf16 %v848_v36 }
 0x108   :  { %v545_v15 = vmul.f32 %v1189_v4, %v482_v6  ;;  %v485_v17 = vadd.f32 %v935_v14, %v881_v0  ;;  %v886_v18 = vpop.f32.mrb[11].mxu0  ;;  %v476_v19 = vpop.f32.mrb[11].mxu1  ;;  %v830_v14 = vunpack.c.h.bf16 %v849_v50 }
 0x109   :  { %v543_v20 = vmul.f32 %v1189_v4, %v474_v12  ;;  %v887_v22 = vadd.f32 %v886_v18, %v885_v13  ;;  %v477_v23 = vadd.f32 %v875_v52, %v476_v19 }
 0x10a   :  { %v568_v24 = vadd.f32 %v1200_v10, %v545_v15  ;;  %v546_v25 = vmul.f32 %v1189_v4, %v485_v17 }
 0x10b   :  { %v566_v27 = vadd.f32 %v1200_v10, %v543_v20  ;;  %v544_v28 = vmul.f32 %v1189_v4, %v477_v23 }
 0x10c   :  { %v616_v30 = vadd.f32 %v821_v16, %v568_v24  ;;  %v569_v31 = vadd.f32 %v1200_v10, %v546_v25  ;;  %v850_v25 = vld [vmem:[%s1330_s4 + $0x20] sm:$0xff]  }
 0x10d   :  { %v614_v32 = vadd.f32 %v817_v21, %v566_v27  ;;  %v567_v33 = vadd.f32 %v1200_v10, %v544_v28  ;;  %v888_v34 = vpop.f32.mrb[12].mxu0  ;;  %v938_v35 = vpop.f32.mrb[12].mxu1 }
 0x10e   :  { %v632_v37 = vmax.f32 %v616_v30, 0.0  ;;  %v617_v38 = vadd.f32 %v822_v26, %v569_v31  ;;  %v889_v39 = vpop.f32.mrb[13].mxu0  ;;  %v489_v40 = vpop.f32.mrb[13].mxu1 }
 0x10f   :  { %v630_v41 = vmax.f32 %v614_v32, 0.0  ;;  %v615_v42 = vadd.f32 %v818_v29, %v567_v33  ;;  %v890_v43 = vadd.f32 %v889_v39, %v888_v34  ;;  %v490_v44 = vadd.f32 %v884_v11, %v489_v40  ;;  %v891_v45 = vpop.f32.mrb[14].mxu0  ;;  %v939_v46 = vpop.f32.mrb[14].mxu1  ;;  %v853_v34 = vld [vmem:[%s1330_s4 + $0x38] sm:$0xff]   ;;  %v1256_v39 = vld [vmem:[%s1330_s4 + $0x30] sm:$0xff]  }
 0x110   :  { %v801_v48 = vpack.c.bf16 %v632_v37, %v632_v37  ;;  %v633_v49 = vmax.f32 %v617_v38, 0.0  ;;  %v892_v52 = vpop.f32.mrb[15].mxu0  ;;  %v492_v54 = vpop.f32.mrb[15].mxu1  ;;  %v833_v37 = vunpack.c.l.bf16 %v850_v25 }
 0x111   :  { %v799_v55 = vpack.c.bf16 %v630_v41, %v630_v41  ;;  %v631_v56 = vmax.f32 %v615_v42, 0.0  ;;  %v498_v57 = vadd.f32 %v938_v35, %v890_v43  ;;  %v547_v58 = vmul.f32 %v1189_v4, %v490_v44 }
 0x112   :  { %713 = vst.msk [vmem:[%s1332_s5 + $0x8] sm:$0xf] %vm710_vm1, %v801_v48  ;;  %v802_v60 = vpack.c.bf16 %v633_v49, %v633_v49  ;;  %v893_v61 = vadd.f32 %v892_v52, %v891_v45  ;;  %v493_v62 = vadd.f32 %v887_v22, %v492_v54  ;;  %v834_v44 = vunpack.c.h.bf16 %v850_v25  ;;  %v851_v49 = vld [vmem:[%s1330_s4 + $0x28] sm:$0xff]  }
 0x113   :  { %711 = vst.msk [vmem:[%s1332_s5] sm:$0xf] %vm710_vm1, %v799_v55  ;;  %v800_v63 = vpack.c.bf16 %v631_v56, %v631_v56  ;;  %v549_v0 = vmul.f32 %v1189_v4, %v498_v57  ;;  %v570_v3 = vadd.f32 %v1200_v10, %v547_v58  ;;  %v845_v48 = vunpack.c.l.bf16 %v853_v34 }
 0x114   :  { %714 = vst.msk [vmem:[%s1332_s5 + $0xc] sm:$0xf] %vm710_vm1, %v802_v60  ;;  %v501_v5 = vadd.f32 %v939_v46, %v893_v61  ;;  %v548_v6 = vmul.f32 %v1189_v4, %v493_v62  ;;  %v841_v55 = vunpack.c.l.bf16 %v1256_v39  ;;  %v846_v56 = vunpack.c.h.bf16 %v853_v34 }
 0x115   :  { %712 = vst.msk [vmem:[%s1332_s5 + $0x4] sm:$0xf] %vm710_vm1, %v800_v63  ;;  %v572_v8 = vadd.f32 %v1200_v10, %v549_v0  ;;  %v618_v9 = vadd.f32 %v825_v51, %v570_v3  ;;  %v894_v11 = vpop.f32.mrb[16].mxu0  ;;  %v942_v12 = vpop.f32.mrb[16].mxu1  ;;  %v837_v0 = vunpack.c.l.bf16 %v851_v49  ;;  %v838_v25 = vunpack.c.h.bf16 %v851_v49 }
 0x116   :  { %v550_v13 = vmul.f32 %v1189_v4, %v501_v5  ;;  %v571_v15 = vadd.f32 %v1200_v10, %v548_v6  ;;  %v895_v16 = vpop.f32.mrb[17].mxu0  ;;  %v505_v17 = vpop.f32.mrb[17].mxu1  ;;  %v842_v6 = vunpack.c.h.bf16 %v1256_v39 }
 0x117   :  { %v620_v18 = vadd.f32 %v829_v2, %v572_v8  ;;  %v634_v19 = vmax.f32 %v618_v9, 0.0  ;;  %v896_v20 = vadd.f32 %v895_v16, %v894_v11  ;;  %v897_v21 = vpop.f32.mrb[18].mxu0  ;;  %v1239_v22 = vpop.f32.mrb[18].mxu1 }
 0x118   :  { %v573_v23 = vadd.f32 %v1200_v10, %v550_v13  ;;  %v619_v24 = vadd.f32 %v826_v7, %v571_v15  ;;  %v898_v26 = vpop.f32.mrb[19].mxu0  ;;  %v508_v27 = vpop.f32.mrb[19].mxu1 }
 0x119   :  { %v636_v28 = vmax.f32 %v620_v18, 0.0  ;;  %v803_v29 = vpack.c.bf16 %v634_v19, %v634_v19  ;;  %v506_v30 = vadd.f32 %v896_v20, %v505_v17  ;;  %v899_v31 = vadd.f32 %v898_v26, %v897_v21 }
 0x11a   :  { %v621_v32 = vadd.f32 %v830_v14, %v573_v23  ;;  %v635_v33 = vmax.f32 %v619_v24, 0.0 }
 0x11b   :  { %v805_v35 = vpack.c.bf16 %v636_v28, %v636_v28  ;;  %715 = vst.msk [vmem:[%s1332_s5 + $0x10] sm:$0xf] %vm710_vm1, %v803_v29  ;;  %v551_v36 = vmul.f32 %v1189_v4, %v506_v30  ;;  %v509_v38 = vadd.f32 %v899_v31, %v508_v27 }
 0x11c   :  { %v637_v40 = vmax.f32 %v621_v32, 0.0  ;;  %v804_v41 = vpack.c.bf16 %v635_v33, %v635_v33 }
 0x11d   :  { %717 = vst.msk [vmem:[%s1332_s5 + $0x18] sm:$0xf] %vm710_vm1, %v805_v35  ;;  %v574_v42 = vadd.f32 %v1200_v10, %v551_v36  ;;  %v552_v43 = vmul.f32 %v1189_v4, %v509_v38  ;;  %v900_v45 = vpop.f32.mrb[20].mxu0  ;;  %v946_v46 = vpop.f32.mrb[20].mxu1 }
 0x11e   :  { %v806_v50 = vpack.c.bf16 %v637_v40, %v637_v40  ;;  %716 = vst.msk [vmem:[%s1332_s5 + $0x14] sm:$0xf] %vm710_vm1, %v804_v41  ;;  %v530_v51 = vadd.f32 %v946_v46, %v1182_v59  ;;  %v901_v52 = vpop.f32.mrb[21].mxu0  ;;  %v521_v54 = vpop.f32.mrb[21].mxu1 }
 0x11f   :  { %v622_v57 = vadd.f32 %v833_v37, %v574_v42  ;;  %v575_v58 = vadd.f32 %v1200_v10, %v552_v43  ;;  %v902_v60 = vadd.f32 %v901_v52, %v900_v45  ;;  %v522_v61 = vadd.f32 %v1178_v47, %v521_v54  ;;  %v903_v62 = vpop.f32.mrb[22].mxu0  ;;  %v947_v63 = vpop.f32.mrb[22].mxu1 }
 0x120   :  { %718 = vst.msk [vmem:[%s1332_s5 + $0x1c] sm:$0xf] %vm710_vm1, %v806_v50  ;;  %v557_v59 = vmul.f32 %v1189_v4, %v530_v51  ;;  %v533_v2 = vadd.f32 %v947_v63, %v1184_v1  ;;  %v904_v3 = vpop.f32.mrb[23].mxu0  ;;  %v524_v5 = vpop.f32.mrb[23].mxu1 }
 0x121   :  { %v638_v7 = vmax.f32 %v622_v57, 0.0  ;;  %v623_v8 = vadd.f32 %v834_v44, %v575_v58  ;;  %v514_v9 = vadd.f32 %v942_v12, %v902_v60  ;;  %v555_v47 = vmul.f32 %v1189_v4, %v522_v61 }
 0x122   :  { %v580_v11 = vadd.f32 %v1200_v10, %v557_v59  ;;  %v558_v13 = vmul.f32 %v1189_v4, %v533_v2  ;;  %v905_v14 = vadd.f32 %v904_v3, %v903_v62  ;;  %v525_v15 = vadd.f32 %v1180_v53, %v524_v5 }
 0x123   :  { %v807_v16 = vpack.c.bf16 %v638_v7, %v638_v7  ;;  %v639_v17 = vmax.f32 %v623_v8, 0.0  ;;  %v553_v1 = vmul.f32 %v1189_v4, %v514_v9  ;;  %v578_v18 = vadd.f32 %v1200_v10, %v555_v47 }
 0x124   :  { %v628_v19 = vadd.f32 %v845_v48, %v580_v11  ;;  %v581_v20 = vadd.f32 %v1200_v10, %v558_v13  ;;  %v517_v12 = vadd.f32 %v1239_v22, %v905_v14  ;;  %v556_v21 = vmul.f32 %v1189_v4, %v525_v15 }
 0x125   :  { %719 = vst.msk [vmem:[%s1332_s5 + $0x20] sm:$0xf] %vm710_vm1, %v807_v16  ;;  %v808_v23 = vpack.c.bf16 %v639_v17, %v639_v17  ;;  %v576_v53 = vadd.f32 %v1200_v10, %v553_v1  ;;  %v626_v24 = vadd.f32 %v841_v55, %v578_v18 }
 0x126   :  { %v644_v26 = vmax.f32 %v628_v19, 0.0  ;;  %v629_v27 = vadd.f32 %v846_v56, %v581_v20  ;;  %v554_v28 = vmul.f32 %v1189_v4, %v517_v12  ;;  %v579_v29 = vadd.f32 %v1200_v10, %v556_v21 }
 0x127   :  { %720 = vst.msk [vmem:[%s1332_s5 + $0x24] sm:$0xf] %vm710_vm1, %v808_v23  ;;  %v624_v22 = vadd.f32 %v837_v0, %v576_v53  ;;  %v642_v30 = vmax.f32 %v626_v24, 0.0 }
 0x128   :  { %v813_v31 = vpack.c.bf16 %v644_v26, %v644_v26  ;;  %v645_v32 = vmax.f32 %v629_v27, 0.0  ;;  %v577_v33 = vadd.f32 %v1200_v10, %v554_v28  ;;  %v627_v34 = vadd.f32 %v842_v6, %v579_v29 }
 0x129   :  { %v640_v35 = vmax.f32 %v624_v22, 0.0  ;;  %v811_v36 = vpack.c.bf16 %v642_v30, %v642_v30 }
 0x12a   :  { %725 = vst.msk [vmem:[%s1332_s5 + $0x38] sm:$0xf] %vm710_vm1, %v813_v31  ;;  %v814_v4 = vpack.c.bf16 %v645_v32, %v645_v32  ;;  %v625_v37 = vadd.f32 %v838_v25, %v577_v33  ;;  %v643_v38 = vmax.f32 %v627_v34, 0.0 }
 0x12b   :  { %v809_v39 = vpack.c.bf16 %v640_v35, %v640_v35  ;;  %723 = vst.msk [vmem:[%s1332_s5 + $0x30] sm:$0xf] %vm710_vm1, %v811_v36 }
 0x12c   :  { %726 = vst.msk [vmem:[%s1332_s5 + $0x3c] sm:$0xf] %vm710_vm1, %v814_v4  ;;  %v641_v10 = vmax.f32 %v625_v37, 0.0  ;;  %v812_v40 = vpack.c.bf16 %v643_v38, %v643_v38 }
 0x12d   :  { %721 = vst.msk [vmem:[%s1332_s5 + $0x28] sm:$0xf] %vm710_vm1, %v809_v39 }
 0x12e   :  { %v810_v41 = vpack.c.bf16 %v641_v10, %v641_v10  ;;  %724 = vst.msk [vmem:[%s1332_s5 + $0x34] sm:$0xf] %vm710_vm1, %v812_v40 }
 0x130   :  { %722 = vst.msk [vmem:[%s1332_s5 + $0x2c] sm:$0xf] %vm710_vm1, %v810_v41 }

// kernel: feature_extractor_forward.60
= control target key start
LH: loop header
LB: loop body
LE: loop exit
PB: predicated region body
PF: predicated region fallthrough
CT: control target
= control target key end

     0   :  { %vm90_vm0 = vcmask 261120   ;;  %vm322_vm1 = vcmask 519168   ;;  %s608_s1 = inlined_call_operand.vmem [shape: bf16[32,64], index: 1, kind: input, shape index: {}]   ;;  %s609_s0 = inlined_call_operand.vmem [shape: bf16[128,32], index: 0, kind: input, shape index: {}]   ;;  %s610_s2 = inlined_call_operand.vmem [shape: f32[1,64], index: 2, kind: input, shape index: {}]   ;;  %s611_s3 = inlined_call_operand.vmem [shape: f32[1,64], index: 3, kind: input, shape index: {}]   ;;  %s612_s4 = inlined_call_operand.vmem [shape: bf16[128,64], index: 4, kind: output, shape index: {}]  }
   0x1   :  { %v429_v0 = vld [vmem:[%s608_s1] sm:$0xff]   ;;  %v430_v1 = vld [vmem:[%s608_s1 + $0x8] sm:$0xff]   ;;  %v435_v6 = vld [vmem:[%s609_s0 + $0x10] sm:$0xff]  }
   0x2   :  { %405 = vmatprep.subr.bf16.mxu0 %v429_v0  ;;  %425 = vmatprep.subr.bf16.mxu1 %v429_v0  ;;  %v431_v2 = vld [vmem:[%s609_s0] sm:$0xff]   ;;  %v433_v4 = vld [vmem:[%s609_s0 + $0x8] sm:$0xff]   ;;  %v436_v7 = vld [vmem:[%s609_s0 + $0x30] sm:$0xff]  }
   0x3   :  { %406 = vmatpush3.bf16.msra.mxu0 %v429_v0  ;;  %427 = vmatpush3.bf16.msra.mxu1 %v429_v0  ;;  %v432_v3 = vld [vmem:[%s609_s0 + $0x20] sm:$0xff]   ;;  %v434_v5 = vld [vmem:[%s609_s0 + $0x28] sm:$0xff]   ;;  %v437_v8 = vld [vmem:[%s609_s0 + $0x18] sm:$0xff]  }
   0x4   :  { %407 = vmatprep.subr.bf16.mxu0 %v430_v1  ;;  %426 = vmatprep.subr.bf16.mxu1 %v430_v1  ;;  %v438_v9 = vld [vmem:[%s609_s0 + $0x38] sm:$0xff]   ;;  %v505_v10 = vld [vmem:[%s610_s2] ss:$0 sm:$0xff] }
   0x5   :  { %409 = vmatprep.mubr.msk.bf16.mxu0 %vm90_vm0, %v431_v2  ;;  %417 = vmatprep.mubr.msk.bf16.mxu1 %vm90_vm0, %v432_v3  ;;  %v510_v12 = vld [vmem:[%s611_s3] ss:$0 sm:$0xff] }
   0x7   :  { %408 = vmatpush3.bf16.msra.mxu0 %v430_v1  ;;  %428 = vmatpush3.bf16.msra.mxu1 %v430_v1 }
   0xa   :  { %410 = vmatmul.mubr.msk.bf16.vlgmr.msra.gmra.mrb[0].mxu0 %vm90_vm0, %v433_v4  ;;  %418 = vmatmul.mubr.msk.bf16.vlgmr.msra.gmra.mrb[0].mxu1 %vm90_vm0, %v434_v5 }
   0xb   :  { %413 = vmatprep.mubr.msk.bf16.mxu0 %vm90_vm0, %v435_v6  ;;  %421 = vmatprep.mubr.msk.bf16.mxu1 %vm90_vm0, %v436_v7 }
  0x12   :  { %414 = vmatmul.mubr.msk.bf16.gmra.mrb[4].mxu0 %vm90_vm0, %v437_v8  ;;  %422 = vmatmul.mubr.msk.bf16.gmra.mrb[4].mxu1 %vm90_vm0, %v438_v9 }
  0xdd   :  { %v411_v11 = vpop.f32.mrb[0].mxu0  ;;  %v419_v13 = vpop.f32.mrb[0].mxu1 }
  0xde   :  { %v221_v14 = vmul.f32 %v411_v11, %v505_v10  ;;  %v229_v15 = vmul.f32 %v419_v13, %v505_v10  ;;  %v149_v16 = vpop.f32.mrb[1].mxu0  ;;  %v181_v17 = vpop.f32.mrb[1].mxu1 }
  0xdf   :  { %v219_v18 = vmul.f32 %v505_v10, %v149_v16  ;;  %v227_v19 = vmul.f32 %v505_v10, %v181_v17  ;;  %v412_v20 = vpop.f32.mrb[2].mxu0  ;;  %v420_v21 = vpop.f32.mrb[2].mxu1 }
  0xe0   :  { %v244_v22 = vadd.f32 %v510_v12, %v221_v14  ;;  %v252_v23 = vadd.f32 %v510_v12, %v229_v15  ;;  %v222_v24 = vmul.f32 %v412_v20, %v505_v10  ;;  %v230_v25 = vmul.f32 %v420_v21, %v505_v10  ;;  %v152_v26 = vpop.f32.mrb[3].mxu0  ;;  %v184_v27 = vpop.f32.mrb[3].mxu1 }
  0xe1   :  { %v242_v28 = vadd.f32 %v510_v12, %v219_v18  ;;  %v250_v29 = vadd.f32 %v510_v12, %v227_v19  ;;  %v220_v30 = vmul.f32 %v505_v10, %v152_v26  ;;  %v228_v31 = vmul.f32 %v505_v10, %v184_v27 }
  0xe2   :  { %v381_v32 = vpack.c.bf16 %v244_v22, %v244_v22  ;;  %v389_v33 = vpack.c.bf16 %v252_v23, %v252_v23  ;;  %v245_v34 = vadd.f32 %v510_v12, %v222_v24  ;;  %v253_v35 = vadd.f32 %v510_v12, %v230_v25 }
  0xe3   :  { %v379_v36 = vpack.c.bf16 %v242_v28, %v242_v28  ;;  %v387_v37 = vpack.c.bf16 %v250_v29, %v250_v29  ;;  %v243_v38 = vadd.f32 %v510_v12, %v220_v30  ;;  %v251_v39 = vadd.f32 %v510_v12, %v228_v31 }
  0xe4   :  { %325 = vst.msk [vmem:[%s612_s4 + $0x8] sm:$0xf] %vm322_vm1, %v381_v32  ;;  %333 = vst.msk [vmem:[%s612_s4 + $0x28] sm:$0xf] %vm322_vm1, %v389_v33  ;;  %v382_v40 = vpack.c.bf16 %v245_v34, %v245_v34  ;;  %v390_v41 = vpack.c.bf16 %v253_v35, %v253_v35 }
  0xe5   :  { %323 = vst.msk [vmem:[%s612_s4] sm:$0xf] %vm322_vm1, %v379_v36  ;;  %331 = vst.msk [vmem:[%s612_s4 + $0x20] sm:$0xf] %vm322_vm1, %v387_v37  ;;  %v380_v42 = vpack.c.bf16 %v243_v38, %v243_v38  ;;  %v388_v43 = vpack.c.bf16 %v251_v39, %v251_v39  ;;  %v415_v44 = vpop.f32.mrb[4].mxu0  ;;  %v423_v45 = vpop.f32.mrb[4].mxu1 }
  0xe6   :  { %326 = vst.msk [vmem:[%s612_s4 + $0xc] sm:$0xf] %vm322_vm1, %v382_v40  ;;  %334 = vst.msk [vmem:[%s612_s4 + $0x2c] sm:$0xf] %vm322_vm1, %v390_v41  ;;  %v225_v46 = vmul.f32 %v415_v44, %v505_v10  ;;  %v233_v47 = vmul.f32 %v423_v45, %v505_v10  ;;  %v165_v48 = vpop.f32.mrb[5].mxu0  ;;  %v197_v49 = vpop.f32.mrb[5].mxu1 }
  0xe7   :  { %324 = vst.msk [vmem:[%s612_s4 + $0x4] sm:$0xf] %vm322_vm1, %v380_v42  ;;  %332 = vst.msk [vmem:[%s612_s4 + $0x24] sm:$0xf] %vm322_vm1, %v388_v43  ;;  %v223_v50 = vmul.f32 %v505_v10, %v165_v48  ;;  %v231_v51 = vmul.f32 %v505_v10, %v197_v49  ;;  %v416_v52 = vpop.f32.mrb[6].mxu0  ;;  %v424_v53 = vpop.f32.mrb[6].mxu1 }
  0xe8   :  { %v248_v54 = vadd.f32 %v510_v12, %v225_v46  ;;  %v256_v55 = vadd.f32 %v510_v12, %v233_v47  ;;  %v226_v56 = vmul.f32 %v416_v52, %v505_v10  ;;  %v234_v57 = vmul.f32 %v424_v53, %v505_v10  ;;  %v168_v58 = vpop.f32.mrb[7].mxu0  ;;  %v200_v59 = vpop.f32.mrb[7].mxu1 }
  0xe9   :  { %v246_v60 = vadd.f32 %v510_v12, %v223_v50  ;;  %v254_v61 = vadd.f32 %v510_v12, %v231_v51  ;;  %v224_v62 = vmul.f32 %v505_v10, %v168_v58  ;;  %v232_v63 = vmul.f32 %v505_v10, %v200_v59 }
  0xea   :  { %v385_v0 = vpack.c.bf16 %v248_v54, %v248_v54  ;;  %v393_v1 = vpack.c.bf16 %v256_v55, %v256_v55  ;;  %v249_v2 = vadd.f32 %v510_v12, %v226_v56  ;;  %v257_v3 = vadd.f32 %v510_v12, %v234_v57 }
  0xeb   :  { %v383_v4 = vpack.c.bf16 %v246_v60, %v246_v60  ;;  %v391_v5 = vpack.c.bf16 %v254_v61, %v254_v61  ;;  %v247_v6 = vadd.f32 %v510_v12, %v224_v62  ;;  %v255_v7 = vadd.f32 %v510_v12, %v232_v63 }
  0xec   :  { %329 = vst.msk [vmem:[%s612_s4 + $0x18] sm:$0xf] %vm322_vm1, %v385_v0  ;;  %337 = vst.msk [vmem:[%s612_s4 + $0x38] sm:$0xf] %vm322_vm1, %v393_v1  ;;  %v386_v8 = vpack.c.bf16 %v249_v2, %v249_v2  ;;  %v394_v9 = vpack.c.bf16 %v257_v3, %v257_v3 }
  0xed   :  { %327 = vst.msk [vmem:[%s612_s4 + $0x10] sm:$0xf] %vm322_vm1, %v383_v4  ;;  %335 = vst.msk [vmem:[%s612_s4 + $0x30] sm:$0xf] %vm322_vm1, %v391_v5  ;;  %v384_v10 = vpack.c.bf16 %v247_v6, %v247_v6  ;;  %v392_v11 = vpack.c.bf16 %v255_v7, %v255_v7 }
  0xee   :  { %330 = vst.msk [vmem:[%s612_s4 + $0x1c] sm:$0xf] %vm322_vm1, %v386_v8  ;;  %338 = vst.msk [vmem:[%s612_s4 + $0x3c] sm:$0xf] %vm322_vm1, %v394_v9 }
  0xef   :  { %328 = vst.msk [vmem:[%s612_s4 + $0x14] sm:$0xf] %vm322_vm1, %v384_v10  ;;  %336 = vst.msk [vmem:[%s612_s4 + $0x34] sm:$0xf] %vm322_vm1, %v392_v11 }

// kernel: feature_extractor_forward.59
= control target key start
LH: loop header
LB: loop body
LE: loop exit
PB: predicated region body
PF: predicated region fallthrough
CT: control target
= control target key end

     0   :  { %vm314_vm0 = vcmask 261120   ;;  %vm659_vm1 = vcmask 519168   ;;  %s1201_s1 = inlined_call_operand.vmem [shape: bf16[288,64], index: 1, kind: input, shape index: {}]   ;;  %s1202_s0 = inlined_call_operand.vmem [shape: bf16[128,288], index: 0, kind: input, shape index: {}]   ;;  %s1203_s2 = inlined_call_operand.vmem [shape: f32[1,64], index: 2, kind: input, shape index: {}]   ;;  %s1204_s3 = inlined_call_operand.vmem [shape: f32[1,64], index: 3, kind: input, shape index: {}]   ;;  %s1205_s4 = inlined_call_operand.vmem [shape: bf16[128,64], index: 4, kind: output, shape index: {}]  }
   0x1   :  { %v874_v0 = vld [vmem:[%s1201_s1 + $0x40] sm:$0xff]   ;;  %v876_v2 = vld [vmem:[%s1201_s1 + $0x48] sm:$0xff]   ;;  %v878_v4 = vld [vmem:[%s1201_s1 + $0x50] sm:$0xff]  }
   0x2   :  { %v875_v1 = vld [vmem:[%s1201_s1] sm:$0xff]   ;;  %764 = vmatprep.subr.bf16.mxu0 %v874_v0  ;;  %858 = vmatprep.subr.bf16.mxu1 %v874_v0  ;;  %v877_v3 = vld [vmem:[%s1201_s1 + $0x8] sm:$0xff]   ;;  %v879_v5 = vld [vmem:[%s1201_s1 + $0x10] sm:$0xff]  }
   0x3   :  { %765 = vmatpush3.bf16.msra.mxu0 %v875_v1  ;;  %866 = vmatpush3.bf16.msra.mxu1 %v875_v1  ;;  %v880_v6 = vld [vmem:[%s1201_s1 + $0x58] sm:$0xff]   ;;  %v882_v8 = vld [vmem:[%s1201_s1 + $0x60] sm:$0xff]   ;;  %v884_v10 = vld [vmem:[%s1201_s1 + $0x68] sm:$0xff]  }
   0x4   :  { %766 = vmatprep.subr.bf16.mxu0 %v876_v2  ;;  %859 = vmatprep.subr.bf16.mxu1 %v876_v2  ;;  %v881_v7 = vld [vmem:[%s1201_s1 + $0x18] sm:$0xff]   ;;  %v883_v9 = vld [vmem:[%s1201_s1 + $0x20] sm:$0xff]   ;;  %v885_v13 = vld [vmem:[%s1201_s1 + $0x28] sm:$0xff]  }
   0x5   :  { %v892_v11 = vld [vmem:[%s1202_s0 + $0x4] ss:$12 sps:$4 sm:$0xff]   ;;  %v895_v12 = vld [vmem:[%s1202_s0 + $0x94] ss:$12 sps:$4 sm:$0xff]   ;;  %v888_v16 = vld [vmem:[%s1201_s1 + $0x78] sm:$0xff]  }
   0x6   :  { %v886_v14 = vld [vmem:[%s1201_s1 + $0x70] sm:$0xff]   ;;  %371 = vmatprep.mubr.bf16.mxu0 %v892_v11  ;;  %419 = vmatprep.mubr.bf16.mxu1 %v895_v12  ;;  %v889_v17 = vld [vmem:[%s1201_s1 + $0x38] sm:$0xff]   ;;  %v890_v18 = vld [vmem:[%s1202_s0] ss:$12 sps:$4 sm:$0xff]  }
   0x7   :  { %767 = vmatpush3.bf16.msra.mxu0 %v877_v3  ;;  %867 = vmatpush3.bf16.msra.mxu1 %v877_v3  ;;  %v887_v15 = vld [vmem:[%s1201_s1 + $0x30] sm:$0xff]   ;;  %v896_v19 = vld [vmem:[%s1201_s1 + $0x80] sm:$0xff]   ;;  %v897_v21 = vld [vmem:[%s1202_s0 + $0x1c] ss:$12 sps:$4 sm:$0xff]  }
   0x8   :  { %768 = vmatprep.subr.bf16.mxu0 %v878_v4  ;;  %860 = vmatprep.subr.bf16.mxu1 %v878_v4  ;;  %v893_v20 = vld [vmem:[%s1202_s0 + $0x90] ss:$12 sps:$4 sm:$0xff]   ;;  %v899_v22 = vld [vmem:[%s1202_s0 + $0xac] ss:$12 sps:$4 sm:$0xff]   ;;  %v902_v25 = vld [vmem:[%s1202_s0 + $0xa8] ss:$12 sps:$4 sm:$0xff]  }
   0x9   :  { %v903_v23 = vld [vmem:[%s1201_s1 + $0x88] sm:$0xff]   ;;  %v901_v24 = vld [vmem:[%s1202_s0 + $0x18] ss:$12 sps:$4 sm:$0xff]   ;;  %v904_v26 = vld [vmem:[%s1202_s0 + $0x34] ss:$12 sps:$4 sm:$0xff]  }
   0xa   :  { %v906_v27 = vld [vmem:[%s1202_s0 + $0x8] ss:$12 sps:$4 sm:$0xff]   ;;  %v907_v28 = vld [vmem:[%s1202_s0 + $0x30] ss:$12 sps:$4 sm:$0xff]   ;;  %v908_v29 = vld [vmem:[%s1202_s0 + $0x20] ss:$12 sps:$4 sm:$0xff]  }
   0xb   :  { %769 = vmatpush3.bf16.msra.mxu0 %v879_v5  ;;  %868 = vmatpush3.bf16.msra.mxu1 %v879_v5  ;;  %v909_v30 = vld [vmem:[%s1202_s0 + $0x4c] ss:$12 sps:$4 sm:$0xff]   ;;  %v912_v32 = vld [vmem:[%s1202_s0 + $0x48] ss:$12 sps:$4 sm:$0xff]   ;;  %v913_v33 = vld [vmem:[%s1202_s0 + $0x50] ss:$12 sps:$4 sm:$0xff]  }
   0xc   :  { %770 = vmatprep.subr.bf16.mxu0 %v880_v6  ;;  %861 = vmatprep.subr.bf16.mxu1 %v880_v6  ;;  %v911_v31 = vld [vmem:[%s1202_s0 + $0x38] ss:$12 sps:$4 sm:$0xff]   ;;  %v916_v35 = vld [vmem:[%s1202_s0 + $0x68] ss:$12 sps:$4 sm:$0xff]   ;;  %v917_v36 = vld [vmem:[%s1202_s0 + $0x60] ss:$12 sps:$4 sm:$0xff]  }
   0xd   :  { %v914_v34 = vld [vmem:[%s1202_s0 + $0x64] ss:$12 sps:$4 sm:$0xff]   ;;  %v918_v37 = vld [vmem:[%s1202_s0 + $0x80] ss:$12 sps:$4 sm:$0xff]   ;;  %v919_v38 = vld [vmem:[%s1202_s0 + $0x7c] ss:$12 sps:$4 sm:$0xff]  }
   0xe   :  { %v921_v39 = vld [vmem:[%s1202_s0 + $0x98] ss:$12 sps:$4 sm:$0xff]   ;;  %v923_v41 = vld [vmem:[%s1202_s0 + $0xb0] ss:$12 sps:$4 sm:$0xff]   ;;  %v1094_v4 = vld [vmem:[%s1203_s2] ss:$0 sm:$0xff] }
   0xf   :  { %771 = vmatpush3.bf16.msra.mxu0 %v881_v7  ;;  %869 = vmatpush3.bf16.msra.mxu1 %v881_v7  ;;  %v922_v40 = vld [vmem:[%s1202_s0 + $0x78] ss:$12 sps:$4 sm:$0xff]  }
  0x10   :  { %772 = vmatprep.subr.bf16.mxu0 %v882_v8  ;;  %862 = vmatprep.subr.bf16.mxu1 %v882_v8  ;;  %v1099_v8 = vld [vmem:[%s1204_s3] ss:$0 sm:$0xff] }
  0x13   :  { %773 = vmatpush3.bf16.msra.mxu0 %v883_v9  ;;  %870 = vmatpush3.bf16.msra.mxu1 %v883_v9 }
  0x14   :  { %774 = vmatprep.subr.bf16.mxu0 %v884_v10  ;;  %863 = vmatprep.subr.bf16.mxu1 %v884_v10 }
  0x17   :  { %775 = vmatpush3.bf16.msra.mxu0 %v885_v13  ;;  %871 = vmatpush3.bf16.msra.mxu1 %v885_v13 }
  0x18   :  { %776 = vmatprep.subr.bf16.mxu0 %v886_v14  ;;  %864 = vmatprep.subr.bf16.mxu1 %v886_v14 }
  0x1b   :  { %777 = vmatpush3.bf16.msra.mxu0 %v887_v15  ;;  %872 = vmatpush3.bf16.msra.mxu1 %v887_v15 }
  0x1c   :  { %778 = vmatprep.subr.bf16.mxu0 %v888_v16  ;;  %865 = vmatprep.subr.bf16.mxu1 %v888_v16 }
  0x1f   :  { %779 = vmatpush3.bf16.msra.mxu0 %v889_v17  ;;  %873 = vmatpush3.bf16.msra.mxu1 %v889_v17 }
  0x20   :  { %838 = vmatprep.subr.bf16.mxu1 %v896_v19 }
  0x22   :  { %372 = vmatmul.mubr.bf16.vlgmr.msra.gmra.mrb[0].mxu0 %v890_v18  ;;  %420 = vmatmul.mubr.bf16.vlgmr.msra.gmra.mrb[0].mxu1 %v893_v20 }
  0x23   :  { %839 = vmatpush3.bf16.msra.mxu1 %v896_v19  ;;  %379 = vmatprep.mubr.bf16.mxu0 %v897_v21 }
  0x24   :  { %427 = vmatprep.mubr.bf16.mxu1 %v899_v22  ;;  %840 = vmatprep.subr.bf16.mxu1 %v903_v23 }
  0x27   :  { %841 = vmatpush3.bf16.msra.mxu1 %v903_v23 }
  0x2a   :  { %380 = vmatmul.mubr.bf16.gmra.mrb[4].mxu0 %v901_v24  ;;  %428 = vmatmul.mubr.bf16.gmra.mrb[4].mxu1 %v902_v25 }
  0x2b   :  { %387 = vmatprep.mubr.bf16.mxu0 %v904_v26  ;;  %842 = vmatprep.mubr.msk.bf16.mxu1 %vm314_vm0, %v906_v27 }
  0x32   :  { %388 = vmatmul.mubr.bf16.gmra.mrb[8].mxu0 %v907_v28  ;;  %843 = vmatmul.mubr.msk.bf16.vlgmr.msra.gmra.mrb[8].mxu1 %vm314_vm0, %v908_v29 }
  0x33   :  { %395 = vmatprep.mubr.bf16.mxu0 %v909_v30  ;;  %846 = vmatprep.mubr.msk.bf16.mxu1 %vm314_vm0, %v911_v31 }
  0x3a   :  { %396 = vmatmul.mubr.bf16.gmra.mrb[12].mxu0 %v912_v32  ;;  %847 = vmatmul.mubr.msk.bf16.gmra.mrb[12].mxu1 %vm314_vm0, %v913_v33 }
  0x3b   :  { %403 = vmatprep.mubr.bf16.mxu0 %v914_v34  ;;  %850 = vmatprep.mubr.msk.bf16.mxu1 %vm314_vm0, %v916_v35 }
  0x42   :  { %404 = vmatmul.mubr.bf16.gmra.mrb[16].mxu0 %v917_v36  ;;  %851 = vmatmul.mubr.msk.bf16.gmra.mrb[16].mxu1 %vm314_vm0, %v918_v37 }
  0x43   :  { %411 = vmatprep.mubr.bf16.mxu0 %v919_v38  ;;  %854 = vmatprep.mubr.msk.bf16.mxu1 %vm314_vm0, %v921_v39 }
  0x4a   :  { %412 = vmatmul.mubr.bf16.gmra.mrb[20].mxu0 %v922_v40  ;;  %855 = vmatmul.mubr.msk.bf16.gmra.mrb[20].mxu1 %vm314_vm0, %v923_v41 }
  0xf5   :  { %v780_v42 = vpop.f32.mrb[0].mxu0  ;;  %v816_v43 = vpop.f32.mrb[0].mxu1 }
  0xf6   :  { %v781_v44 = vpop.f32.mrb[1].mxu0  ;;  %v817_v45 = vpop.f32.mrb[1].mxu1 }
  0xf7   :  { %v782_v46 = vadd.f32 %v781_v44, %v780_v42  ;;  %v1083_v47 = vadd.f32 %v817_v45, %v816_v43  ;;  %v783_v48 = vpop.f32.mrb[2].mxu0  ;;  %v819_v49 = vpop.f32.mrb[2].mxu1 }
  0xf8   :  { %v784_v50 = vpop.f32.mrb[3].mxu0  ;;  %v820_v51 = vpop.f32.mrb[3].mxu1 }
  0xf9   :  { %v785_v52 = vadd.f32 %v784_v50, %v783_v48  ;;  %v1085_v53 = vadd.f32 %v820_v51, %v819_v49 }
  0xfd   :  { %v786_v54 = vpop.f32.mrb[4].mxu0  ;;  %v822_v55 = vpop.f32.mrb[4].mxu1 }
  0xfe   :  { %v787_v56 = vpop.f32.mrb[5].mxu0  ;;  %v823_v57 = vpop.f32.mrb[5].mxu1 }
  0xff   :  { %v788_v58 = vadd.f32 %v787_v56, %v786_v54  ;;  %v1087_v59 = vadd.f32 %v823_v57, %v822_v55  ;;  %v789_v60 = vpop.f32.mrb[6].mxu0  ;;  %v825_v61 = vpop.f32.mrb[6].mxu1 }
 0x100   :  { %v790_v62 = vpop.f32.mrb[7].mxu0  ;;  %v826_v63 = vpop.f32.mrb[7].mxu1 }
 0x101   :  { %v791_v0 = vadd.f32 %v790_v62, %v789_v60  ;;  %v1089_v1 = vadd.f32 %v826_v63, %v825_v61 }
 0x105   :  { %v792_v2 = vpop.f32.mrb[8].mxu0  ;;  %v844_v3 = vpop.f32.mrb[8].mxu1 }
 0x106   :  { %v479_v5 = vadd.f32 %v844_v3, %v788_v58  ;;  %v793_v6 = vpop.f32.mrb[9].mxu0  ;;  %v470_v7 = vpop.f32.mrb[9].mxu1 }
 0x107   :  { %v794_v9 = vadd.f32 %v793_v6, %v792_v2  ;;  %v471_v10 = vadd.f32 %v782_v46, %v470_v7  ;;  %v795_v11 = vpop.f32.mrb[10].mxu0  ;;  %v845_v12 = vpop.f32.mrb[10].mxu1 }
 0x108   :  { %v542_v13 = vmul.f32 %v1094_v4, %v479_v5  ;;  %v482_v14 = vadd.f32 %v845_v12, %v791_v0  ;;  %v796_v15 = vpop.f32.mrb[11].mxu0  ;;  %v473_v16 = vpop.f32.mrb[11].mxu1 }
 0x109   :  { %v540_v17 = vmul.f32 %v1094_v4, %v471_v10  ;;  %v797_v18 = vadd.f32 %v796_v15, %v795_v11  ;;  %v474_v19 = vadd.f32 %v785_v52, %v473_v16 }
 0x10a   :  { %v565_v20 = vadd.f32 %v1099_v8, %v542_v13  ;;  %v543_v21 = vmul.f32 %v1094_v4, %v482_v14 }
 0x10b   :  { %v563_v22 = vadd.f32 %v1099_v8, %v540_v17  ;;  %v541_v23 = vmul.f32 %v1094_v4, %v474_v19 }
 0x10c   :  { %v581_v24 = vmax.f32 %v565_v20, 0.0  ;;  %v566_v25 = vadd.f32 %v1099_v8, %v543_v21 }
 0x10d   :  { %v579_v26 = vmax.f32 %v563_v22, 0.0  ;;  %v564_v27 = vadd.f32 %v1099_v8, %v541_v23  ;;  %v798_v28 = vpop.f32.mrb[12].mxu0  ;;  %v848_v29 = vpop.f32.mrb[12].mxu1 }
 0x10e   :  { %v750_v30 = vpack.c.bf16 %v581_v24, %v581_v24  ;;  %v582_v31 = vmax.f32 %v566_v25, 0.0  ;;  %v799_v32 = vpop.f32.mrb[13].mxu0  ;;  %v486_v33 = vpop.f32.mrb[13].mxu1 }
 0x10f   :  { %v748_v34 = vpack.c.bf16 %v579_v26, %v579_v26  ;;  %v580_v35 = vmax.f32 %v564_v27, 0.0  ;;  %v800_v36 = vadd.f32 %v799_v32, %v798_v28  ;;  %v487_v37 = vadd.f32 %v794_v9, %v486_v33  ;;  %v801_v38 = vpop.f32.mrb[14].mxu0  ;;  %v849_v39 = vpop.f32.mrb[14].mxu1 }
 0x110   :  { %662 = vst.msk [vmem:[%s1205_s4 + $0x8] sm:$0xf] %vm659_vm1, %v750_v30  ;;  %v751_v40 = vpack.c.bf16 %v582_v31, %v582_v31  ;;  %v802_v41 = vpop.f32.mrb[15].mxu0  ;;  %v489_v42 = vpop.f32.mrb[15].mxu1 }
 0x111   :  { %660 = vst.msk [vmem:[%s1205_s4] sm:$0xf] %vm659_vm1, %v748_v34  ;;  %v749_v43 = vpack.c.bf16 %v580_v35, %v580_v35  ;;  %v495_v44 = vadd.f32 %v848_v29, %v800_v36  ;;  %v544_v45 = vmul.f32 %v1094_v4, %v487_v37  ;;  %v803_v46 = vadd.f32 %v802_v41, %v801_v38 }
 0x112   :  { %663 = vst.msk [vmem:[%s1205_s4 + $0xc] sm:$0xf] %vm659_vm1, %v751_v40  ;;  %v490_v48 = vadd.f32 %v797_v18, %v489_v42 }
 0x113   :  { %661 = vst.msk [vmem:[%s1205_s4 + $0x4] sm:$0xf] %vm659_vm1, %v749_v43  ;;  %v546_v49 = vmul.f32 %v1094_v4, %v495_v44  ;;  %v567_v50 = vadd.f32 %v1099_v8, %v544_v45  ;;  %v498_v51 = vadd.f32 %v849_v39, %v803_v46 }
 0x114   :  { %v545_v52 = vmul.f32 %v1094_v4, %v490_v48 }
 0x115   :  { %v569_v54 = vadd.f32 %v1099_v8, %v546_v49  ;;  %v583_v55 = vmax.f32 %v567_v50, 0.0  ;;  %v547_v56 = vmul.f32 %v1094_v4, %v498_v51  ;;  %v804_v57 = vpop.f32.mrb[16].mxu0  ;;  %v852_v58 = vpop.f32.mrb[16].mxu1 }
 0x116   :  { %v568_v60 = vadd.f32 %v1099_v8, %v545_v52  ;;  %v805_v61 = vpop.f32.mrb[17].mxu0  ;;  %v502_v62 = vpop.f32.mrb[17].mxu1 }
 0x117   :  { %v585_v63 = vmax.f32 %v569_v54, 0.0  ;;  %v752_v0 = vpack.c.bf16 %v583_v55, %v583_v55  ;;  %v570_v2 = vadd.f32 %v1099_v8, %v547_v56  ;;  %v806_v3 = vadd.f32 %v805_v61, %v804_v57  ;;  %v807_v5 = vpop.f32.mrb[18].mxu0  ;;  %v853_v6 = vpop.f32.mrb[18].mxu1 }
 0x118   :  { %v584_v7 = vmax.f32 %v568_v60, 0.0  ;;  %v808_v9 = vpop.f32.mrb[19].mxu0  ;;  %v505_v10 = vpop.f32.mrb[19].mxu1 }
 0x119   :  { %v754_v11 = vpack.c.bf16 %v585_v63, %v585_v63  ;;  %664 = vst.msk [vmem:[%s1205_s4 + $0x10] sm:$0xf] %vm659_vm1, %v752_v0  ;;  %v586_v12 = vmax.f32 %v570_v2, 0.0  ;;  %v503_v13 = vadd.f32 %v806_v3, %v502_v62  ;;  %v809_v14 = vadd.f32 %v808_v9, %v807_v5 }
 0x11a   :  { %v753_v15 = vpack.c.bf16 %v584_v7, %v584_v7 }
 0x11b   :  { %666 = vst.msk [vmem:[%s1205_s4 + $0x18] sm:$0xf] %vm659_vm1, %v754_v11  ;;  %v755_v16 = vpack.c.bf16 %v586_v12, %v586_v12  ;;  %v548_v17 = vmul.f32 %v1094_v4, %v503_v13  ;;  %v506_v18 = vadd.f32 %v809_v14, %v505_v10 }
 0x11c   :  { %665 = vst.msk [vmem:[%s1205_s4 + $0x14] sm:$0xf] %vm659_vm1, %v753_v15 }
 0x11d   :  { %667 = vst.msk [vmem:[%s1205_s4 + $0x1c] sm:$0xf] %vm659_vm1, %v755_v16  ;;  %v571_v19 = vadd.f32 %v1099_v8, %v548_v17  ;;  %v549_v20 = vmul.f32 %v1094_v4, %v506_v18  ;;  %v810_v21 = vpop.f32.mrb[20].mxu0  ;;  %v856_v22 = vpop.f32.mrb[20].mxu1 }
 0x11e   :  { %v527_v23 = vadd.f32 %v856_v22, %v1087_v59  ;;  %v811_v24 = vpop.f32.mrb[21].mxu0  ;;  %v518_v25 = vpop.f32.mrb[21].mxu1 }
 0x11f   :  { %v587_v26 = vmax.f32 %v571_v19, 0.0  ;;  %v572_v27 = vadd.f32 %v1099_v8, %v549_v20  ;;  %v812_v28 = vadd.f32 %v811_v24, %v810_v21  ;;  %v519_v29 = vadd.f32 %v1083_v47, %v518_v25  ;;  %v813_v30 = vpop.f32.mrb[22].mxu0  ;;  %v857_v31 = vpop.f32.mrb[22].mxu1 }
 0x120   :  { %v554_v32 = vmul.f32 %v1094_v4, %v527_v23  ;;  %v530_v33 = vadd.f32 %v857_v31, %v1089_v1  ;;  %v814_v34 = vpop.f32.mrb[23].mxu0  ;;  %v521_v35 = vpop.f32.mrb[23].mxu1 }
 0x121   :  { %v756_v36 = vpack.c.bf16 %v587_v26, %v587_v26  ;;  %v588_v37 = vmax.f32 %v572_v27, 0.0  ;;  %v511_v38 = vadd.f32 %v852_v58, %v812_v28  ;;  %v552_v59 = vmul.f32 %v1094_v4, %v519_v29 }
 0x122   :  { %v577_v39 = vadd.f32 %v1099_v8, %v554_v32  ;;  %v555_v40 = vmul.f32 %v1094_v4, %v530_v33  ;;  %v815_v41 = vadd.f32 %v814_v34, %v813_v30  ;;  %v522_v47 = vadd.f32 %v1085_v53, %v521_v35 }
 0x123   :  { %668 = vst.msk [vmem:[%s1205_s4 + $0x20] sm:$0xf] %vm659_vm1, %v756_v36  ;;  %v757_v1 = vpack.c.bf16 %v588_v37, %v588_v37  ;;  %v550_v42 = vmul.f32 %v1094_v4, %v511_v38  ;;  %v575_v43 = vadd.f32 %v1099_v8, %v552_v59 }
 0x124   :  { %v593_v44 = vmax.f32 %v577_v39, 0.0  ;;  %v578_v45 = vadd.f32 %v1099_v8, %v555_v40  ;;  %v514_v46 = vadd.f32 %v853_v6, %v815_v41  ;;  %v553_v48 = vmul.f32 %v1094_v4, %v522_v47 }
 0x125   :  { %669 = vst.msk [vmem:[%s1205_s4 + $0x24] sm:$0xf] %vm659_vm1, %v757_v1  ;;  %v573_v53 = vadd.f32 %v1099_v8, %v550_v42  ;;  %v591_v49 = vmax.f32 %v575_v43, 0.0 }
 0x126   :  { %v762_v50 = vpack.c.bf16 %v593_v44, %v593_v44  ;;  %v594_v51 = vmax.f32 %v578_v45, 0.0  ;;  %v551_v52 = vmul.f32 %v1094_v4, %v514_v46  ;;  %v576_v54 = vadd.f32 %v1099_v8, %v553_v48 }
 0x127   :  { %v589_v55 = vmax.f32 %v573_v53, 0.0  ;;  %v760_v56 = vpack.c.bf16 %v591_v49, %v591_v49 }
 0x128   :  { %674 = vst.msk [vmem:[%s1205_s4 + $0x38] sm:$0xf] %vm659_vm1, %v762_v50  ;;  %v763_v57 = vpack.c.bf16 %v594_v51, %v594_v51  ;;  %v574_v58 = vadd.f32 %v1099_v8, %v551_v52  ;;  %v592_v60 = vmax.f32 %v576_v54, 0.0 }
 0x129   :  { %v758_v61 = vpack.c.bf16 %v589_v55, %v589_v55  ;;  %672 = vst.msk [vmem:[%s1205_s4 + $0x30] sm:$0xf] %vm659_vm1, %v760_v56 }
 0x12a   :  { %675 = vst.msk [vmem:[%s1205_s4 + $0x3c] sm:$0xf] %vm659_vm1, %v763_v57  ;;  %v590_v4 = vmax.f32 %v574_v58, 0.0  ;;  %v761_v62 = vpack.c.bf16 %v592_v60, %v592_v60 }
 0x12b   :  { %670 = vst.msk [vmem:[%s1205_s4 + $0x28] sm:$0xf] %vm659_vm1, %v758_v61 }
 0x12c   :  { %v759_v8 = vpack.c.bf16 %v590_v4, %v590_v4  ;;  %673 = vst.msk [vmem:[%s1205_s4 + $0x34] sm:$0xf] %vm659_vm1, %v761_v62 }
 0x12e   :  { %671 = vst.msk [vmem:[%s1205_s4 + $0x2c] sm:$0xf] %vm659_vm1, %v759_v8 }

// kernel: feature_extractor_forward.62
= control target key start
LH: loop header
LB: loop body
LE: loop exit
PB: predicated region body
PF: predicated region fallthrough
CT: control target
= control target key end

     0   :  { %vm554_vm0 = vcmask 523264   ;;  %vm996_vm1 = vcmask 519168   ;;  %s1805_s1 = inlined_call_operand.vmem [shape: bf16[576,64], index: 1, kind: input, shape index: {}]   ;;  %s1806_s0 = inlined_call_operand.vmem [shape: bf16[128,576], index: 0, kind: input, shape index: {}]   ;;  %s1807_s2 = inlined_call_operand.vmem [shape: f32[1,64], index: 2, kind: input, shape index: {}]   ;;  %s1808_s3 = inlined_call_operand.vmem [shape: f32[1,64], index: 3, kind: input, shape index: {}]   ;;  %s1809_s4 = inlined_call_operand.vmem [shape: bf16[128,64], index: 4, kind: output, shape index: {}]  }
   0x1   :  { %v1307_v0 = vld [vmem:[%s1805_s1 + $0x40] sm:$0xff]   ;;  %v1311_v4 = vld [vmem:[%s1805_s1 + $0x48] sm:$0xff]   ;;  %v1315_v8 = vld [vmem:[%s1805_s1 + $0x50] sm:$0xff]  }
   0x2   :  { %v1308_v1 = vld [vmem:[%s1805_s1 + $0xc0] sm:$0xff]   ;;  %1135 = vmatprep.subr.bf16.mxu0 %v1307_v0  ;;  %v1312_v5 = vld [vmem:[%s1805_s1 + $0xc8] sm:$0xff]   ;;  %v1316_v9 = vld [vmem:[%s1805_s1 + $0xd0] sm:$0xff]  }
   0x3   :  { %v1309_v2 = vld [vmem:[%s1805_s1] sm:$0xff]   ;;  %1199 = vmatprep.subr.bf16.mxu1 %v1308_v1  ;;  %v1313_v6 = vld [vmem:[%s1805_s1 + $0x8] sm:$0xff]   ;;  %v1317_v10 = vld [vmem:[%s1805_s1 + $0x10] sm:$0xff]  }
   0x4   :  { %v1310_v3 = vld [vmem:[%s1805_s1 + $0x80] sm:$0xff]   ;;  %1136 = vmatpush3.bf16.msra.mxu0 %v1309_v2  ;;  %v1314_v7 = vld [vmem:[%s1805_s1 + $0x88] sm:$0xff]   ;;  %v1318_v11 = vld [vmem:[%s1805_s1 + $0x90] sm:$0xff]  }
   0x5   :  { %1200 = vmatpush3.bf16.msra.mxu1 %v1310_v3  ;;  %1137 = vmatprep.subr.bf16.mxu0 %v1311_v4  ;;  %v1319_v12 = vld [vmem:[%s1805_s1 + $0x58] sm:$0xff]   ;;  %v1323_v16 = vld [vmem:[%s1805_s1 + $0x60] sm:$0xff]   ;;  %v1327_v20 = vld [vmem:[%s1805_s1 + $0x68] sm:$0xff]  }
   0x6   :  { %1201 = vmatprep.subr.bf16.mxu1 %v1312_v5  ;;  %v1320_v13 = vld [vmem:[%s1805_s1 + $0xd8] sm:$0xff]   ;;  %v1324_v17 = vld [vmem:[%s1805_s1 + $0xe0] sm:$0xff]   ;;  %v1328_v21 = vld [vmem:[%s1805_s1 + $0xe8] sm:$0xff]  }
   0x7   :  { %v1321_v14 = vld [vmem:[%s1805_s1 + $0x18] sm:$0xff]   ;;  %v1325_v18 = vld [vmem:[%s1805_s1 + $0x20] sm:$0xff]   ;;  %v1329_v22 = vld [vmem:[%s1805_s1 + $0x28] sm:$0xff]  }
   0x8   :  { %1138 = vmatpush3.bf16.msra.mxu0 %v1313_v6  ;;  %v1322_v15 = vld [vmem:[%s1805_s1 + $0x98] sm:$0xff]   ;;  %v1326_v19 = vld [vmem:[%s1805_s1 + $0xa0] sm:$0xff]   ;;  %v1330_v23 = vld [vmem:[%s1805_s1 + $0xa8] sm:$0xff]  }
   0x9   :  { %1202 = vmatpush3.bf16.msra.mxu1 %v1314_v7  ;;  %1139 = vmatprep.subr.bf16.mxu0 %v1315_v8  ;;  %v1331_v24 = vld [vmem:[%s1805_s1 + $0x70] sm:$0xff]   ;;  %v1335_v28 = vld [vmem:[%s1805_s1 + $0x78] sm:$0xff]   ;;  %v1344_v35 = vld [vmem:[%s1806_s0 + $0xc] ss:$20 sps:$4 sm:$0xff]  }
   0xa   :  { %1203 = vmatprep.subr.bf16.mxu1 %v1316_v9  ;;  %v1332_v25 = vld [vmem:[%s1805_s1 + $0xf0] sm:$0xff]   ;;  %v1336_v29 = vld [vmem:[%s1805_s1 + $0xf8] sm:$0xff]   ;;  %v1345_v36 = vld [vmem:[%s1805_s1 + $0x100] sm:$0xff]   ;;  %708 = vmatprep.mubr.bf16.mxu1 %v1344_v35 }
   0xb   :  { %v1333_v26 = vld [vmem:[%s1805_s1 + $0x30] sm:$0xff]   ;;  %v1337_v30 = vld [vmem:[%s1805_s1 + $0x38] sm:$0xff]   ;;  %v1346_v37 = vld [vmem:[%s1806_s0 + $0x2c] ss:$20 sps:$4 sm:$0xff]  }
   0xc   :  { %1140 = vmatpush3.bf16.msra.mxu0 %v1317_v10  ;;  %v1334_v27 = vld [vmem:[%s1805_s1 + $0xb0] sm:$0xff]   ;;  %v1338_v31 = vld [vmem:[%s1805_s1 + $0xb8] sm:$0xff]   ;;  %v1358_v42 = vld [vmem:[%s1805_s1 + $0x108] sm:$0xff]  }
   0xd   :  { %1204 = vmatpush3.bf16.msra.mxu1 %v1318_v11  ;;  %1141 = vmatprep.subr.bf16.mxu0 %v1319_v12  ;;  %v1339_v32 = vld [vmem:[%s1806_s0] ss:$20 sps:$4 sm:$0xff]   ;;  %v1341_v33 = vld [vmem:[%s1806_s0 + $0x4] ss:$20 sps:$4 sm:$0xff]   ;;  %v1342_v34 = vld [vmem:[%s1806_s0 + $0x8] ss:$20 sps:$4 sm:$0xff]  }
   0xe   :  { %1205 = vmatprep.subr.bf16.mxu1 %v1320_v13  ;;  %611 = vmatprep.mubr.bf16.mxu0 %v1341_v33  ;;  %v1348_v38 = vld [vmem:[%s1806_s0 + $0x34] ss:$20 sps:$4 sm:$0xff]   ;;  %v1351_v40 = vld [vmem:[%s1806_s0 + $0x30] ss:$20 sps:$4 sm:$0xff]   ;;  %v1357_v45 = vld [vmem:[%s1806_s0 + $0x58] ss:$20 sps:$4 sm:$0xff]  }
   0xf   :  { %v1350_v39 = vld [vmem:[%s1806_s0 + $0x28] ss:$20 sps:$4 sm:$0xff]   ;;  %v1356_v44 = vld [vmem:[%s1806_s0 + $0x50] ss:$20 sps:$4 sm:$0xff]   ;;  %v1363_v50 = vld [vmem:[%s1806_s0 + $0x78] ss:$20 sps:$4 sm:$0xff]  }
  0x10   :  { %1142 = vmatpush3.bf16.msra.mxu0 %v1321_v14  ;;  %v1352_v41 = vld [vmem:[%s1806_s0 + $0x54] ss:$20 sps:$4 sm:$0xff]   ;;  %v1354_v43 = vld [vmem:[%s1806_s0 + $0x5c] ss:$20 sps:$4 sm:$0xff]   ;;  %v1361_v48 = vld [vmem:[%s1806_s0 + $0x84] ss:$20 sps:$4 sm:$0xff]  }
  0x11   :  { %1206 = vmatpush3.bf16.msra.mxu1 %v1322_v15  ;;  %1143 = vmatprep.subr.bf16.mxu0 %v1323_v16  ;;  %v1371_v46 = vld [vmem:[%s1805_s1 + $0x110] sm:$0xff]   ;;  %v1384_v49 = vld [vmem:[%s1805_s1 + $0x118] sm:$0xff]   ;;  %v1367_v53 = vld [vmem:[%s1806_s0 + $0xac] ss:$20 sps:$4 sm:$0xff]  }
  0x12   :  { %1207 = vmatprep.subr.bf16.mxu1 %v1324_v17  ;;  %v1359_v47 = vld [vmem:[%s1806_s0 + $0x7c] ss:$20 sps:$4 sm:$0xff]   ;;  %v1364_v51 = vld [vmem:[%s1806_s0 + $0x80] ss:$20 sps:$4 sm:$0xff]   ;;  %v1365_v52 = vld [vmem:[%s1806_s0 + $0xa4] ss:$20 sps:$4 sm:$0xff]  }
  0x13   :  { %v1369_v54 = vld [vmem:[%s1806_s0 + $0xa0] ss:$20 sps:$4 sm:$0xff]   ;;  %v1370_v55 = vld [vmem:[%s1806_s0 + $0xa8] ss:$20 sps:$4 sm:$0xff]   ;;  %v1377_v59 = vld [vmem:[%s1806_s0 + $0xd0] ss:$20 sps:$4 sm:$0xff]  }
  0x14   :  { %1144 = vmatpush3.bf16.msra.mxu0 %v1325_v18  ;;  %v1372_v56 = vld [vmem:[%s1806_s0 + $0xcc] ss:$20 sps:$4 sm:$0xff]   ;;  %v1374_v57 = vld [vmem:[%s1806_s0 + $0xd4] ss:$20 sps:$4 sm:$0xff]   ;;  %v1380_v61 = vld [vmem:[%s1806_s0 + $0xfc] ss:$20 sps:$4 sm:$0xff]  }
  0x15   :  { %1208 = vmatpush3.bf16.msra.mxu1 %v1326_v19  ;;  %1145 = vmatprep.subr.bf16.mxu0 %v1327_v20  ;;  %v1376_v58 = vld [vmem:[%s1806_s0 + $0xc8] ss:$20 sps:$4 sm:$0xff]   ;;  %v1382_v62 = vld [vmem:[%s1806_s0 + $0xf0] ss:$20 sps:$4 sm:$0xff]   ;;  %v1383_v63 = vld [vmem:[%s1806_s0 + $0xf8] ss:$20 sps:$4 sm:$0xff]  }
  0x16   :  { %1209 = vmatprep.subr.bf16.mxu1 %v1328_v21  ;;  %v1378_v60 = vld [vmem:[%s1806_s0 + $0xf4] ss:$20 sps:$4 sm:$0xff]   ;;  %v1385_v0 = vld [vmem:[%s1806_s0 + $0x11c] ss:$20 sps:$4 sm:$0xff]   ;;  %v1387_v1 = vld [vmem:[%s1806_s0 + $0x124] ss:$20 sps:$4 sm:$0xff]  }
  0x17   :  { %v1389_v2 = vld [vmem:[%s1806_s0 + $0x118] ss:$20 sps:$4 sm:$0xff]   ;;  %v1390_v3 = vld [vmem:[%s1806_s0 + $0x120] ss:$20 sps:$4 sm:$0xff]   ;;  %v1391_v4 = vld [vmem:[%s1806_s0 + $0x10] ss:$20 sps:$4 sm:$0xff]  }
  0x18   :  { %1146 = vmatpush3.bf16.msra.mxu0 %v1329_v22  ;;  %v1392_v5 = vld [vmem:[%s1806_s0 + $0xb0] ss:$20 sps:$4 sm:$0xff]   ;;  %v1393_v6 = vld [vmem:[%s1806_s0 + $0x38] ss:$20 sps:$4 sm:$0xff]   ;;  %v1395_v8 = vld [vmem:[%s1806_s0 + $0x60] ss:$20 sps:$4 sm:$0xff]  }
  0x19   :  { %1210 = vmatpush3.bf16.msra.mxu1 %v1330_v23  ;;  %1147 = vmatprep.subr.bf16.mxu0 %v1331_v24  ;;  %v1394_v7 = vld [vmem:[%s1806_s0 + $0xd8] ss:$20 sps:$4 sm:$0xff]   ;;  %v1396_v9 = vld [vmem:[%s1806_s0 + $0x100] ss:$20 sps:$4 sm:$0xff]   ;;  %v1397_v10 = vld [vmem:[%s1806_s0 + $0x88] ss:$20 sps:$4 sm:$0xff]  }
  0x1a   :  { %1211 = vmatprep.subr.bf16.mxu1 %v1332_v25  ;;  %v1398_v11 = vld [vmem:[%s1806_s0 + $0x128] ss:$20 sps:$4 sm:$0xff]  }
  0x1c   :  { %1148 = vmatpush3.bf16.msra.mxu0 %v1333_v26 }
  0x1d   :  { %1212 = vmatpush3.bf16.msra.mxu1 %v1334_v27  ;;  %1149 = vmatprep.subr.bf16.mxu0 %v1335_v28 }
  0x1e   :  { %1213 = vmatprep.subr.bf16.mxu1 %v1336_v29 }
  0x20   :  { %1150 = vmatpush3.bf16.msra.mxu0 %v1337_v30 }
  0x21   :  { %1214 = vmatpush3.bf16.msra.mxu1 %v1338_v31  ;;  %1275 = vmatprep.subr.bf16.mxu0 %v1345_v36 }
  0x22   :  { %1299 = vmatprep.subr.bf16.mxu1 %v1345_v36 }
  0x23   :  { %612 = vmatmul.mubr.bf16.vlgmr.msra.gmra.mrb[0].mxu0 %v1339_v32 }
  0x24   :  { %709 = vmatmul.mubr.bf16.vlgmr.msra.gmra.mrb[0].mxu1 %v1342_v34  ;;  %1276 = vmatpush3.bf16.msra.mxu0 %v1345_v36 }
  0x25   :  { %1303 = vmatpush3.bf16.msra.mxu1 %v1345_v36  ;;  %619 = vmatprep.mubr.bf16.mxu0 %v1346_v37 }
  0x26   :  { %716 = vmatprep.mubr.bf16.mxu1 %v1348_v38  ;;  %1277 = vmatprep.subr.bf16.mxu0 %v1358_v42 }
  0x27   :  { %1300 = vmatprep.subr.bf16.mxu1 %v1358_v42 }
  0x28   :  { %1278 = vmatpush3.bf16.msra.mxu0 %v1358_v42 }
  0x29   :  { %1304 = vmatpush3.bf16.msra.mxu1 %v1358_v42  ;;  %1279 = vmatprep.subr.bf16.mxu0 %v1371_v46 }
  0x2a   :  { %1301 = vmatprep.subr.bf16.mxu1 %v1371_v46 }
  0x2b   :  { %620 = vmatmul.mubr.bf16.gmra.mrb[4].mxu0 %v1350_v39 }
  0x2c   :  { %717 = vmatmul.mubr.bf16.gmra.mrb[4].mxu1 %v1351_v40  ;;  %627 = vmatprep.mubr.bf16.mxu0 %v1352_v41 }
  0x2d   :  { %724 = vmatprep.mubr.bf16.mxu1 %v1354_v43  ;;  %1280 = vmatpush3.bf16.msra.mxu0 %v1371_v46 }
  0x2e   :  { %1305 = vmatpush3.bf16.msra.mxu1 %v1371_v46  ;;  %1281 = vmatprep.subr.bf16.mxu0 %v1384_v49 }
  0x2f   :  { %1302 = vmatprep.subr.bf16.mxu1 %v1384_v49 }
  0x31   :  { %1282 = vmatpush3.bf16.msra.mxu0 %v1384_v49 }
  0x32   :  { %1306 = vmatpush3.bf16.msra.mxu1 %v1384_v49 }
  0x33   :  { %628 = vmatmul.mubr.bf16.gmra.mrb[8].mxu0 %v1356_v44 }
  0x34   :  { %725 = vmatmul.mubr.bf16.gmra.mrb[8].mxu1 %v1357_v45  ;;  %635 = vmatprep.mubr.bf16.mxu0 %v1359_v47 }
  0x35   :  { %732 = vmatprep.mubr.bf16.mxu1 %v1361_v48 }
  0x3b   :  { %636 = vmatmul.mubr.bf16.gmra.mrb[12].mxu0 %v1363_v50 }
  0x3c   :  { %733 = vmatmul.mubr.bf16.gmra.mrb[12].mxu1 %v1364_v51  ;;  %643 = vmatprep.mubr.bf16.mxu0 %v1365_v52 }
  0x3d   :  { %740 = vmatprep.mubr.bf16.mxu1 %v1367_v53 }
  0x43   :  { %644 = vmatmul.mubr.bf16.gmra.mrb[16].mxu0 %v1369_v54 }
  0x44   :  { %741 = vmatmul.mubr.bf16.gmra.mrb[16].mxu1 %v1370_v55  ;;  %651 = vmatprep.mubr.bf16.mxu0 %v1372_v56 }
  0x45   :  { %748 = vmatprep.mubr.bf16.mxu1 %v1374_v57 }
  0x4b   :  { %652 = vmatmul.mubr.bf16.gmra.mrb[20].mxu0 %v1376_v58 }
  0x4c   :  { %749 = vmatmul.mubr.bf16.gmra.mrb[20].mxu1 %v1377_v59  ;;  %659 = vmatprep.mubr.bf16.mxu0 %v1378_v60 }
  0x4d   :  { %756 = vmatprep.mubr.bf16.mxu1 %v1380_v61 }
  0x53   :  { %660 = vmatmul.mubr.bf16.gmra.mrb[24].mxu0 %v1382_v62 }
  0x54   :  { %757 = vmatmul.mubr.bf16.gmra.mrb[24].mxu1 %v1383_v63  ;;  %667 = vmatprep.mubr.bf16.mxu0 %v1385_v0 }
  0x55   :  { %764 = vmatprep.mubr.bf16.mxu1 %v1387_v1 }
  0x5b   :  { %668 = vmatmul.mubr.bf16.gmra.mrb[28].mxu0 %v1389_v2 }
  0x5c   :  { %765 = vmatmul.mubr.bf16.gmra.mrb[28].mxu1 %v1390_v3  ;;  %1283 = vmatprep.mubr.msk.bf16.mxu0 %vm554_vm0, %v1391_v4 }
  0x5d   :  { %1291 = vmatprep.mubr.msk.bf16.mxu1 %vm554_vm0, %v1392_v5 }
  0x63   :  { %1284 = vmatmul.mubr.msk.bf16.vlgmr.msra.gmra.mrb[32].mxu0 %vm554_vm0, %v1393_v6 }
  0x64   :  { %1292 = vmatmul.mubr.msk.bf16.vlgmr.msra.gmra.mrb[32].mxu1 %vm554_vm0, %v1394_v7  ;;  %1287 = vmatprep.mubr.msk.bf16.mxu0 %vm554_vm0, %v1395_v8 }
  0x65   :  { %1295 = vmatprep.mubr.msk.bf16.mxu1 %vm554_vm0, %v1396_v9 }
  0x6b   :  { %1288 = vmatmul.mubr.msk.bf16.gmra.mrb[36].mxu0 %vm554_vm0, %v1397_v10 }
  0x6c   :  { %1296 = vmatmul.mubr.msk.bf16.gmra.mrb[36].mxu1 %vm554_vm0, %v1398_v11 }
  0xf6   :  { %v1151_v12 = vpop.f32.mrb[0].mxu0 }
  0xf7   :  { %v1215_v13 = vpop.f32.mrb[0].mxu1  ;;  %v1152_v14 = vpop.f32.mrb[1].mxu0 }
  0xf8   :  { %v1153_v15 = vadd.f32 %v1152_v14, %v1151_v12  ;;  %v1216_v16 = vpop.f32.mrb[1].mxu1  ;;  %v1154_v17 = vpop.f32.mrb[2].mxu0 }
  0xf9   :  { %v1217_v18 = vadd.f32 %v1216_v16, %v1215_v13  ;;  %v1218_v19 = vpop.f32.mrb[2].mxu1  ;;  %v1155_v20 = vpop.f32.mrb[3].mxu0 }
  0xfa   :  { %v1156_v21 = vadd.f32 %v1155_v20, %v1154_v17  ;;  %v1219_v22 = vpop.f32.mrb[3].mxu1 }
  0xfb   :  { %v1220_v23 = vadd.f32 %v1219_v22, %v1218_v19  ;;  %v1660_v24 = vadd.f32 %v1217_v18, %v1153_v15 }
  0xfd   :  { %v1662_v25 = vadd.f32 %v1220_v23, %v1156_v21 }
  0xfe   :  { %v1157_v26 = vpop.f32.mrb[4].mxu0 }
  0xff   :  { %v1221_v27 = vpop.f32.mrb[4].mxu1  ;;  %v1158_v28 = vpop.f32.mrb[5].mxu0 }
 0x100   :  { %v1159_v29 = vadd.f32 %v1158_v28, %v1157_v26  ;;  %v1222_v30 = vpop.f32.mrb[5].mxu1  ;;  %v1160_v31 = vpop.f32.mrb[6].mxu0 }
 0x101   :  { %v1223_v32 = vadd.f32 %v1222_v30, %v1221_v27  ;;  %v1224_v33 = vpop.f32.mrb[6].mxu1  ;;  %v1161_v34 = vpop.f32.mrb[7].mxu0 }
 0x102   :  { %v1162_v35 = vadd.f32 %v1161_v34, %v1160_v31  ;;  %v1225_v36 = vpop.f32.mrb[7].mxu1 }
 0x103   :  { %v1226_v37 = vadd.f32 %v1225_v36, %v1224_v33  ;;  %v1664_v38 = vadd.f32 %v1223_v32, %v1159_v29 }
 0x105   :  { %v1666_v39 = vadd.f32 %v1226_v37, %v1162_v35 }
 0x106   :  { %v1163_v40 = vpop.f32.mrb[8].mxu0 }
 0x107   :  { %v1227_v41 = vpop.f32.mrb[8].mxu1  ;;  %v1164_v42 = vpop.f32.mrb[9].mxu0 }
 0x108   :  { %v1165_v43 = vadd.f32 %v1164_v42, %v1163_v40  ;;  %v1228_v44 = vpop.f32.mrb[9].mxu1  ;;  %v1166_v45 = vpop.f32.mrb[10].mxu0 }
 0x109   :  { %v1229_v46 = vadd.f32 %v1228_v44, %v1227_v41  ;;  %v1230_v47 = vpop.f32.mrb[10].mxu1  ;;  %v1167_v48 = vpop.f32.mrb[11].mxu0 }
 0x10a   :  { %v1168_v49 = vadd.f32 %v1167_v48, %v1166_v45  ;;  %v1231_v50 = vpop.f32.mrb[11].mxu1 }
 0x10b   :  { %v1232_v51 = vadd.f32 %v1231_v50, %v1230_v47  ;;  %v1668_v52 = vadd.f32 %v1229_v46, %v1165_v43 }
 0x10d   :  { %v1670_v53 = vadd.f32 %v1232_v51, %v1168_v49 }
 0x10e   :  { %v1169_v54 = vpop.f32.mrb[12].mxu0 }
 0x10f   :  { %v1233_v55 = vpop.f32.mrb[12].mxu1  ;;  %v1170_v56 = vpop.f32.mrb[13].mxu0 }
 0x110   :  { %v1171_v57 = vadd.f32 %v1170_v56, %v1169_v54  ;;  %v1234_v58 = vpop.f32.mrb[13].mxu1  ;;  %v1172_v59 = vpop.f32.mrb[14].mxu0 }
 0x111   :  { %v1235_v60 = vadd.f32 %v1234_v58, %v1233_v55  ;;  %v1236_v61 = vpop.f32.mrb[14].mxu1  ;;  %v1173_v62 = vpop.f32.mrb[15].mxu0 }
 0x112   :  { %v1174_v63 = vadd.f32 %v1173_v62, %v1172_v59  ;;  %v1237_v0 = vpop.f32.mrb[15].mxu1 }
 0x113   :  { %v1238_v1 = vadd.f32 %v1237_v0, %v1236_v61  ;;  %v1672_v2 = vadd.f32 %v1235_v60, %v1171_v57 }
 0x115   :  { %v1674_v3 = vadd.f32 %v1238_v1, %v1174_v63 }
 0x116   :  { %v1175_v4 = vpop.f32.mrb[16].mxu0 }
 0x117   :  { %v1239_v5 = vpop.f32.mrb[16].mxu1  ;;  %v1176_v6 = vpop.f32.mrb[17].mxu0 }
 0x118   :  { %v1177_v7 = vadd.f32 %v1176_v6, %v1175_v4  ;;  %v1240_v8 = vpop.f32.mrb[17].mxu1  ;;  %v1178_v9 = vpop.f32.mrb[18].mxu0 }
 0x119   :  { %v1241_v10 = vadd.f32 %v1240_v8, %v1239_v5  ;;  %v1242_v11 = vpop.f32.mrb[18].mxu1  ;;  %v1179_v12 = vpop.f32.mrb[19].mxu0  ;;  %v1689_v5 = vld [vmem:[%s1807_s2] ss:$0 sm:$0xff] }
 0x11a   :  { %v1180_v13 = vadd.f32 %v1179_v12, %v1178_v9  ;;  %v1243_v14 = vpop.f32.mrb[19].mxu1  ;;  %v1695_v9 = vld [vmem:[%s1808_s3] ss:$0 sm:$0xff] }
 0x11b   :  { %v1244_v15 = vadd.f32 %v1243_v14, %v1242_v11  ;;  %v743_v16 = vadd.f32 %v1241_v10, %v1177_v7 }
 0x11d   :  { %v1676_v17 = vadd.f32 %v1244_v15, %v1180_v13 }
 0x11e   :  { %v1181_v18 = vpop.f32.mrb[20].mxu0 }
 0x11f   :  { %v1245_v19 = vpop.f32.mrb[20].mxu1  ;;  %v1182_v20 = vpop.f32.mrb[21].mxu0 }
 0x120   :  { %v1183_v21 = vadd.f32 %v1182_v20, %v1181_v18  ;;  %v1246_v22 = vpop.f32.mrb[21].mxu1  ;;  %v1184_v23 = vpop.f32.mrb[22].mxu0 }
 0x121   :  { %v1247_v26 = vadd.f32 %v1246_v22, %v1245_v19  ;;  %v1248_v27 = vpop.f32.mrb[22].mxu1  ;;  %v1185_v28 = vpop.f32.mrb[23].mxu0 }
 0x122   :  { %v1186_v29 = vadd.f32 %v1185_v28, %v1184_v23  ;;  %v1249_v30 = vpop.f32.mrb[23].mxu1 }
 0x123   :  { %v1250_v31 = vadd.f32 %v1249_v30, %v1248_v27  ;;  %v751_v32 = vadd.f32 %v1247_v26, %v1183_v21 }
 0x125   :  { %v754_v33 = vadd.f32 %v1250_v31, %v1186_v29 }
 0x126   :  { %v1187_v34 = vpop.f32.mrb[24].mxu0 }
 0x127   :  { %v1251_v35 = vpop.f32.mrb[24].mxu1  ;;  %v1188_v36 = vpop.f32.mrb[25].mxu0 }
 0x128   :  { %v1189_v37 = vadd.f32 %v1188_v36, %v1187_v34  ;;  %v1252_v40 = vpop.f32.mrb[25].mxu1  ;;  %v1190_v41 = vpop.f32.mrb[26].mxu0 }
 0x129   :  { %v1253_v42 = vadd.f32 %v1252_v40, %v1251_v35  ;;  %v1254_v43 = vpop.f32.mrb[26].mxu1  ;;  %v1191_v44 = vpop.f32.mrb[27].mxu0 }
 0x12a   :  { %v1192_v45 = vadd.f32 %v1191_v44, %v1190_v41  ;;  %v1255_v46 = vpop.f32.mrb[27].mxu1 }
 0x12b   :  { %v1256_v47 = vadd.f32 %v1255_v46, %v1254_v43  ;;  %v1678_v48 = vadd.f32 %v1253_v42, %v1189_v37 }
 0x12d   :  { %v1680_v49 = vadd.f32 %v1256_v47, %v1192_v45 }
 0x12e   :  { %v1193_v50 = vpop.f32.mrb[28].mxu0 }
 0x12f   :  { %v1257_v51 = vpop.f32.mrb[28].mxu1  ;;  %v1194_v54 = vpop.f32.mrb[29].mxu0 }
 0x130   :  { %v1195_v55 = vadd.f32 %v1194_v54, %v1193_v50  ;;  %v1258_v56 = vpop.f32.mrb[29].mxu1  ;;  %v1196_v57 = vpop.f32.mrb[30].mxu0 }
 0x131   :  { %v1259_v58 = vadd.f32 %v1258_v56, %v1257_v51  ;;  %v1260_v59 = vpop.f32.mrb[30].mxu1  ;;  %v1197_v60 = vpop.f32.mrb[31].mxu0 }
 0x132   :  { %v1198_v61 = vadd.f32 %v1197_v60, %v1196_v57  ;;  %v1261_v62 = vpop.f32.mrb[31].mxu1 }
 0x133   :  { %v1262_v63 = vadd.f32 %v1261_v62, %v1260_v59  ;;  %v1682_v0 = vadd.f32 %v1259_v58, %v1195_v55 }
 0x135   :  { %v1684_v1 = vadd.f32 %v1262_v63, %v1198_v61 }
 0x136   :  { %v1285_v4 = vpop.f32.mrb[32].mxu0 }
 0x137   :  { %v816_v6 = vadd.f32 %v1285_v4, %v1664_v38  ;;  %v1293_v7 = vpop.f32.mrb[32].mxu1  ;;  %v807_v8 = vpop.f32.mrb[33].mxu0 }
 0x138   :  { %v848_v10 = vadd.f32 %v1293_v7, %v751_v32  ;;  %v808_v11 = vadd.f32 %v807_v8, %v1660_v24  ;;  %v839_v12 = vpop.f32.mrb[33].mxu1  ;;  %v1286_v13 = vpop.f32.mrb[34].mxu0 }
 0x139   :  { %v879_v14 = vmul.f32 %v1689_v5, %v816_v6  ;;  %v840_v15 = vadd.f32 %v839_v12, %v743_v16  ;;  %v819_v18 = vadd.f32 %v1286_v13, %v1666_v39  ;;  %v1294_v19 = vpop.f32.mrb[34].mxu1  ;;  %v810_v38 = vpop.f32.mrb[35].mxu0 }
 0x13a   :  { %v887_v20 = vmul.f32 %v1689_v5, %v848_v10  ;;  %v877_v21 = vmul.f32 %v1689_v5, %v808_v11  ;;  %v851_v22 = vadd.f32 %v1294_v19, %v754_v33  ;;  %v811_v23 = vadd.f32 %v810_v38, %v1662_v25  ;;  %v842_v26 = vpop.f32.mrb[35].mxu1 }
 0x13b   :  { %v902_v24 = vadd.f32 %v1695_v9, %v879_v14  ;;  %v885_v27 = vmul.f32 %v1689_v5, %v840_v15  ;;  %v880_v28 = vmul.f32 %v1689_v5, %v819_v18  ;;  %v843_v16 = vadd.f32 %v842_v26, %v1676_v17 }
 0x13c   :  { %v910_v39 = vadd.f32 %v1695_v9, %v887_v20  ;;  %v900_v29 = vadd.f32 %v1695_v9, %v877_v21  ;;  %v888_v30 = vmul.f32 %v1689_v5, %v851_v22  ;;  %v878_v31 = vmul.f32 %v1689_v5, %v811_v23 }
 0x13d   :  { %v918_v32 = vmax.f32 %v902_v24, 0.0  ;;  %v908_v25 = vadd.f32 %v1695_v9, %v885_v27  ;;  %v903_v33 = vadd.f32 %v1695_v9, %v880_v28  ;;  %v886_v34 = vmul.f32 %v1689_v5, %v843_v16 }
 0x13e   :  { %v926_v35 = vmax.f32 %v910_v39, 0.0  ;;  %v916_v36 = vmax.f32 %v900_v29, 0.0  ;;  %v911_v37 = vadd.f32 %v1695_v9, %v888_v30  ;;  %v901_v17 = vadd.f32 %v1695_v9, %v878_v31  ;;  %v1289_v40 = vpop.f32.mrb[36].mxu0 }
 0x13f   :  { %v1121_v41 = vpack.c.bf16 %v918_v32, %v918_v32  ;;  %v924_v42 = vmax.f32 %v908_v25, 0.0  ;;  %v919_v43 = vmax.f32 %v903_v33, 0.0  ;;  %v909_v44 = vadd.f32 %v1695_v9, %v886_v34  ;;  %v1297_v45 = vpop.f32.mrb[36].mxu1  ;;  %v823_v46 = vpop.f32.mrb[37].mxu0 }
 0x140   :  { %v1129_v47 = vpack.c.bf16 %v926_v35, %v926_v35  ;;  %v1119_v50 = vpack.c.bf16 %v916_v36, %v916_v36  ;;  %v927_v51 = vmax.f32 %v911_v37, 0.0  ;;  %v917_v54 = vmax.f32 %v901_v17, 0.0  ;;  %v855_v55 = vpop.f32.mrb[37].mxu1  ;;  %v1290_v56 = vpop.f32.mrb[38].mxu0 }
 0x141   :  { %999 = vst.msk [vmem:[%s1809_s4 + $0x8] sm:$0xf] %vm996_vm1, %v1121_v41  ;;  %v1127_v57 = vpack.c.bf16 %v924_v42, %v924_v42  ;;  %v1122_v58 = vpack.c.bf16 %v919_v43, %v919_v43  ;;  %v925_v59 = vmax.f32 %v909_v44, 0.0  ;;  %v832_v60 = vadd.f32 %v1289_v40, %v1672_v2  ;;  %v1298_v61 = vpop.f32.mrb[38].mxu1  ;;  %v826_v62 = vpop.f32.mrb[39].mxu0 }
 0x142   :  { %1007 = vst.msk [vmem:[%s1809_s4 + $0x28] sm:$0xf] %vm996_vm1, %v1129_v47  ;;  %997 = vst.msk [vmem:[%s1809_s4] sm:$0xf] %vm996_vm1, %v1119_v50  ;;  %v1130_v63 = vpack.c.bf16 %v927_v51, %v927_v51  ;;  %v1120_v4 = vpack.c.bf16 %v917_v54, %v917_v54  ;;  %v864_v6 = vadd.f32 %v1297_v45, %v1682_v0  ;;  %v858_v8 = vpop.f32.mrb[39].mxu1 }
 0x143   :  { %v824_v7 = vadd.f32 %v823_v46, %v1668_v52  ;;  %1005 = vst.msk [vmem:[%s1809_s4 + $0x20] sm:$0xf] %vm996_vm1, %v1127_v57  ;;  %1000 = vst.msk [vmem:[%s1809_s4 + $0xc] sm:$0xf] %vm996_vm1, %v1122_v58  ;;  %v1128_v2 = vpack.c.bf16 %v925_v59, %v925_v59  ;;  %v883_v10 = vmul.f32 %v1689_v5, %v832_v60 }
 0x144   :  { %v856_v11 = vadd.f32 %v855_v55, %v1678_v48  ;;  %v835_v0 = vadd.f32 %v1290_v56, %v1674_v3  ;;  %1008 = vst.msk [vmem:[%s1809_s4 + $0x2c] sm:$0xf] %vm996_vm1, %v1130_v63  ;;  %998 = vst.msk [vmem:[%s1809_s4 + $0x4] sm:$0xf] %vm996_vm1, %v1120_v4  ;;  %v891_v52 = vmul.f32 %v1689_v5, %v864_v6 }
 0x145   :  { %v881_v12 = vmul.f32 %v1689_v5, %v824_v7  ;;  %v867_v13 = vadd.f32 %v1298_v61, %v1684_v1  ;;  %v827_v48 = vadd.f32 %v826_v62, %v1670_v53  ;;  %1006 = vst.msk [vmem:[%s1809_s4 + $0x24] sm:$0xf] %vm996_vm1, %v1128_v2  ;;  %v906_v3 = vadd.f32 %v1695_v9, %v883_v10 }
 0x146   :  { %v889_v14 = vmul.f32 %v1689_v5, %v856_v11  ;;  %v884_v15 = vmul.f32 %v1689_v5, %v835_v0  ;;  %v859_v18 = vadd.f32 %v858_v8, %v1680_v49  ;;  %v914_v19 = vadd.f32 %v1695_v9, %v891_v52 }
 0x147   :  { %v904_v38 = vadd.f32 %v1695_v9, %v881_v12  ;;  %v892_v1 = vmul.f32 %v1689_v5, %v867_v13  ;;  %v882_v53 = vmul.f32 %v1689_v5, %v827_v48  ;;  %v922_v20 = vmax.f32 %v906_v3, 0.0 }
 0x148   :  { %v912_v21 = vadd.f32 %v1695_v9, %v889_v14  ;;  %v907_v22 = vadd.f32 %v1695_v9, %v884_v15  ;;  %v890_v23 = vmul.f32 %v1689_v5, %v859_v18  ;;  %v930_v26 = vmax.f32 %v914_v19, 0.0 }
 0x149   :  { %v920_v24 = vmax.f32 %v904_v38, 0.0  ;;  %v915_v27 = vadd.f32 %v1695_v9, %v892_v1  ;;  %v905_v49 = vadd.f32 %v1695_v9, %v882_v53  ;;  %v1125_v28 = vpack.c.bf16 %v922_v20, %v922_v20 }
 0x14a   :  { %v928_v16 = vmax.f32 %v912_v21, 0.0  ;;  %v923_v39 = vmax.f32 %v907_v22, 0.0  ;;  %v913_v29 = vadd.f32 %v1695_v9, %v890_v23  ;;  %v1133_v30 = vpack.c.bf16 %v930_v26, %v930_v26 }
 0x14b   :  { %v1123_v31 = vpack.c.bf16 %v920_v24, %v920_v24  ;;  %v931_v32 = vmax.f32 %v915_v27, 0.0  ;;  %v921_v25 = vmax.f32 %v905_v49, 0.0  ;;  %1003 = vst.msk [vmem:[%s1809_s4 + $0x18] sm:$0xf] %vm996_vm1, %v1125_v28 }
 0x14c   :  { %v1131_v5 = vpack.c.bf16 %v928_v16, %v928_v16  ;;  %v1126_v33 = vpack.c.bf16 %v923_v39, %v923_v39  ;;  %v929_v34 = vmax.f32 %v913_v29, 0.0  ;;  %1011 = vst.msk [vmem:[%s1809_s4 + $0x38] sm:$0xf] %vm996_vm1, %v1133_v30 }
 0x14d   :  { %1001 = vst.msk [vmem:[%s1809_s4 + $0x10] sm:$0xf] %vm996_vm1, %v1123_v31  ;;  %v1134_v9 = vpack.c.bf16 %v931_v32, %v931_v32  ;;  %v1124_v35 = vpack.c.bf16 %v921_v25, %v921_v25 }
 0x14e   :  { %1009 = vst.msk [vmem:[%s1809_s4 + $0x30] sm:$0xf] %vm996_vm1, %v1131_v5  ;;  %1004 = vst.msk [vmem:[%s1809_s4 + $0x1c] sm:$0xf] %vm996_vm1, %v1126_v33  ;;  %v1132_v36 = vpack.c.bf16 %v929_v34, %v929_v34 }
 0x14f   :  { %1012 = vst.msk [vmem:[%s1809_s4 + $0x3c] sm:$0xf] %vm996_vm1, %v1134_v9  ;;  %1002 = vst.msk [vmem:[%s1809_s4 + $0x14] sm:$0xf] %vm996_vm1, %v1124_v35 }
 0x150   :  { %1010 = vst.msk [vmem:[%s1809_s4 + $0x34] sm:$0xf] %vm996_vm1, %v1132_v36 }

// kernel: feature_extractor_forward.61
= control target key start
LH: loop header
LB: loop body
LE: loop exit
PB: predicated region body
PF: predicated region fallthrough
CT: control target
= control target key end

     0   :  { %vm557_vm0 = vcmask 523264   ;;  %vm1047_vm1 = vcmask 519168   ;;  %s1978_s1 = inlined_call_operand.vmem [shape: bf16[576,64], index: 1, kind: input, shape index: {}]   ;;  %s1979_s0 = inlined_call_operand.vmem [shape: bf16[128,576], index: 0, kind: input, shape index: {}]   ;;  %s1980_s4 = inlined_call_operand.vmem [shape: bf16[128,64], index: 4, kind: input, shape index: {}]   ;;  %s1981_s2 = inlined_call_operand.vmem [shape: f32[1,64], index: 2, kind: input, shape index: {}]   ;;  %s1982_s3 = inlined_call_operand.vmem [shape: f32[1,64], index: 3, kind: input, shape index: {}]   ;;  %s1983_s5 = inlined_call_operand.vmem [shape: bf16[128,64], index: 5, kind: output, shape index: {}]  }
   0x1   :  { %v1397_v0 = vld [vmem:[%s1978_s1 + $0x40] sm:$0xff]   ;;  %v1401_v4 = vld [vmem:[%s1978_s1 + $0x48] sm:$0xff]   ;;  %v1405_v8 = vld [vmem:[%s1978_s1 + $0x50] sm:$0xff]  }
   0x2   :  { %v1398_v1 = vld [vmem:[%s1978_s1 + $0xc0] sm:$0xff]   ;;  %1225 = vmatprep.subr.bf16.mxu0 %v1397_v0  ;;  %v1402_v5 = vld [vmem:[%s1978_s1 + $0xc8] sm:$0xff]   ;;  %v1406_v9 = vld [vmem:[%s1978_s1 + $0xd0] sm:$0xff]  }
   0x3   :  { %v1399_v2 = vld [vmem:[%s1978_s1] sm:$0xff]   ;;  %1289 = vmatprep.subr.bf16.mxu1 %v1398_v1  ;;  %v1403_v6 = vld [vmem:[%s1978_s1 + $0x8] sm:$0xff]   ;;  %v1407_v10 = vld [vmem:[%s1978_s1 + $0x10] sm:$0xff]  }
   0x4   :  { %v1400_v3 = vld [vmem:[%s1978_s1 + $0x80] sm:$0xff]   ;;  %1226 = vmatpush3.bf16.msra.mxu0 %v1399_v2  ;;  %v1404_v7 = vld [vmem:[%s1978_s1 + $0x88] sm:$0xff]   ;;  %v1408_v11 = vld [vmem:[%s1978_s1 + $0x90] sm:$0xff]  }
   0x5   :  { %1290 = vmatpush3.bf16.msra.mxu1 %v1400_v3  ;;  %1227 = vmatprep.subr.bf16.mxu0 %v1401_v4  ;;  %v1409_v12 = vld [vmem:[%s1978_s1 + $0x58] sm:$0xff]   ;;  %v1413_v16 = vld [vmem:[%s1978_s1 + $0x60] sm:$0xff]   ;;  %v1417_v20 = vld [vmem:[%s1978_s1 + $0x68] sm:$0xff]  }
   0x6   :  { %1291 = vmatprep.subr.bf16.mxu1 %v1402_v5  ;;  %v1410_v13 = vld [vmem:[%s1978_s1 + $0xd8] sm:$0xff]   ;;  %v1414_v17 = vld [vmem:[%s1978_s1 + $0xe0] sm:$0xff]   ;;  %v1418_v21 = vld [vmem:[%s1978_s1 + $0xe8] sm:$0xff]  }
   0x7   :  { %v1411_v14 = vld [vmem:[%s1978_s1 + $0x18] sm:$0xff]   ;;  %v1415_v18 = vld [vmem:[%s1978_s1 + $0x20] sm:$0xff]   ;;  %v1419_v22 = vld [vmem:[%s1978_s1 + $0x28] sm:$0xff]  }
   0x8   :  { %1228 = vmatpush3.bf16.msra.mxu0 %v1403_v6  ;;  %v1412_v15 = vld [vmem:[%s1978_s1 + $0x98] sm:$0xff]   ;;  %v1416_v19 = vld [vmem:[%s1978_s1 + $0xa0] sm:$0xff]   ;;  %v1420_v23 = vld [vmem:[%s1978_s1 + $0xa8] sm:$0xff]  }
   0x9   :  { %1292 = vmatpush3.bf16.msra.mxu1 %v1404_v7  ;;  %1229 = vmatprep.subr.bf16.mxu0 %v1405_v8  ;;  %v1421_v24 = vld [vmem:[%s1978_s1 + $0x70] sm:$0xff]   ;;  %v1425_v28 = vld [vmem:[%s1978_s1 + $0x78] sm:$0xff]   ;;  %v1434_v35 = vld [vmem:[%s1979_s0 + $0xc] ss:$20 sps:$4 sm:$0xff]  }
   0xa   :  { %1293 = vmatprep.subr.bf16.mxu1 %v1406_v9  ;;  %v1422_v25 = vld [vmem:[%s1978_s1 + $0xf0] sm:$0xff]   ;;  %v1426_v29 = vld [vmem:[%s1978_s1 + $0xf8] sm:$0xff]   ;;  %v1435_v36 = vld [vmem:[%s1978_s1 + $0x100] sm:$0xff]   ;;  %711 = vmatprep.mubr.bf16.mxu1 %v1434_v35 }
   0xb   :  { %v1423_v26 = vld [vmem:[%s1978_s1 + $0x30] sm:$0xff]   ;;  %v1427_v30 = vld [vmem:[%s1978_s1 + $0x38] sm:$0xff]   ;;  %v1436_v37 = vld [vmem:[%s1979_s0 + $0x2c] ss:$20 sps:$4 sm:$0xff]  }
   0xc   :  { %1230 = vmatpush3.bf16.msra.mxu0 %v1407_v10  ;;  %v1424_v27 = vld [vmem:[%s1978_s1 + $0xb0] sm:$0xff]   ;;  %v1428_v31 = vld [vmem:[%s1978_s1 + $0xb8] sm:$0xff]   ;;  %v1448_v42 = vld [vmem:[%s1978_s1 + $0x108] sm:$0xff]  }
   0xd   :  { %1294 = vmatpush3.bf16.msra.mxu1 %v1408_v11  ;;  %1231 = vmatprep.subr.bf16.mxu0 %v1409_v12  ;;  %v1429_v32 = vld [vmem:[%s1979_s0] ss:$20 sps:$4 sm:$0xff]   ;;  %v1431_v33 = vld [vmem:[%s1979_s0 + $0x4] ss:$20 sps:$4 sm:$0xff]   ;;  %v1432_v34 = vld [vmem:[%s1979_s0 + $0x8] ss:$20 sps:$4 sm:$0xff]  }
   0xe   :  { %1295 = vmatprep.subr.bf16.mxu1 %v1410_v13  ;;  %614 = vmatprep.mubr.bf16.mxu0 %v1431_v33  ;;  %v1438_v38 = vld [vmem:[%s1979_s0 + $0x34] ss:$20 sps:$4 sm:$0xff]   ;;  %v1441_v40 = vld [vmem:[%s1979_s0 + $0x30] ss:$20 sps:$4 sm:$0xff]   ;;  %v1447_v45 = vld [vmem:[%s1979_s0 + $0x58] ss:$20 sps:$4 sm:$0xff]  }
   0xf   :  { %v1440_v39 = vld [vmem:[%s1979_s0 + $0x28] ss:$20 sps:$4 sm:$0xff]   ;;  %v1446_v44 = vld [vmem:[%s1979_s0 + $0x50] ss:$20 sps:$4 sm:$0xff]   ;;  %v1453_v50 = vld [vmem:[%s1979_s0 + $0x78] ss:$20 sps:$4 sm:$0xff]  }
  0x10   :  { %1232 = vmatpush3.bf16.msra.mxu0 %v1411_v14  ;;  %v1442_v41 = vld [vmem:[%s1979_s0 + $0x54] ss:$20 sps:$4 sm:$0xff]   ;;  %v1444_v43 = vld [vmem:[%s1979_s0 + $0x5c] ss:$20 sps:$4 sm:$0xff]   ;;  %v1451_v48 = vld [vmem:[%s1979_s0 + $0x84] ss:$20 sps:$4 sm:$0xff]  }
  0x11   :  { %1296 = vmatpush3.bf16.msra.mxu1 %v1412_v15  ;;  %1233 = vmatprep.subr.bf16.mxu0 %v1413_v16  ;;  %v1461_v46 = vld [vmem:[%s1978_s1 + $0x110] sm:$0xff]   ;;  %v1474_v49 = vld [vmem:[%s1978_s1 + $0x118] sm:$0xff]   ;;  %v1457_v53 = vld [vmem:[%s1979_s0 + $0xac] ss:$20 sps:$4 sm:$0xff]  }
  0x12   :  { %1297 = vmatprep.subr.bf16.mxu1 %v1414_v17  ;;  %v1449_v47 = vld [vmem:[%s1979_s0 + $0x7c] ss:$20 sps:$4 sm:$0xff]   ;;  %v1454_v51 = vld [vmem:[%s1979_s0 + $0x80] ss:$20 sps:$4 sm:$0xff]   ;;  %v1455_v52 = vld [vmem:[%s1979_s0 + $0xa4] ss:$20 sps:$4 sm:$0xff]  }
  0x13   :  { %v1459_v54 = vld [vmem:[%s1979_s0 + $0xa0] ss:$20 sps:$4 sm:$0xff]   ;;  %v1460_v55 = vld [vmem:[%s1979_s0 + $0xa8] ss:$20 sps:$4 sm:$0xff]   ;;  %v1467_v59 = vld [vmem:[%s1979_s0 + $0xd0] ss:$20 sps:$4 sm:$0xff]  }
  0x14   :  { %1234 = vmatpush3.bf16.msra.mxu0 %v1415_v18  ;;  %v1462_v56 = vld [vmem:[%s1979_s0 + $0xcc] ss:$20 sps:$4 sm:$0xff]   ;;  %v1464_v57 = vld [vmem:[%s1979_s0 + $0xd4] ss:$20 sps:$4 sm:$0xff]   ;;  %v1470_v61 = vld [vmem:[%s1979_s0 + $0xfc] ss:$20 sps:$4 sm:$0xff]  }
  0x15   :  { %1298 = vmatpush3.bf16.msra.mxu1 %v1416_v19  ;;  %1235 = vmatprep.subr.bf16.mxu0 %v1417_v20  ;;  %v1466_v58 = vld [vmem:[%s1979_s0 + $0xc8] ss:$20 sps:$4 sm:$0xff]   ;;  %v1472_v62 = vld [vmem:[%s1979_s0 + $0xf0] ss:$20 sps:$4 sm:$0xff]   ;;  %v1473_v63 = vld [vmem:[%s1979_s0 + $0xf8] ss:$20 sps:$4 sm:$0xff]  }
  0x16   :  { %1299 = vmatprep.subr.bf16.mxu1 %v1418_v21  ;;  %v1468_v60 = vld [vmem:[%s1979_s0 + $0xf4] ss:$20 sps:$4 sm:$0xff]   ;;  %v1475_v0 = vld [vmem:[%s1979_s0 + $0x11c] ss:$20 sps:$4 sm:$0xff]   ;;  %v1477_v1 = vld [vmem:[%s1979_s0 + $0x124] ss:$20 sps:$4 sm:$0xff]  }
  0x17   :  { %v1479_v2 = vld [vmem:[%s1979_s0 + $0x118] ss:$20 sps:$4 sm:$0xff]   ;;  %v1480_v3 = vld [vmem:[%s1979_s0 + $0x120] ss:$20 sps:$4 sm:$0xff]   ;;  %v1481_v4 = vld [vmem:[%s1979_s0 + $0x10] ss:$20 sps:$4 sm:$0xff]  }
  0x18   :  { %1236 = vmatpush3.bf16.msra.mxu0 %v1419_v22  ;;  %v1482_v5 = vld [vmem:[%s1979_s0 + $0xb0] ss:$20 sps:$4 sm:$0xff]   ;;  %v1483_v6 = vld [vmem:[%s1979_s0 + $0x38] ss:$20 sps:$4 sm:$0xff]   ;;  %v1485_v8 = vld [vmem:[%s1979_s0 + $0x60] ss:$20 sps:$4 sm:$0xff]  }
  0x19   :  { %1300 = vmatpush3.bf16.msra.mxu1 %v1420_v23  ;;  %1237 = vmatprep.subr.bf16.mxu0 %v1421_v24  ;;  %v1484_v7 = vld [vmem:[%s1979_s0 + $0xd8] ss:$20 sps:$4 sm:$0xff]   ;;  %v1486_v9 = vld [vmem:[%s1979_s0 + $0x100] ss:$20 sps:$4 sm:$0xff]   ;;  %v1487_v10 = vld [vmem:[%s1979_s0 + $0x88] ss:$20 sps:$4 sm:$0xff]  }
  0x1a   :  { %1301 = vmatprep.subr.bf16.mxu1 %v1422_v25  ;;  %v1488_v11 = vld [vmem:[%s1979_s0 + $0x128] ss:$20 sps:$4 sm:$0xff]  }
  0x1c   :  { %1238 = vmatpush3.bf16.msra.mxu0 %v1423_v26 }
  0x1d   :  { %1302 = vmatpush3.bf16.msra.mxu1 %v1424_v27  ;;  %1239 = vmatprep.subr.bf16.mxu0 %v1425_v28 }
  0x1e   :  { %1303 = vmatprep.subr.bf16.mxu1 %v1426_v29 }
  0x20   :  { %1240 = vmatpush3.bf16.msra.mxu0 %v1427_v30 }
  0x21   :  { %1304 = vmatpush3.bf16.msra.mxu1 %v1428_v31  ;;  %1365 = vmatprep.subr.bf16.mxu0 %v1435_v36 }
  0x22   :  { %1389 = vmatprep.subr.bf16.mxu1 %v1435_v36 }
  0x23   :  { %615 = vmatmul.mubr.bf16.vlgmr.msra.gmra.mrb[0].mxu0 %v1429_v32 }
  0x24   :  { %712 = vmatmul.mubr.bf16.vlgmr.msra.gmra.mrb[0].mxu1 %v1432_v34  ;;  %1366 = vmatpush3.bf16.msra.mxu0 %v1435_v36 }
  0x25   :  { %1393 = vmatpush3.bf16.msra.mxu1 %v1435_v36  ;;  %622 = vmatprep.mubr.bf16.mxu0 %v1436_v37 }
  0x26   :  { %719 = vmatprep.mubr.bf16.mxu1 %v1438_v38  ;;  %1367 = vmatprep.subr.bf16.mxu0 %v1448_v42 }
  0x27   :  { %1390 = vmatprep.subr.bf16.mxu1 %v1448_v42 }
  0x28   :  { %1368 = vmatpush3.bf16.msra.mxu0 %v1448_v42 }
  0x29   :  { %1394 = vmatpush3.bf16.msra.mxu1 %v1448_v42  ;;  %1369 = vmatprep.subr.bf16.mxu0 %v1461_v46 }
  0x2a   :  { %1391 = vmatprep.subr.bf16.mxu1 %v1461_v46 }
  0x2b   :  { %623 = vmatmul.mubr.bf16.gmra.mrb[4].mxu0 %v1440_v39 }
  0x2c   :  { %720 = vmatmul.mubr.bf16.gmra.mrb[4].mxu1 %v1441_v40  ;;  %630 = vmatprep.mubr.bf16.mxu0 %v1442_v41 }
  0x2d   :  { %727 = vmatprep.mubr.bf16.mxu1 %v1444_v43  ;;  %1370 = vmatpush3.bf16.msra.mxu0 %v1461_v46 }
  0x2e   :  { %1395 = vmatpush3.bf16.msra.mxu1 %v1461_v46  ;;  %1371 = vmatprep.subr.bf16.mxu0 %v1474_v49 }
  0x2f   :  { %1392 = vmatprep.subr.bf16.mxu1 %v1474_v49 }
  0x31   :  { %1372 = vmatpush3.bf16.msra.mxu0 %v1474_v49 }
  0x32   :  { %1396 = vmatpush3.bf16.msra.mxu1 %v1474_v49 }
  0x33   :  { %631 = vmatmul.mubr.bf16.gmra.mrb[8].mxu0 %v1446_v44 }
  0x34   :  { %728 = vmatmul.mubr.bf16.gmra.mrb[8].mxu1 %v1447_v45  ;;  %638 = vmatprep.mubr.bf16.mxu0 %v1449_v47 }
  0x35   :  { %735 = vmatprep.mubr.bf16.mxu1 %v1451_v48 }
  0x3b   :  { %639 = vmatmul.mubr.bf16.gmra.mrb[12].mxu0 %v1453_v50 }
  0x3c   :  { %736 = vmatmul.mubr.bf16.gmra.mrb[12].mxu1 %v1454_v51  ;;  %646 = vmatprep.mubr.bf16.mxu0 %v1455_v52 }
  0x3d   :  { %743 = vmatprep.mubr.bf16.mxu1 %v1457_v53 }
  0x43   :  { %647 = vmatmul.mubr.bf16.gmra.mrb[16].mxu0 %v1459_v54 }
  0x44   :  { %744 = vmatmul.mubr.bf16.gmra.mrb[16].mxu1 %v1460_v55  ;;  %654 = vmatprep.mubr.bf16.mxu0 %v1462_v56 }
  0x45   :  { %751 = vmatprep.mubr.bf16.mxu1 %v1464_v57 }
  0x4b   :  { %655 = vmatmul.mubr.bf16.gmra.mrb[20].mxu0 %v1466_v58 }
  0x4c   :  { %752 = vmatmul.mubr.bf16.gmra.mrb[20].mxu1 %v1467_v59  ;;  %662 = vmatprep.mubr.bf16.mxu0 %v1468_v60 }
  0x4d   :  { %759 = vmatprep.mubr.bf16.mxu1 %v1470_v61 }
  0x53   :  { %663 = vmatmul.mubr.bf16.gmra.mrb[24].mxu0 %v1472_v62 }
  0x54   :  { %760 = vmatmul.mubr.bf16.gmra.mrb[24].mxu1 %v1473_v63  ;;  %670 = vmatprep.mubr.bf16.mxu0 %v1475_v0 }
  0x55   :  { %767 = vmatprep.mubr.bf16.mxu1 %v1477_v1 }
  0x5b   :  { %671 = vmatmul.mubr.bf16.gmra.mrb[28].mxu0 %v1479_v2 }
  0x5c   :  { %768 = vmatmul.mubr.bf16.gmra.mrb[28].mxu1 %v1480_v3  ;;  %1373 = vmatprep.mubr.msk.bf16.mxu0 %vm557_vm0, %v1481_v4 }
  0x5d   :  { %1381 = vmatprep.mubr.msk.bf16.mxu1 %vm557_vm0, %v1482_v5 }
  0x63   :  { %1374 = vmatmul.mubr.msk.bf16.vlgmr.msra.gmra.mrb[32].mxu0 %vm557_vm0, %v1483_v6 }
  0x64   :  { %1382 = vmatmul.mubr.msk.bf16.vlgmr.msra.gmra.mrb[32].mxu1 %vm557_vm0, %v1484_v7  ;;  %1377 = vmatprep.mubr.msk.bf16.mxu0 %vm557_vm0, %v1485_v8 }
  0x65   :  { %1385 = vmatprep.mubr.msk.bf16.mxu1 %vm557_vm0, %v1486_v9 }
  0x6b   :  { %1378 = vmatmul.mubr.msk.bf16.gmra.mrb[36].mxu0 %vm557_vm0, %v1487_v10 }
  0x6c   :  { %1386 = vmatmul.mubr.msk.bf16.gmra.mrb[36].mxu1 %vm557_vm0, %v1488_v11 }
  0xf6   :  { %v1241_v12 = vpop.f32.mrb[0].mxu0 }
  0xf7   :  { %v1305_v13 = vpop.f32.mrb[0].mxu1  ;;  %v1242_v14 = vpop.f32.mrb[1].mxu0 }
  0xf8   :  { %v1243_v15 = vadd.f32 %v1242_v14, %v1241_v12  ;;  %v1306_v16 = vpop.f32.mrb[1].mxu1  ;;  %v1244_v17 = vpop.f32.mrb[2].mxu0 }
  0xf9   :  { %v1307_v18 = vadd.f32 %v1306_v16, %v1305_v13  ;;  %v1308_v19 = vpop.f32.mrb[2].mxu1  ;;  %v1245_v20 = vpop.f32.mrb[3].mxu0 }
  0xfa   :  { %v1246_v21 = vadd.f32 %v1245_v20, %v1244_v17  ;;  %v1309_v22 = vpop.f32.mrb[3].mxu1 }
  0xfb   :  { %v1310_v23 = vadd.f32 %v1309_v22, %v1308_v19  ;;  %v1755_v24 = vadd.f32 %v1307_v18, %v1243_v15 }
  0xfd   :  { %v1757_v25 = vadd.f32 %v1310_v23, %v1246_v21 }
  0xfe   :  { %v1247_v26 = vpop.f32.mrb[4].mxu0 }
  0xff   :  { %v1311_v27 = vpop.f32.mrb[4].mxu1  ;;  %v1248_v28 = vpop.f32.mrb[5].mxu0 }
 0x100   :  { %v1249_v29 = vadd.f32 %v1248_v28, %v1247_v26  ;;  %v1312_v30 = vpop.f32.mrb[5].mxu1  ;;  %v1250_v31 = vpop.f32.mrb[6].mxu0 }
 0x101   :  { %v1313_v32 = vadd.f32 %v1312_v30, %v1311_v27  ;;  %v1314_v33 = vpop.f32.mrb[6].mxu1  ;;  %v1251_v34 = vpop.f32.mrb[7].mxu0 }
 0x102   :  { %v1252_v35 = vadd.f32 %v1251_v34, %v1250_v31  ;;  %v1315_v36 = vpop.f32.mrb[7].mxu1 }
 0x103   :  { %v1316_v37 = vadd.f32 %v1315_v36, %v1314_v33  ;;  %v1759_v38 = vadd.f32 %v1313_v32, %v1249_v29 }
 0x105   :  { %v1761_v39 = vadd.f32 %v1316_v37, %v1252_v35 }
 0x106   :  { %v1253_v40 = vpop.f32.mrb[8].mxu0 }
 0x107   :  { %v1317_v41 = vpop.f32.mrb[8].mxu1  ;;  %v1254_v42 = vpop.f32.mrb[9].mxu0 }
 0x108   :  { %v1255_v43 = vadd.f32 %v1254_v42, %v1253_v40  ;;  %v1318_v44 = vpop.f32.mrb[9].mxu1  ;;  %v1256_v45 = vpop.f32.mrb[10].mxu0 }
 0x109   :  { %v1319_v46 = vadd.f32 %v1318_v44, %v1317_v41  ;;  %v1320_v47 = vpop.f32.mrb[10].mxu1  ;;  %v1257_v48 = vpop.f32.mrb[11].mxu0 }
 0x10a   :  { %v1258_v49 = vadd.f32 %v1257_v48, %v1256_v45  ;;  %v1321_v50 = vpop.f32.mrb[11].mxu1 }
 0x10b   :  { %v1322_v51 = vadd.f32 %v1321_v50, %v1320_v47  ;;  %v1763_v52 = vadd.f32 %v1319_v46, %v1255_v43 }
 0x10d   :  { %v1765_v53 = vadd.f32 %v1322_v51, %v1258_v49 }
 0x10e   :  { %v1259_v54 = vpop.f32.mrb[12].mxu0 }
 0x10f   :  { %v1323_v55 = vpop.f32.mrb[12].mxu1  ;;  %v1260_v56 = vpop.f32.mrb[13].mxu0 }
 0x110   :  { %v1261_v57 = vadd.f32 %v1260_v56, %v1259_v54  ;;  %v1324_v58 = vpop.f32.mrb[13].mxu1  ;;  %v1262_v59 = vpop.f32.mrb[14].mxu0 }
 0x111   :  { %v1325_v60 = vadd.f32 %v1324_v58, %v1323_v55  ;;  %v1326_v61 = vpop.f32.mrb[14].mxu1  ;;  %v1263_v62 = vpop.f32.mrb[15].mxu0 }
 0x112   :  { %v1264_v63 = vadd.f32 %v1263_v62, %v1262_v59  ;;  %v1327_v0 = vpop.f32.mrb[15].mxu1  ;;  %v1789_v62 = vld [vmem:[%s1980_s4 + $0x28] sm:$0xff]  }
 0x113   :  { %v1328_v1 = vadd.f32 %v1327_v0, %v1326_v61  ;;  %v1767_v2 = vadd.f32 %v1325_v60, %v1261_v57  ;;  %v1784_v61 = vld [vmem:[%s1980_s4 + $0x8] sm:$0xff]  }
 0x115   :  { %v1769_v3 = vadd.f32 %v1328_v1, %v1264_v63  ;;  %v1794_v63 = vld [vmem:[%s1980_s4] sm:$0xff]  }
 0x116   :  { %v1265_v4 = vpop.f32.mrb[16].mxu0 }
 0x117   :  { %v1329_v5 = vpop.f32.mrb[16].mxu1  ;;  %v1266_v6 = vpop.f32.mrb[17].mxu0 }
 0x118   :  { %v1267_v7 = vadd.f32 %v1266_v6, %v1265_v4  ;;  %v1330_v8 = vpop.f32.mrb[17].mxu1  ;;  %v1268_v9 = vpop.f32.mrb[18].mxu0  ;;  %v1799_v4 = vld [vmem:[%s1980_s4 + $0x20] sm:$0xff]   ;;  %v1804_v6 = vld [vmem:[%s1980_s4 + $0x18] sm:$0xff]  }
 0x119   :  { %v1331_v10 = vadd.f32 %v1330_v8, %v1329_v5  ;;  %v1332_v11 = vpop.f32.mrb[18].mxu1  ;;  %v1269_v12 = vpop.f32.mrb[19].mxu0  ;;  %v1811_v8 = vld [vmem:[%s1980_s4 + $0x38] sm:$0xff]  }
 0x11a   :  { %v1270_v13 = vadd.f32 %v1269_v12, %v1268_v9  ;;  %v1333_v14 = vpop.f32.mrb[19].mxu1  ;;  %v1192_v9 = vunpack.c.l.bf16 %v1784_v61  ;;  %v1819_v12 = vld [vmem:[%s1980_s4 + $0x10] sm:$0xff]  }
 0x11b   :  { %v1334_v15 = vadd.f32 %v1333_v14, %v1332_v11  ;;  %v1771_v16 = vadd.f32 %v1331_v10, %v1267_v7  ;;  %v1208_v10 = vunpack.c.l.bf16 %v1789_v62  ;;  %v1188_v11 = vunpack.c.l.bf16 %v1794_v63 }
 0x11c   :  { %v1204_v14 = vunpack.c.l.bf16 %v1799_v4 }
 0x11d   :  { %v1773_v17 = vadd.f32 %v1334_v15, %v1270_v13  ;;  %v1824_v13 = vld [vmem:[%s1980_s4 + $0x30] sm:$0xff]   ;;  %v1193_v15 = vunpack.c.h.bf16 %v1784_v61 }
 0x11e   :  { %v1271_v18 = vpop.f32.mrb[20].mxu0 }
 0x11f   :  { %v1335_v19 = vpop.f32.mrb[20].mxu1  ;;  %v1272_v20 = vpop.f32.mrb[21].mxu0 }
 0x120   :  { %v1273_v21 = vadd.f32 %v1272_v20, %v1271_v18  ;;  %v1336_v22 = vpop.f32.mrb[21].mxu1  ;;  %v1274_v23 = vpop.f32.mrb[22].mxu0  ;;  %v1209_v18 = vunpack.c.h.bf16 %v1789_v62 }
 0x121   :  { %v1337_v26 = vadd.f32 %v1336_v22, %v1335_v19  ;;  %v1338_v27 = vpop.f32.mrb[22].mxu1  ;;  %v1275_v28 = vpop.f32.mrb[23].mxu0  ;;  %v1189_v22 = vunpack.c.h.bf16 %v1794_v63 }
 0x122   :  { %v1276_v29 = vadd.f32 %v1275_v28, %v1274_v23  ;;  %v1339_v30 = vpop.f32.mrb[23].mxu1  ;;  %v1205_v23 = vunpack.c.h.bf16 %v1799_v4 }
 0x123   :  { %v1340_v31 = vadd.f32 %v1339_v30, %v1338_v27  ;;  %v754_v32 = vadd.f32 %v1337_v26, %v1273_v21  ;;  %v1834_v21 = vld [vmem:[%s1981_s2] ss:$0 sm:$0xff]  ;;  %v1200_v26 = vunpack.c.l.bf16 %v1804_v6  ;;  %v1216_v27 = vunpack.c.l.bf16 %v1811_v8 }
 0x125   :  { %v1775_v33 = vadd.f32 %v1340_v31, %v1276_v29  ;;  %v1196_v31 = vunpack.c.l.bf16 %v1819_v12 }
 0x126   :  { %v1277_v34 = vpop.f32.mrb[24].mxu0 }
 0x127   :  { %v1341_v35 = vpop.f32.mrb[24].mxu1  ;;  %v1278_v36 = vpop.f32.mrb[25].mxu0 }
 0x128   :  { %v1279_v37 = vadd.f32 %v1278_v36, %v1277_v34  ;;  %v1342_v40 = vpop.f32.mrb[25].mxu1  ;;  %v1280_v41 = vpop.f32.mrb[26].mxu0  ;;  %v1212_v34 = vunpack.c.l.bf16 %v1824_v13  ;;  %v1847_v36 = vld [vmem:[%s1982_s3] ss:$0 sm:$0xff] }
 0x129   :  { %v1343_v42 = vadd.f32 %v1342_v40, %v1341_v35  ;;  %v1344_v43 = vpop.f32.mrb[26].mxu1  ;;  %v1281_v44 = vpop.f32.mrb[27].mxu0  ;;  %v1201_v35 = vunpack.c.h.bf16 %v1804_v6 }
 0x12a   :  { %v1282_v45 = vadd.f32 %v1281_v44, %v1280_v41  ;;  %v1345_v46 = vpop.f32.mrb[27].mxu1 }
 0x12b   :  { %v1346_v47 = vadd.f32 %v1345_v46, %v1344_v43  ;;  %v1777_v48 = vadd.f32 %v1343_v42, %v1279_v37  ;;  %v1197_v43 = vunpack.c.h.bf16 %v1819_v12 }
 0x12d   :  { %v1779_v49 = vadd.f32 %v1346_v47, %v1282_v45 }
 0x12e   :  { %v1283_v50 = vpop.f32.mrb[28].mxu0 }
 0x12f   :  { %v1347_v51 = vpop.f32.mrb[28].mxu1  ;;  %v1284_v54 = vpop.f32.mrb[29].mxu0 }
 0x130   :  { %v1285_v55 = vadd.f32 %v1284_v54, %v1283_v50  ;;  %v1348_v56 = vpop.f32.mrb[29].mxu1  ;;  %v1286_v57 = vpop.f32.mrb[30].mxu0 }
 0x131   :  { %v1349_v58 = vadd.f32 %v1348_v56, %v1347_v51  ;;  %v1350_v59 = vpop.f32.mrb[30].mxu1  ;;  %v1287_v60 = vpop.f32.mrb[31].mxu0  ;;  %v1213_v51 = vunpack.c.h.bf16 %v1824_v13 }
 0x132   :  { %v1288_v0 = vadd.f32 %v1287_v60, %v1286_v57  ;;  %v1351_v1 = vpop.f32.mrb[31].mxu1 }
 0x133   :  { %v1352_v5 = vadd.f32 %v1351_v1, %v1350_v59  ;;  %v1806_v7 = vadd.f32 %v1349_v58, %v1285_v55 }
 0x135   :  { %v1829_v19 = vadd.f32 %v1352_v5, %v1288_v0 }
 0x136   :  { %v1375_v20 = vpop.f32.mrb[32].mxu0 }
 0x137   :  { %v819_v28 = vadd.f32 %v1375_v20, %v1759_v38  ;;  %v1383_v29 = vpop.f32.mrb[32].mxu1  ;;  %v810_v30 = vpop.f32.mrb[33].mxu0  ;;  %v1217_v38 = vunpack.c.h.bf16 %v1811_v8 }
 0x138   :  { %v851_v37 = vadd.f32 %v1383_v29, %v754_v32  ;;  %v811_v40 = vadd.f32 %v810_v30, %v1755_v24  ;;  %v842_v41 = vpop.f32.mrb[33].mxu1  ;;  %v1376_v42 = vpop.f32.mrb[34].mxu0 }
 0x139   :  { %v882_v44 = vmul.f32 %v1834_v21, %v819_v28  ;;  %v843_v45 = vadd.f32 %v842_v41, %v1771_v16  ;;  %v822_v46 = vadd.f32 %v1376_v42, %v1761_v39  ;;  %v1384_v47 = vpop.f32.mrb[34].mxu1  ;;  %v813_v50 = vpop.f32.mrb[35].mxu0 }
 0x13a   :  { %v890_v32 = vmul.f32 %v1834_v21, %v851_v37  ;;  %v880_v24 = vmul.f32 %v1834_v21, %v811_v40  ;;  %v854_v54 = vadd.f32 %v1384_v47, %v1775_v33  ;;  %v814_v55 = vadd.f32 %v813_v50, %v1757_v25  ;;  %v845_v56 = vpop.f32.mrb[35].mxu1 }
 0x13b   :  { %v905_v57 = vadd.f32 %v1847_v36, %v882_v44  ;;  %v888_v58 = vmul.f32 %v1834_v21, %v843_v45  ;;  %v883_v16 = vmul.f32 %v1834_v21, %v822_v46  ;;  %v846_v39 = vadd.f32 %v845_v56, %v1773_v17 }
 0x13c   :  { %v913_v59 = vadd.f32 %v1847_v36, %v890_v32  ;;  %v903_v60 = vadd.f32 %v1847_v36, %v880_v24  ;;  %v891_v61 = vmul.f32 %v1834_v21, %v854_v54  ;;  %v881_v62 = vmul.f32 %v1834_v21, %v814_v55 }
 0x13d   :  { %v953_v33 = vadd.f32 %v1192_v9, %v905_v57  ;;  %v911_v25 = vadd.f32 %v1847_v36, %v888_v58  ;;  %v906_v63 = vadd.f32 %v1847_v36, %v883_v16  ;;  %v889_v0 = vmul.f32 %v1834_v21, %v846_v39 }
 0x13e   :  { %v961_v1 = vadd.f32 %v1208_v10, %v913_v59  ;;  %v951_v4 = vadd.f32 %v1188_v11, %v903_v60  ;;  %v914_v5 = vadd.f32 %v1847_v36, %v891_v61  ;;  %v904_v17 = vadd.f32 %v1847_v36, %v881_v62  ;;  %v1379_v20 = vpop.f32.mrb[36].mxu0 }
 0x13f   :  { %v969_v28 = vmax.f32 %v953_v33, 0.0  ;;  %v959_v29 = vadd.f32 %v1204_v14, %v911_v25  ;;  %v954_v30 = vadd.f32 %v1193_v15, %v906_v63  ;;  %v912_v37 = vadd.f32 %v1847_v36, %v889_v0  ;;  %v1387_v40 = vpop.f32.mrb[36].mxu1  ;;  %v826_v9 = vpop.f32.mrb[37].mxu0 }
 0x140   :  { %v977_v41 = vmax.f32 %v961_v1, 0.0  ;;  %v967_v42 = vmax.f32 %v951_v4, 0.0  ;;  %v962_v44 = vadd.f32 %v1209_v18, %v914_v5  ;;  %v952_v45 = vadd.f32 %v1189_v22, %v904_v17  ;;  %v858_v46 = vpop.f32.mrb[37].mxu1  ;;  %v1380_v47 = vpop.f32.mrb[38].mxu0 }
 0x141   :  { %v1172_v10 = vpack.c.bf16 %v969_v28, %v969_v28  ;;  %v975_v11 = vmax.f32 %v959_v29, 0.0  ;;  %v970_v50 = vmax.f32 %v954_v30, 0.0  ;;  %v960_v32 = vadd.f32 %v1205_v23, %v912_v37  ;;  %v1388_v24 = vpop.f32.mrb[38].mxu1  ;;  %v829_v54 = vpop.f32.mrb[39].mxu0 }
 0x142   :  { %v1180_v55 = vpack.c.bf16 %v977_v41, %v977_v41  ;;  %v1170_v56 = vpack.c.bf16 %v967_v42, %v967_v42  ;;  %v978_v14 = vmax.f32 %v962_v44, 0.0  ;;  %v968_v15 = vmax.f32 %v952_v45, 0.0  ;;  %v861_v57 = vpop.f32.mrb[39].mxu1 }
 0x143   :  { %1050 = vst.msk [vmem:[%s1983_s5 + $0x8] sm:$0xf] %vm1047_vm1, %v1172_v10  ;;  %v1178_v18 = vpack.c.bf16 %v975_v11, %v975_v11  ;;  %v1173_v22 = vpack.c.bf16 %v970_v50, %v970_v50  ;;  %v976_v58 = vmax.f32 %v960_v32, 0.0  ;;  %v835_v16 = vadd.f32 %v1379_v20, %v1767_v2 }
 0x144   :  { %1058 = vst.msk [vmem:[%s1983_s5 + $0x28] sm:$0xf] %vm1047_vm1, %v1180_v55  ;;  %1048 = vst.msk [vmem:[%s1983_s5] sm:$0xf] %vm1047_vm1, %v1170_v56  ;;  %v1181_v23 = vpack.c.bf16 %v978_v14, %v978_v14  ;;  %v1171_v39 = vpack.c.bf16 %v968_v15, %v968_v15  ;;  %v867_v59 = vadd.f32 %v1387_v40, %v1806_v7 }
 0x145   :  { %v827_v60 = vadd.f32 %v826_v9, %v1763_v52  ;;  %1056 = vst.msk [vmem:[%s1983_s5 + $0x20] sm:$0xf] %vm1047_vm1, %v1178_v18  ;;  %1051 = vst.msk [vmem:[%s1983_s5 + $0xc] sm:$0xf] %vm1047_vm1, %v1173_v22  ;;  %v1179_v2 = vpack.c.bf16 %v976_v58, %v976_v58  ;;  %v886_v61 = vmul.f32 %v1834_v21, %v835_v16 }
 0x146   :  { %v859_v62 = vadd.f32 %v858_v46, %v1777_v48  ;;  %v838_v33 = vadd.f32 %v1380_v47, %v1769_v3  ;;  %1059 = vst.msk [vmem:[%s1983_s5 + $0x2c] sm:$0xf] %vm1047_vm1, %v1181_v23  ;;  %1049 = vst.msk [vmem:[%s1983_s5 + $0x4] sm:$0xf] %vm1047_vm1, %v1171_v39  ;;  %v894_v52 = vmul.f32 %v1834_v21, %v867_v59 }
 0x147   :  { %v884_v7 = vmul.f32 %v1834_v21, %v827_v60  ;;  %v870_v25 = vadd.f32 %v1388_v24, %v1829_v19  ;;  %v830_v48 = vadd.f32 %v829_v54, %v1765_v53  ;;  %1057 = vst.msk [vmem:[%s1983_s5 + $0x24] sm:$0xf] %vm1047_vm1, %v1179_v2  ;;  %v909_v3 = vadd.f32 %v1847_v36, %v886_v61 }
 0x148   :  { %v892_v63 = vmul.f32 %v1834_v21, %v859_v62  ;;  %v887_v0 = vmul.f32 %v1834_v21, %v838_v33  ;;  %v862_v1 = vadd.f32 %v861_v57, %v1779_v49  ;;  %v917_v4 = vadd.f32 %v1847_v36, %v894_v52 }
 0x149   :  { %v907_v5 = vadd.f32 %v1847_v36, %v884_v7  ;;  %v895_v19 = vmul.f32 %v1834_v21, %v870_v25  ;;  %v885_v53 = vmul.f32 %v1834_v21, %v830_v48  ;;  %v957_v17 = vadd.f32 %v1200_v26, %v909_v3 }
 0x14a   :  { %v915_v20 = vadd.f32 %v1847_v36, %v892_v63  ;;  %v910_v28 = vadd.f32 %v1847_v36, %v887_v0  ;;  %v893_v29 = vmul.f32 %v1834_v21, %v862_v1  ;;  %v965_v49 = vadd.f32 %v1216_v27, %v917_v4 }
 0x14b   :  { %v955_v30 = vadd.f32 %v1196_v31, %v907_v5  ;;  %v918_v37 = vadd.f32 %v1847_v36, %v895_v19  ;;  %v908_v40 = vadd.f32 %v1847_v36, %v885_v53  ;;  %v973_v9 = vmax.f32 %v957_v17, 0.0 }
 0x14c   :  { %v963_v26 = vadd.f32 %v1212_v34, %v915_v20  ;;  %v958_v41 = vadd.f32 %v1201_v35, %v910_v28  ;;  %v916_v42 = vadd.f32 %v1847_v36, %v893_v29  ;;  %v981_v21 = vmax.f32 %v965_v49, 0.0 }
 0x14d   :  { %v971_v44 = vmax.f32 %v955_v30, 0.0  ;;  %v966_v27 = vadd.f32 %v1217_v38, %v918_v37  ;;  %v956_v31 = vadd.f32 %v1197_v43, %v908_v40  ;;  %v1176_v45 = vpack.c.bf16 %v973_v9, %v973_v9 }
 0x14e   :  { %v979_v46 = vmax.f32 %v963_v26, 0.0  ;;  %v974_v47 = vmax.f32 %v958_v41, 0.0  ;;  %v964_v10 = vadd.f32 %v1213_v51, %v916_v42  ;;  %v1184_v34 = vpack.c.bf16 %v981_v21, %v981_v21 }
 0x14f   :  { %v1174_v11 = vpack.c.bf16 %v971_v44, %v971_v44  ;;  %v982_v6 = vmax.f32 %v966_v27, 0.0  ;;  %v972_v35 = vmax.f32 %v956_v31, 0.0  ;;  %1054 = vst.msk [vmem:[%s1983_s5 + $0x18] sm:$0xf] %vm1047_vm1, %v1176_v45 }
 0x150   :  { %v1182_v8 = vpack.c.bf16 %v979_v46, %v979_v46  ;;  %v1177_v36 = vpack.c.bf16 %v974_v47, %v974_v47  ;;  %v980_v38 = vmax.f32 %v964_v10, 0.0  ;;  %1062 = vst.msk [vmem:[%s1983_s5 + $0x38] sm:$0xf] %vm1047_vm1, %v1184_v34 }
 0x151   :  { %1052 = vst.msk [vmem:[%s1983_s5 + $0x10] sm:$0xf] %vm1047_vm1, %v1174_v11  ;;  %v1185_v12 = vpack.c.bf16 %v982_v6, %v982_v6  ;;  %v1175_v13 = vpack.c.bf16 %v972_v35, %v972_v35 }
 0x152   :  { %1060 = vst.msk [vmem:[%s1983_s5 + $0x30] sm:$0xf] %vm1047_vm1, %v1182_v8  ;;  %1055 = vst.msk [vmem:[%s1983_s5 + $0x1c] sm:$0xf] %vm1047_vm1, %v1177_v36  ;;  %v1183_v43 = vpack.c.bf16 %v980_v38, %v980_v38 }
 0x153   :  { %1063 = vst.msk [vmem:[%s1983_s5 + $0x3c] sm:$0xf] %vm1047_vm1, %v1185_v12  ;;  %1053 = vst.msk [vmem:[%s1983_s5 + $0x14] sm:$0xf] %vm1047_vm1, %v1175_v13 }
 0x154   :  { %1061 = vst.msk [vmem:[%s1983_s5 + $0x34] sm:$0xf] %vm1047_vm1, %v1183_v43 }

// kernel: feature_extractor_forward.69
= control target key start
LH: loop header
LB: loop body
LE: loop exit
PB: predicated region body
PF: predicated region fallthrough
CT: control target
= control target key end

     0   :  { %vm64_vm0 = vcmask 523264   ;;  %s274_s1 = inlined_call_operand.vmem [shape: bf16[64,128], index: 1, kind: input, shape index: {}]   ;;  %s275_s0 = inlined_call_operand.vmem [shape: bf16[32,64], index: 0, kind: input, shape index: {}]   ;;  %s276_s2 = inlined_call_operand.vmem [shape: f32[1,128], index: 2, kind: input, shape index: {}]   ;;  %s277_s3 = inlined_call_operand.vmem [shape: f32[1,128], index: 3, kind: input, shape index: {}]   ;;  %s278_s4 = inlined_call_operand.vmem [shape: bf16[32,128], index: 4, kind: output, shape index: {}]  }
   0x1   :  { %v213_v0 = vld [vmem:[%s274_s1] sm:$0xff]   ;;  %v214_v1 = vld [vmem:[%s274_s1 + $0x8] sm:$0xff]   ;;  %v215_v2 = vld [vmem:[%s274_s1 + $0x10] sm:$0xff]  }
   0x2   :  { %201 = vmatprep.subr.bf16.mxu0 %v213_v0  ;;  %v217_v3 = vld [vmem:[%s275_s0] sm:$0xff]   ;;  %v216_v4 = vld [vmem:[%s274_s1 + $0x18] sm:$0xff]   ;;  %v218_v5 = vld [vmem:[%s275_s0 + $0x8] sm:$0xff]  }
   0x3   :  { %202 = vmatpush3.bf16.msra.mxu0 %v213_v0  ;;  %209 = vmatprep.mubr.msk.bf16.mxu0 %vm64_vm0, %v217_v3  ;;  %v174_v6 = vld [vmem:[%s276_s2] ss:$0 sm:$0xff] }
   0x4   :  { %203 = vmatprep.subr.bf16.mxu0 %v214_v1  ;;  %v175_v10 = vld [vmem:[%s277_s3] ss:$0 sm:$0xff] }
   0x7   :  { %204 = vmatpush3.bf16.msra.mxu0 %v214_v1 }
   0x8   :  { %205 = vmatprep.subr.bf16.mxu0 %v215_v2 }
   0xb   :  { %206 = vmatpush3.bf16.msra.mxu0 %v215_v2 }
   0xc   :  { %207 = vmatprep.subr.bf16.mxu0 %v216_v4 }
   0xf   :  { %208 = vmatpush3.bf16.msra.mxu0 %v216_v4 }
  0x12   :  { %210 = vmatmul.mubr.msk.bf16.vlgmr.msra.gmra.mrb[0].mxu0 %vm64_vm0, %v218_v5 }
  0xe5   :  { %v211_v7 = vpop.f32.mrb[0].mxu0 }
  0xe6   :  { %v129_v8 = vmul.f32 %v211_v7, %v174_v6  ;;  %v105_v9 = vpop.f32.mrb[1].mxu0 }
  0xe7   :  { %v127_v11 = vmul.f32 %v174_v6, %v105_v9  ;;  %v212_v12 = vpop.f32.mrb[2].mxu0 }
  0xe8   :  { %v130_v13 = vmul.f32 %v212_v12, %v174_v6  ;;  %v108_v14 = vpop.f32.mrb[3].mxu0  ;;  %v140_v16 = vadd.f32 %v175_v10, %v129_v8 }
  0xe9   :  { %v128_v15 = vmul.f32 %v174_v6, %v108_v14  ;;  %v138_v18 = vadd.f32 %v175_v10, %v127_v11 }
  0xea   :  { %v141_v17 = vadd.f32 %v175_v10, %v130_v13 }
  0xeb   :  { %v139_v19 = vadd.f32 %v175_v10, %v128_v15 }
  0xec   :  { %v192_v20 = vpack.c.bf16 %v141_v17, %v140_v16 }
  0xed   :  { %v187_v21 = vpack.c.bf16 %v139_v19, %v138_v18 }
  0xee   :  { %194 = vst [vmem:[%s278_s4 + $0x8] sm:$0xff] %v192_v20  }
  0xef   :  { %188 = vst [vmem:[%s278_s4] sm:$0xff] %v187_v21  }

// kernel: feature_extractor_forward.68
= control target key start
LH: loop header
LB: loop body
LE: loop exit
PB: predicated region body
PF: predicated region fallthrough
CT: control target
= control target key end

     0   :  { %vm368_vm0 = vcmask 523264   ;;  %s940_s1 = inlined_call_operand.vmem [shape: bf16[576,128], index: 1, kind: input, shape index: {}]   ;;  %s941_s0 = inlined_call_operand.vmem [shape: bf16[32,576], index: 0, kind: input, shape index: {}]   ;;  %s942_s2 = inlined_call_operand.vmem [shape: f32[1,128], index: 2, kind: input, shape index: {}]   ;;  %s943_s3 = inlined_call_operand.vmem [shape: f32[1,128], index: 3, kind: input, shape index: {}]   ;;  %s944_s4 = inlined_call_operand.vmem [shape: bf16[32,128], index: 4, kind: output, shape index: {}]  }
   0x1   :  { %v715_v0 = vld [vmem:[%s940_s1 + $0x40] sm:$0xff]   ;;  %v719_v4 = vld [vmem:[%s940_s1 + $0x48] sm:$0xff]   ;;  %v723_v8 = vld [vmem:[%s940_s1 + $0x50] sm:$0xff]  }
   0x2   :  { %v716_v1 = vld [vmem:[%s940_s1 + $0xc0] sm:$0xff]   ;;  %641 = vmatprep.subr.bf16.mxu0 %v715_v0  ;;  %v720_v5 = vld [vmem:[%s940_s1 + $0xc8] sm:$0xff]   ;;  %v724_v9 = vld [vmem:[%s940_s1 + $0xd0] sm:$0xff]  }
   0x3   :  { %v717_v2 = vld [vmem:[%s940_s1] sm:$0xff]   ;;  %669 = vmatprep.subr.bf16.mxu1 %v716_v1  ;;  %v721_v6 = vld [vmem:[%s940_s1 + $0x8] sm:$0xff]   ;;  %v725_v10 = vld [vmem:[%s940_s1 + $0x10] sm:$0xff]  }
   0x4   :  { %v718_v3 = vld [vmem:[%s940_s1 + $0x80] sm:$0xff]   ;;  %642 = vmatpush3.bf16.msra.mxu0 %v717_v2  ;;  %v722_v7 = vld [vmem:[%s940_s1 + $0x88] sm:$0xff]   ;;  %v726_v11 = vld [vmem:[%s940_s1 + $0x90] sm:$0xff]  }
   0x5   :  { %670 = vmatpush3.bf16.msra.mxu1 %v718_v3  ;;  %643 = vmatprep.subr.bf16.mxu0 %v719_v4  ;;  %v727_v12 = vld [vmem:[%s940_s1 + $0x58] sm:$0xff]   ;;  %v731_v16 = vld [vmem:[%s940_s1 + $0x60] sm:$0xff]   ;;  %v735_v20 = vld [vmem:[%s940_s1 + $0x68] sm:$0xff]  }
   0x6   :  { %671 = vmatprep.subr.bf16.mxu1 %v720_v5  ;;  %v728_v13 = vld [vmem:[%s940_s1 + $0xd8] sm:$0xff]   ;;  %v732_v17 = vld [vmem:[%s940_s1 + $0xe0] sm:$0xff]   ;;  %v736_v21 = vld [vmem:[%s940_s1 + $0xe8] sm:$0xff]  }
   0x7   :  { %v729_v14 = vld [vmem:[%s940_s1 + $0x18] sm:$0xff]   ;;  %v733_v18 = vld [vmem:[%s940_s1 + $0x20] sm:$0xff]   ;;  %v737_v22 = vld [vmem:[%s940_s1 + $0x28] sm:$0xff]  }
   0x8   :  { %644 = vmatpush3.bf16.msra.mxu0 %v721_v6  ;;  %v730_v15 = vld [vmem:[%s940_s1 + $0x98] sm:$0xff]   ;;  %v734_v19 = vld [vmem:[%s940_s1 + $0xa0] sm:$0xff]   ;;  %v738_v23 = vld [vmem:[%s940_s1 + $0xa8] sm:$0xff]  }
   0x9   :  { %672 = vmatpush3.bf16.msra.mxu1 %v722_v7  ;;  %645 = vmatprep.subr.bf16.mxu0 %v723_v8  ;;  %v739_v24 = vld [vmem:[%s940_s1 + $0x70] sm:$0xff]   ;;  %v743_v28 = vld [vmem:[%s940_s1 + $0x78] sm:$0xff]   ;;  %v752_v35 = vld [vmem:[%s941_s0 + $0xc] ss:$20 sps:$4 sm:$0xff]  }
   0xa   :  { %673 = vmatprep.subr.bf16.mxu1 %v724_v9  ;;  %v740_v25 = vld [vmem:[%s940_s1 + $0xf0] sm:$0xff]   ;;  %v744_v29 = vld [vmem:[%s940_s1 + $0xf8] sm:$0xff]   ;;  %v753_v36 = vld [vmem:[%s940_s1 + $0x100] sm:$0xff]   ;;  %456 = vmatprep.mubr.bf16.mxu1 %v752_v35 }
   0xb   :  { %v741_v26 = vld [vmem:[%s940_s1 + $0x30] sm:$0xff]   ;;  %v745_v30 = vld [vmem:[%s940_s1 + $0x38] sm:$0xff]   ;;  %v754_v37 = vld [vmem:[%s940_s1 + $0x108] sm:$0xff]  }
   0xc   :  { %646 = vmatpush3.bf16.msra.mxu0 %v725_v10  ;;  %v742_v27 = vld [vmem:[%s940_s1 + $0xb0] sm:$0xff]   ;;  %v746_v31 = vld [vmem:[%s940_s1 + $0xb8] sm:$0xff]   ;;  %v755_v38 = vld [vmem:[%s941_s0 + $0x2c] ss:$20 sps:$4 sm:$0xff]  }
   0xd   :  { %674 = vmatpush3.bf16.msra.mxu1 %v726_v11  ;;  %647 = vmatprep.subr.bf16.mxu0 %v727_v12  ;;  %v747_v32 = vld [vmem:[%s941_s0] ss:$20 sps:$4 sm:$0xff]   ;;  %v749_v33 = vld [vmem:[%s941_s0 + $0x4] ss:$20 sps:$4 sm:$0xff]   ;;  %v750_v34 = vld [vmem:[%s941_s0 + $0x8] ss:$20 sps:$4 sm:$0xff]  }
   0xe   :  { %675 = vmatprep.subr.bf16.mxu1 %v728_v13  ;;  %407 = vmatprep.mubr.bf16.mxu0 %v749_v33  ;;  %v757_v39 = vld [vmem:[%s941_s0 + $0x34] ss:$20 sps:$4 sm:$0xff]   ;;  %v760_v42 = vld [vmem:[%s941_s0 + $0x30] ss:$20 sps:$4 sm:$0xff]   ;;  %v762_v44 = vld [vmem:[%s940_s1 + $0x118] sm:$0xff]  }
   0xf   :  { %v759_v40 = vld [vmem:[%s941_s0 + $0x28] ss:$20 sps:$4 sm:$0xff]   ;;  %v761_v41 = vld [vmem:[%s940_s1 + $0x110] sm:$0xff]   ;;  %v764_v45 = vld [vmem:[%s941_s0 + $0x38] ss:$20 sps:$4 sm:$0xff]  }
  0x10   :  { %648 = vmatpush3.bf16.msra.mxu0 %v729_v14  ;;  %v763_v43 = vld [vmem:[%s941_s0 + $0x10] ss:$20 sps:$4 sm:$0xff]   ;;  %v620_v11 = vld [vmem:[%s942_s2] ss:$0 sm:$0xff] }
  0x11   :  { %676 = vmatpush3.bf16.msra.mxu1 %v730_v15  ;;  %649 = vmatprep.subr.bf16.mxu0 %v731_v16  ;;  %v621_v14 = vld [vmem:[%s943_s3] ss:$0 sm:$0xff] }
  0x12   :  { %677 = vmatprep.subr.bf16.mxu1 %v732_v17 }
  0x14   :  { %650 = vmatpush3.bf16.msra.mxu0 %v733_v18 }
  0x15   :  { %678 = vmatpush3.bf16.msra.mxu1 %v734_v19  ;;  %651 = vmatprep.subr.bf16.mxu0 %v735_v20 }
  0x16   :  { %679 = vmatprep.subr.bf16.mxu1 %v736_v21 }
  0x18   :  { %652 = vmatpush3.bf16.msra.mxu0 %v737_v22 }
  0x19   :  { %680 = vmatpush3.bf16.msra.mxu1 %v738_v23  ;;  %653 = vmatprep.subr.bf16.mxu0 %v739_v24 }
  0x1a   :  { %681 = vmatprep.subr.bf16.mxu1 %v740_v25 }
  0x1c   :  { %654 = vmatpush3.bf16.msra.mxu0 %v741_v26 }
  0x1d   :  { %682 = vmatpush3.bf16.msra.mxu1 %v742_v27  ;;  %655 = vmatprep.subr.bf16.mxu0 %v743_v28 }
  0x1e   :  { %683 = vmatprep.subr.bf16.mxu1 %v744_v29 }
  0x20   :  { %656 = vmatpush3.bf16.msra.mxu0 %v745_v30 }
  0x21   :  { %684 = vmatpush3.bf16.msra.mxu1 %v746_v31  ;;  %703 = vmatprep.subr.bf16.mxu0 %v753_v36 }
  0x23   :  { %408 = vmatmul.mubr.bf16.vlgmr.msra.gmra.mrb[0].mxu0 %v747_v32 }
  0x24   :  { %457 = vmatmul.mubr.bf16.vlgmr.msra.gmra.mrb[0].mxu1 %v750_v34  ;;  %704 = vmatpush3.bf16.msra.mxu0 %v753_v36 }
  0x25   :  { %705 = vmatprep.subr.bf16.mxu0 %v754_v37  ;;  %415 = vmatprep.mubr.bf16.mxu0 %v755_v38 }
  0x26   :  { %464 = vmatprep.mubr.bf16.mxu1 %v757_v39 }
  0x28   :  { %706 = vmatpush3.bf16.msra.mxu0 %v754_v37 }
  0x29   :  { %707 = vmatprep.subr.bf16.mxu0 %v761_v41 }
  0x2b   :  { %416 = vmatmul.mubr.bf16.gmra.mrb[4].mxu0 %v759_v40 }
  0x2c   :  { %465 = vmatmul.mubr.bf16.gmra.mrb[4].mxu1 %v760_v42  ;;  %711 = vmatprep.mubr.msk.bf16.mxu0 %vm368_vm0, %v763_v43 }
  0x2d   :  { %708 = vmatpush3.bf16.msra.mxu0 %v761_v41 }
  0x2e   :  { %709 = vmatprep.subr.bf16.mxu0 %v762_v44 }
  0x31   :  { %710 = vmatpush3.bf16.msra.mxu0 %v762_v44 }
  0x34   :  { %712 = vmatmul.mubr.msk.bf16.vlgmr.msra.gmra.mrb[8].mxu0 %vm368_vm0, %v764_v45 }
  0xf6   :  { %v657_v46 = vpop.f32.mrb[0].mxu0 }
  0xf7   :  { %v685_v47 = vpop.f32.mrb[0].mxu1  ;;  %v658_v48 = vpop.f32.mrb[1].mxu0 }
  0xf8   :  { %v659_v49 = vadd.f32 %v658_v48, %v657_v46  ;;  %v686_v50 = vpop.f32.mrb[1].mxu1  ;;  %v660_v51 = vpop.f32.mrb[2].mxu0 }
  0xf9   :  { %v687_v52 = vadd.f32 %v686_v50, %v685_v47  ;;  %v688_v53 = vpop.f32.mrb[2].mxu1  ;;  %v661_v54 = vpop.f32.mrb[3].mxu0 }
  0xfa   :  { %v662_v55 = vadd.f32 %v661_v54, %v660_v51  ;;  %v689_v56 = vpop.f32.mrb[3].mxu1 }
  0xfb   :  { %v690_v57 = vadd.f32 %v689_v56, %v688_v53  ;;  %v459_v58 = vadd.f32 %v687_v52, %v659_v49 }
  0xfd   :  { %v462_v59 = vadd.f32 %v690_v57, %v662_v55 }
  0xfe   :  { %v663_v60 = vpop.f32.mrb[4].mxu0 }
  0xff   :  { %v691_v61 = vpop.f32.mrb[4].mxu1  ;;  %v664_v62 = vpop.f32.mrb[5].mxu0 }
 0x100   :  { %v665_v63 = vadd.f32 %v664_v62, %v663_v60  ;;  %v692_v0 = vpop.f32.mrb[5].mxu1  ;;  %v666_v1 = vpop.f32.mrb[6].mxu0 }
 0x101   :  { %v693_v2 = vadd.f32 %v692_v0, %v691_v61  ;;  %v694_v3 = vpop.f32.mrb[6].mxu1  ;;  %v667_v4 = vpop.f32.mrb[7].mxu0 }
 0x102   :  { %v668_v5 = vadd.f32 %v667_v4, %v666_v1  ;;  %v695_v6 = vpop.f32.mrb[7].mxu1 }
 0x103   :  { %v696_v7 = vadd.f32 %v695_v6, %v694_v3  ;;  %v467_v8 = vadd.f32 %v693_v2, %v665_v63 }
 0x105   :  { %v470_v9 = vadd.f32 %v696_v7, %v668_v5 }
 0x107   :  { %v713_v10 = vpop.f32.mrb[8].mxu0 }
 0x108   :  { %v516_v12 = vadd.f32 %v713_v10, %v467_v8  ;;  %v507_v13 = vpop.f32.mrb[9].mxu0 }
 0x109   :  { %v508_v15 = vadd.f32 %v507_v13, %v459_v58  ;;  %v714_v16 = vpop.f32.mrb[10].mxu0 }
 0x10a   :  { %v531_v17 = vmul.f32 %v620_v11, %v516_v12  ;;  %v519_v18 = vadd.f32 %v714_v16, %v470_v9  ;;  %v510_v19 = vpop.f32.mrb[11].mxu0 }
 0x10b   :  { %v529_v20 = vmul.f32 %v620_v11, %v508_v15  ;;  %v511_v21 = vadd.f32 %v510_v19, %v462_v59 }
 0x10c   :  { %v542_v22 = vadd.f32 %v621_v14, %v531_v17  ;;  %v532_v23 = vmul.f32 %v620_v11, %v519_v18 }
 0x10d   :  { %v540_v24 = vadd.f32 %v621_v14, %v529_v20  ;;  %v530_v25 = vmul.f32 %v620_v11, %v511_v21 }
 0x10e   :  { %v543_v26 = vadd.f32 %v621_v14, %v532_v23  ;;  %v546_v28 = vmax.f32 %v542_v22, 0.0 }
 0x10f   :  { %v541_v27 = vadd.f32 %v621_v14, %v530_v25  ;;  %v544_v30 = vmax.f32 %v540_v24, 0.0 }
 0x110   :  { %v547_v29 = vmax.f32 %v543_v26, 0.0 }
 0x111   :  { %v545_v31 = vmax.f32 %v541_v27, 0.0 }
 0x112   :  { %v638_v32 = vpack.c.bf16 %v547_v29, %v546_v28 }
 0x113   :  { %v633_v33 = vpack.c.bf16 %v545_v31, %v544_v30 }
 0x114   :  { %640 = vst [vmem:[%s944_s4 + $0x8] sm:$0xff] %v638_v32  }
 0x115   :  { %634 = vst [vmem:[%s944_s4] sm:$0xff] %v633_v33  }

// kernel: feature_extractor_forward.71
= control target key start
LH: loop header
LB: loop body
LE: loop exit
PB: predicated region body
PF: predicated region fallthrough
CT: control target
= control target key end

     0   :  { %s1659_s1 = inlined_call_operand.vmem [shape: bf16[1152,128], index: 1, kind: input, shape index: {}]   ;;  %s1660_s0 = inlined_call_operand.vmem [shape: bf16[32,1152], index: 0, kind: input, shape index: {}]   ;;  %s1661_s2 = inlined_call_operand.vmem [shape: f32[1,128], index: 2, kind: input, shape index: {}]   ;;  %s1662_s3 = inlined_call_operand.vmem [shape: f32[1,128], index: 3, kind: input, shape index: {}]   ;;  %s1663_s4 = inlined_call_operand.vmem [shape: bf16[32,128], index: 4, kind: output, shape index: {}]  }
   0x1   :  { %v1254_v0 = vld [vmem:[%s1659_s1 + $0x40] sm:$0xff]   ;;  %v1258_v4 = vld [vmem:[%s1659_s1 + $0x48] sm:$0xff]   ;;  %v1262_v8 = vld [vmem:[%s1659_s1 + $0x50] sm:$0xff]  }
   0x2   :  { %v1255_v1 = vld [vmem:[%s1659_s1 + $0xc0] sm:$0xff]   ;;  %1112 = vmatprep.subr.bf16.mxu0 %v1254_v0  ;;  %v1259_v5 = vld [vmem:[%s1659_s1 + $0xc8] sm:$0xff]   ;;  %v1263_v9 = vld [vmem:[%s1659_s1 + $0xd0] sm:$0xff]  }
   0x3   :  { %v1256_v2 = vld [vmem:[%s1659_s1] sm:$0xff]   ;;  %1140 = vmatprep.subr.bf16.mxu1 %v1255_v1  ;;  %v1260_v6 = vld [vmem:[%s1659_s1 + $0x8] sm:$0xff]   ;;  %v1264_v10 = vld [vmem:[%s1659_s1 + $0x10] sm:$0xff]  }
   0x4   :  { %v1257_v3 = vld [vmem:[%s1659_s1 + $0x80] sm:$0xff]   ;;  %1113 = vmatpush3.bf16.msra.mxu0 %v1256_v2  ;;  %v1261_v7 = vld [vmem:[%s1659_s1 + $0x88] sm:$0xff]   ;;  %v1265_v11 = vld [vmem:[%s1659_s1 + $0x90] sm:$0xff]  }
   0x5   :  { %1141 = vmatpush3.bf16.msra.mxu1 %v1257_v3  ;;  %1114 = vmatprep.subr.bf16.mxu0 %v1258_v4  ;;  %v1266_v12 = vld [vmem:[%s1659_s1 + $0x58] sm:$0xff]   ;;  %v1270_v16 = vld [vmem:[%s1659_s1 + $0x60] sm:$0xff]   ;;  %v1274_v20 = vld [vmem:[%s1659_s1 + $0x68] sm:$0xff]  }
   0x6   :  { %1142 = vmatprep.subr.bf16.mxu1 %v1259_v5  ;;  %v1267_v13 = vld [vmem:[%s1659_s1 + $0xd8] sm:$0xff]   ;;  %v1271_v17 = vld [vmem:[%s1659_s1 + $0xe0] sm:$0xff]   ;;  %v1275_v21 = vld [vmem:[%s1659_s1 + $0xe8] sm:$0xff]  }
   0x7   :  { %v1268_v14 = vld [vmem:[%s1659_s1 + $0x18] sm:$0xff]   ;;  %v1272_v18 = vld [vmem:[%s1659_s1 + $0x20] sm:$0xff]   ;;  %v1276_v22 = vld [vmem:[%s1659_s1 + $0x28] sm:$0xff]  }
   0x8   :  { %1115 = vmatpush3.bf16.msra.mxu0 %v1260_v6  ;;  %v1269_v15 = vld [vmem:[%s1659_s1 + $0x98] sm:$0xff]   ;;  %v1273_v19 = vld [vmem:[%s1659_s1 + $0xa0] sm:$0xff]   ;;  %v1277_v23 = vld [vmem:[%s1659_s1 + $0xa8] sm:$0xff]  }
   0x9   :  { %1143 = vmatpush3.bf16.msra.mxu1 %v1261_v7  ;;  %1116 = vmatprep.subr.bf16.mxu0 %v1262_v8  ;;  %v1278_v24 = vld [vmem:[%s1659_s1 + $0x70] sm:$0xff]   ;;  %v1282_v28 = vld [vmem:[%s1659_s1 + $0x78] sm:$0xff]   ;;  %v1286_v32 = vld [vmem:[%s1660_s0] ss:$36 sps:$4 sm:$0xff]  }
   0xa   :  { %1144 = vmatprep.subr.bf16.mxu1 %v1263_v9  ;;  %v1279_v25 = vld [vmem:[%s1659_s1 + $0xf0] sm:$0xff]   ;;  %v1283_v29 = vld [vmem:[%s1659_s1 + $0xf8] sm:$0xff]   ;;  %v1288_v33 = vld [vmem:[%s1660_s0 + $0x4] ss:$36 sps:$4 sm:$0xff]  }
   0xb   :  { %v1280_v26 = vld [vmem:[%s1659_s1 + $0x30] sm:$0xff]   ;;  %v1284_v30 = vld [vmem:[%s1659_s1 + $0x38] sm:$0xff]   ;;  %v1289_v34 = vld [vmem:[%s1660_s0 + $0x8] ss:$36 sps:$4 sm:$0xff]   ;;  %738 = vmatprep.mubr.bf16.mxu0 %v1288_v33 }
   0xc   :  { %1117 = vmatpush3.bf16.msra.mxu0 %v1264_v10  ;;  %v1281_v27 = vld [vmem:[%s1659_s1 + $0xb0] sm:$0xff]   ;;  %v1285_v31 = vld [vmem:[%s1659_s1 + $0xb8] sm:$0xff]   ;;  %v1292_v36 = vld [vmem:[%s1659_s1 + $0x140] sm:$0xff]  }
   0xd   :  { %1145 = vmatpush3.bf16.msra.mxu1 %v1265_v11  ;;  %1118 = vmatprep.subr.bf16.mxu0 %v1266_v12  ;;  %v1291_v35 = vld [vmem:[%s1660_s0 + $0xc] ss:$36 sps:$4 sm:$0xff]   ;;  %v1293_v37 = vld [vmem:[%s1659_s1 + $0x100] sm:$0xff]   ;;  %v1304_v48 = vld [vmem:[%s1659_s1 + $0x158] sm:$0xff]  }
   0xe   :  { %1146 = vmatprep.subr.bf16.mxu1 %v1267_v13  ;;  %787 = vmatprep.mubr.bf16.mxu1 %v1291_v35  ;;  %v1294_v38 = vld [vmem:[%s1659_s1 + $0x1c0] sm:$0xff]   ;;  %v1296_v40 = vld [vmem:[%s1659_s1 + $0x148] sm:$0xff]   ;;  %v1300_v44 = vld [vmem:[%s1659_s1 + $0x150] sm:$0xff]  }
   0xf   :  { %v1295_v39 = vld [vmem:[%s1659_s1 + $0x180] sm:$0xff]   ;;  %v1297_v41 = vld [vmem:[%s1659_s1 + $0x108] sm:$0xff]   ;;  %v1301_v45 = vld [vmem:[%s1659_s1 + $0x110] sm:$0xff]  }
  0x10   :  { %1119 = vmatpush3.bf16.msra.mxu0 %v1268_v14  ;;  %v1298_v42 = vld [vmem:[%s1659_s1 + $0x1c8] sm:$0xff]   ;;  %v1302_v46 = vld [vmem:[%s1659_s1 + $0x1d0] sm:$0xff]   ;;  %v1305_v49 = vld [vmem:[%s1659_s1 + $0x118] sm:$0xff]  }
  0x11   :  { %1147 = vmatpush3.bf16.msra.mxu1 %v1269_v15  ;;  %1120 = vmatprep.subr.bf16.mxu0 %v1270_v16  ;;  %v1299_v43 = vld [vmem:[%s1659_s1 + $0x188] sm:$0xff]   ;;  %v1303_v47 = vld [vmem:[%s1659_s1 + $0x190] sm:$0xff]   ;;  %v1306_v50 = vld [vmem:[%s1659_s1 + $0x1d8] sm:$0xff]  }
  0x12   :  { %1148 = vmatprep.subr.bf16.mxu1 %v1271_v17  ;;  %v1307_v51 = vld [vmem:[%s1659_s1 + $0x198] sm:$0xff]   ;;  %v1308_v52 = vld [vmem:[%s1659_s1 + $0x160] sm:$0xff]   ;;  %v1312_v56 = vld [vmem:[%s1659_s1 + $0x168] sm:$0xff]  }
  0x13   :  { %v1309_v53 = vld [vmem:[%s1659_s1 + $0x120] sm:$0xff]   ;;  %v1313_v57 = vld [vmem:[%s1660_s0 + $0x4c] ss:$36 sps:$4 sm:$0xff]   ;;  %v1315_v58 = vld [vmem:[%s1660_s0 + $0x54] ss:$36 sps:$4 sm:$0xff]  }
  0x14   :  { %1121 = vmatpush3.bf16.msra.mxu0 %v1272_v18  ;;  %v1310_v54 = vld [vmem:[%s1659_s1 + $0x1e0] sm:$0xff]   ;;  %v1317_v59 = vld [vmem:[%s1659_s1 + $0x128] sm:$0xff]   ;;  %v1319_v61 = vld [vmem:[%s1660_s0 + $0x50] ss:$36 sps:$4 sm:$0xff]  }
  0x15   :  { %1149 = vmatpush3.bf16.msra.mxu1 %v1273_v19  ;;  %1122 = vmatprep.subr.bf16.mxu0 %v1274_v20  ;;  %v1311_v55 = vld [vmem:[%s1659_s1 + $0x1a0] sm:$0xff]   ;;  %v1318_v60 = vld [vmem:[%s1660_s0 + $0x48] ss:$36 sps:$4 sm:$0xff]   ;;  %v1322_v0 = vld [vmem:[%s1659_s1 + $0x170] sm:$0xff]  }
  0x16   :  { %1150 = vmatprep.subr.bf16.mxu1 %v1275_v21  ;;  %v1320_v62 = vld [vmem:[%s1659_s1 + $0x1e8] sm:$0xff]   ;;  %v1323_v1 = vld [vmem:[%s1659_s1 + $0x130] sm:$0xff]   ;;  %v1326_v4 = vld [vmem:[%s1659_s1 + $0x178] sm:$0xff]  }
  0x17   :  { %v1321_v63 = vld [vmem:[%s1659_s1 + $0x1a8] sm:$0xff]   ;;  %v1324_v2 = vld [vmem:[%s1659_s1 + $0x1f0] sm:$0xff]   ;;  %v1327_v5 = vld [vmem:[%s1659_s1 + $0x138] sm:$0xff]  }
  0x18   :  { %1123 = vmatpush3.bf16.msra.mxu0 %v1276_v22  ;;  %v1325_v3 = vld [vmem:[%s1659_s1 + $0x1b0] sm:$0xff]   ;;  %v1328_v6 = vld [vmem:[%s1659_s1 + $0x1f8] sm:$0xff]   ;;  %v1333_v10 = vld [vmem:[%s1659_s1 + $0x200] sm:$0xff]  }
  0x19   :  { %1151 = vmatpush3.bf16.msra.mxu1 %v1277_v23  ;;  %1124 = vmatprep.subr.bf16.mxu0 %v1278_v24  ;;  %v1329_v7 = vld [vmem:[%s1660_s0 + $0x10] ss:$36 sps:$4 sm:$0xff]   ;;  %v1332_v9 = vld [vmem:[%s1659_s1 + $0x1b8] sm:$0xff]   ;;  %v1337_v13 = vld [vmem:[%s1659_s1 + $0x208] sm:$0xff]  }
  0x1a   :  { %1152 = vmatprep.subr.bf16.mxu1 %v1279_v25  ;;  %v1331_v8 = vld [vmem:[%s1660_s0 + $0x14] ss:$36 sps:$4 sm:$0xff]   ;;  %v1336_v12 = vld [vmem:[%s1660_s0 + $0x1c] ss:$36 sps:$4 sm:$0xff]   ;;  %v1342_v17 = vld [vmem:[%s1660_s0 + $0x64] ss:$36 sps:$4 sm:$0xff]  }
  0x1b   :  { %v1334_v11 = vld [vmem:[%s1660_s0 + $0x18] ss:$36 sps:$4 sm:$0xff]   ;;  %v1341_v16 = vld [vmem:[%s1659_s1 + $0x210] sm:$0xff]   ;;  %v1344_v18 = vld [vmem:[%s1660_s0 + $0x60] ss:$36 sps:$4 sm:$0xff]  }
  0x1c   :  { %1125 = vmatpush3.bf16.msra.mxu0 %v1280_v26  ;;  %v1338_v14 = vld [vmem:[%s1660_s0 + $0x5c] ss:$36 sps:$4 sm:$0xff]   ;;  %v1347_v22 = vld [vmem:[%s1659_s1 + $0x228] sm:$0xff]   ;;  %v1348_v23 = vld [vmem:[%s1659_s1 + $0x230] sm:$0xff]  }
  0x1d   :  { %1153 = vmatpush3.bf16.msra.mxu1 %v1281_v27  ;;  %1126 = vmatprep.subr.bf16.mxu0 %v1282_v28  ;;  %v1340_v15 = vld [vmem:[%s1660_s0 + $0x58] ss:$36 sps:$4 sm:$0xff]   ;;  %v1346_v20 = vld [vmem:[%s1659_s1 + $0x220] sm:$0xff]   ;;  %v1351_v25 = vld [vmem:[%s1660_s0 + $0x68] ss:$36 sps:$4 sm:$0xff]  }
  0x1e   :  { %1154 = vmatprep.subr.bf16.mxu1 %v1283_v29  ;;  %v1345_v19 = vld [vmem:[%s1659_s1 + $0x218] sm:$0xff]   ;;  %v1350_v21 = vld [vmem:[%s1660_s0 + $0x20] ss:$36 sps:$4 sm:$0xff]  }
  0x1f   :  { %v1349_v24 = vld [vmem:[%s1659_s1 + $0x238] sm:$0xff]  }
  0x20   :  { %1127 = vmatpush3.bf16.msra.mxu0 %v1284_v30 }
  0x21   :  { %1155 = vmatpush3.bf16.msra.mxu1 %v1285_v31  ;;  %1168 = vmatprep.subr.bf16.mxu0 %v1292_v36 }
  0x22   :  { %1196 = vmatprep.subr.bf16.mxu1 %v1294_v38 }
  0x23   :  { %739 = vmatmul.mubr.bf16.vlgmr.msra.gmra.mrb[0].mxu0 %v1286_v32 }
  0x24   :  { %788 = vmatmul.mubr.bf16.vlgmr.msra.gmra.mrb[0].mxu1 %v1289_v34  ;;  %1169 = vmatpush3.bf16.msra.mxu0 %v1293_v37 }
  0x25   :  { %1197 = vmatpush3.bf16.msra.mxu1 %v1295_v39  ;;  %1170 = vmatprep.subr.bf16.mxu0 %v1296_v40 }
  0x26   :  { %1198 = vmatprep.subr.bf16.mxu1 %v1298_v42  ;;  %746 = vmatprep.mubr.bf16.mxu0 %v1313_v57 }
  0x27   :  { %795 = vmatprep.mubr.bf16.mxu1 %v1315_v58 }
  0x28   :  { %1171 = vmatpush3.bf16.msra.mxu0 %v1297_v41 }
  0x29   :  { %1199 = vmatpush3.bf16.msra.mxu1 %v1299_v43  ;;  %1172 = vmatprep.subr.bf16.mxu0 %v1300_v44 }
  0x2a   :  { %1200 = vmatprep.subr.bf16.mxu1 %v1302_v46 }
  0x2b   :  { %747 = vmatmul.mubr.bf16.gmra.mrb[4].mxu0 %v1318_v60 }
  0x2c   :  { %1173 = vmatpush3.bf16.msra.mxu0 %v1301_v45  ;;  %796 = vmatmul.mubr.bf16.gmra.mrb[4].mxu1 %v1319_v61 }
  0x2d   :  { %1201 = vmatpush3.bf16.msra.mxu1 %v1303_v47  ;;  %1174 = vmatprep.subr.bf16.mxu0 %v1304_v48 }
  0x2e   :  { %1202 = vmatprep.subr.bf16.mxu1 %v1306_v50  ;;  %836 = vmatprep.mubr.bf16.mxu0 %v1331_v8 }
  0x2f   :  { %885 = vmatprep.mubr.bf16.mxu1 %v1336_v12 }
  0x30   :  { %1175 = vmatpush3.bf16.msra.mxu0 %v1305_v49 }
  0x31   :  { %1203 = vmatpush3.bf16.msra.mxu1 %v1307_v51  ;;  %1176 = vmatprep.subr.bf16.mxu0 %v1308_v52 }
  0x32   :  { %1204 = vmatprep.subr.bf16.mxu1 %v1310_v54 }
  0x34   :  { %1177 = vmatpush3.bf16.msra.mxu0 %v1309_v53 }
  0x35   :  { %1205 = vmatpush3.bf16.msra.mxu1 %v1311_v55  ;;  %1178 = vmatprep.subr.bf16.mxu0 %v1312_v56 }
  0x36   :  { %1206 = vmatprep.subr.bf16.mxu1 %v1320_v62 }
  0x38   :  { %1179 = vmatpush3.bf16.msra.mxu0 %v1317_v59 }
  0x39   :  { %1207 = vmatpush3.bf16.msra.mxu1 %v1321_v63  ;;  %1180 = vmatprep.subr.bf16.mxu0 %v1322_v0 }
  0x3a   :  { %1208 = vmatprep.subr.bf16.mxu1 %v1324_v2 }
  0x3c   :  { %1181 = vmatpush3.bf16.msra.mxu0 %v1323_v1 }
  0x3d   :  { %1209 = vmatpush3.bf16.msra.mxu1 %v1325_v3  ;;  %1182 = vmatprep.subr.bf16.mxu0 %v1326_v4 }
  0x3e   :  { %1210 = vmatprep.subr.bf16.mxu1 %v1328_v6 }
  0x40   :  { %1183 = vmatpush3.bf16.msra.mxu0 %v1327_v5 }
  0x41   :  { %1211 = vmatpush3.bf16.msra.mxu1 %v1332_v9  ;;  %1234 = vmatprep.subr.bf16.mxu0 %v1333_v10 }
  0x43   :  { %837 = vmatmul.mubr.bf16.vlgmr.msra.gmra.mrb[8].mxu0 %v1329_v7 }
  0x44   :  { %1235 = vmatpush3.bf16.msra.mxu0 %v1333_v10  ;;  %886 = vmatmul.mubr.bf16.vlgmr.msra.gmra.mrb[8].mxu1 %v1334_v11 }
  0x45   :  { %1236 = vmatprep.subr.bf16.mxu0 %v1337_v13  ;;  %844 = vmatprep.mubr.bf16.mxu0 %v1338_v14 }
  0x46   :  { %893 = vmatprep.mubr.bf16.mxu1 %v1342_v17 }
  0x48   :  { %1237 = vmatpush3.bf16.msra.mxu0 %v1337_v13 }
  0x49   :  { %1238 = vmatprep.subr.bf16.mxu0 %v1341_v16 }
  0x4b   :  { %845 = vmatmul.mubr.bf16.gmra.mrb[12].mxu0 %v1340_v15 }
  0x4c   :  { %1239 = vmatpush3.bf16.msra.mxu0 %v1341_v16  ;;  %894 = vmatmul.mubr.bf16.gmra.mrb[12].mxu1 %v1344_v18 }
  0x4d   :  { %1240 = vmatprep.subr.bf16.mxu0 %v1345_v19  ;;  %1250 = vmatprep.mubr.bf16.mxu0 %v1350_v21 }
  0x50   :  { %1241 = vmatpush3.bf16.msra.mxu0 %v1345_v19 }
  0x51   :  { %1242 = vmatprep.subr.bf16.mxu0 %v1346_v20 }
  0x54   :  { %1243 = vmatpush3.bf16.msra.mxu0 %v1346_v20 }
  0x55   :  { %1244 = vmatprep.subr.bf16.mxu0 %v1347_v22 }
  0x58   :  { %1245 = vmatpush3.bf16.msra.mxu0 %v1347_v22 }
  0x59   :  { %1246 = vmatprep.subr.bf16.mxu0 %v1348_v23 }
  0x5c   :  { %1247 = vmatpush3.bf16.msra.mxu0 %v1348_v23  ;;  %v1091_v23 = vld [vmem:[%s1661_s2] ss:$0 sm:$0xff] }
  0x5d   :  { %1248 = vmatprep.subr.bf16.mxu0 %v1349_v24 }
  0x60   :  { %1249 = vmatpush3.bf16.msra.mxu0 %v1349_v24 }
  0x63   :  { %1251 = vmatmul.mubr.bf16.vlgmr.msra.gmra.mrb[16].mxu0 %v1351_v25 }
  0xf6   :  { %v1128_v26 = vpop.f32.mrb[0].mxu0 }
  0xf7   :  { %v1156_v27 = vpop.f32.mrb[0].mxu1  ;;  %v1129_v28 = vpop.f32.mrb[1].mxu0 }
  0xf8   :  { %v1130_v29 = vadd.f32 %v1129_v28, %v1128_v26  ;;  %v1157_v30 = vpop.f32.mrb[1].mxu1  ;;  %v1131_v31 = vpop.f32.mrb[2].mxu0  ;;  %v1092_v26 = vld [vmem:[%s1662_s3] ss:$0 sm:$0xff] }
  0xf9   :  { %v1158_v32 = vadd.f32 %v1157_v30, %v1156_v27  ;;  %v1159_v33 = vpop.f32.mrb[2].mxu1  ;;  %v1132_v34 = vpop.f32.mrb[3].mxu0 }
  0xfa   :  { %v1133_v35 = vadd.f32 %v1132_v34, %v1131_v31  ;;  %v1160_v36 = vpop.f32.mrb[3].mxu1 }
  0xfb   :  { %v790_v37 = vadd.f32 %v1158_v32, %v1130_v29  ;;  %v1161_v38 = vadd.f32 %v1160_v36, %v1159_v33 }
  0xfd   :  { %v793_v39 = vadd.f32 %v1161_v38, %v1133_v35 }
  0xfe   :  { %v1134_v40 = vpop.f32.mrb[4].mxu0 }
  0xff   :  { %v1162_v41 = vpop.f32.mrb[4].mxu1  ;;  %v1135_v42 = vpop.f32.mrb[5].mxu0 }
 0x100   :  { %v1163_v43 = vpop.f32.mrb[5].mxu1  ;;  %v1136_v44 = vadd.f32 %v1135_v42, %v1134_v40  ;;  %v1137_v46 = vpop.f32.mrb[6].mxu0 }
 0x101   :  { %v1164_v45 = vadd.f32 %v1163_v43, %v1162_v41  ;;  %v1165_v47 = vpop.f32.mrb[6].mxu1  ;;  %v1138_v48 = vpop.f32.mrb[7].mxu0 }
 0x102   :  { %v1166_v49 = vpop.f32.mrb[7].mxu1  ;;  %v1139_v51 = vadd.f32 %v1138_v48, %v1137_v46 }
 0x103   :  { %v798_v50 = vadd.f32 %v1164_v45, %v1136_v44  ;;  %v1167_v52 = vadd.f32 %v1166_v49, %v1165_v47 }
 0x105   :  { %v801_v53 = vadd.f32 %v1167_v52, %v1139_v51 }
 0x116   :  { %v1184_v54 = vpop.f32.mrb[8].mxu0 }
 0x117   :  { %v1185_v55 = vpop.f32.mrb[9].mxu0  ;;  %v1212_v58 = vpop.f32.mrb[8].mxu1 }
 0x118   :  { %v1186_v56 = vadd.f32 %v1185_v55, %v1184_v54  ;;  %v1187_v57 = vpop.f32.mrb[10].mxu0  ;;  %v1213_v62 = vpop.f32.mrb[9].mxu1 }
 0x119   :  { %v1188_v59 = vpop.f32.mrb[11].mxu0  ;;  %v1214_v63 = vadd.f32 %v1213_v62, %v1212_v58  ;;  %v1215_v0 = vpop.f32.mrb[10].mxu1 }
 0x11a   :  { %v839_v60 = vadd.f32 %v1186_v56, %v790_v37  ;;  %v1189_v61 = vadd.f32 %v1188_v59, %v1187_v57  ;;  %v1216_v2 = vpop.f32.mrb[11].mxu1 }
 0x11b   :  { %v1217_v3 = vadd.f32 %v1216_v2, %v1215_v0 }
 0x11c   :  { %v842_v1 = vadd.f32 %v1189_v61, %v793_v39  ;;  %v888_v4 = vadd.f32 %v1214_v63, %v839_v60 }
 0x11e   :  { %v1190_v5 = vpop.f32.mrb[12].mxu0  ;;  %v891_v7 = vadd.f32 %v1217_v3, %v842_v1 }
 0x11f   :  { %v1191_v6 = vpop.f32.mrb[13].mxu0  ;;  %v1218_v10 = vpop.f32.mrb[12].mxu1 }
 0x120   :  { %v1192_v8 = vadd.f32 %v1191_v6, %v1190_v5  ;;  %v1193_v9 = vpop.f32.mrb[14].mxu0  ;;  %v1219_v14 = vpop.f32.mrb[13].mxu1 }
 0x121   :  { %v1194_v11 = vpop.f32.mrb[15].mxu0  ;;  %v1220_v15 = vadd.f32 %v1219_v14, %v1218_v10  ;;  %v1221_v16 = vpop.f32.mrb[14].mxu1 }
 0x122   :  { %v847_v12 = vadd.f32 %v1192_v8, %v798_v50  ;;  %v1195_v13 = vadd.f32 %v1194_v11, %v1193_v9  ;;  %v1222_v18 = vpop.f32.mrb[15].mxu1 }
 0x123   :  { %v1223_v19 = vadd.f32 %v1222_v18, %v1221_v16 }
 0x124   :  { %v850_v17 = vadd.f32 %v1195_v13, %v801_v53  ;;  %v896_v20 = vadd.f32 %v1220_v15, %v847_v12 }
 0x126   :  { %v899_v21 = vadd.f32 %v1223_v19, %v850_v17 }
 0x136   :  { %v1252_v22 = vpop.f32.mrb[16].mxu0 }
 0x137   :  { %v945_v24 = vadd.f32 %v1252_v22, %v896_v20  ;;  %v936_v25 = vpop.f32.mrb[17].mxu0 }
 0x138   :  { %v937_v27 = vadd.f32 %v936_v25, %v888_v4  ;;  %v1253_v28 = vpop.f32.mrb[18].mxu0 }
 0x139   :  { %v960_v29 = vmul.f32 %v1091_v23, %v945_v24  ;;  %v948_v30 = vadd.f32 %v1253_v28, %v899_v21  ;;  %v939_v31 = vpop.f32.mrb[19].mxu0 }
 0x13a   :  { %v958_v32 = vmul.f32 %v1091_v23, %v937_v27  ;;  %v940_v33 = vadd.f32 %v939_v31, %v891_v7 }
 0x13b   :  { %v971_v34 = vadd.f32 %v1092_v26, %v960_v29  ;;  %v961_v35 = vmul.f32 %v1091_v23, %v948_v30 }
 0x13c   :  { %v969_v36 = vadd.f32 %v1092_v26, %v958_v32  ;;  %v959_v37 = vmul.f32 %v1091_v23, %v940_v33 }
 0x13d   :  { %v972_v38 = vadd.f32 %v1092_v26, %v961_v35  ;;  %v975_v40 = vmax.f32 %v971_v34, 0.0 }
 0x13e   :  { %v970_v39 = vadd.f32 %v1092_v26, %v959_v37  ;;  %v973_v42 = vmax.f32 %v969_v36, 0.0 }
 0x13f   :  { %v976_v41 = vmax.f32 %v972_v38, 0.0 }
 0x140   :  { %v974_v43 = vmax.f32 %v970_v39, 0.0 }
 0x141   :  { %v1109_v44 = vpack.c.bf16 %v976_v41, %v975_v40 }
 0x142   :  { %v1104_v45 = vpack.c.bf16 %v974_v43, %v973_v42 }
 0x143   :  { %1111 = vst [vmem:[%s1663_s4 + $0x8] sm:$0xff] %v1109_v44  }
 0x144   :  { %1105 = vst [vmem:[%s1663_s4] sm:$0xff] %v1104_v45  }

// kernel: feature_extractor_forward.70
= control target key start
LH: loop header
LB: loop body
LE: loop exit
PB: predicated region body
PF: predicated region fallthrough
CT: control target
= control target key end

     0   :  { %s1694_s1 = inlined_call_operand.vmem [shape: bf16[1152,128], index: 1, kind: input, shape index: {}]   ;;  %s1695_s0 = inlined_call_operand.vmem [shape: bf16[32,1152], index: 0, kind: input, shape index: {}]   ;;  %s1696_s2 = inlined_call_operand.vmem [shape: f32[1,128], index: 2, kind: input, shape index: {}]   ;;  %s1697_s4 = inlined_call_operand.vmem [shape: bf16[32,128], index: 4, kind: input, shape index: {}]   ;;  %s1698_s3 = inlined_call_operand.vmem [shape: f32[1,128], index: 3, kind: input, shape index: {}]   ;;  %s1699_s5 = inlined_call_operand.vmem [shape: bf16[32,128], index: 5, kind: output, shape index: {}]  }
   0x1   :  { %v1278_v0 = vld [vmem:[%s1694_s1 + $0x40] sm:$0xff]   ;;  %v1282_v4 = vld [vmem:[%s1694_s1 + $0x48] sm:$0xff]   ;;  %v1286_v8 = vld [vmem:[%s1694_s1 + $0x50] sm:$0xff]  }
   0x2   :  { %v1279_v1 = vld [vmem:[%s1694_s1 + $0xc0] sm:$0xff]   ;;  %1136 = vmatprep.subr.bf16.mxu0 %v1278_v0  ;;  %v1283_v5 = vld [vmem:[%s1694_s1 + $0xc8] sm:$0xff]   ;;  %v1287_v9 = vld [vmem:[%s1694_s1 + $0xd0] sm:$0xff]  }
   0x3   :  { %v1280_v2 = vld [vmem:[%s1694_s1] sm:$0xff]   ;;  %1164 = vmatprep.subr.bf16.mxu1 %v1279_v1  ;;  %v1284_v6 = vld [vmem:[%s1694_s1 + $0x8] sm:$0xff]   ;;  %v1288_v10 = vld [vmem:[%s1694_s1 + $0x10] sm:$0xff]  }
   0x4   :  { %v1281_v3 = vld [vmem:[%s1694_s1 + $0x80] sm:$0xff]   ;;  %1137 = vmatpush3.bf16.msra.mxu0 %v1280_v2  ;;  %v1285_v7 = vld [vmem:[%s1694_s1 + $0x88] sm:$0xff]   ;;  %v1289_v11 = vld [vmem:[%s1694_s1 + $0x90] sm:$0xff]  }
   0x5   :  { %1165 = vmatpush3.bf16.msra.mxu1 %v1281_v3  ;;  %1138 = vmatprep.subr.bf16.mxu0 %v1282_v4  ;;  %v1290_v12 = vld [vmem:[%s1694_s1 + $0x58] sm:$0xff]   ;;  %v1294_v16 = vld [vmem:[%s1694_s1 + $0x60] sm:$0xff]   ;;  %v1298_v20 = vld [vmem:[%s1694_s1 + $0x68] sm:$0xff]  }
   0x6   :  { %1166 = vmatprep.subr.bf16.mxu1 %v1283_v5  ;;  %v1291_v13 = vld [vmem:[%s1694_s1 + $0xd8] sm:$0xff]   ;;  %v1295_v17 = vld [vmem:[%s1694_s1 + $0xe0] sm:$0xff]   ;;  %v1299_v21 = vld [vmem:[%s1694_s1 + $0xe8] sm:$0xff]  }
   0x7   :  { %v1292_v14 = vld [vmem:[%s1694_s1 + $0x18] sm:$0xff]   ;;  %v1296_v18 = vld [vmem:[%s1694_s1 + $0x20] sm:$0xff]   ;;  %v1300_v22 = vld [vmem:[%s1694_s1 + $0x28] sm:$0xff]  }
   0x8   :  { %1139 = vmatpush3.bf16.msra.mxu0 %v1284_v6  ;;  %v1293_v15 = vld [vmem:[%s1694_s1 + $0x98] sm:$0xff]   ;;  %v1297_v19 = vld [vmem:[%s1694_s1 + $0xa0] sm:$0xff]   ;;  %v1301_v23 = vld [vmem:[%s1694_s1 + $0xa8] sm:$0xff]  }
   0x9   :  { %1167 = vmatpush3.bf16.msra.mxu1 %v1285_v7  ;;  %1140 = vmatprep.subr.bf16.mxu0 %v1286_v8  ;;  %v1302_v24 = vld [vmem:[%s1694_s1 + $0x70] sm:$0xff]   ;;  %v1306_v28 = vld [vmem:[%s1694_s1 + $0x78] sm:$0xff]   ;;  %v1310_v32 = vld [vmem:[%s1695_s0] ss:$36 sps:$4 sm:$0xff]  }
   0xa   :  { %1168 = vmatprep.subr.bf16.mxu1 %v1287_v9  ;;  %v1303_v25 = vld [vmem:[%s1694_s1 + $0xf0] sm:$0xff]   ;;  %v1307_v29 = vld [vmem:[%s1694_s1 + $0xf8] sm:$0xff]   ;;  %v1312_v33 = vld [vmem:[%s1695_s0 + $0x4] ss:$36 sps:$4 sm:$0xff]  }
   0xb   :  { %v1304_v26 = vld [vmem:[%s1694_s1 + $0x30] sm:$0xff]   ;;  %v1308_v30 = vld [vmem:[%s1694_s1 + $0x38] sm:$0xff]   ;;  %v1313_v34 = vld [vmem:[%s1695_s0 + $0x8] ss:$36 sps:$4 sm:$0xff]   ;;  %741 = vmatprep.mubr.bf16.mxu0 %v1312_v33 }
   0xc   :  { %1141 = vmatpush3.bf16.msra.mxu0 %v1288_v10  ;;  %v1305_v27 = vld [vmem:[%s1694_s1 + $0xb0] sm:$0xff]   ;;  %v1309_v31 = vld [vmem:[%s1694_s1 + $0xb8] sm:$0xff]   ;;  %v1316_v36 = vld [vmem:[%s1694_s1 + $0x140] sm:$0xff]  }
   0xd   :  { %1169 = vmatpush3.bf16.msra.mxu1 %v1289_v11  ;;  %1142 = vmatprep.subr.bf16.mxu0 %v1290_v12  ;;  %v1315_v35 = vld [vmem:[%s1695_s0 + $0xc] ss:$36 sps:$4 sm:$0xff]   ;;  %v1317_v37 = vld [vmem:[%s1694_s1 + $0x100] sm:$0xff]   ;;  %v1328_v48 = vld [vmem:[%s1694_s1 + $0x158] sm:$0xff]  }
   0xe   :  { %1170 = vmatprep.subr.bf16.mxu1 %v1291_v13  ;;  %790 = vmatprep.mubr.bf16.mxu1 %v1315_v35  ;;  %v1318_v38 = vld [vmem:[%s1694_s1 + $0x1c0] sm:$0xff]   ;;  %v1320_v40 = vld [vmem:[%s1694_s1 + $0x148] sm:$0xff]   ;;  %v1324_v44 = vld [vmem:[%s1694_s1 + $0x150] sm:$0xff]  }
   0xf   :  { %v1319_v39 = vld [vmem:[%s1694_s1 + $0x180] sm:$0xff]   ;;  %v1321_v41 = vld [vmem:[%s1694_s1 + $0x108] sm:$0xff]   ;;  %v1325_v45 = vld [vmem:[%s1694_s1 + $0x110] sm:$0xff]  }
  0x10   :  { %1143 = vmatpush3.bf16.msra.mxu0 %v1292_v14  ;;  %v1322_v42 = vld [vmem:[%s1694_s1 + $0x1c8] sm:$0xff]   ;;  %v1326_v46 = vld [vmem:[%s1694_s1 + $0x1d0] sm:$0xff]   ;;  %v1329_v49 = vld [vmem:[%s1694_s1 + $0x118] sm:$0xff]  }
  0x11   :  { %1171 = vmatpush3.bf16.msra.mxu1 %v1293_v15  ;;  %1144 = vmatprep.subr.bf16.mxu0 %v1294_v16  ;;  %v1323_v43 = vld [vmem:[%s1694_s1 + $0x188] sm:$0xff]   ;;  %v1327_v47 = vld [vmem:[%s1694_s1 + $0x190] sm:$0xff]   ;;  %v1330_v50 = vld [vmem:[%s1694_s1 + $0x1d8] sm:$0xff]  }
  0x12   :  { %1172 = vmatprep.subr.bf16.mxu1 %v1295_v17  ;;  %v1331_v51 = vld [vmem:[%s1694_s1 + $0x198] sm:$0xff]   ;;  %v1332_v52 = vld [vmem:[%s1694_s1 + $0x160] sm:$0xff]   ;;  %v1336_v56 = vld [vmem:[%s1694_s1 + $0x168] sm:$0xff]  }
  0x13   :  { %v1333_v53 = vld [vmem:[%s1694_s1 + $0x120] sm:$0xff]   ;;  %v1337_v57 = vld [vmem:[%s1695_s0 + $0x4c] ss:$36 sps:$4 sm:$0xff]   ;;  %v1339_v58 = vld [vmem:[%s1695_s0 + $0x54] ss:$36 sps:$4 sm:$0xff]  }
  0x14   :  { %1145 = vmatpush3.bf16.msra.mxu0 %v1296_v18  ;;  %v1334_v54 = vld [vmem:[%s1694_s1 + $0x1e0] sm:$0xff]   ;;  %v1341_v59 = vld [vmem:[%s1694_s1 + $0x128] sm:$0xff]   ;;  %v1343_v61 = vld [vmem:[%s1695_s0 + $0x50] ss:$36 sps:$4 sm:$0xff]  }
  0x15   :  { %1173 = vmatpush3.bf16.msra.mxu1 %v1297_v19  ;;  %1146 = vmatprep.subr.bf16.mxu0 %v1298_v20  ;;  %v1335_v55 = vld [vmem:[%s1694_s1 + $0x1a0] sm:$0xff]   ;;  %v1342_v60 = vld [vmem:[%s1695_s0 + $0x48] ss:$36 sps:$4 sm:$0xff]   ;;  %v1346_v0 = vld [vmem:[%s1694_s1 + $0x170] sm:$0xff]  }
  0x16   :  { %1174 = vmatprep.subr.bf16.mxu1 %v1299_v21  ;;  %v1344_v62 = vld [vmem:[%s1694_s1 + $0x1e8] sm:$0xff]   ;;  %v1347_v1 = vld [vmem:[%s1694_s1 + $0x130] sm:$0xff]   ;;  %v1350_v4 = vld [vmem:[%s1694_s1 + $0x178] sm:$0xff]  }
  0x17   :  { %v1345_v63 = vld [vmem:[%s1694_s1 + $0x1a8] sm:$0xff]   ;;  %v1348_v2 = vld [vmem:[%s1694_s1 + $0x1f0] sm:$0xff]   ;;  %v1351_v5 = vld [vmem:[%s1694_s1 + $0x138] sm:$0xff]  }
  0x18   :  { %1147 = vmatpush3.bf16.msra.mxu0 %v1300_v22  ;;  %v1349_v3 = vld [vmem:[%s1694_s1 + $0x1b0] sm:$0xff]   ;;  %v1352_v6 = vld [vmem:[%s1694_s1 + $0x1f8] sm:$0xff]   ;;  %v1357_v10 = vld [vmem:[%s1694_s1 + $0x200] sm:$0xff]  }
  0x19   :  { %1175 = vmatpush3.bf16.msra.mxu1 %v1301_v23  ;;  %1148 = vmatprep.subr.bf16.mxu0 %v1302_v24  ;;  %v1353_v7 = vld [vmem:[%s1695_s0 + $0x10] ss:$36 sps:$4 sm:$0xff]   ;;  %v1356_v9 = vld [vmem:[%s1694_s1 + $0x1b8] sm:$0xff]   ;;  %v1361_v13 = vld [vmem:[%s1694_s1 + $0x208] sm:$0xff]  }
  0x1a   :  { %1176 = vmatprep.subr.bf16.mxu1 %v1303_v25  ;;  %v1355_v8 = vld [vmem:[%s1695_s0 + $0x14] ss:$36 sps:$4 sm:$0xff]   ;;  %v1360_v12 = vld [vmem:[%s1695_s0 + $0x1c] ss:$36 sps:$4 sm:$0xff]   ;;  %v1366_v17 = vld [vmem:[%s1695_s0 + $0x64] ss:$36 sps:$4 sm:$0xff]  }
  0x1b   :  { %v1358_v11 = vld [vmem:[%s1695_s0 + $0x18] ss:$36 sps:$4 sm:$0xff]   ;;  %v1365_v16 = vld [vmem:[%s1694_s1 + $0x210] sm:$0xff]   ;;  %v1368_v18 = vld [vmem:[%s1695_s0 + $0x60] ss:$36 sps:$4 sm:$0xff]  }
  0x1c   :  { %1149 = vmatpush3.bf16.msra.mxu0 %v1304_v26  ;;  %v1362_v14 = vld [vmem:[%s1695_s0 + $0x5c] ss:$36 sps:$4 sm:$0xff]   ;;  %v1371_v22 = vld [vmem:[%s1694_s1 + $0x228] sm:$0xff]   ;;  %v1372_v23 = vld [vmem:[%s1694_s1 + $0x230] sm:$0xff]  }
  0x1d   :  { %1177 = vmatpush3.bf16.msra.mxu1 %v1305_v27  ;;  %1150 = vmatprep.subr.bf16.mxu0 %v1306_v28  ;;  %v1364_v15 = vld [vmem:[%s1695_s0 + $0x58] ss:$36 sps:$4 sm:$0xff]   ;;  %v1370_v20 = vld [vmem:[%s1694_s1 + $0x220] sm:$0xff]   ;;  %v1375_v25 = vld [vmem:[%s1695_s0 + $0x68] ss:$36 sps:$4 sm:$0xff]  }
  0x1e   :  { %1178 = vmatprep.subr.bf16.mxu1 %v1307_v29  ;;  %v1369_v19 = vld [vmem:[%s1694_s1 + $0x218] sm:$0xff]   ;;  %v1374_v21 = vld [vmem:[%s1695_s0 + $0x20] ss:$36 sps:$4 sm:$0xff]  }
  0x1f   :  { %v1373_v24 = vld [vmem:[%s1694_s1 + $0x238] sm:$0xff]  }
  0x20   :  { %1151 = vmatpush3.bf16.msra.mxu0 %v1308_v30 }
  0x21   :  { %1179 = vmatpush3.bf16.msra.mxu1 %v1309_v31  ;;  %1192 = vmatprep.subr.bf16.mxu0 %v1316_v36 }
  0x22   :  { %1220 = vmatprep.subr.bf16.mxu1 %v1318_v38 }
  0x23   :  { %742 = vmatmul.mubr.bf16.vlgmr.msra.gmra.mrb[0].mxu0 %v1310_v32 }
  0x24   :  { %791 = vmatmul.mubr.bf16.vlgmr.msra.gmra.mrb[0].mxu1 %v1313_v34  ;;  %1193 = vmatpush3.bf16.msra.mxu0 %v1317_v37 }
  0x25   :  { %1221 = vmatpush3.bf16.msra.mxu1 %v1319_v39  ;;  %1194 = vmatprep.subr.bf16.mxu0 %v1320_v40 }
  0x26   :  { %1222 = vmatprep.subr.bf16.mxu1 %v1322_v42  ;;  %749 = vmatprep.mubr.bf16.mxu0 %v1337_v57 }
  0x27   :  { %798 = vmatprep.mubr.bf16.mxu1 %v1339_v58 }
  0x28   :  { %1195 = vmatpush3.bf16.msra.mxu0 %v1321_v41 }
  0x29   :  { %1223 = vmatpush3.bf16.msra.mxu1 %v1323_v43  ;;  %1196 = vmatprep.subr.bf16.mxu0 %v1324_v44 }
  0x2a   :  { %1224 = vmatprep.subr.bf16.mxu1 %v1326_v46 }
  0x2b   :  { %750 = vmatmul.mubr.bf16.gmra.mrb[4].mxu0 %v1342_v60 }
  0x2c   :  { %1197 = vmatpush3.bf16.msra.mxu0 %v1325_v45  ;;  %799 = vmatmul.mubr.bf16.gmra.mrb[4].mxu1 %v1343_v61 }
  0x2d   :  { %1225 = vmatpush3.bf16.msra.mxu1 %v1327_v47  ;;  %1198 = vmatprep.subr.bf16.mxu0 %v1328_v48 }
  0x2e   :  { %1226 = vmatprep.subr.bf16.mxu1 %v1330_v50  ;;  %839 = vmatprep.mubr.bf16.mxu0 %v1355_v8 }
  0x2f   :  { %888 = vmatprep.mubr.bf16.mxu1 %v1360_v12 }
  0x30   :  { %1199 = vmatpush3.bf16.msra.mxu0 %v1329_v49 }
  0x31   :  { %1227 = vmatpush3.bf16.msra.mxu1 %v1331_v51  ;;  %1200 = vmatprep.subr.bf16.mxu0 %v1332_v52 }
  0x32   :  { %1228 = vmatprep.subr.bf16.mxu1 %v1334_v54 }
  0x34   :  { %1201 = vmatpush3.bf16.msra.mxu0 %v1333_v53 }
  0x35   :  { %1229 = vmatpush3.bf16.msra.mxu1 %v1335_v55  ;;  %1202 = vmatprep.subr.bf16.mxu0 %v1336_v56 }
  0x36   :  { %1230 = vmatprep.subr.bf16.mxu1 %v1344_v62 }
  0x38   :  { %1203 = vmatpush3.bf16.msra.mxu0 %v1341_v59 }
  0x39   :  { %1231 = vmatpush3.bf16.msra.mxu1 %v1345_v63  ;;  %1204 = vmatprep.subr.bf16.mxu0 %v1346_v0 }
  0x3a   :  { %1232 = vmatprep.subr.bf16.mxu1 %v1348_v2 }
  0x3c   :  { %1205 = vmatpush3.bf16.msra.mxu0 %v1347_v1 }
  0x3d   :  { %1233 = vmatpush3.bf16.msra.mxu1 %v1349_v3  ;;  %1206 = vmatprep.subr.bf16.mxu0 %v1350_v4 }
  0x3e   :  { %1234 = vmatprep.subr.bf16.mxu1 %v1352_v6 }
  0x40   :  { %1207 = vmatpush3.bf16.msra.mxu0 %v1351_v5 }
  0x41   :  { %1235 = vmatpush3.bf16.msra.mxu1 %v1356_v9  ;;  %1258 = vmatprep.subr.bf16.mxu0 %v1357_v10 }
  0x43   :  { %840 = vmatmul.mubr.bf16.vlgmr.msra.gmra.mrb[8].mxu0 %v1353_v7 }
  0x44   :  { %1259 = vmatpush3.bf16.msra.mxu0 %v1357_v10  ;;  %889 = vmatmul.mubr.bf16.vlgmr.msra.gmra.mrb[8].mxu1 %v1358_v11 }
  0x45   :  { %1260 = vmatprep.subr.bf16.mxu0 %v1361_v13  ;;  %847 = vmatprep.mubr.bf16.mxu0 %v1362_v14 }
  0x46   :  { %896 = vmatprep.mubr.bf16.mxu1 %v1366_v17 }
  0x48   :  { %1261 = vmatpush3.bf16.msra.mxu0 %v1361_v13 }
  0x49   :  { %1262 = vmatprep.subr.bf16.mxu0 %v1365_v16 }
  0x4b   :  { %848 = vmatmul.mubr.bf16.gmra.mrb[12].mxu0 %v1364_v15 }
  0x4c   :  { %1263 = vmatpush3.bf16.msra.mxu0 %v1365_v16  ;;  %897 = vmatmul.mubr.bf16.gmra.mrb[12].mxu1 %v1368_v18 }
  0x4d   :  { %1264 = vmatprep.subr.bf16.mxu0 %v1369_v19  ;;  %1274 = vmatprep.mubr.bf16.mxu0 %v1374_v21 }
  0x50   :  { %1265 = vmatpush3.bf16.msra.mxu0 %v1369_v19 }
  0x51   :  { %1266 = vmatprep.subr.bf16.mxu0 %v1370_v20 }
  0x54   :  { %1267 = vmatpush3.bf16.msra.mxu0 %v1370_v20 }
  0x55   :  { %1268 = vmatprep.subr.bf16.mxu0 %v1371_v22 }
  0x58   :  { %1269 = vmatpush3.bf16.msra.mxu0 %v1371_v22 }
  0x59   :  { %1270 = vmatprep.subr.bf16.mxu0 %v1372_v23 }
  0x5c   :  { %1271 = vmatpush3.bf16.msra.mxu0 %v1372_v23  ;;  %v1106_v23 = vld [vmem:[%s1696_s2] ss:$0 sm:$0xff] }
  0x5d   :  { %1272 = vmatprep.subr.bf16.mxu0 %v1373_v24 }
  0x60   :  { %1273 = vmatpush3.bf16.msra.mxu0 %v1373_v24  ;;  %v1134_v24 = vld [vmem:[%s1697_s4 + $0x8] sm:$0xff]  }
  0x63   :  { %1275 = vmatmul.mubr.bf16.vlgmr.msra.gmra.mrb[16].mxu0 %v1375_v25 }
  0xf6   :  { %v1152_v26 = vpop.f32.mrb[0].mxu0 }
  0xf7   :  { %v1180_v27 = vpop.f32.mrb[0].mxu1  ;;  %v1153_v28 = vpop.f32.mrb[1].mxu0 }
  0xf8   :  { %v1154_v29 = vadd.f32 %v1153_v28, %v1152_v26  ;;  %v1181_v30 = vpop.f32.mrb[1].mxu1  ;;  %v1155_v31 = vpop.f32.mrb[2].mxu0  ;;  %v1107_v28 = vld [vmem:[%s1698_s3] ss:$0 sm:$0xff] }
  0xf9   :  { %v1182_v32 = vadd.f32 %v1181_v30, %v1180_v27  ;;  %v1183_v33 = vpop.f32.mrb[2].mxu1  ;;  %v1156_v34 = vpop.f32.mrb[3].mxu0  ;;  %v1117_v27 = vld [vmem:[%s1697_s4] sm:$0xff]  }
  0xfa   :  { %v1157_v35 = vadd.f32 %v1156_v34, %v1155_v31  ;;  %v1184_v36 = vpop.f32.mrb[3].mxu1 }
  0xfb   :  { %v793_v37 = vadd.f32 %v1182_v32, %v1154_v29  ;;  %v1185_v38 = vadd.f32 %v1184_v36, %v1183_v33  ;;  %v1122_v32 = vunpack.c.l.bf16 %v1134_v24  ;;  %v1118_v36 = vunpack.c.l.bf16 %v1117_v27 }
  0xfd   :  { %v796_v39 = vadd.f32 %v1185_v38, %v1157_v35 }
  0xfe   :  { %v1158_v40 = vpop.f32.mrb[4].mxu0 }
  0xff   :  { %v1186_v41 = vpop.f32.mrb[4].mxu1  ;;  %v1159_v42 = vpop.f32.mrb[5].mxu0 }
 0x100   :  { %v1187_v43 = vpop.f32.mrb[5].mxu1  ;;  %v1160_v44 = vadd.f32 %v1159_v42, %v1158_v40  ;;  %v1161_v46 = vpop.f32.mrb[6].mxu0  ;;  %v1123_v40 = vunpack.c.h.bf16 %v1134_v24 }
 0x101   :  { %v1188_v45 = vadd.f32 %v1187_v43, %v1186_v41  ;;  %v1189_v47 = vpop.f32.mrb[6].mxu1  ;;  %v1162_v48 = vpop.f32.mrb[7].mxu0  ;;  %v1119_v43 = vunpack.c.h.bf16 %v1117_v27 }
 0x102   :  { %v1190_v49 = vpop.f32.mrb[7].mxu1  ;;  %v1163_v51 = vadd.f32 %v1162_v48, %v1161_v46 }
 0x103   :  { %v801_v50 = vadd.f32 %v1188_v45, %v1160_v44  ;;  %v1191_v52 = vadd.f32 %v1190_v49, %v1189_v47 }
 0x105   :  { %v804_v53 = vadd.f32 %v1191_v52, %v1163_v51 }
 0x116   :  { %v1208_v54 = vpop.f32.mrb[8].mxu0 }
 0x117   :  { %v1209_v55 = vpop.f32.mrb[9].mxu0  ;;  %v1236_v58 = vpop.f32.mrb[8].mxu1 }
 0x118   :  { %v1210_v56 = vadd.f32 %v1209_v55, %v1208_v54  ;;  %v1211_v57 = vpop.f32.mrb[10].mxu0  ;;  %v1237_v62 = vpop.f32.mrb[9].mxu1 }
 0x119   :  { %v1212_v59 = vpop.f32.mrb[11].mxu0  ;;  %v1238_v63 = vadd.f32 %v1237_v62, %v1236_v58  ;;  %v1239_v0 = vpop.f32.mrb[10].mxu1 }
 0x11a   :  { %v842_v60 = vadd.f32 %v1210_v56, %v793_v37  ;;  %v1213_v61 = vadd.f32 %v1212_v59, %v1211_v57  ;;  %v1240_v2 = vpop.f32.mrb[11].mxu1 }
 0x11b   :  { %v1241_v3 = vadd.f32 %v1240_v2, %v1239_v0 }
 0x11c   :  { %v845_v1 = vadd.f32 %v1213_v61, %v796_v39  ;;  %v891_v4 = vadd.f32 %v1238_v63, %v842_v60 }
 0x11e   :  { %v1214_v5 = vpop.f32.mrb[12].mxu0  ;;  %v894_v7 = vadd.f32 %v1241_v3, %v845_v1 }
 0x11f   :  { %v1215_v6 = vpop.f32.mrb[13].mxu0  ;;  %v1242_v10 = vpop.f32.mrb[12].mxu1 }
 0x120   :  { %v1216_v8 = vadd.f32 %v1215_v6, %v1214_v5  ;;  %v1217_v9 = vpop.f32.mrb[14].mxu0  ;;  %v1243_v14 = vpop.f32.mrb[13].mxu1 }
 0x121   :  { %v1218_v11 = vpop.f32.mrb[15].mxu0  ;;  %v1244_v15 = vadd.f32 %v1243_v14, %v1242_v10  ;;  %v1245_v16 = vpop.f32.mrb[14].mxu1 }
 0x122   :  { %v850_v12 = vadd.f32 %v1216_v8, %v801_v50  ;;  %v1219_v13 = vadd.f32 %v1218_v11, %v1217_v9  ;;  %v1246_v18 = vpop.f32.mrb[15].mxu1 }
 0x123   :  { %v1247_v19 = vadd.f32 %v1246_v18, %v1245_v16 }
 0x124   :  { %v853_v17 = vadd.f32 %v1219_v13, %v804_v53  ;;  %v899_v20 = vadd.f32 %v1244_v15, %v850_v12 }
 0x126   :  { %v902_v21 = vadd.f32 %v1247_v19, %v853_v17 }
 0x136   :  { %v1276_v22 = vpop.f32.mrb[16].mxu0 }
 0x137   :  { %v948_v25 = vadd.f32 %v1276_v22, %v899_v20  ;;  %v939_v26 = vpop.f32.mrb[17].mxu0 }
 0x138   :  { %v940_v29 = vadd.f32 %v939_v26, %v891_v4  ;;  %v1277_v30 = vpop.f32.mrb[18].mxu0 }
 0x139   :  { %v963_v31 = vmul.f32 %v1106_v23, %v948_v25  ;;  %v951_v33 = vadd.f32 %v1277_v30, %v902_v21  ;;  %v942_v34 = vpop.f32.mrb[19].mxu0 }
 0x13a   :  { %v961_v35 = vmul.f32 %v1106_v23, %v940_v29  ;;  %v943_v37 = vadd.f32 %v942_v34, %v894_v7 }
 0x13b   :  { %v974_v38 = vadd.f32 %v1107_v28, %v963_v31  ;;  %v964_v39 = vmul.f32 %v1106_v23, %v951_v33 }
 0x13c   :  { %v972_v41 = vadd.f32 %v1107_v28, %v961_v35  ;;  %v962_v42 = vmul.f32 %v1106_v23, %v943_v37 }
 0x13d   :  { %v986_v44 = vadd.f32 %v1122_v32, %v974_v38  ;;  %v975_v45 = vadd.f32 %v1107_v28, %v964_v39 }
 0x13e   :  { %v984_v46 = vadd.f32 %v1118_v36, %v972_v41  ;;  %v973_v47 = vadd.f32 %v1107_v28, %v962_v42 }
 0x13f   :  { %v987_v48 = vadd.f32 %v1123_v40, %v975_v45  ;;  %v990_v50 = vmax.f32 %v986_v44, 0.0 }
 0x140   :  { %v985_v49 = vadd.f32 %v1119_v43, %v973_v47  ;;  %v988_v52 = vmax.f32 %v984_v46, 0.0 }
 0x141   :  { %v991_v51 = vmax.f32 %v987_v48, 0.0 }
 0x142   :  { %v989_v53 = vmax.f32 %v985_v49, 0.0 }
 0x143   :  { %v1132_v54 = vpack.c.bf16 %v991_v51, %v990_v50 }
 0x144   :  { %v1127_v55 = vpack.c.bf16 %v989_v53, %v988_v52 }
 0x145   :  { %1135 = vst [vmem:[%s1699_s5 + $0x8] sm:$0xff] %v1132_v54  }
 0x146   :  { %1128 = vst [vmem:[%s1699_s5] sm:$0xff] %v1127_v55  }

// kernel: feature_extractor_forward.81
= control target key start
LH: loop header
LB: loop body
LE: loop exit
PB: predicated region body
PF: predicated region fallthrough
CT: control target
= control target key end

     0   :  { %s2330_s1 = inlined_call_operand.vmem [shape: bf16[1152,256], index: 1, kind: input, shape index: {}]   ;;  %s2331_s0 = inlined_call_operand.vmem [shape: bf16[32,1152], index: 0, kind: input, shape index: {}]   ;;  %s2332_s2 = inlined_call_operand.vmem [shape: f32[1,256], index: 2, kind: input, shape index: {}]   ;;  %s2333_s3 = inlined_call_operand.vmem [shape: f32[1,256], index: 3, kind: input, shape index: {}]   ;;  %s2334_s4 = inlined_call_operand.vmem [shape: bf16[32,256], index: 4, kind: output, shape index: {}]  }
   0x1   :  { %v1558_v0 = vld [vmem:[%s2330_s1 + $0x4] ss:$8 sps:$4 sm:$0xff]   ;;  %v1562_v2 = vld [vmem:[%s2330_s1] ss:$8 sps:$4 sm:$0xff]   ;;  %v1564_v4 = vld [vmem:[%s2330_s1 + $0x14] ss:$8 sps:$4 sm:$0xff]  }
   0x2   :  { %v1560_v1 = vld [vmem:[%s2330_s1 + $0x204] ss:$8 sps:$4 sm:$0xff]   ;;  %994 = vmatprep.subr.bf16.mxu1 %v1558_v0  ;;  %v1563_v3 = vld [vmem:[%s2330_s1 + $0x200] ss:$8 sps:$4 sm:$0xff]   ;;  %v1566_v5 = vld [vmem:[%s2330_s1 + $0x214] ss:$8 sps:$4 sm:$0xff]  }
   0x3   :  { %1100 = vmatprep.subr.bf16.mxu0 %v1560_v1  ;;  %995 = vmatpush1.bf16.msra.mxu1 %v1562_v2  ;;  %v1568_v6 = vld [vmem:[%s2330_s1 + $0x10] ss:$8 sps:$4 sm:$0xff]   ;;  %v1570_v8 = vld [vmem:[%s2330_s1 + $0x24] ss:$8 sps:$4 sm:$0xff]   ;;  %v1574_v10 = vld [vmem:[%s2330_s1 + $0x20] ss:$8 sps:$4 sm:$0xff]  }
   0x4   :  { %1101 = vmatpush1.bf16.msra.mxu0 %v1563_v3  ;;  %996 = vmatprep.subr.bf16.mxu1 %v1564_v4  ;;  %v1569_v7 = vld [vmem:[%s2330_s1 + $0x210] ss:$8 sps:$4 sm:$0xff]   ;;  %v1572_v9 = vld [vmem:[%s2330_s1 + $0x224] ss:$8 sps:$4 sm:$0xff]   ;;  %v1575_v11 = vld [vmem:[%s2330_s1 + $0x220] ss:$8 sps:$4 sm:$0xff]  }
   0x5   :  { %1102 = vmatprep.subr.bf16.mxu0 %v1566_v5  ;;  %v1576_v12 = vld [vmem:[%s2330_s1 + $0x34] ss:$8 sps:$4 sm:$0xff]   ;;  %v1580_v14 = vld [vmem:[%s2330_s1 + $0x30] ss:$8 sps:$4 sm:$0xff]   ;;  %v1582_v16 = vld [vmem:[%s2330_s1 + $0x44] ss:$8 sps:$4 sm:$0xff]  }
   0x6   :  { %v1578_v13 = vld [vmem:[%s2330_s1 + $0x234] ss:$8 sps:$4 sm:$0xff]   ;;  %v1581_v15 = vld [vmem:[%s2330_s1 + $0x230] ss:$8 sps:$4 sm:$0xff]   ;;  %v1584_v17 = vld [vmem:[%s2330_s1 + $0x244] ss:$8 sps:$4 sm:$0xff]  }
   0x7   :  { %997 = vmatpush1.bf16.msra.mxu1 %v1568_v6  ;;  %v1586_v18 = vld [vmem:[%s2330_s1 + $0x40] ss:$8 sps:$4 sm:$0xff]   ;;  %v1588_v20 = vld [vmem:[%s2330_s1 + $0x54] ss:$8 sps:$4 sm:$0xff]   ;;  %v1592_v22 = vld [vmem:[%s2330_s1 + $0x50] ss:$8 sps:$4 sm:$0xff]  }
   0x8   :  { %1103 = vmatpush1.bf16.msra.mxu0 %v1569_v7  ;;  %998 = vmatprep.subr.bf16.mxu1 %v1570_v8  ;;  %v1587_v19 = vld [vmem:[%s2330_s1 + $0x240] ss:$8 sps:$4 sm:$0xff]   ;;  %v1590_v21 = vld [vmem:[%s2330_s1 + $0x254] ss:$8 sps:$4 sm:$0xff]   ;;  %v1593_v23 = vld [vmem:[%s2330_s1 + $0x250] ss:$8 sps:$4 sm:$0xff]  }
   0x9   :  { %1104 = vmatprep.subr.bf16.mxu0 %v1572_v9  ;;  %v1594_v24 = vld [vmem:[%s2330_s1 + $0x64] ss:$8 sps:$4 sm:$0xff]   ;;  %v1598_v26 = vld [vmem:[%s2330_s1 + $0x60] ss:$8 sps:$4 sm:$0xff]   ;;  %v1600_v28 = vld [vmem:[%s2330_s1 + $0x74] ss:$8 sps:$4 sm:$0xff]  }
   0xa   :  { %v1596_v25 = vld [vmem:[%s2330_s1 + $0x264] ss:$8 sps:$4 sm:$0xff]   ;;  %v1599_v27 = vld [vmem:[%s2330_s1 + $0x260] ss:$8 sps:$4 sm:$0xff]   ;;  %v1602_v29 = vld [vmem:[%s2330_s1 + $0x274] ss:$8 sps:$4 sm:$0xff]  }
   0xb   :  { %999 = vmatpush1.bf16.msra.mxu1 %v1574_v10  ;;  %v1604_v30 = vld [vmem:[%s2330_s1 + $0x70] ss:$8 sps:$4 sm:$0xff]   ;;  %v1606_v32 = vld [vmem:[%s2330_s1 + $0x84] ss:$8 sps:$4 sm:$0xff]   ;;  %v1610_v34 = vld [vmem:[%s2330_s1 + $0x80] ss:$8 sps:$4 sm:$0xff]  }
   0xc   :  { %1105 = vmatpush1.bf16.msra.mxu0 %v1575_v11  ;;  %1000 = vmatprep.subr.bf16.mxu1 %v1576_v12  ;;  %v1605_v31 = vld [vmem:[%s2330_s1 + $0x270] ss:$8 sps:$4 sm:$0xff]   ;;  %v1608_v33 = vld [vmem:[%s2330_s1 + $0x284] ss:$8 sps:$4 sm:$0xff]   ;;  %v1611_v35 = vld [vmem:[%s2330_s1 + $0x280] ss:$8 sps:$4 sm:$0xff]  }
   0xd   :  { %1106 = vmatprep.subr.bf16.mxu0 %v1578_v13  ;;  %v1612_v36 = vld [vmem:[%s2330_s1 + $0x94] ss:$8 sps:$4 sm:$0xff]   ;;  %v1616_v38 = vld [vmem:[%s2330_s1 + $0x90] ss:$8 sps:$4 sm:$0xff]   ;;  %v1618_v40 = vld [vmem:[%s2330_s1 + $0xa4] ss:$8 sps:$4 sm:$0xff]  }
   0xe   :  { %v1614_v37 = vld [vmem:[%s2330_s1 + $0x294] ss:$8 sps:$4 sm:$0xff]   ;;  %v1617_v39 = vld [vmem:[%s2330_s1 + $0x290] ss:$8 sps:$4 sm:$0xff]   ;;  %v1620_v41 = vld [vmem:[%s2330_s1 + $0x2a4] ss:$8 sps:$4 sm:$0xff]  }
   0xf   :  { %1001 = vmatpush1.bf16.msra.mxu1 %v1580_v14  ;;  %v1622_v42 = vld [vmem:[%s2330_s1 + $0xa0] ss:$8 sps:$4 sm:$0xff]   ;;  %v1624_v44 = vld [vmem:[%s2330_s1 + $0xb4] ss:$8 sps:$4 sm:$0xff]   ;;  %v1628_v46 = vld [vmem:[%s2330_s1 + $0xb0] ss:$8 sps:$4 sm:$0xff]  }
  0x10   :  { %1107 = vmatpush1.bf16.msra.mxu0 %v1581_v15  ;;  %1002 = vmatprep.subr.bf16.mxu1 %v1582_v16  ;;  %v1623_v43 = vld [vmem:[%s2330_s1 + $0x2a0] ss:$8 sps:$4 sm:$0xff]   ;;  %v1626_v45 = vld [vmem:[%s2330_s1 + $0x2b4] ss:$8 sps:$4 sm:$0xff]   ;;  %v1629_v47 = vld [vmem:[%s2330_s1 + $0x2b0] ss:$8 sps:$4 sm:$0xff]  }
  0x11   :  { %1108 = vmatprep.subr.bf16.mxu0 %v1584_v17  ;;  %v1656_v48 = vld [vmem:[%s2331_s0 + $0x4] ss:$36 sps:$4 sm:$0xff]   ;;  %v1662_v51 = vld [vmem:[%s2331_s0 + $0x14] ss:$36 sps:$4 sm:$0xff]  }
  0x12   :  { %v1630_v49 = vld [vmem:[%s2330_s1 + $0xc4] ss:$8 sps:$4 sm:$0xff]   ;;  %1026 = vmatprep.mubr.bf16.mxu1 %v1656_v48  ;;  %v1634_v52 = vld [vmem:[%s2330_s1 + $0xc0] ss:$8 sps:$4 sm:$0xff]   ;;  %v1636_v54 = vld [vmem:[%s2330_s1 + $0xd4] ss:$8 sps:$4 sm:$0xff]   ;;  %1132 = vmatprep.mubr.bf16.mxu0 %v1662_v51 }
  0x13   :  { %1003 = vmatpush1.bf16.msra.mxu1 %v1586_v18  ;;  %v1632_v50 = vld [vmem:[%s2330_s1 + $0x2c4] ss:$8 sps:$4 sm:$0xff]   ;;  %v1635_v53 = vld [vmem:[%s2330_s1 + $0x2c0] ss:$8 sps:$4 sm:$0xff]   ;;  %v1638_v55 = vld [vmem:[%s2330_s1 + $0x2d4] ss:$8 sps:$4 sm:$0xff]  }
  0x14   :  { %1109 = vmatpush1.bf16.msra.mxu0 %v1587_v19  ;;  %1004 = vmatprep.subr.bf16.mxu1 %v1588_v20  ;;  %v1640_v56 = vld [vmem:[%s2330_s1 + $0xd0] ss:$8 sps:$4 sm:$0xff]   ;;  %v1642_v58 = vld [vmem:[%s2330_s1 + $0xe4] ss:$8 sps:$4 sm:$0xff]   ;;  %v1646_v60 = vld [vmem:[%s2330_s1 + $0xe0] ss:$8 sps:$4 sm:$0xff]  }
  0x15   :  { %1110 = vmatprep.subr.bf16.mxu0 %v1590_v21  ;;  %v1641_v57 = vld [vmem:[%s2330_s1 + $0x2d0] ss:$8 sps:$4 sm:$0xff]   ;;  %v1644_v59 = vld [vmem:[%s2330_s1 + $0x2e4] ss:$8 sps:$4 sm:$0xff]   ;;  %v1647_v61 = vld [vmem:[%s2330_s1 + $0x2e0] ss:$8 sps:$4 sm:$0xff]  }
  0x16   :  { %v1648_v62 = vld [vmem:[%s2330_s1 + $0xf4] ss:$8 sps:$4 sm:$0xff]   ;;  %v1652_v0 = vld [vmem:[%s2330_s1 + $0xf0] ss:$8 sps:$4 sm:$0xff]   ;;  %v1659_v2 = vld [vmem:[%s2330_s1 + $0x104] ss:$8 sps:$4 sm:$0xff]  }
  0x17   :  { %1005 = vmatpush1.bf16.msra.mxu1 %v1592_v22  ;;  %v1650_v63 = vld [vmem:[%s2330_s1 + $0x2f4] ss:$8 sps:$4 sm:$0xff]   ;;  %v1653_v1 = vld [vmem:[%s2330_s1 + $0x2f0] ss:$8 sps:$4 sm:$0xff]   ;;  %v1665_v3 = vld [vmem:[%s2330_s1 + $0x304] ss:$8 sps:$4 sm:$0xff]  }
  0x18   :  { %1111 = vmatpush1.bf16.msra.mxu0 %v1593_v23  ;;  %1006 = vmatprep.subr.bf16.mxu1 %v1594_v24  ;;  %v1654_v4 = vld [vmem:[%s2331_s0] ss:$36 sps:$4 sm:$0xff]   ;;  %v1660_v6 = vld [vmem:[%s2331_s0 + $0x10] ss:$36 sps:$4 sm:$0xff]  }
  0x19   :  { %1112 = vmatprep.subr.bf16.mxu0 %v1596_v25  ;;  %v1657_v5 = vld [vmem:[%s2330_s1 + $0x100] ss:$8 sps:$4 sm:$0xff]   ;;  %v1668_v8 = vld [vmem:[%s2330_s1 + $0x114] ss:$8 sps:$4 sm:$0xff]   ;;  %v1666_v10 = vld [vmem:[%s2330_s1 + $0x110] ss:$8 sps:$4 sm:$0xff]  }
  0x1a   :  { %v1663_v7 = vld [vmem:[%s2330_s1 + $0x300] ss:$8 sps:$4 sm:$0xff]   ;;  %v1671_v9 = vld [vmem:[%s2330_s1 + $0x314] ss:$8 sps:$4 sm:$0xff]   ;;  %v1669_v11 = vld [vmem:[%s2330_s1 + $0x310] ss:$8 sps:$4 sm:$0xff]  }
  0x1b   :  { %1007 = vmatpush1.bf16.msra.mxu1 %v1598_v26  ;;  %v1674_v12 = vld [vmem:[%s2330_s1 + $0x124] ss:$8 sps:$4 sm:$0xff]   ;;  %v1672_v14 = vld [vmem:[%s2330_s1 + $0x120] ss:$8 sps:$4 sm:$0xff]   ;;  %v1680_v16 = vld [vmem:[%s2330_s1 + $0x134] ss:$8 sps:$4 sm:$0xff]  }
  0x1c   :  { %1113 = vmatpush1.bf16.msra.mxu0 %v1599_v27  ;;  %1008 = vmatprep.subr.bf16.mxu1 %v1600_v28  ;;  %v1677_v13 = vld [vmem:[%s2330_s1 + $0x324] ss:$8 sps:$4 sm:$0xff]   ;;  %v1675_v15 = vld [vmem:[%s2330_s1 + $0x320] ss:$8 sps:$4 sm:$0xff]   ;;  %v1683_v17 = vld [vmem:[%s2330_s1 + $0x334] ss:$8 sps:$4 sm:$0xff]  }
  0x1d   :  { %1114 = vmatprep.subr.bf16.mxu0 %v1602_v29  ;;  %v1678_v18 = vld [vmem:[%s2330_s1 + $0x130] ss:$8 sps:$4 sm:$0xff]   ;;  %v1686_v20 = vld [vmem:[%s2330_s1 + $0x144] ss:$8 sps:$4 sm:$0xff]   ;;  %v1684_v22 = vld [vmem:[%s2330_s1 + $0x140] ss:$8 sps:$4 sm:$0xff]  }
  0x1e   :  { %v1681_v19 = vld [vmem:[%s2330_s1 + $0x330] ss:$8 sps:$4 sm:$0xff]   ;;  %v1689_v21 = vld [vmem:[%s2330_s1 + $0x344] ss:$8 sps:$4 sm:$0xff]   ;;  %v1687_v23 = vld [vmem:[%s2330_s1 + $0x340] ss:$8 sps:$4 sm:$0xff]  }
  0x1f   :  { %1009 = vmatpush1.bf16.msra.mxu1 %v1604_v30  ;;  %v1692_v24 = vld [vmem:[%s2330_s1 + $0x154] ss:$8 sps:$4 sm:$0xff]   ;;  %v1690_v26 = vld [vmem:[%s2330_s1 + $0x150] ss:$8 sps:$4 sm:$0xff]   ;;  %v1698_v28 = vld [vmem:[%s2330_s1 + $0x164] ss:$8 sps:$4 sm:$0xff]  }
  0x20   :  { %1115 = vmatpush1.bf16.msra.mxu0 %v1605_v31  ;;  %1010 = vmatprep.subr.bf16.mxu1 %v1606_v32  ;;  %v1695_v25 = vld [vmem:[%s2330_s1 + $0x354] ss:$8 sps:$4 sm:$0xff]   ;;  %v1693_v27 = vld [vmem:[%s2330_s1 + $0x350] ss:$8 sps:$4 sm:$0xff]   ;;  %v1748_v31 = vld [vmem:[%s2331_s0 + $0x48] ss:$36 sps:$4 sm:$0xff]  }
  0x21   :  { %1116 = vmatprep.subr.bf16.mxu0 %v1608_v33  ;;  %v1744_v29 = vld [vmem:[%s2331_s0 + $0x4c] ss:$36 sps:$4 sm:$0xff]   ;;  %v1746_v30 = vld [vmem:[%s2331_s0 + $0x5c] ss:$36 sps:$4 sm:$0xff]  }
  0x22   :  { %v1701_v32 = vld [vmem:[%s2330_s1 + $0x364] ss:$8 sps:$4 sm:$0xff]   ;;  %v1752_v33 = vld [vmem:[%s2331_s0 + $0x58] ss:$36 sps:$4 sm:$0xff]  }
  0x23   :  { %1011 = vmatpush1.bf16.msra.mxu1 %v1610_v34  ;;  %v1696_v34 = vld [vmem:[%s2330_s1 + $0x160] ss:$8 sps:$4 sm:$0xff]   ;;  %v1714_v48 = vld [vmem:[%s2330_s1 + $0x190] ss:$8 sps:$4 sm:$0xff]   ;;  %v1725_v51 = vld [vmem:[%s2330_s1 + $0x3a4] ss:$8 sps:$4 sm:$0xff]  }
  0x24   :  { %1117 = vmatpush1.bf16.msra.mxu0 %v1611_v35  ;;  %1012 = vmatprep.subr.bf16.mxu1 %v1612_v36  ;;  %v1699_v35 = vld [vmem:[%s2330_s1 + $0x360] ss:$8 sps:$4 sm:$0xff]   ;;  %v1704_v36 = vld [vmem:[%s2330_s1 + $0x174] ss:$8 sps:$4 sm:$0xff]  }
  0x25   :  { %1118 = vmatprep.subr.bf16.mxu0 %v1614_v37  ;;  %v1707_v37 = vld [vmem:[%s2330_s1 + $0x374] ss:$8 sps:$4 sm:$0xff]  }
  0x27   :  { %1013 = vmatpush1.bf16.msra.mxu1 %v1616_v38  ;;  %v1702_v38 = vld [vmem:[%s2330_s1 + $0x170] ss:$8 sps:$4 sm:$0xff]  }
  0x28   :  { %1119 = vmatpush1.bf16.msra.mxu0 %v1617_v39  ;;  %1014 = vmatprep.subr.bf16.mxu1 %v1618_v40  ;;  %v1705_v39 = vld [vmem:[%s2330_s1 + $0x370] ss:$8 sps:$4 sm:$0xff]   ;;  %v1710_v40 = vld [vmem:[%s2330_s1 + $0x184] ss:$8 sps:$4 sm:$0xff]  }
  0x29   :  { %1120 = vmatprep.subr.bf16.mxu0 %v1620_v41  ;;  %v1764_v41 = vld [vmem:[%s2331_s0 + $0xc] ss:$36 sps:$4 sm:$0xff]  }
  0x2b   :  { %1015 = vmatpush1.bf16.msra.mxu1 %v1622_v42  ;;  %v1713_v42 = vld [vmem:[%s2330_s1 + $0x384] ss:$8 sps:$4 sm:$0xff]  }
  0x2c   :  { %1121 = vmatpush1.bf16.msra.mxu0 %v1623_v43  ;;  %1016 = vmatprep.subr.bf16.mxu1 %v1624_v44  ;;  %v1767_v43 = vld [vmem:[%s2331_s0 + $0x1c] ss:$36 sps:$4 sm:$0xff]  }
  0x2d   :  { %1122 = vmatprep.subr.bf16.mxu0 %v1626_v45  ;;  %v1708_v44 = vld [vmem:[%s2330_s1 + $0x180] ss:$8 sps:$4 sm:$0xff]  }
  0x2e   :  { %v1711_v45 = vld [vmem:[%s2330_s1 + $0x380] ss:$8 sps:$4 sm:$0xff]  }
  0x2f   :  { %1017 = vmatpush1.bf16.msra.mxu1 %v1628_v46  ;;  %v1716_v46 = vld [vmem:[%s2330_s1 + $0x194] ss:$8 sps:$4 sm:$0xff]  }
  0x30   :  { %1123 = vmatpush1.bf16.msra.mxu0 %v1629_v47  ;;  %1018 = vmatprep.subr.bf16.mxu1 %v1630_v49  ;;  %v1719_v47 = vld [vmem:[%s2330_s1 + $0x394] ss:$8 sps:$4 sm:$0xff]   ;;  %v1717_v49 = vld [vmem:[%s2330_s1 + $0x390] ss:$8 sps:$4 sm:$0xff]  }
  0x31   :  { %1124 = vmatprep.subr.bf16.mxu0 %v1632_v50  ;;  %v1722_v50 = vld [vmem:[%s2330_s1 + $0x1a4] ss:$8 sps:$4 sm:$0xff]  }
  0x33   :  { %1019 = vmatpush1.bf16.msra.mxu1 %v1634_v52  ;;  %v1720_v52 = vld [vmem:[%s2330_s1 + $0x1a0] ss:$8 sps:$4 sm:$0xff]  }
  0x34   :  { %1125 = vmatpush1.bf16.msra.mxu0 %v1635_v53  ;;  %1020 = vmatprep.subr.bf16.mxu1 %v1636_v54  ;;  %v1723_v53 = vld [vmem:[%s2330_s1 + $0x3a0] ss:$8 sps:$4 sm:$0xff]   ;;  %v1728_v54 = vld [vmem:[%s2330_s1 + $0x1b4] ss:$8 sps:$4 sm:$0xff]  }
  0x35   :  { %1126 = vmatprep.subr.bf16.mxu0 %v1638_v55  ;;  %v1731_v55 = vld [vmem:[%s2330_s1 + $0x3b4] ss:$8 sps:$4 sm:$0xff]  }
  0x37   :  { %1021 = vmatpush1.bf16.msra.mxu1 %v1640_v56  ;;  %v1726_v56 = vld [vmem:[%s2330_s1 + $0x1b0] ss:$8 sps:$4 sm:$0xff]  }
  0x38   :  { %1127 = vmatpush1.bf16.msra.mxu0 %v1641_v57  ;;  %1022 = vmatprep.subr.bf16.mxu1 %v1642_v58  ;;  %v1729_v57 = vld [vmem:[%s2330_s1 + $0x3b0] ss:$8 sps:$4 sm:$0xff]   ;;  %v1734_v58 = vld [vmem:[%s2330_s1 + $0x1c4] ss:$8 sps:$4 sm:$0xff]  }
  0x39   :  { %1128 = vmatprep.subr.bf16.mxu0 %v1644_v59  ;;  %v1737_v59 = vld [vmem:[%s2330_s1 + $0x3c4] ss:$8 sps:$4 sm:$0xff]  }
  0x3b   :  { %1023 = vmatpush1.bf16.msra.mxu1 %v1646_v60  ;;  %v1732_v60 = vld [vmem:[%s2330_s1 + $0x1c0] ss:$8 sps:$4 sm:$0xff]  }
  0x3c   :  { %1129 = vmatpush1.bf16.msra.mxu0 %v1647_v61  ;;  %1024 = vmatprep.subr.bf16.mxu1 %v1648_v62  ;;  %v1735_v61 = vld [vmem:[%s2330_s1 + $0x3c0] ss:$8 sps:$4 sm:$0xff]   ;;  %v1740_v62 = vld [vmem:[%s2330_s1 + $0x1d4] ss:$8 sps:$4 sm:$0xff]  }
  0x3d   :  { %1130 = vmatprep.subr.bf16.mxu0 %v1650_v63  ;;  %v1743_v63 = vld [vmem:[%s2330_s1 + $0x3d4] ss:$8 sps:$4 sm:$0xff]  }
  0x3f   :  { %1025 = vmatpush1.bf16.msra.mxu1 %v1652_v0  ;;  %v1738_v0 = vld [vmem:[%s2330_s1 + $0x1d0] ss:$8 sps:$4 sm:$0xff]  }
  0x40   :  { %1131 = vmatpush1.bf16.msra.mxu0 %v1653_v1  ;;  %1047 = vmatprep.subr.bf16.mxu1 %v1659_v2  ;;  %v1741_v1 = vld [vmem:[%s2330_s1 + $0x3d0] ss:$8 sps:$4 sm:$0xff]   ;;  %v1751_v2 = vld [vmem:[%s2330_s1 + $0x1e4] ss:$8 sps:$4 sm:$0xff]  }
  0x41   :  { %1153 = vmatprep.subr.bf16.mxu0 %v1665_v3  ;;  %v1755_v3 = vld [vmem:[%s2330_s1 + $0x3e4] ss:$8 sps:$4 sm:$0xff]  }
  0x42   :  { %1027 = vmatmul.mubr.bf16.vlgmr.msra.gmra.mrb[0].mxu1 %v1654_v4  ;;  %v1749_v4 = vld [vmem:[%s2330_s1 + $0x1e0] ss:$8 sps:$4 sm:$0xff]  }
  0x43   :  { %1133 = vmatmul.mubr.bf16.vlgmr.msra.gmra.mrb[0].mxu0 %v1660_v6  ;;  %1048 = vmatpush1.bf16.msra.mxu1 %v1657_v5  ;;  %v1753_v5 = vld [vmem:[%s2330_s1 + $0x3e0] ss:$8 sps:$4 sm:$0xff]   ;;  %v1758_v6 = vld [vmem:[%s2330_s1 + $0x1f4] ss:$8 sps:$4 sm:$0xff]  }
  0x44   :  { %1154 = vmatpush1.bf16.msra.mxu0 %v1663_v7  ;;  %1049 = vmatprep.subr.bf16.mxu1 %v1668_v8  ;;  %v1761_v7 = vld [vmem:[%s2330_s1 + $0x3f4] ss:$8 sps:$4 sm:$0xff]   ;;  %v1756_v8 = vld [vmem:[%s2330_s1 + $0x1f0] ss:$8 sps:$4 sm:$0xff]  }
  0x45   :  { %1155 = vmatprep.subr.bf16.mxu0 %v1671_v9  ;;  %1036 = vmatprep.mubr.bf16.mxu1 %v1744_v29  ;;  %v1759_v9 = vld [vmem:[%s2330_s1 + $0x3f0] ss:$8 sps:$4 sm:$0xff]   ;;  %v1794_v29 = vld [vmem:[%s2330_s1 + $0x464] ss:$8 sps:$4 sm:$0xff]  }
  0x46   :  { %1142 = vmatprep.mubr.bf16.mxu0 %v1746_v30  ;;  %v1792_v30 = vld [vmem:[%s2330_s1 + $0x460] ss:$8 sps:$4 sm:$0xff]  }
  0x47   :  { %1050 = vmatpush1.bf16.msra.mxu1 %v1666_v10  ;;  %v1770_v10 = vld [vmem:[%s2330_s1 + $0x404] ss:$8 sps:$4 sm:$0xff]  }
  0x48   :  { %1156 = vmatpush1.bf16.msra.mxu0 %v1669_v11  ;;  %1051 = vmatprep.subr.bf16.mxu1 %v1674_v12  ;;  %v1762_v11 = vld [vmem:[%s2331_s0 + $0x8] ss:$36 sps:$4 sm:$0xff]   ;;  %v1765_v12 = vld [vmem:[%s2331_s0 + $0x18] ss:$36 sps:$4 sm:$0xff]  }
  0x49   :  { %1157 = vmatprep.subr.bf16.mxu0 %v1677_v13  ;;  %v1768_v13 = vld [vmem:[%s2330_s1 + $0x400] ss:$8 sps:$4 sm:$0xff]  }
  0x4a   :  { %1037 = vmatmul.mubr.bf16.gmra.mrb[4].mxu1 %v1748_v31  ;;  %v1797_v31 = vld [vmem:[%s2330_s1 + $0x474] ss:$8 sps:$4 sm:$0xff]  }
  0x4b   :  { %1052 = vmatpush1.bf16.msra.mxu1 %v1672_v14  ;;  %1143 = vmatmul.mubr.bf16.gmra.mrb[4].mxu0 %v1752_v33  ;;  %v1773_v14 = vld [vmem:[%s2330_s1 + $0x414] ss:$8 sps:$4 sm:$0xff]   ;;  %v1798_v33 = vld [vmem:[%s2331_s0 + $0x20] ss:$36 sps:$4 sm:$0xff]  }
  0x4c   :  { %1158 = vmatpush1.bf16.msra.mxu0 %v1675_v15  ;;  %1053 = vmatprep.subr.bf16.mxu1 %v1680_v16  ;;  %v1774_v15 = vld [vmem:[%s2331_s0 + $0x54] ss:$36 sps:$4 sm:$0xff]   ;;  %v1776_v16 = vld [vmem:[%s2331_s0 + $0x64] ss:$36 sps:$4 sm:$0xff]  }
  0x4d   :  { %1159 = vmatprep.subr.bf16.mxu0 %v1683_v17  ;;  %1079 = vmatprep.mubr.bf16.mxu1 %v1764_v41  ;;  %v1771_v17 = vld [vmem:[%s2330_s1 + $0x410] ss:$8 sps:$4 sm:$0xff]  }
  0x4e   :  { %1185 = vmatprep.mubr.bf16.mxu0 %v1767_v43 }
  0x4f   :  { %1054 = vmatpush1.bf16.msra.mxu1 %v1678_v18  ;;  %v1782_v18 = vld [vmem:[%s2330_s1 + $0x424] ss:$8 sps:$4 sm:$0xff]  }
  0x50   :  { %1160 = vmatpush1.bf16.msra.mxu0 %v1681_v19  ;;  %1055 = vmatprep.subr.bf16.mxu1 %v1686_v20  ;;  %v1778_v19 = vld [vmem:[%s2331_s0 + $0x50] ss:$36 sps:$4 sm:$0xff]   ;;  %v1779_v20 = vld [vmem:[%s2331_s0 + $0x60] ss:$36 sps:$4 sm:$0xff]  }
  0x51   :  { %1161 = vmatprep.subr.bf16.mxu0 %v1689_v21  ;;  %v1780_v21 = vld [vmem:[%s2330_s1 + $0x420] ss:$8 sps:$4 sm:$0xff]  }
  0x53   :  { %1056 = vmatpush1.bf16.msra.mxu1 %v1684_v22  ;;  %v1785_v22 = vld [vmem:[%s2330_s1 + $0x434] ss:$8 sps:$4 sm:$0xff]  }
  0x54   :  { %1162 = vmatpush1.bf16.msra.mxu0 %v1687_v23  ;;  %1057 = vmatprep.subr.bf16.mxu1 %v1692_v24  ;;  %v1783_v23 = vld [vmem:[%s2330_s1 + $0x430] ss:$8 sps:$4 sm:$0xff]   ;;  %v1788_v24 = vld [vmem:[%s2330_s1 + $0x444] ss:$8 sps:$4 sm:$0xff]  }
  0x55   :  { %1163 = vmatprep.subr.bf16.mxu0 %v1695_v25  ;;  %v1800_v25 = vmov 0  }
  0x57   :  { %1058 = vmatpush1.bf16.msra.mxu1 %v1690_v26  ;;  %v1786_v26 = vld [vmem:[%s2330_s1 + $0x440] ss:$8 sps:$4 sm:$0xff]  }
  0x58   :  { %1164 = vmatpush1.bf16.msra.mxu0 %v1693_v27  ;;  %1059 = vmatprep.subr.bf16.mxu1 %v1698_v28  ;;  %v1791_v27 = vld [vmem:[%s2330_s1 + $0x454] ss:$8 sps:$4 sm:$0xff]   ;;  %v1789_v28 = vld [vmem:[%s2330_s1 + $0x450] ss:$8 sps:$4 sm:$0xff]  }
  0x59   :  { %1165 = vmatprep.subr.bf16.mxu0 %v1701_v32  ;;  %v1795_v32 = vld [vmem:[%s2330_s1 + $0x470] ss:$8 sps:$4 sm:$0xff]  }
  0x5b   :  { %1060 = vmatpush1.bf16.msra.mxu1 %v1696_v34  ;;  %v1799_v34 = vld [vmem:[%s2331_s0 + $0x68] ss:$36 sps:$4 sm:$0xff]  }
  0x5c   :  { %1166 = vmatpush1.bf16.msra.mxu0 %v1699_v35  ;;  %1061 = vmatprep.subr.bf16.mxu1 %v1704_v36 }
  0x5d   :  { %1167 = vmatprep.subr.bf16.mxu0 %v1707_v37 }
  0x5f   :  { %1062 = vmatpush1.bf16.msra.mxu1 %v1702_v38 }
  0x60   :  { %1168 = vmatpush1.bf16.msra.mxu0 %v1705_v39  ;;  %1063 = vmatprep.subr.bf16.mxu1 %v1710_v40 }
  0x61   :  { %1169 = vmatprep.subr.bf16.mxu0 %v1713_v42 }
  0x63   :  { %1064 = vmatpush1.bf16.msra.mxu1 %v1708_v44 }
  0x64   :  { %1170 = vmatpush1.bf16.msra.mxu0 %v1711_v45  ;;  %1065 = vmatprep.subr.bf16.mxu1 %v1716_v46 }
  0x65   :  { %1171 = vmatprep.subr.bf16.mxu0 %v1719_v47 }
  0x67   :  { %1066 = vmatpush1.bf16.msra.mxu1 %v1714_v48 }
  0x68   :  { %1172 = vmatpush1.bf16.msra.mxu0 %v1717_v49  ;;  %1067 = vmatprep.subr.bf16.mxu1 %v1722_v50 }
  0x69   :  { %1173 = vmatprep.subr.bf16.mxu0 %v1725_v51  ;;  %v1261_v51 = vlaneseq }
  0x6b   :  { %1068 = vmatpush1.bf16.msra.mxu1 %v1720_v52  ;;  %v1262_v52 = vshrl.u32 %v1261_v51, 7 }
  0x6c   :  { %1174 = vmatpush1.bf16.msra.mxu0 %v1723_v53  ;;  %1069 = vmatprep.subr.bf16.mxu1 %v1728_v54  ;;  %v1259_v54 = vld [vmem:[%s2332_s2] sm:$0x3] }
  0x6d   :  { %1175 = vmatprep.subr.bf16.mxu0 %v1731_v55  ;;  %v1263_v53 = vsub.s32 0, %v1262_v52  ;;  %v1267_v55 = vsub.s32 1, %v1262_v52 }
  0x6f   :  { %1070 = vmatpush1.bf16.msra.mxu1 %v1726_v56  ;;  %v1279_v56 = vld [vmem:[%s2333_s3] sm:$0x3] }
  0x70   :  { %1176 = vmatpush1.bf16.msra.mxu0 %v1729_v57  ;;  %1071 = vmatprep.subr.bf16.mxu1 %v1734_v58  ;;  %v1264_v57 = vrot.slane %v1259_v54, %v1263_v53 }
  0x71   :  { %1177 = vmatprep.subr.bf16.mxu0 %v1737_v59 }
  0x73   :  { %1072 = vmatpush1.bf16.msra.mxu1 %v1732_v60  ;;  %v1268_v60 = vrot.slane %v1259_v54, %v1267_v55 }
  0x74   :  { %1178 = vmatpush1.bf16.msra.mxu0 %v1735_v61  ;;  %1073 = vmatprep.subr.bf16.mxu1 %v1740_v62  ;;  %v1284_v62 = vrot.slane %v1279_v56, %v1263_v53 }
  0x75   :  { %1179 = vmatprep.subr.bf16.mxu0 %v1743_v63 }
  0x77   :  { %1074 = vmatpush1.bf16.msra.mxu1 %v1738_v0 }
  0x78   :  { %1180 = vmatpush1.bf16.msra.mxu0 %v1741_v1  ;;  %1075 = vmatprep.subr.bf16.mxu1 %v1751_v2 }
  0x79   :  { %1181 = vmatprep.subr.bf16.mxu0 %v1755_v3  ;;  %v1288_v3 = vrot.slane %v1279_v56, %v1267_v55 }
  0x7b   :  { %1076 = vmatpush1.bf16.msra.mxu1 %v1749_v4 }
  0x7c   :  { %1182 = vmatpush1.bf16.msra.mxu0 %v1753_v5  ;;  %1077 = vmatprep.subr.bf16.mxu1 %v1758_v6 }
  0x7d   :  { %1183 = vmatprep.subr.bf16.mxu0 %v1761_v7 }
  0x7f   :  { %1078 = vmatpush1.bf16.msra.mxu1 %v1756_v8 }
  0x80   :  { %1184 = vmatpush1.bf16.msra.mxu0 %v1759_v9  ;;  %1509 = vmatprep.subr.bf16.mxu1 %v1770_v10 }
  0x81   :  { %1206 = vmatprep.subr.bf16.mxu0 %v1770_v10 }
  0x82   :  { %1080 = vmatmul.mubr.bf16.vlgmr.msra.gmra.mrb[0].mxu1 %v1762_v11 }
  0x83   :  { %1186 = vmatmul.mubr.bf16.vlgmr.msra.gmra.mrb[0].mxu0 %v1765_v12  ;;  %1517 = vmatpush1.bf16.msra.mxu1 %v1768_v13 }
  0x84   :  { %1207 = vmatpush1.bf16.msra.mxu0 %v1768_v13  ;;  %1510 = vmatprep.subr.bf16.mxu1 %v1773_v14 }
  0x85   :  { %1208 = vmatprep.subr.bf16.mxu0 %v1773_v14  ;;  %1089 = vmatprep.mubr.bf16.mxu1 %v1774_v15 }
  0x86   :  { %1195 = vmatprep.mubr.bf16.mxu0 %v1776_v16 }
  0x87   :  { %1518 = vmatpush1.bf16.msra.mxu1 %v1771_v17 }
  0x88   :  { %1209 = vmatpush1.bf16.msra.mxu0 %v1771_v17  ;;  %1511 = vmatprep.subr.bf16.mxu1 %v1782_v18 }
  0x89   :  { %1210 = vmatprep.subr.bf16.mxu0 %v1782_v18 }
  0x8a   :  { %1090 = vmatmul.mubr.bf16.gmra.mrb[4].mxu1 %v1778_v19 }
  0x8b   :  { %1196 = vmatmul.mubr.bf16.gmra.mrb[4].mxu0 %v1779_v20  ;;  %1519 = vmatpush1.bf16.msra.mxu1 %v1780_v21 }
  0x8c   :  { %1211 = vmatpush1.bf16.msra.mxu0 %v1780_v21  ;;  %1512 = vmatprep.subr.bf16.mxu1 %v1785_v22 }
  0x8d   :  { %1212 = vmatprep.subr.bf16.mxu0 %v1785_v22  ;;  %1238 = vmatprep.mubr.bf16.mxu0 %v1800_v25 }
  0x8e   :  { %1248 = vmatprep.mubr.bf16.mxu1 %v1800_v25 }
  0x8f   :  { %1520 = vmatpush1.bf16.msra.mxu1 %v1783_v23 }
  0x90   :  { %1213 = vmatpush1.bf16.msra.mxu0 %v1783_v23  ;;  %1513 = vmatprep.subr.bf16.mxu1 %v1788_v24 }
  0x91   :  { %1214 = vmatprep.subr.bf16.mxu0 %v1788_v24 }
  0x93   :  { %1521 = vmatpush1.bf16.msra.mxu1 %v1786_v26 }
  0x94   :  { %1215 = vmatpush1.bf16.msra.mxu0 %v1786_v26  ;;  %1514 = vmatprep.subr.bf16.mxu1 %v1791_v27 }
  0x95   :  { %1216 = vmatprep.subr.bf16.mxu0 %v1791_v27 }
  0x97   :  { %1522 = vmatpush1.bf16.msra.mxu1 %v1789_v28 }
  0x98   :  { %1217 = vmatpush1.bf16.msra.mxu0 %v1789_v28  ;;  %1515 = vmatprep.subr.bf16.mxu1 %v1794_v29 }
  0x99   :  { %1218 = vmatprep.subr.bf16.mxu0 %v1794_v29 }
  0x9b   :  { %1523 = vmatpush1.bf16.msra.mxu1 %v1792_v30 }
  0x9c   :  { %1219 = vmatpush1.bf16.msra.mxu0 %v1792_v30  ;;  %1516 = vmatprep.subr.bf16.mxu1 %v1797_v31 }
  0x9d   :  { %1220 = vmatprep.subr.bf16.mxu0 %v1797_v31 }
  0x9f   :  { %1524 = vmatpush1.bf16.msra.mxu1 %v1795_v32 }
  0xa0   :  { %1221 = vmatpush1.bf16.msra.mxu0 %v1795_v32 }
  0xa2   :  { %1249 = vmatmul.mubr.bf16.vlgmr.msra.gmra.mrb[8].mxu1 %v1799_v34 }
  0xa3   :  { %1239 = vmatmul.mubr.bf16.vlgmr.msra.gmra.mrb[0].mxu0 %v1798_v33 }
 0x155   :  { %v1081_v35 = vpop.f32.mrb[0].mxu1 }
 0x156   :  { %v1083_v36 = vpop.f32.mrb[1].mxu1 }
 0x157   :  { %v1085_v37 = vpop.f32.mrb[2].mxu1 }
 0x158   :  { %v1087_v38 = vpop.f32.mrb[3].mxu1 }
 0x15d   :  { %v1091_v39 = vpop.f32.mrb[4].mxu1 }
 0x15e   :  { %v1197_v40 = vpop.f32.mrb[4].mxu0  ;;  %v1093_v42 = vpop.f32.mrb[5].mxu1 }
 0x15f   :  { %v1529_v41 = vadd.f32 %v1197_v40, %v1091_v39  ;;  %v1199_v43 = vpop.f32.mrb[5].mxu0  ;;  %v1095_v45 = vpop.f32.mrb[6].mxu1 }
 0x160   :  { %v1531_v44 = vadd.f32 %v1199_v43, %v1093_v42  ;;  %v1201_v46 = vpop.f32.mrb[6].mxu0  ;;  %v1097_v48 = vpop.f32.mrb[7].mxu1 }
 0x161   :  { %v1533_v47 = vadd.f32 %v1201_v46, %v1095_v45  ;;  %v1203_v49 = vpop.f32.mrb[7].mxu0 }
 0x162   :  { %v1535_v50 = vadd.f32 %v1203_v49, %v1097_v48 }
 0x175   :  { %v1250_v59 = vpop.f32.mrb[8].mxu1 }
 0x176   :  { %v1240_v58 = vpop.f32.mrb[0].mxu0  ;;  %v1530_v63 = vadd.f32 %v1529_v41, %v1250_v59  ;;  %v1252_v1 = vpop.f32.mrb[9].mxu1 }
 0x177   :  { %v1525_v61 = vadd.f32 %v1240_v58, %v1081_v35  ;;  %v1242_v0 = vpop.f32.mrb[1].mxu0  ;;  %v1532_v4 = vadd.f32 %v1531_v44, %v1252_v1  ;;  %v1254_v6 = vpop.f32.mrb[10].mxu1 }
 0x178   :  { %v1526_v2 = vadd.f32 %v1242_v0, %v1083_v36  ;;  %v1244_v5 = vpop.f32.mrb[2].mxu0  ;;  %v1275_v8 = vmul.f32 %v1530_v63, %v1264_v57  ;;  %v1534_v10 = vadd.f32 %v1533_v47, %v1254_v6  ;;  %v1256_v12 = vpop.f32.mrb[11].mxu1 }
 0x179   :  { %v1271_v7 = vmul.f32 %v1525_v61, %v1264_v57  ;;  %v1527_v9 = vadd.f32 %v1244_v5, %v1085_v37  ;;  %v1246_v11 = vpop.f32.mrb[3].mxu0  ;;  %v1276_v14 = vmul.f32 %v1532_v4, %v1268_v60  ;;  %v1536_v16 = vadd.f32 %v1535_v50, %v1256_v12 }
 0x17a   :  { %v1272_v13 = vmul.f32 %v1526_v2, %v1268_v60  ;;  %v1528_v15 = vadd.f32 %v1246_v11, %v1087_v38  ;;  %v1295_v18 = vadd.f32 %v1284_v62, %v1275_v8  ;;  %v1277_v20 = vmul.f32 %v1534_v10, %v1264_v57 }
 0x17b   :  { %v1291_v17 = vadd.f32 %v1284_v62, %v1271_v7  ;;  %v1273_v19 = vmul.f32 %v1527_v9, %v1264_v57  ;;  %v1296_v22 = vadd.f32 %v1288_v3, %v1276_v14  ;;  %v1278_v24 = vmul.f32 %v1536_v16, %v1268_v60 }
 0x17c   :  { %v1292_v21 = vadd.f32 %v1288_v3, %v1272_v13  ;;  %v1274_v23 = vmul.f32 %v1528_v15, %v1268_v60  ;;  %v1303_v26 = vmax.f32 %v1295_v18, 0.0  ;;  %v1297_v28 = vadd.f32 %v1284_v62, %v1277_v20 }
 0x17d   :  { %v1299_v25 = vmax.f32 %v1291_v17, 0.0  ;;  %v1293_v27 = vadd.f32 %v1284_v62, %v1273_v19  ;;  %v1304_v30 = vmax.f32 %v1296_v22, 0.0  ;;  %v1298_v32 = vadd.f32 %v1288_v3, %v1278_v24 }
 0x17e   :  { %v1300_v29 = vmax.f32 %v1292_v21, 0.0  ;;  %v1294_v31 = vadd.f32 %v1288_v3, %v1274_v23  ;;  %v1305_v34 = vmax.f32 %v1297_v28, 0.0 }
 0x17f   :  { %v1301_v33 = vmax.f32 %v1293_v27, 0.0  ;;  %v1507_v36 = vpack.c.bf16 %v1304_v30, %v1303_v26  ;;  %v1306_v38 = vmax.f32 %v1298_v32, 0.0 }
 0x180   :  { %v1505_v35 = vpack.c.bf16 %v1300_v29, %v1299_v25  ;;  %v1302_v37 = vmax.f32 %v1294_v31, 0.0 }
 0x181   :  { %1333 = vst [vmem:[%s2334_s4 + $0x10] sm:$0xff] %v1507_v36  ;;  %v1508_v40 = vpack.c.bf16 %v1306_v38, %v1305_v34 }
 0x182   :  { %1331 = vst [vmem:[%s2334_s4] sm:$0xff] %v1505_v35  ;;  %v1506_v39 = vpack.c.bf16 %v1302_v37, %v1301_v33 }
 0x183   :  { %1334 = vst [vmem:[%s2334_s4 + $0x18] sm:$0xff] %v1508_v40 }
 0x184   :  { %1332 = vst [vmem:[%s2334_s4 + $0x8] sm:$0xff] %v1506_v39 }

// kernel: feature_extractor_forward.82
= control target key start
LH: loop header
LB: loop body
LE: loop exit
PB: predicated region body
PF: predicated region fallthrough
CT: control target
= control target key end

     0   :  { %v324_v1 = vmov 0   ;;  %v185_v19 = vlaneseq  ;;  %s422_s1 = inlined_call_operand.vmem [shape: bf16[128,256], index: 1, kind: input, shape index: {}]   ;;  %s423_s0 = inlined_call_operand.vmem [shape: bf16[32,128], index: 0, kind: input, shape index: {}]   ;;  %s424_s2 = inlined_call_operand.vmem [shape: f32[1,256], index: 2, kind: input, shape index: {}]   ;;  %s425_s3 = inlined_call_operand.vmem [shape: f32[1,256], index: 3, kind: input, shape index: {}]   ;;  %s426_s4 = inlined_call_operand.vmem [shape: bf16[32,256], index: 4, kind: output, shape index: {}]  }
   0x1   :  { %v298_v0 = vld [vmem:[%s422_s1 + $0x4] ss:$8 sps:$4 sm:$0xff]   ;;  %162 = vmatprep.mubr.bf16.mxu0 %v324_v1  ;;  %172 = vmatprep.mubr.bf16.mxu1 %v324_v1  ;;  %v300_v2 = vld [vmem:[%s422_s1] ss:$8 sps:$4 sm:$0xff]   ;;  %v301_v3 = vld [vmem:[%s422_s1 + $0x14] ss:$8 sps:$4 sm:$0xff]  }
   0x2   :  { %130 = vmatprep.subr.bf16.mxu0 %v298_v0  ;;  %281 = vmatprep.subr.bf16.mxu1 %v298_v0  ;;  %v303_v4 = vld [vmem:[%s422_s1 + $0x10] ss:$8 sps:$4 sm:$0xff]   ;;  %v304_v5 = vld [vmem:[%s422_s1 + $0x24] ss:$8 sps:$4 sm:$0xff]   ;;  %v306_v6 = vld [vmem:[%s422_s1 + $0x20] ss:$8 sps:$4 sm:$0xff]  }
   0x3   :  { %131 = vmatpush1.bf16.msra.mxu0 %v300_v2  ;;  %289 = vmatpush1.bf16.msra.mxu1 %v300_v2  ;;  %v307_v7 = vld [vmem:[%s422_s1 + $0x34] ss:$8 sps:$4 sm:$0xff]   ;;  %v309_v8 = vld [vmem:[%s422_s1 + $0x30] ss:$8 sps:$4 sm:$0xff]   ;;  %v310_v9 = vld [vmem:[%s422_s1 + $0x44] ss:$8 sps:$4 sm:$0xff]  }
   0x4   :  { %132 = vmatprep.subr.bf16.mxu0 %v301_v3  ;;  %282 = vmatprep.subr.bf16.mxu1 %v301_v3  ;;  %v312_v10 = vld [vmem:[%s422_s1 + $0x40] ss:$8 sps:$4 sm:$0xff]   ;;  %v313_v11 = vld [vmem:[%s422_s1 + $0x54] ss:$8 sps:$4 sm:$0xff]   ;;  %v315_v12 = vld [vmem:[%s422_s1 + $0x50] ss:$8 sps:$4 sm:$0xff]  }
   0x5   :  { %v316_v13 = vld [vmem:[%s422_s1 + $0x64] ss:$8 sps:$4 sm:$0xff]   ;;  %v318_v14 = vld [vmem:[%s422_s1 + $0x60] ss:$8 sps:$4 sm:$0xff]   ;;  %v319_v15 = vld [vmem:[%s422_s1 + $0x74] ss:$8 sps:$4 sm:$0xff]  }
   0x6   :  { %v321_v16 = vld [vmem:[%s422_s1 + $0x70] ss:$8 sps:$4 sm:$0xff]   ;;  %v322_v17 = vld [vmem:[%s423_s0] sm:$0xff]   ;;  %v323_v18 = vld [vmem:[%s423_s0 + $0x8] sm:$0xff]   ;;  %v186_v20 = vshrl.u32 %v185_v19, 7 }
   0x7   :  { %133 = vmatpush1.bf16.msra.mxu0 %v303_v4  ;;  %290 = vmatpush1.bf16.msra.mxu1 %v303_v4  ;;  %v183_v22 = vld [vmem:[%s424_s2] sm:$0x3] }
   0x8   :  { %134 = vmatprep.subr.bf16.mxu0 %v304_v5  ;;  %283 = vmatprep.subr.bf16.mxu1 %v304_v5  ;;  %v187_v21 = vsub.s32 0, %v186_v20  ;;  %v191_v23 = vsub.s32 1, %v186_v20  ;;  %v203_v24 = vld [vmem:[%s425_s3] sm:$0x3] }
   0xa   :  { %v188_v25 = vrot.slane %v183_v22, %v187_v21  ;;  %v192_v26 = vrot.slane %v183_v22, %v191_v23  ;;  %v208_v27 = vrot.slane %v203_v24, %v187_v21  ;;  %v212_v30 = vrot.slane %v203_v24, %v191_v23 }
   0xb   :  { %135 = vmatpush1.bf16.msra.mxu0 %v306_v6  ;;  %291 = vmatpush1.bf16.msra.mxu1 %v306_v6 }
   0xc   :  { %136 = vmatprep.subr.bf16.mxu0 %v307_v7  ;;  %284 = vmatprep.subr.bf16.mxu1 %v307_v7 }
   0xf   :  { %137 = vmatpush1.bf16.msra.mxu0 %v309_v8  ;;  %292 = vmatpush1.bf16.msra.mxu1 %v309_v8 }
  0x10   :  { %138 = vmatprep.subr.bf16.mxu0 %v310_v9  ;;  %285 = vmatprep.subr.bf16.mxu1 %v310_v9 }
  0x13   :  { %139 = vmatpush1.bf16.msra.mxu0 %v312_v10  ;;  %293 = vmatpush1.bf16.msra.mxu1 %v312_v10 }
  0x14   :  { %140 = vmatprep.subr.bf16.mxu0 %v313_v11  ;;  %286 = vmatprep.subr.bf16.mxu1 %v313_v11 }
  0x17   :  { %141 = vmatpush1.bf16.msra.mxu0 %v315_v12  ;;  %294 = vmatpush1.bf16.msra.mxu1 %v315_v12 }
  0x18   :  { %142 = vmatprep.subr.bf16.mxu0 %v316_v13  ;;  %287 = vmatprep.subr.bf16.mxu1 %v316_v13 }
  0x1b   :  { %143 = vmatpush1.bf16.msra.mxu0 %v318_v14  ;;  %295 = vmatpush1.bf16.msra.mxu1 %v318_v14 }
  0x1c   :  { %144 = vmatprep.subr.bf16.mxu0 %v319_v15  ;;  %288 = vmatprep.subr.bf16.mxu1 %v319_v15 }
  0x1f   :  { %145 = vmatpush1.bf16.msra.mxu0 %v321_v16  ;;  %296 = vmatpush1.bf16.msra.mxu1 %v321_v16 }
  0x22   :  { %163 = vmatmul.mubr.bf16.vlgmr.msra.gmra.mrb[0].mxu0 %v322_v17  ;;  %173 = vmatmul.mubr.bf16.vlgmr.msra.gmra.mrb[0].mxu1 %v323_v18 }
  0xf5   :  { %v164_v28 = vpop.f32.mrb[0].mxu0  ;;  %v174_v29 = vpop.f32.mrb[0].mxu1 }
  0xf6   :  { %v195_v31 = vmul.f32 %v188_v25, %v164_v28  ;;  %v199_v32 = vmul.f32 %v188_v25, %v174_v29  ;;  %v166_v33 = vpop.f32.mrb[1].mxu0  ;;  %v176_v34 = vpop.f32.mrb[1].mxu1 }
  0xf7   :  { %v196_v35 = vmul.f32 %v192_v26, %v166_v33  ;;  %v200_v36 = vmul.f32 %v192_v26, %v176_v34  ;;  %v168_v37 = vpop.f32.mrb[2].mxu0  ;;  %v178_v38 = vpop.f32.mrb[2].mxu1 }
  0xf8   :  { %v215_v39 = vadd.f32 %v208_v27, %v195_v31  ;;  %v219_v40 = vadd.f32 %v208_v27, %v199_v32  ;;  %v197_v41 = vmul.f32 %v188_v25, %v168_v37  ;;  %v201_v42 = vmul.f32 %v188_v25, %v178_v38  ;;  %v170_v43 = vpop.f32.mrb[3].mxu0  ;;  %v180_v44 = vpop.f32.mrb[3].mxu1 }
  0xf9   :  { %v216_v45 = vadd.f32 %v212_v30, %v196_v35  ;;  %v220_v46 = vadd.f32 %v212_v30, %v200_v36  ;;  %v198_v47 = vmul.f32 %v192_v26, %v170_v43  ;;  %v202_v48 = vmul.f32 %v192_v26, %v180_v44 }
  0xfa   :  { %v217_v49 = vadd.f32 %v208_v27, %v197_v41  ;;  %v221_v50 = vadd.f32 %v208_v27, %v201_v42 }
  0xfb   :  { %v277_v51 = vpack.c.bf16 %v216_v45, %v215_v39  ;;  %v279_v52 = vpack.c.bf16 %v220_v46, %v219_v40  ;;  %v218_v53 = vadd.f32 %v212_v30, %v198_v47  ;;  %v222_v54 = vadd.f32 %v212_v30, %v202_v48 }
  0xfd   :  { %247 = vst [vmem:[%s426_s4] sm:$0xff] %v277_v51  ;;  %249 = vst [vmem:[%s426_s4 + $0x10] sm:$0xff] %v279_v52  ;;  %v278_v55 = vpack.c.bf16 %v218_v53, %v217_v49  ;;  %v280_v56 = vpack.c.bf16 %v222_v54, %v221_v50 }
  0xff   :  { %248 = vst [vmem:[%s426_s4 + $0x8] sm:$0xff] %v278_v55  ;;  %250 = vst [vmem:[%s426_s4 + $0x18] sm:$0xff] %v280_v56 }

// kernel: feature_extractor_forward.95
= control target key start
LH: loop header
LB: loop body
LE: loop exit
PB: predicated region body
PF: predicated region fallthrough
CT: control target
= control target key end

     0   :  { %s469_s1 = inlined_call_operand.vmem [shape: bf16[256,128], index: 1, kind: input, shape index: {}]   ;;  %s470_s0 = inlined_call_operand.vmem [shape: bf16[32,256], index: 0, kind: input, shape index: {}]   ;;  %s471_s2 = inlined_call_operand.vmem [shape: f32[1,128], index: 2, kind: input, shape index: {}]   ;;  %s472_s3 = inlined_call_operand.vmem [shape: f32[1,128], index: 3, kind: input, shape index: {}]   ;;  %s473_s4 = inlined_call_operand.vmem [shape: bf16[32,128], index: 4, kind: output, shape index: {}]  }
   0x1   :  { %v350_v0 = vld [vmem:[%s469_s1 + $0x40] sm:$0xff]   ;;  %v352_v2 = vld [vmem:[%s469_s1 + $0x48] sm:$0xff]   ;;  %v354_v4 = vld [vmem:[%s469_s1 + $0x50] sm:$0xff]  }
   0x2   :  { %v351_v1 = vld [vmem:[%s469_s1] sm:$0xff]   ;;  %306 = vmatprep.subr.bf16.mxu0 %v350_v0  ;;  %334 = vmatprep.subr.bf16.mxu1 %v350_v0  ;;  %v353_v3 = vld [vmem:[%s469_s1 + $0x8] sm:$0xff]   ;;  %v355_v5 = vld [vmem:[%s469_s1 + $0x10] sm:$0xff]  }
   0x3   :  { %307 = vmatpush3.bf16.msra.mxu0 %v351_v1  ;;  %342 = vmatpush3.bf16.msra.mxu1 %v351_v1  ;;  %v356_v6 = vld [vmem:[%s469_s1 + $0x58] sm:$0xff]   ;;  %v358_v8 = vld [vmem:[%s469_s1 + $0x60] sm:$0xff]   ;;  %v360_v10 = vld [vmem:[%s469_s1 + $0x68] sm:$0xff]  }
   0x4   :  { %308 = vmatprep.subr.bf16.mxu0 %v352_v2  ;;  %335 = vmatprep.subr.bf16.mxu1 %v352_v2  ;;  %v357_v7 = vld [vmem:[%s469_s1 + $0x18] sm:$0xff]   ;;  %v359_v9 = vld [vmem:[%s469_s1 + $0x20] sm:$0xff]   ;;  %v361_v13 = vld [vmem:[%s469_s1 + $0x28] sm:$0xff]  }
   0x5   :  { %v368_v11 = vld [vmem:[%s470_s0 + $0x4] ss:$8 sps:$4 sm:$0xff]   ;;  %v371_v12 = vld [vmem:[%s470_s0 + $0x14] ss:$8 sps:$4 sm:$0xff]   ;;  %v366_v18 = vld [vmem:[%s470_s0] ss:$8 sps:$4 sm:$0xff]  }
   0x6   :  { %v362_v14 = vld [vmem:[%s469_s1 + $0x70] sm:$0xff]   ;;  %202 = vmatprep.mubr.bf16.mxu0 %v368_v11  ;;  %210 = vmatprep.mubr.bf16.mxu1 %v371_v12  ;;  %v364_v16 = vld [vmem:[%s469_s1 + $0x78] sm:$0xff]   ;;  %v285_v23 = vld [vmem:[%s471_s2] ss:$0 sm:$0xff] }
   0x7   :  { %309 = vmatpush3.bf16.msra.mxu0 %v353_v3  ;;  %343 = vmatpush3.bf16.msra.mxu1 %v353_v3  ;;  %v363_v15 = vld [vmem:[%s469_s1 + $0x30] sm:$0xff]   ;;  %v365_v17 = vld [vmem:[%s469_s1 + $0x38] sm:$0xff]   ;;  %v286_v35 = vld [vmem:[%s472_s3] ss:$0 sm:$0xff] }
   0x8   :  { %310 = vmatprep.subr.bf16.mxu0 %v354_v4  ;;  %336 = vmatprep.subr.bf16.mxu1 %v354_v4  ;;  %v369_v19 = vld [vmem:[%s470_s0 + $0x10] ss:$8 sps:$4 sm:$0xff]  }
   0xb   :  { %311 = vmatpush3.bf16.msra.mxu0 %v355_v5  ;;  %344 = vmatpush3.bf16.msra.mxu1 %v355_v5 }
   0xc   :  { %312 = vmatprep.subr.bf16.mxu0 %v356_v6  ;;  %337 = vmatprep.subr.bf16.mxu1 %v356_v6 }
   0xf   :  { %313 = vmatpush3.bf16.msra.mxu0 %v357_v7  ;;  %345 = vmatpush3.bf16.msra.mxu1 %v357_v7 }
  0x10   :  { %314 = vmatprep.subr.bf16.mxu0 %v358_v8  ;;  %338 = vmatprep.subr.bf16.mxu1 %v358_v8 }
  0x13   :  { %315 = vmatpush3.bf16.msra.mxu0 %v359_v9  ;;  %346 = vmatpush3.bf16.msra.mxu1 %v359_v9 }
  0x14   :  { %316 = vmatprep.subr.bf16.mxu0 %v360_v10  ;;  %339 = vmatprep.subr.bf16.mxu1 %v360_v10 }
  0x17   :  { %317 = vmatpush3.bf16.msra.mxu0 %v361_v13  ;;  %347 = vmatpush3.bf16.msra.mxu1 %v361_v13 }
  0x18   :  { %318 = vmatprep.subr.bf16.mxu0 %v362_v14  ;;  %340 = vmatprep.subr.bf16.mxu1 %v362_v14 }
  0x1b   :  { %319 = vmatpush3.bf16.msra.mxu0 %v363_v15  ;;  %348 = vmatpush3.bf16.msra.mxu1 %v363_v15 }
  0x1c   :  { %320 = vmatprep.subr.bf16.mxu0 %v364_v16  ;;  %341 = vmatprep.subr.bf16.mxu1 %v364_v16 }
  0x1f   :  { %321 = vmatpush3.bf16.msra.mxu0 %v365_v17  ;;  %349 = vmatpush3.bf16.msra.mxu1 %v365_v17 }
  0x22   :  { %203 = vmatmul.mubr.bf16.vlgmr.msra.gmra.mrb[0].mxu0 %v366_v18  ;;  %211 = vmatmul.mubr.bf16.vlgmr.msra.gmra.mrb[0].mxu1 %v369_v19 }
  0xf5   :  { %v322_v20 = vpop.f32.mrb[0].mxu0  ;;  %v328_v21 = vpop.f32.mrb[0].mxu1 }
  0xf6   :  { %v323_v22 = vpop.f32.mrb[1].mxu0  ;;  %v329_v24 = vpop.f32.mrb[1].mxu1 }
  0xf7   :  { %v324_v25 = vadd.f32 %v323_v22, %v322_v20  ;;  %v330_v26 = vadd.f32 %v329_v24, %v328_v21  ;;  %v325_v27 = vpop.f32.mrb[2].mxu0  ;;  %v331_v28 = vpop.f32.mrb[2].mxu1 }
  0xf8   :  { %v326_v29 = vpop.f32.mrb[3].mxu0  ;;  %v332_v30 = vpop.f32.mrb[3].mxu1 }
  0xf9   :  { %v226_v31 = vmul.f32 %v324_v25, %v285_v23  ;;  %v228_v32 = vmul.f32 %v330_v26, %v285_v23  ;;  %v327_v33 = vadd.f32 %v326_v29, %v325_v27  ;;  %v333_v34 = vadd.f32 %v332_v30, %v331_v28 }
  0xfb   :  { %v227_v36 = vmul.f32 %v327_v33, %v285_v23  ;;  %v229_v37 = vmul.f32 %v333_v34, %v285_v23  ;;  %v237_v38 = vadd.f32 %v286_v35, %v226_v31  ;;  %v239_v39 = vadd.f32 %v286_v35, %v228_v32 }
  0xfd   :  { %v238_v40 = vadd.f32 %v286_v35, %v227_v36  ;;  %v240_v41 = vadd.f32 %v286_v35, %v229_v37 }
  0xff   :  { %v298_v42 = vpack.c.bf16 %v238_v40, %v237_v38  ;;  %v303_v43 = vpack.c.bf16 %v240_v41, %v239_v39 }
 0x101   :  { %299 = vst [vmem:[%s473_s4] sm:$0xff] %v298_v42   ;;  %305 = vst [vmem:[%s473_s4 + $0x8] sm:$0xff] %v303_v43  }

// kernel: feature_extractor_forward.101
= control target key start
LH: loop header
LB: loop body
LE: loop exit
PB: predicated region body
PF: predicated region fallthrough
CT: control target
= control target key end

     0   :  { %v465_v1 = vmov 0.0   ;;  %vm466_vm0 = vmmov 0   ;;  %s582_s1 = inlined_call_operand.vmem [shape: bf16[384,128], index: 1, kind: input, shape index: {}]   ;;  %s583_s0 = inlined_call_operand.vmem [shape: bf16[16,384], index: 0, kind: input, shape index: {}]   ;;  %s584_s2 = inlined_call_operand.vmem [shape: f32[1,128], index: 2, kind: input, shape index: {}]   ;;  %s585_s3 = inlined_call_operand.vmem [shape: f32[1,128], index: 3, kind: input, shape index: {}]   ;;  %s586_s4 = inlined_call_operand.vmem [shape: bf16[16,128], index: 4, kind: output, shape index: {}]  }
   0x1   :  { %v437_v0 = vld [vmem:[%s582_s1 + $0x40] sm:$0xff]   ;;  %415 = vmatprep.subr.bf16.mxu1 %v465_v1  ;;  %431 = vmatprep.mubr.msk.bf16.mxu1 %vm466_vm0, %v465_v1  ;;  %v440_v4 = vld [vmem:[%s582_s1 + $0x48] sm:$0xff]   ;;  %v443_v7 = vld [vmem:[%s582_s1 + $0x50] sm:$0xff]  }
   0x2   :  { %v438_v2 = vld [vmem:[%s582_s1] sm:$0xff]   ;;  %384 = vmatprep.subr.bf16.mxu0 %v437_v0  ;;  %v441_v5 = vld [vmem:[%s582_s1 + $0x8] sm:$0xff]   ;;  %v444_v8 = vld [vmem:[%s582_s1 + $0x10] sm:$0xff]  }
   0x3   :  { %v439_v3 = vld [vmem:[%s582_s1 + $0x80] sm:$0xff]   ;;  %385 = vmatpush3.bf16.msra.mxu0 %v438_v2  ;;  %v442_v6 = vld [vmem:[%s582_s1 + $0x88] sm:$0xff]   ;;  %v445_v9 = vld [vmem:[%s582_s1 + $0x90] sm:$0xff]  }
   0x4   :  { %416 = vmatpush3.bf16.msra.mxu1 %v439_v3  ;;  %386 = vmatprep.subr.bf16.mxu0 %v440_v4  ;;  %v446_v10 = vld [vmem:[%s582_s1 + $0x58] sm:$0xff]   ;;  %v449_v13 = vld [vmem:[%s582_s1 + $0x60] sm:$0xff]   ;;  %v452_v16 = vld [vmem:[%s582_s1 + $0x68] sm:$0xff]  }
   0x5   :  { %417 = vmatprep.subr.bf16.mxu1 %v465_v1  ;;  %v447_v11 = vld [vmem:[%s582_s1 + $0x18] sm:$0xff]   ;;  %v450_v14 = vld [vmem:[%s582_s1 + $0x20] sm:$0xff]   ;;  %v453_v17 = vld [vmem:[%s582_s1 + $0x28] sm:$0xff]  }
   0x6   :  { %v448_v12 = vld [vmem:[%s582_s1 + $0x98] sm:$0xff]   ;;  %v451_v15 = vld [vmem:[%s582_s1 + $0xa0] sm:$0xff]   ;;  %v454_v18 = vld [vmem:[%s582_s1 + $0xa8] sm:$0xff]  }
   0x7   :  { %387 = vmatpush3.bf16.msra.mxu0 %v441_v5  ;;  %v455_v19 = vld [vmem:[%s582_s1 + $0x70] sm:$0xff]   ;;  %v458_v22 = vld [vmem:[%s582_s1 + $0x78] sm:$0xff]   ;;  %v461_v26 = vld [vmem:[%s583_s0] ss:$12 sps:$4 sm:$0xff]  }
   0x8   :  { %418 = vmatpush3.bf16.msra.mxu1 %v442_v6  ;;  %388 = vmatprep.subr.bf16.mxu0 %v443_v7  ;;  %v456_v20 = vld [vmem:[%s582_s1 + $0x30] sm:$0xff]   ;;  %v459_v24 = vld [vmem:[%s582_s1 + $0x38] sm:$0xff]   ;;  %v373_v34 = vld [vmem:[%s584_s2] ss:$0 sm:$0xff] }
   0x9   :  { %419 = vmatprep.subr.bf16.mxu1 %v465_v1  ;;  %v457_v21 = vld [vmem:[%s582_s1 + $0xb0] sm:$0xff]   ;;  %v460_v25 = vld [vmem:[%s582_s1 + $0xb8] sm:$0xff]   ;;  %v374_v40 = vld [vmem:[%s585_s3] ss:$0 sm:$0xff] }
   0xa   :  { %v463_v23 = vld [vmem:[%s583_s0 + $0x4] ss:$12 sps:$4 sm:$0xff]   ;;  %v464_v27 = vld [vmem:[%s583_s0 + $0x8] ss:$12 sps:$4 sm:$0xff]  }
   0xb   :  { %389 = vmatpush3.bf16.msra.mxu0 %v444_v8  ;;  %262 = vmatprep.mubr.bf16.mxu0 %v463_v23 }
   0xc   :  { %420 = vmatpush3.bf16.msra.mxu1 %v445_v9  ;;  %390 = vmatprep.subr.bf16.mxu0 %v446_v10 }
   0xd   :  { %421 = vmatprep.subr.bf16.mxu1 %v465_v1 }
   0xf   :  { %391 = vmatpush3.bf16.msra.mxu0 %v447_v11 }
  0x10   :  { %422 = vmatpush3.bf16.msra.mxu1 %v448_v12  ;;  %392 = vmatprep.subr.bf16.mxu0 %v449_v13 }
  0x11   :  { %423 = vmatprep.subr.bf16.mxu1 %v465_v1 }
  0x13   :  { %393 = vmatpush3.bf16.msra.mxu0 %v450_v14 }
  0x14   :  { %424 = vmatpush3.bf16.msra.mxu1 %v451_v15  ;;  %394 = vmatprep.subr.bf16.mxu0 %v452_v16 }
  0x15   :  { %425 = vmatprep.subr.bf16.mxu1 %v465_v1 }
  0x17   :  { %395 = vmatpush3.bf16.msra.mxu0 %v453_v17 }
  0x18   :  { %426 = vmatpush3.bf16.msra.mxu1 %v454_v18  ;;  %396 = vmatprep.subr.bf16.mxu0 %v455_v19 }
  0x19   :  { %427 = vmatprep.subr.bf16.mxu1 %v465_v1 }
  0x1b   :  { %397 = vmatpush3.bf16.msra.mxu0 %v456_v20 }
  0x1c   :  { %428 = vmatpush3.bf16.msra.mxu1 %v457_v21  ;;  %398 = vmatprep.subr.bf16.mxu0 %v458_v22 }
  0x1d   :  { %429 = vmatprep.subr.bf16.mxu1 %v465_v1 }
  0x1f   :  { %399 = vmatpush3.bf16.msra.mxu0 %v459_v24 }
  0x20   :  { %430 = vmatpush3.bf16.msra.mxu1 %v460_v25 }
  0x22   :  { %263 = vmatmul.mubr.bf16.vlgmr.msra.gmra.mrb[0].mxu0 %v461_v26 }
  0x23   :  { %432 = vmatmul.mubr.bf16.vlgmr.msra.gmra.mrb[0].mxu1 %v464_v27 }
  0xf5   :  { %v400_v28 = vpop.f32.mrb[0].mxu0 }
  0xf6   :  { %v305_v29 = vpop.f32.mrb[0].mxu1  ;;  %v401_v30 = vpop.f32.mrb[1].mxu0 }
  0xf7   :  { %v402_v31 = vadd.f32 %v401_v30, %v400_v28  ;;  %v433_v32 = vpop.f32.mrb[1].mxu1  ;;  %v403_v33 = vpop.f32.mrb[2].mxu0 }
  0xf8   :  { %v308_v35 = vpop.f32.mrb[2].mxu1  ;;  %v404_v36 = vpop.f32.mrb[3].mxu0 }
  0xf9   :  { %v306_v37 = vadd.f32 %v402_v31, %v305_v29  ;;  %v405_v38 = vadd.f32 %v404_v36, %v403_v33  ;;  %v434_v39 = vpop.f32.mrb[3].mxu1 }
  0xfb   :  { %v319_v41 = vmul.f32 %v373_v34, %v306_v37  ;;  %v309_v42 = vadd.f32 %v405_v38, %v308_v35 }
  0xfd   :  { %v328_v43 = vadd.f32 %v374_v40, %v319_v41  ;;  %v320_v44 = vmul.f32 %v373_v34, %v309_v42 }
  0xff   :  { %v329_v45 = vadd.f32 %v374_v40, %v320_v44  ;;  %v330_v46 = vmax.f32 %v328_v43, 0.0 }
 0x101   :  { %v331_v47 = vmax.f32 %v329_v45, 0.0 }
 0x103   :  { %v382_v48 = vpack.c.bf16 %v331_v47, %v330_v46 }
 0x105   :  { %383 = vst [vmem:[%s586_s4] sm:$0xff] %v382_v48  }

// kernel: feature_extractor_forward.84
= control target key start
LH: loop header
LB: loop body
LE: loop exit
PB: predicated region body
PF: predicated region fallthrough
CT: control target
= control target key end

     0   :  { %s4447_s1 = inlined_call_operand.vmem [shape: bf16[2304,256], index: 1, kind: input, shape index: {}]   ;;  %s4448_s0 = inlined_call_operand.vmem [shape: bf16[32,2304], index: 0, kind: input, shape index: {}]   ;;  %s4449_s2 = inlined_call_operand.vmem [shape: f32[1,256], index: 2, kind: input, shape index: {}]   ;;  %s4450_s3 = inlined_call_operand.vmem [shape: f32[1,256], index: 3, kind: input, shape index: {}]   ;;  %s4451_s4 = inlined_call_operand.vmem [shape: bf16[32,256], index: 4, kind: output, shape index: {}]  }
   0x1   :  { %v2946_v0 = vld [vmem:[%s4447_s1 + $0x4] ss:$8 sps:$4 sm:$0xff]   ;;  %v2950_v2 = vld [vmem:[%s4447_s1] ss:$8 sps:$4 sm:$0xff]   ;;  %v2952_v4 = vld [vmem:[%s4447_s1 + $0x14] ss:$8 sps:$4 sm:$0xff]  }
   0x2   :  { %v2948_v1 = vld [vmem:[%s4447_s1 + $0x404] ss:$8 sps:$4 sm:$0xff]   ;;  %1961 = vmatprep.subr.bf16.mxu1 %v2946_v0  ;;  %v2951_v3 = vld [vmem:[%s4447_s1 + $0x400] ss:$8 sps:$4 sm:$0xff]   ;;  %v2954_v5 = vld [vmem:[%s4447_s1 + $0x414] ss:$8 sps:$4 sm:$0xff]  }
   0x3   :  { %2173 = vmatprep.subr.bf16.mxu0 %v2948_v1  ;;  %1962 = vmatpush1.bf16.msra.mxu1 %v2950_v2  ;;  %v2956_v6 = vld [vmem:[%s4447_s1 + $0x10] ss:$8 sps:$4 sm:$0xff]   ;;  %v2958_v8 = vld [vmem:[%s4447_s1 + $0x24] ss:$8 sps:$4 sm:$0xff]   ;;  %v2962_v10 = vld [vmem:[%s4447_s1 + $0x20] ss:$8 sps:$4 sm:$0xff]  }
   0x4   :  { %2174 = vmatpush1.bf16.msra.mxu0 %v2951_v3  ;;  %1963 = vmatprep.subr.bf16.mxu1 %v2952_v4  ;;  %v2957_v7 = vld [vmem:[%s4447_s1 + $0x410] ss:$8 sps:$4 sm:$0xff]   ;;  %v2960_v9 = vld [vmem:[%s4447_s1 + $0x424] ss:$8 sps:$4 sm:$0xff]   ;;  %v2963_v11 = vld [vmem:[%s4447_s1 + $0x420] ss:$8 sps:$4 sm:$0xff]  }
   0x5   :  { %2175 = vmatprep.subr.bf16.mxu0 %v2954_v5  ;;  %v2964_v12 = vld [vmem:[%s4447_s1 + $0x34] ss:$8 sps:$4 sm:$0xff]   ;;  %v2968_v14 = vld [vmem:[%s4447_s1 + $0x30] ss:$8 sps:$4 sm:$0xff]   ;;  %v2970_v16 = vld [vmem:[%s4447_s1 + $0x44] ss:$8 sps:$4 sm:$0xff]  }
   0x6   :  { %v2966_v13 = vld [vmem:[%s4447_s1 + $0x434] ss:$8 sps:$4 sm:$0xff]   ;;  %v2969_v15 = vld [vmem:[%s4447_s1 + $0x430] ss:$8 sps:$4 sm:$0xff]   ;;  %v2972_v17 = vld [vmem:[%s4447_s1 + $0x444] ss:$8 sps:$4 sm:$0xff]  }
   0x7   :  { %1964 = vmatpush1.bf16.msra.mxu1 %v2956_v6  ;;  %v2974_v18 = vld [vmem:[%s4447_s1 + $0x40] ss:$8 sps:$4 sm:$0xff]   ;;  %v2976_v20 = vld [vmem:[%s4447_s1 + $0x54] ss:$8 sps:$4 sm:$0xff]   ;;  %v2980_v22 = vld [vmem:[%s4447_s1 + $0x50] ss:$8 sps:$4 sm:$0xff]  }
   0x8   :  { %2176 = vmatpush1.bf16.msra.mxu0 %v2957_v7  ;;  %1965 = vmatprep.subr.bf16.mxu1 %v2958_v8  ;;  %v2975_v19 = vld [vmem:[%s4447_s1 + $0x440] ss:$8 sps:$4 sm:$0xff]   ;;  %v2978_v21 = vld [vmem:[%s4447_s1 + $0x454] ss:$8 sps:$4 sm:$0xff]   ;;  %v2981_v23 = vld [vmem:[%s4447_s1 + $0x450] ss:$8 sps:$4 sm:$0xff]  }
   0x9   :  { %2177 = vmatprep.subr.bf16.mxu0 %v2960_v9  ;;  %v2982_v24 = vld [vmem:[%s4447_s1 + $0x64] ss:$8 sps:$4 sm:$0xff]   ;;  %v2986_v26 = vld [vmem:[%s4447_s1 + $0x60] ss:$8 sps:$4 sm:$0xff]   ;;  %v2988_v28 = vld [vmem:[%s4447_s1 + $0x74] ss:$8 sps:$4 sm:$0xff]  }
   0xa   :  { %v2984_v25 = vld [vmem:[%s4447_s1 + $0x464] ss:$8 sps:$4 sm:$0xff]   ;;  %v2987_v27 = vld [vmem:[%s4447_s1 + $0x460] ss:$8 sps:$4 sm:$0xff]   ;;  %v2990_v29 = vld [vmem:[%s4447_s1 + $0x474] ss:$8 sps:$4 sm:$0xff]  }
   0xb   :  { %1966 = vmatpush1.bf16.msra.mxu1 %v2962_v10  ;;  %v2992_v30 = vld [vmem:[%s4447_s1 + $0x70] ss:$8 sps:$4 sm:$0xff]   ;;  %v2994_v32 = vld [vmem:[%s4447_s1 + $0x84] ss:$8 sps:$4 sm:$0xff]   ;;  %v2998_v34 = vld [vmem:[%s4447_s1 + $0x80] ss:$8 sps:$4 sm:$0xff]  }
   0xc   :  { %2178 = vmatpush1.bf16.msra.mxu0 %v2963_v11  ;;  %1967 = vmatprep.subr.bf16.mxu1 %v2964_v12  ;;  %v2993_v31 = vld [vmem:[%s4447_s1 + $0x470] ss:$8 sps:$4 sm:$0xff]   ;;  %v2996_v33 = vld [vmem:[%s4447_s1 + $0x484] ss:$8 sps:$4 sm:$0xff]   ;;  %v2999_v35 = vld [vmem:[%s4447_s1 + $0x480] ss:$8 sps:$4 sm:$0xff]  }
   0xd   :  { %2179 = vmatprep.subr.bf16.mxu0 %v2966_v13  ;;  %v3000_v36 = vld [vmem:[%s4447_s1 + $0x94] ss:$8 sps:$4 sm:$0xff]   ;;  %v3004_v38 = vld [vmem:[%s4447_s1 + $0x90] ss:$8 sps:$4 sm:$0xff]   ;;  %v3006_v40 = vld [vmem:[%s4447_s1 + $0xa4] ss:$8 sps:$4 sm:$0xff]  }
   0xe   :  { %v3002_v37 = vld [vmem:[%s4447_s1 + $0x494] ss:$8 sps:$4 sm:$0xff]   ;;  %v3005_v39 = vld [vmem:[%s4447_s1 + $0x490] ss:$8 sps:$4 sm:$0xff]   ;;  %v3008_v41 = vld [vmem:[%s4447_s1 + $0x4a4] ss:$8 sps:$4 sm:$0xff]  }
   0xf   :  { %1968 = vmatpush1.bf16.msra.mxu1 %v2968_v14  ;;  %v3010_v42 = vld [vmem:[%s4447_s1 + $0xa0] ss:$8 sps:$4 sm:$0xff]   ;;  %v3012_v44 = vld [vmem:[%s4447_s1 + $0xb4] ss:$8 sps:$4 sm:$0xff]   ;;  %v3016_v46 = vld [vmem:[%s4447_s1 + $0xb0] ss:$8 sps:$4 sm:$0xff]  }
  0x10   :  { %2180 = vmatpush1.bf16.msra.mxu0 %v2969_v15  ;;  %1969 = vmatprep.subr.bf16.mxu1 %v2970_v16  ;;  %v3011_v43 = vld [vmem:[%s4447_s1 + $0x4a0] ss:$8 sps:$4 sm:$0xff]   ;;  %v3014_v45 = vld [vmem:[%s4447_s1 + $0x4b4] ss:$8 sps:$4 sm:$0xff]   ;;  %v3017_v47 = vld [vmem:[%s4447_s1 + $0x4b0] ss:$8 sps:$4 sm:$0xff]  }
  0x11   :  { %2181 = vmatprep.subr.bf16.mxu0 %v2972_v17  ;;  %v3044_v48 = vld [vmem:[%s4448_s0 + $0x4] ss:$72 sps:$4 sm:$0xff]   ;;  %v3022_v52 = vld [vmem:[%s4447_s1 + $0xc0] ss:$8 sps:$4 sm:$0xff]   ;;  %v3024_v54 = vld [vmem:[%s4447_s1 + $0xd4] ss:$8 sps:$4 sm:$0xff]  }
  0x12   :  { %v3018_v49 = vld [vmem:[%s4447_s1 + $0xc4] ss:$8 sps:$4 sm:$0xff]   ;;  %1993 = vmatprep.mubr.bf16.mxu1 %v3044_v48  ;;  %v3023_v53 = vld [vmem:[%s4447_s1 + $0x4c0] ss:$8 sps:$4 sm:$0xff]   ;;  %v3026_v55 = vld [vmem:[%s4447_s1 + $0x4d4] ss:$8 sps:$4 sm:$0xff]  }
  0x13   :  { %1970 = vmatpush1.bf16.msra.mxu1 %v2974_v18  ;;  %v3020_v50 = vld [vmem:[%s4447_s1 + $0x4c4] ss:$8 sps:$4 sm:$0xff]   ;;  %v3028_v56 = vld [vmem:[%s4447_s1 + $0xd0] ss:$8 sps:$4 sm:$0xff]   ;;  %v3034_v60 = vld [vmem:[%s4447_s1 + $0xe0] ss:$8 sps:$4 sm:$0xff]  }
  0x14   :  { %2182 = vmatpush1.bf16.msra.mxu0 %v2975_v19  ;;  %1971 = vmatprep.subr.bf16.mxu1 %v2976_v20  ;;  %v3050_v51 = vld [vmem:[%s4448_s0 + $0x24] ss:$72 sps:$4 sm:$0xff]   ;;  %v3029_v57 = vld [vmem:[%s4447_s1 + $0x4d0] ss:$8 sps:$4 sm:$0xff]   ;;  %v3035_v61 = vld [vmem:[%s4447_s1 + $0x4e0] ss:$8 sps:$4 sm:$0xff]  }
  0x15   :  { %2183 = vmatprep.subr.bf16.mxu0 %v2978_v21  ;;  %2205 = vmatprep.mubr.bf16.mxu0 %v3050_v51  ;;  %v3030_v58 = vld [vmem:[%s4447_s1 + $0xe4] ss:$8 sps:$4 sm:$0xff]   ;;  %v3036_v62 = vld [vmem:[%s4447_s1 + $0xf4] ss:$8 sps:$4 sm:$0xff]   ;;  %v3040_v0 = vld [vmem:[%s4447_s1 + $0xf0] ss:$8 sps:$4 sm:$0xff]  }
  0x16   :  { %v3032_v59 = vld [vmem:[%s4447_s1 + $0x4e4] ss:$8 sps:$4 sm:$0xff]   ;;  %v3038_v63 = vld [vmem:[%s4447_s1 + $0x4f4] ss:$8 sps:$4 sm:$0xff]   ;;  %v3041_v1 = vld [vmem:[%s4447_s1 + $0x4f0] ss:$8 sps:$4 sm:$0xff]  }
  0x17   :  { %1972 = vmatpush1.bf16.msra.mxu1 %v2980_v22  ;;  %v3047_v2 = vld [vmem:[%s4447_s1 + $0x104] ss:$8 sps:$4 sm:$0xff]   ;;  %v3042_v4 = vld [vmem:[%s4448_s0] ss:$72 sps:$4 sm:$0xff]   ;;  %v3056_v8 = vld [vmem:[%s4447_s1 + $0x114] ss:$8 sps:$4 sm:$0xff]  }
  0x18   :  { %2184 = vmatpush1.bf16.msra.mxu0 %v2981_v23  ;;  %1973 = vmatprep.subr.bf16.mxu1 %v2982_v24  ;;  %v3053_v3 = vld [vmem:[%s4447_s1 + $0x504] ss:$8 sps:$4 sm:$0xff]   ;;  %v3045_v5 = vld [vmem:[%s4447_s1 + $0x100] ss:$8 sps:$4 sm:$0xff]   ;;  %v3059_v9 = vld [vmem:[%s4447_s1 + $0x514] ss:$8 sps:$4 sm:$0xff]  }
  0x19   :  { %2185 = vmatprep.subr.bf16.mxu0 %v2984_v25  ;;  %v3048_v6 = vld [vmem:[%s4448_s0 + $0x20] ss:$72 sps:$4 sm:$0xff]   ;;  %v3054_v10 = vld [vmem:[%s4447_s1 + $0x110] ss:$8 sps:$4 sm:$0xff]   ;;  %v3062_v12 = vld [vmem:[%s4447_s1 + $0x124] ss:$8 sps:$4 sm:$0xff]  }
  0x1a   :  { %v3051_v7 = vld [vmem:[%s4447_s1 + $0x500] ss:$8 sps:$4 sm:$0xff]   ;;  %v3057_v11 = vld [vmem:[%s4447_s1 + $0x510] ss:$8 sps:$4 sm:$0xff]   ;;  %v3065_v13 = vld [vmem:[%s4447_s1 + $0x524] ss:$8 sps:$4 sm:$0xff]  }
  0x1b   :  { %1974 = vmatpush1.bf16.msra.mxu1 %v2986_v26  ;;  %v3060_v14 = vld [vmem:[%s4447_s1 + $0x120] ss:$8 sps:$4 sm:$0xff]   ;;  %v3068_v16 = vld [vmem:[%s4447_s1 + $0x134] ss:$8 sps:$4 sm:$0xff]   ;;  %v3066_v18 = vld [vmem:[%s4447_s1 + $0x130] ss:$8 sps:$4 sm:$0xff]  }
  0x1c   :  { %2186 = vmatpush1.bf16.msra.mxu0 %v2987_v27  ;;  %1975 = vmatprep.subr.bf16.mxu1 %v2988_v28  ;;  %v3063_v15 = vld [vmem:[%s4447_s1 + $0x520] ss:$8 sps:$4 sm:$0xff]   ;;  %v3071_v17 = vld [vmem:[%s4447_s1 + $0x534] ss:$8 sps:$4 sm:$0xff]   ;;  %v3069_v19 = vld [vmem:[%s4447_s1 + $0x530] ss:$8 sps:$4 sm:$0xff]  }
  0x1d   :  { %2187 = vmatprep.subr.bf16.mxu0 %v2990_v29  ;;  %v3074_v20 = vld [vmem:[%s4447_s1 + $0x144] ss:$8 sps:$4 sm:$0xff]   ;;  %v3072_v22 = vld [vmem:[%s4447_s1 + $0x140] ss:$8 sps:$4 sm:$0xff]   ;;  %v3080_v24 = vld [vmem:[%s4447_s1 + $0x154] ss:$8 sps:$4 sm:$0xff]  }
  0x1e   :  { %v3077_v21 = vld [vmem:[%s4447_s1 + $0x544] ss:$8 sps:$4 sm:$0xff]   ;;  %v3075_v23 = vld [vmem:[%s4447_s1 + $0x540] ss:$8 sps:$4 sm:$0xff]   ;;  %v3083_v25 = vld [vmem:[%s4447_s1 + $0x554] ss:$8 sps:$4 sm:$0xff]  }
  0x1f   :  { %1976 = vmatpush1.bf16.msra.mxu1 %v2992_v30  ;;  %v3078_v26 = vld [vmem:[%s4447_s1 + $0x150] ss:$8 sps:$4 sm:$0xff]   ;;  %v3132_v28 = vld [vmem:[%s4448_s0 + $0x94] ss:$72 sps:$4 sm:$0xff]   ;;  %v3086_v29 = vld [vmem:[%s4447_s1 + $0x164] ss:$8 sps:$4 sm:$0xff]  }
  0x20   :  { %2188 = vmatpush1.bf16.msra.mxu0 %v2993_v31  ;;  %1977 = vmatprep.subr.bf16.mxu1 %v2994_v32  ;;  %v3081_v27 = vld [vmem:[%s4447_s1 + $0x550] ss:$8 sps:$4 sm:$0xff]   ;;  %v3089_v30 = vld [vmem:[%s4447_s1 + $0x564] ss:$8 sps:$4 sm:$0xff]   ;;  %v3137_v31 = vld [vmem:[%s4448_s0 + $0xb4] ss:$72 sps:$4 sm:$0xff]  }
  0x21   :  { %2189 = vmatprep.subr.bf16.mxu0 %v2996_v33  ;;  %v3084_v32 = vld [vmem:[%s4447_s1 + $0x160] ss:$8 sps:$4 sm:$0xff]   ;;  %v3102_v48 = vld [vmem:[%s4447_s1 + $0x190] ss:$8 sps:$4 sm:$0xff]   ;;  %v3113_v51 = vld [vmem:[%s4447_s1 + $0x5a4] ss:$8 sps:$4 sm:$0xff]  }
  0x22   :  { %v3087_v33 = vld [vmem:[%s4447_s1 + $0x560] ss:$8 sps:$4 sm:$0xff]  }
  0x23   :  { %1978 = vmatpush1.bf16.msra.mxu1 %v2998_v34  ;;  %v3142_v34 = vld [vmem:[%s4448_s0 + $0x90] ss:$72 sps:$4 sm:$0xff]  }
  0x24   :  { %2190 = vmatpush1.bf16.msra.mxu0 %v2999_v35  ;;  %1979 = vmatprep.subr.bf16.mxu1 %v3000_v36  ;;  %v3143_v35 = vld [vmem:[%s4448_s0 + $0xb0] ss:$72 sps:$4 sm:$0xff]   ;;  %v3092_v36 = vld [vmem:[%s4447_s1 + $0x174] ss:$8 sps:$4 sm:$0xff]  }
  0x25   :  { %2191 = vmatprep.subr.bf16.mxu0 %v3002_v37  ;;  %v3095_v37 = vld [vmem:[%s4447_s1 + $0x574] ss:$8 sps:$4 sm:$0xff]  }
  0x27   :  { %1980 = vmatpush1.bf16.msra.mxu1 %v3004_v38  ;;  %v3090_v38 = vld [vmem:[%s4447_s1 + $0x170] ss:$8 sps:$4 sm:$0xff]  }
  0x28   :  { %2192 = vmatpush1.bf16.msra.mxu0 %v3005_v39  ;;  %1981 = vmatprep.subr.bf16.mxu1 %v3006_v40  ;;  %v3093_v39 = vld [vmem:[%s4447_s1 + $0x570] ss:$8 sps:$4 sm:$0xff]   ;;  %v3152_v40 = vld [vmem:[%s4448_s0 + $0xc] ss:$72 sps:$4 sm:$0xff]  }
  0x29   :  { %2193 = vmatprep.subr.bf16.mxu0 %v3008_v41  ;;  %v3098_v41 = vld [vmem:[%s4447_s1 + $0x184] ss:$8 sps:$4 sm:$0xff]  }
  0x2b   :  { %1982 = vmatpush1.bf16.msra.mxu1 %v3010_v42  ;;  %v3101_v42 = vld [vmem:[%s4447_s1 + $0x584] ss:$8 sps:$4 sm:$0xff]  }
  0x2c   :  { %2194 = vmatpush1.bf16.msra.mxu0 %v3011_v43  ;;  %1983 = vmatprep.subr.bf16.mxu1 %v3012_v44  ;;  %v3158_v43 = vld [vmem:[%s4448_s0 + $0x2c] ss:$72 sps:$4 sm:$0xff]   ;;  %v3096_v44 = vld [vmem:[%s4447_s1 + $0x180] ss:$8 sps:$4 sm:$0xff]  }
  0x2d   :  { %2195 = vmatprep.subr.bf16.mxu0 %v3014_v45  ;;  %v3099_v45 = vld [vmem:[%s4447_s1 + $0x580] ss:$8 sps:$4 sm:$0xff]  }
  0x2f   :  { %1984 = vmatpush1.bf16.msra.mxu1 %v3016_v46  ;;  %v3104_v46 = vld [vmem:[%s4447_s1 + $0x194] ss:$8 sps:$4 sm:$0xff]  }
  0x30   :  { %2196 = vmatpush1.bf16.msra.mxu0 %v3017_v47  ;;  %1985 = vmatprep.subr.bf16.mxu1 %v3018_v49  ;;  %v3107_v47 = vld [vmem:[%s4447_s1 + $0x594] ss:$8 sps:$4 sm:$0xff]   ;;  %v3105_v49 = vld [vmem:[%s4447_s1 + $0x590] ss:$8 sps:$4 sm:$0xff]  }
  0x31   :  { %2197 = vmatprep.subr.bf16.mxu0 %v3020_v50  ;;  %v3110_v50 = vld [vmem:[%s4447_s1 + $0x1a4] ss:$8 sps:$4 sm:$0xff]  }
  0x33   :  { %1986 = vmatpush1.bf16.msra.mxu1 %v3022_v52  ;;  %v3108_v52 = vld [vmem:[%s4447_s1 + $0x1a0] ss:$8 sps:$4 sm:$0xff]  }
  0x34   :  { %2198 = vmatpush1.bf16.msra.mxu0 %v3023_v53  ;;  %1987 = vmatprep.subr.bf16.mxu1 %v3024_v54  ;;  %v3111_v53 = vld [vmem:[%s4447_s1 + $0x5a0] ss:$8 sps:$4 sm:$0xff]   ;;  %v3116_v54 = vld [vmem:[%s4447_s1 + $0x1b4] ss:$8 sps:$4 sm:$0xff]  }
  0x35   :  { %2199 = vmatprep.subr.bf16.mxu0 %v3026_v55  ;;  %v3119_v55 = vld [vmem:[%s4447_s1 + $0x5b4] ss:$8 sps:$4 sm:$0xff]  }
  0x37   :  { %1988 = vmatpush1.bf16.msra.mxu1 %v3028_v56  ;;  %v3114_v56 = vld [vmem:[%s4447_s1 + $0x1b0] ss:$8 sps:$4 sm:$0xff]  }
  0x38   :  { %2200 = vmatpush1.bf16.msra.mxu0 %v3029_v57  ;;  %1989 = vmatprep.subr.bf16.mxu1 %v3030_v58  ;;  %v3117_v57 = vld [vmem:[%s4447_s1 + $0x5b0] ss:$8 sps:$4 sm:$0xff]   ;;  %v3122_v58 = vld [vmem:[%s4447_s1 + $0x1c4] ss:$8 sps:$4 sm:$0xff]  }
  0x39   :  { %2201 = vmatprep.subr.bf16.mxu0 %v3032_v59  ;;  %v3125_v59 = vld [vmem:[%s4447_s1 + $0x5c4] ss:$8 sps:$4 sm:$0xff]  }
  0x3b   :  { %1990 = vmatpush1.bf16.msra.mxu1 %v3034_v60  ;;  %v3120_v60 = vld [vmem:[%s4447_s1 + $0x1c0] ss:$8 sps:$4 sm:$0xff]  }
  0x3c   :  { %2202 = vmatpush1.bf16.msra.mxu0 %v3035_v61  ;;  %1991 = vmatprep.subr.bf16.mxu1 %v3036_v62  ;;  %v3123_v61 = vld [vmem:[%s4447_s1 + $0x5c0] ss:$8 sps:$4 sm:$0xff]   ;;  %v3128_v62 = vld [vmem:[%s4447_s1 + $0x1d4] ss:$8 sps:$4 sm:$0xff]  }
  0x3d   :  { %2203 = vmatprep.subr.bf16.mxu0 %v3038_v63  ;;  %v3131_v63 = vld [vmem:[%s4447_s1 + $0x5d4] ss:$8 sps:$4 sm:$0xff]  }
  0x3f   :  { %1992 = vmatpush1.bf16.msra.mxu1 %v3040_v0  ;;  %v3126_v0 = vld [vmem:[%s4447_s1 + $0x1d0] ss:$8 sps:$4 sm:$0xff]  }
  0x40   :  { %2204 = vmatpush1.bf16.msra.mxu0 %v3041_v1  ;;  %2014 = vmatprep.subr.bf16.mxu1 %v3047_v2  ;;  %v3129_v1 = vld [vmem:[%s4447_s1 + $0x5d0] ss:$8 sps:$4 sm:$0xff]   ;;  %v3136_v2 = vld [vmem:[%s4447_s1 + $0x1e4] ss:$8 sps:$4 sm:$0xff]  }
  0x41   :  { %2226 = vmatprep.subr.bf16.mxu0 %v3053_v3  ;;  %v3141_v3 = vld [vmem:[%s4447_s1 + $0x5e4] ss:$8 sps:$4 sm:$0xff]  }
  0x42   :  { %1994 = vmatmul.mubr.bf16.vlgmr.msra.gmra.mrb[0].mxu1 %v3042_v4  ;;  %v3134_v4 = vld [vmem:[%s4447_s1 + $0x1e0] ss:$8 sps:$4 sm:$0xff]  }
  0x43   :  { %2206 = vmatmul.mubr.bf16.vlgmr.msra.gmra.mrb[0].mxu0 %v3048_v6  ;;  %2015 = vmatpush1.bf16.msra.mxu1 %v3045_v5  ;;  %v3139_v5 = vld [vmem:[%s4447_s1 + $0x5e0] ss:$8 sps:$4 sm:$0xff]   ;;  %v3146_v6 = vld [vmem:[%s4447_s1 + $0x1f4] ss:$8 sps:$4 sm:$0xff]  }
  0x44   :  { %2227 = vmatpush1.bf16.msra.mxu0 %v3051_v7  ;;  %2016 = vmatprep.subr.bf16.mxu1 %v3056_v8  ;;  %v3149_v7 = vld [vmem:[%s4447_s1 + $0x5f4] ss:$8 sps:$4 sm:$0xff]   ;;  %v3144_v8 = vld [vmem:[%s4447_s1 + $0x1f0] ss:$8 sps:$4 sm:$0xff]  }
  0x45   :  { %2228 = vmatprep.subr.bf16.mxu0 %v3059_v9  ;;  %2003 = vmatprep.mubr.bf16.mxu1 %v3132_v28  ;;  %v3147_v9 = vld [vmem:[%s4447_s1 + $0x5f0] ss:$8 sps:$4 sm:$0xff]   ;;  %v3176_v28 = vld [vmem:[%s4447_s1 + $0x234] ss:$8 sps:$4 sm:$0xff]  }
  0x46   :  { %2215 = vmatprep.mubr.bf16.mxu0 %v3137_v31  ;;  %v3177_v31 = vld [vmem:[%s4447_s1 + $0x630] ss:$8 sps:$4 sm:$0xff]  }
  0x47   :  { %2017 = vmatpush1.bf16.msra.mxu1 %v3054_v10  ;;  %v3155_v10 = vld [vmem:[%s4447_s1 + $0x204] ss:$8 sps:$4 sm:$0xff]  }
  0x48   :  { %2229 = vmatpush1.bf16.msra.mxu0 %v3057_v11  ;;  %2018 = vmatprep.subr.bf16.mxu1 %v3062_v12  ;;  %v3161_v11 = vld [vmem:[%s4447_s1 + $0x604] ss:$8 sps:$4 sm:$0xff]   ;;  %v3150_v12 = vld [vmem:[%s4448_s0 + $0x8] ss:$72 sps:$4 sm:$0xff]  }
  0x49   :  { %2230 = vmatprep.subr.bf16.mxu0 %v3065_v13  ;;  %v3153_v13 = vld [vmem:[%s4447_s1 + $0x200] ss:$8 sps:$4 sm:$0xff]  }
  0x4a   :  { %2004 = vmatmul.mubr.bf16.gmra.mrb[4].mxu1 %v3142_v34  ;;  %v3185_v34 = vld [vmem:[%s4447_s1 + $0x644] ss:$8 sps:$4 sm:$0xff]  }
  0x4b   :  { %2019 = vmatpush1.bf16.msra.mxu1 %v3060_v14  ;;  %2216 = vmatmul.mubr.bf16.gmra.mrb[4].mxu0 %v3143_v35  ;;  %v3156_v14 = vld [vmem:[%s4448_s0 + $0x28] ss:$72 sps:$4 sm:$0xff]   ;;  %v3266_v35 = vld [vmem:[%s4448_s0 + $0x34] ss:$72 sps:$4 sm:$0xff]  }
  0x4c   :  { %2231 = vmatpush1.bf16.msra.mxu0 %v3063_v15  ;;  %2020 = vmatprep.subr.bf16.mxu1 %v3068_v16  ;;  %v3159_v15 = vld [vmem:[%s4447_s1 + $0x600] ss:$8 sps:$4 sm:$0xff]   ;;  %v3164_v16 = vld [vmem:[%s4447_s1 + $0x214] ss:$8 sps:$4 sm:$0xff]  }
  0x4d   :  { %2232 = vmatprep.subr.bf16.mxu0 %v3071_v17  ;;  %2046 = vmatprep.mubr.bf16.mxu1 %v3152_v40  ;;  %v3167_v17 = vld [vmem:[%s4447_s1 + $0x614] ss:$8 sps:$4 sm:$0xff]   ;;  %v3186_v40 = vld [vmem:[%s4447_s1 + $0x250] ss:$8 sps:$4 sm:$0xff]  }
  0x4e   :  { %2258 = vmatprep.mubr.bf16.mxu0 %v3158_v43  ;;  %v3197_v43 = vld [vmem:[%s4447_s1 + $0x664] ss:$8 sps:$4 sm:$0xff]  }
  0x4f   :  { %2021 = vmatpush1.bf16.msra.mxu1 %v3066_v18  ;;  %v3162_v18 = vld [vmem:[%s4447_s1 + $0x210] ss:$8 sps:$4 sm:$0xff]  }
  0x50   :  { %2233 = vmatpush1.bf16.msra.mxu0 %v3069_v19  ;;  %2022 = vmatprep.subr.bf16.mxu1 %v3074_v20  ;;  %v3165_v19 = vld [vmem:[%s4447_s1 + $0x610] ss:$8 sps:$4 sm:$0xff]   ;;  %v3240_v20 = vld [vmem:[%s4448_s0 + $0x9c] ss:$72 sps:$4 sm:$0xff]  }
  0x51   :  { %2234 = vmatprep.subr.bf16.mxu0 %v3077_v21  ;;  %v3170_v21 = vld [vmem:[%s4447_s1 + $0x224] ss:$8 sps:$4 sm:$0xff]  }
  0x53   :  { %2023 = vmatpush1.bf16.msra.mxu1 %v3072_v22  ;;  %v3173_v22 = vld [vmem:[%s4447_s1 + $0x624] ss:$8 sps:$4 sm:$0xff]  }
  0x54   :  { %2235 = vmatpush1.bf16.msra.mxu0 %v3075_v23  ;;  %2024 = vmatprep.subr.bf16.mxu1 %v3080_v24  ;;  %v3245_v23 = vld [vmem:[%s4448_s0 + $0xbc] ss:$72 sps:$4 sm:$0xff]   ;;  %v3168_v24 = vld [vmem:[%s4447_s1 + $0x220] ss:$8 sps:$4 sm:$0xff]  }
  0x55   :  { %2236 = vmatprep.subr.bf16.mxu0 %v3083_v25  ;;  %v3171_v25 = vld [vmem:[%s4447_s1 + $0x620] ss:$8 sps:$4 sm:$0xff]  }
  0x57   :  { %2025 = vmatpush1.bf16.msra.mxu1 %v3078_v26  ;;  %v3250_v26 = vld [vmem:[%s4448_s0 + $0x98] ss:$72 sps:$4 sm:$0xff]  }
  0x58   :  { %2237 = vmatpush1.bf16.msra.mxu0 %v3081_v27  ;;  %2026 = vmatprep.subr.bf16.mxu1 %v3086_v29  ;;  %v3251_v27 = vld [vmem:[%s4448_s0 + $0xb8] ss:$72 sps:$4 sm:$0xff]   ;;  %v3179_v29 = vld [vmem:[%s4447_s1 + $0x634] ss:$8 sps:$4 sm:$0xff]  }
  0x59   :  { %2238 = vmatprep.subr.bf16.mxu0 %v3089_v30  ;;  %v3174_v30 = vld [vmem:[%s4447_s1 + $0x230] ss:$8 sps:$4 sm:$0xff]  }
  0x5b   :  { %2027 = vmatpush1.bf16.msra.mxu1 %v3084_v32  ;;  %v3260_v32 = vld [vmem:[%s4448_s0 + $0x14] ss:$72 sps:$4 sm:$0xff]  }
  0x5c   :  { %2239 = vmatpush1.bf16.msra.mxu0 %v3087_v33  ;;  %2028 = vmatprep.subr.bf16.mxu1 %v3092_v36  ;;  %v3182_v33 = vld [vmem:[%s4447_s1 + $0x244] ss:$8 sps:$4 sm:$0xff]   ;;  %v3180_v36 = vld [vmem:[%s4447_s1 + $0x240] ss:$8 sps:$4 sm:$0xff]  }
  0x5d   :  { %2240 = vmatprep.subr.bf16.mxu0 %v3095_v37  ;;  %v3183_v37 = vld [vmem:[%s4447_s1 + $0x640] ss:$8 sps:$4 sm:$0xff]  }
  0x5f   :  { %2029 = vmatpush1.bf16.msra.mxu1 %v3090_v38  ;;  %v3188_v38 = vld [vmem:[%s4447_s1 + $0x254] ss:$8 sps:$4 sm:$0xff]  }
  0x60   :  { %2241 = vmatpush1.bf16.msra.mxu0 %v3093_v39  ;;  %2030 = vmatprep.subr.bf16.mxu1 %v3098_v41  ;;  %v3191_v39 = vld [vmem:[%s4447_s1 + $0x654] ss:$8 sps:$4 sm:$0xff]   ;;  %v3189_v41 = vld [vmem:[%s4447_s1 + $0x650] ss:$8 sps:$4 sm:$0xff]  }
  0x61   :  { %2242 = vmatprep.subr.bf16.mxu0 %v3101_v42  ;;  %v3194_v42 = vld [vmem:[%s4447_s1 + $0x264] ss:$8 sps:$4 sm:$0xff]  }
  0x63   :  { %2031 = vmatpush1.bf16.msra.mxu1 %v3096_v44  ;;  %v3192_v44 = vld [vmem:[%s4447_s1 + $0x260] ss:$8 sps:$4 sm:$0xff]  }
  0x64   :  { %2243 = vmatpush1.bf16.msra.mxu0 %v3099_v45  ;;  %2032 = vmatprep.subr.bf16.mxu1 %v3104_v46  ;;  %v3195_v45 = vld [vmem:[%s4447_s1 + $0x660] ss:$8 sps:$4 sm:$0xff]   ;;  %v3200_v46 = vld [vmem:[%s4447_s1 + $0x274] ss:$8 sps:$4 sm:$0xff]  }
  0x65   :  { %2244 = vmatprep.subr.bf16.mxu0 %v3107_v47  ;;  %v3203_v47 = vld [vmem:[%s4447_s1 + $0x674] ss:$8 sps:$4 sm:$0xff]  }
  0x67   :  { %2033 = vmatpush1.bf16.msra.mxu1 %v3102_v48  ;;  %v3198_v48 = vld [vmem:[%s4447_s1 + $0x270] ss:$8 sps:$4 sm:$0xff]  }
  0x68   :  { %2245 = vmatpush1.bf16.msra.mxu0 %v3105_v49  ;;  %2034 = vmatprep.subr.bf16.mxu1 %v3110_v50  ;;  %v3201_v49 = vld [vmem:[%s4447_s1 + $0x670] ss:$8 sps:$4 sm:$0xff]   ;;  %v3206_v50 = vld [vmem:[%s4447_s1 + $0x284] ss:$8 sps:$4 sm:$0xff]  }
  0x69   :  { %2246 = vmatprep.subr.bf16.mxu0 %v3113_v51  ;;  %v3209_v51 = vld [vmem:[%s4447_s1 + $0x684] ss:$8 sps:$4 sm:$0xff]  }
  0x6b   :  { %2035 = vmatpush1.bf16.msra.mxu1 %v3108_v52  ;;  %v3204_v52 = vld [vmem:[%s4447_s1 + $0x280] ss:$8 sps:$4 sm:$0xff]  }
  0x6c   :  { %2247 = vmatpush1.bf16.msra.mxu0 %v3111_v53  ;;  %2036 = vmatprep.subr.bf16.mxu1 %v3116_v54  ;;  %v3207_v53 = vld [vmem:[%s4447_s1 + $0x680] ss:$8 sps:$4 sm:$0xff]   ;;  %v3212_v54 = vld [vmem:[%s4447_s1 + $0x294] ss:$8 sps:$4 sm:$0xff]  }
  0x6d   :  { %2248 = vmatprep.subr.bf16.mxu0 %v3119_v55  ;;  %v3215_v55 = vld [vmem:[%s4447_s1 + $0x694] ss:$8 sps:$4 sm:$0xff]  }
  0x6f   :  { %2037 = vmatpush1.bf16.msra.mxu1 %v3114_v56  ;;  %v3210_v56 = vld [vmem:[%s4447_s1 + $0x290] ss:$8 sps:$4 sm:$0xff]  }
  0x70   :  { %2249 = vmatpush1.bf16.msra.mxu0 %v3117_v57  ;;  %2038 = vmatprep.subr.bf16.mxu1 %v3122_v58  ;;  %v3213_v57 = vld [vmem:[%s4447_s1 + $0x690] ss:$8 sps:$4 sm:$0xff]   ;;  %v3218_v58 = vld [vmem:[%s4447_s1 + $0x2a4] ss:$8 sps:$4 sm:$0xff]  }
  0x71   :  { %2250 = vmatprep.subr.bf16.mxu0 %v3125_v59  ;;  %v3221_v59 = vld [vmem:[%s4447_s1 + $0x6a4] ss:$8 sps:$4 sm:$0xff]  }
  0x73   :  { %2039 = vmatpush1.bf16.msra.mxu1 %v3120_v60  ;;  %v3216_v60 = vld [vmem:[%s4447_s1 + $0x2a0] ss:$8 sps:$4 sm:$0xff]  }
  0x74   :  { %2251 = vmatpush1.bf16.msra.mxu0 %v3123_v61  ;;  %2040 = vmatprep.subr.bf16.mxu1 %v3128_v62  ;;  %v3219_v61 = vld [vmem:[%s4447_s1 + $0x6a0] ss:$8 sps:$4 sm:$0xff]   ;;  %v3224_v62 = vld [vmem:[%s4447_s1 + $0x2b4] ss:$8 sps:$4 sm:$0xff]  }
  0x75   :  { %2252 = vmatprep.subr.bf16.mxu0 %v3131_v63  ;;  %v3227_v63 = vld [vmem:[%s4447_s1 + $0x6b4] ss:$8 sps:$4 sm:$0xff]  }
  0x77   :  { %2041 = vmatpush1.bf16.msra.mxu1 %v3126_v0  ;;  %v3222_v0 = vld [vmem:[%s4447_s1 + $0x2b0] ss:$8 sps:$4 sm:$0xff]  }
  0x78   :  { %2253 = vmatpush1.bf16.msra.mxu0 %v3129_v1  ;;  %2042 = vmatprep.subr.bf16.mxu1 %v3136_v2  ;;  %v3225_v1 = vld [vmem:[%s4447_s1 + $0x6b0] ss:$8 sps:$4 sm:$0xff]   ;;  %v3230_v2 = vld [vmem:[%s4447_s1 + $0x2c4] ss:$8 sps:$4 sm:$0xff]  }
  0x79   :  { %2254 = vmatprep.subr.bf16.mxu0 %v3141_v3  ;;  %v3233_v3 = vld [vmem:[%s4447_s1 + $0x6c4] ss:$8 sps:$4 sm:$0xff]  }
  0x7b   :  { %2043 = vmatpush1.bf16.msra.mxu1 %v3134_v4  ;;  %v3228_v4 = vld [vmem:[%s4447_s1 + $0x2c0] ss:$8 sps:$4 sm:$0xff]  }
  0x7c   :  { %2255 = vmatpush1.bf16.msra.mxu0 %v3139_v5  ;;  %2044 = vmatprep.subr.bf16.mxu1 %v3146_v6  ;;  %v3231_v5 = vld [vmem:[%s4447_s1 + $0x6c0] ss:$8 sps:$4 sm:$0xff]   ;;  %v3236_v6 = vld [vmem:[%s4447_s1 + $0x2d4] ss:$8 sps:$4 sm:$0xff]  }
  0x7d   :  { %2256 = vmatprep.subr.bf16.mxu0 %v3149_v7  ;;  %v3239_v7 = vld [vmem:[%s4447_s1 + $0x6d4] ss:$8 sps:$4 sm:$0xff]  }
  0x7f   :  { %2045 = vmatpush1.bf16.msra.mxu1 %v3144_v8  ;;  %v3234_v8 = vld [vmem:[%s4447_s1 + $0x2d0] ss:$8 sps:$4 sm:$0xff]  }
  0x80   :  { %2257 = vmatpush1.bf16.msra.mxu0 %v3147_v9  ;;  %2067 = vmatprep.subr.bf16.mxu1 %v3155_v10  ;;  %v3237_v9 = vld [vmem:[%s4447_s1 + $0x6d0] ss:$8 sps:$4 sm:$0xff]   ;;  %v3244_v10 = vld [vmem:[%s4447_s1 + $0x2e4] ss:$8 sps:$4 sm:$0xff]  }
  0x81   :  { %2279 = vmatprep.subr.bf16.mxu0 %v3161_v11  ;;  %v3249_v11 = vld [vmem:[%s4447_s1 + $0x6e4] ss:$8 sps:$4 sm:$0xff]  }
  0x82   :  { %2047 = vmatmul.mubr.bf16.vlgmr.msra.gmra.mrb[0].mxu1 %v3150_v12  ;;  %v3242_v12 = vld [vmem:[%s4447_s1 + $0x2e0] ss:$8 sps:$4 sm:$0xff]  }
  0x83   :  { %2259 = vmatmul.mubr.bf16.vlgmr.msra.gmra.mrb[0].mxu0 %v3156_v14  ;;  %2068 = vmatpush1.bf16.msra.mxu1 %v3153_v13  ;;  %v3247_v13 = vld [vmem:[%s4447_s1 + $0x6e0] ss:$8 sps:$4 sm:$0xff]   ;;  %v3254_v14 = vld [vmem:[%s4447_s1 + $0x2f4] ss:$8 sps:$4 sm:$0xff]  }
  0x84   :  { %2280 = vmatpush1.bf16.msra.mxu0 %v3159_v15  ;;  %2069 = vmatprep.subr.bf16.mxu1 %v3164_v16  ;;  %v3257_v15 = vld [vmem:[%s4447_s1 + $0x6f4] ss:$8 sps:$4 sm:$0xff]   ;;  %v3252_v16 = vld [vmem:[%s4447_s1 + $0x2f0] ss:$8 sps:$4 sm:$0xff]  }
  0x85   :  { %2281 = vmatprep.subr.bf16.mxu0 %v3167_v17  ;;  %2056 = vmatprep.mubr.bf16.mxu1 %v3240_v20  ;;  %v3255_v17 = vld [vmem:[%s4447_s1 + $0x6f0] ss:$8 sps:$4 sm:$0xff]  }
  0x86   :  { %2268 = vmatprep.mubr.bf16.mxu0 %v3245_v23  ;;  %v3258_v20 = vld [vmem:[%s4448_s0 + $0x10] ss:$72 sps:$4 sm:$0xff]   ;;  %v3267_v23 = vld [vmem:[%s4447_s1 + $0x700] ss:$8 sps:$4 sm:$0xff]  }
  0x87   :  { %2070 = vmatpush1.bf16.msra.mxu1 %v3162_v18  ;;  %v3263_v18 = vld [vmem:[%s4447_s1 + $0x304] ss:$8 sps:$4 sm:$0xff]  }
  0x88   :  { %2282 = vmatpush1.bf16.msra.mxu0 %v3165_v19  ;;  %2071 = vmatprep.subr.bf16.mxu1 %v3170_v21  ;;  %v3269_v19 = vld [vmem:[%s4447_s1 + $0x704] ss:$8 sps:$4 sm:$0xff]   ;;  %v3261_v21 = vld [vmem:[%s4447_s1 + $0x300] ss:$8 sps:$4 sm:$0xff]  }
  0x89   :  { %2283 = vmatprep.subr.bf16.mxu0 %v3173_v22  ;;  %v3264_v22 = vld [vmem:[%s4448_s0 + $0x30] ss:$72 sps:$4 sm:$0xff]  }
  0x8a   :  { %2057 = vmatmul.mubr.bf16.gmra.mrb[4].mxu1 %v3250_v26  ;;  %v3348_v26 = vld [vmem:[%s4448_s0 + $0xa4] ss:$72 sps:$4 sm:$0xff]  }
  0x8b   :  { %2269 = vmatmul.mubr.bf16.gmra.mrb[4].mxu0 %v3251_v27  ;;  %2072 = vmatpush1.bf16.msra.mxu1 %v3168_v24  ;;  %v3272_v24 = vld [vmem:[%s4447_s1 + $0x314] ss:$8 sps:$4 sm:$0xff]   ;;  %v3350_v27 = vld [vmem:[%s4448_s0 + $0xc4] ss:$72 sps:$4 sm:$0xff]  }
  0x8c   :  { %2284 = vmatpush1.bf16.msra.mxu0 %v3171_v25  ;;  %2073 = vmatprep.subr.bf16.mxu1 %v3176_v28  ;;  %v3275_v25 = vld [vmem:[%s4447_s1 + $0x714] ss:$8 sps:$4 sm:$0xff]   ;;  %v3270_v28 = vld [vmem:[%s4447_s1 + $0x310] ss:$8 sps:$4 sm:$0xff]  }
  0x8d   :  { %2285 = vmatprep.subr.bf16.mxu0 %v3179_v29  ;;  %2099 = vmatprep.mubr.bf16.mxu1 %v3260_v32  ;;  %v3273_v29 = vld [vmem:[%s4447_s1 + $0x710] ss:$8 sps:$4 sm:$0xff]   ;;  %v3276_v32 = vld [vmem:[%s4447_s1 + $0x320] ss:$8 sps:$4 sm:$0xff]  }
  0x8e   :  { %2311 = vmatprep.mubr.bf16.mxu0 %v3266_v35  ;;  %v3356_v35 = vld [vmem:[%s4448_s0 + $0xc0] ss:$72 sps:$4 sm:$0xff]  }
  0x8f   :  { %2074 = vmatpush1.bf16.msra.mxu1 %v3174_v30  ;;  %v3278_v30 = vld [vmem:[%s4447_s1 + $0x324] ss:$8 sps:$4 sm:$0xff]  }
  0x90   :  { %2286 = vmatpush1.bf16.msra.mxu0 %v3177_v31  ;;  %2075 = vmatprep.subr.bf16.mxu1 %v3182_v33  ;;  %v3281_v31 = vld [vmem:[%s4447_s1 + $0x724] ss:$8 sps:$4 sm:$0xff]   ;;  %v3279_v33 = vld [vmem:[%s4447_s1 + $0x720] ss:$8 sps:$4 sm:$0xff]  }
  0x91   :  { %2287 = vmatprep.subr.bf16.mxu0 %v3185_v34  ;;  %v3352_v34 = vld [vmem:[%s4448_s0 + $0xa0] ss:$72 sps:$4 sm:$0xff]  }
  0x93   :  { %2076 = vmatpush1.bf16.msra.mxu1 %v3180_v36  ;;  %v3284_v36 = vld [vmem:[%s4447_s1 + $0x334] ss:$8 sps:$4 sm:$0xff]  }
  0x94   :  { %2288 = vmatpush1.bf16.msra.mxu0 %v3183_v37  ;;  %2077 = vmatprep.subr.bf16.mxu1 %v3188_v38  ;;  %v3287_v37 = vld [vmem:[%s4447_s1 + $0x734] ss:$8 sps:$4 sm:$0xff]  }
  0x95   :  { %2289 = vmatprep.subr.bf16.mxu0 %v3191_v39  ;;  %v3368_v38 = vld [vmem:[%s4448_s0 + $0x1c] ss:$72 sps:$4 sm:$0xff]  }
  0x96   :  { %v3371_v39 = vld [vmem:[%s4448_s0 + $0x3c] ss:$72 sps:$4 sm:$0xff]  }
  0x97   :  { %2078 = vmatpush1.bf16.msra.mxu1 %v3186_v40  ;;  %v3282_v40 = vld [vmem:[%s4447_s1 + $0x330] ss:$8 sps:$4 sm:$0xff]  }
  0x98   :  { %2290 = vmatpush1.bf16.msra.mxu0 %v3189_v41  ;;  %2079 = vmatprep.subr.bf16.mxu1 %v3194_v42  ;;  %v3285_v41 = vld [vmem:[%s4447_s1 + $0x730] ss:$8 sps:$4 sm:$0xff]   ;;  %v3290_v42 = vld [vmem:[%s4447_s1 + $0x344] ss:$8 sps:$4 sm:$0xff]  }
  0x99   :  { %2291 = vmatprep.subr.bf16.mxu0 %v3197_v43  ;;  %v3293_v43 = vld [vmem:[%s4447_s1 + $0x744] ss:$8 sps:$4 sm:$0xff]  }
  0x9b   :  { %2080 = vmatpush1.bf16.msra.mxu1 %v3192_v44  ;;  %v3288_v44 = vld [vmem:[%s4447_s1 + $0x340] ss:$8 sps:$4 sm:$0xff]  }
  0x9c   :  { %2292 = vmatpush1.bf16.msra.mxu0 %v3195_v45  ;;  %2081 = vmatprep.subr.bf16.mxu1 %v3200_v46  ;;  %v3291_v45 = vld [vmem:[%s4447_s1 + $0x740] ss:$8 sps:$4 sm:$0xff]   ;;  %v3296_v46 = vld [vmem:[%s4447_s1 + $0x354] ss:$8 sps:$4 sm:$0xff]  }
  0x9d   :  { %2293 = vmatprep.subr.bf16.mxu0 %v3203_v47  ;;  %v3299_v47 = vld [vmem:[%s4447_s1 + $0x754] ss:$8 sps:$4 sm:$0xff]  }
  0x9f   :  { %2082 = vmatpush1.bf16.msra.mxu1 %v3198_v48  ;;  %v3294_v48 = vld [vmem:[%s4447_s1 + $0x350] ss:$8 sps:$4 sm:$0xff]  }
  0xa0   :  { %2294 = vmatpush1.bf16.msra.mxu0 %v3201_v49  ;;  %2083 = vmatprep.subr.bf16.mxu1 %v3206_v50  ;;  %v3297_v49 = vld [vmem:[%s4447_s1 + $0x750] ss:$8 sps:$4 sm:$0xff]   ;;  %v3302_v50 = vld [vmem:[%s4447_s1 + $0x364] ss:$8 sps:$4 sm:$0xff]  }
  0xa1   :  { %2295 = vmatprep.subr.bf16.mxu0 %v3209_v51  ;;  %v3305_v51 = vld [vmem:[%s4447_s1 + $0x764] ss:$8 sps:$4 sm:$0xff]  }
  0xa3   :  { %2084 = vmatpush1.bf16.msra.mxu1 %v3204_v52  ;;  %v3300_v52 = vld [vmem:[%s4447_s1 + $0x360] ss:$8 sps:$4 sm:$0xff]  }
  0xa4   :  { %2296 = vmatpush1.bf16.msra.mxu0 %v3207_v53  ;;  %2085 = vmatprep.subr.bf16.mxu1 %v3212_v54  ;;  %v3303_v53 = vld [vmem:[%s4447_s1 + $0x760] ss:$8 sps:$4 sm:$0xff]   ;;  %v3308_v54 = vld [vmem:[%s4447_s1 + $0x374] ss:$8 sps:$4 sm:$0xff]  }
  0xa5   :  { %2297 = vmatprep.subr.bf16.mxu0 %v3215_v55  ;;  %v3311_v55 = vld [vmem:[%s4447_s1 + $0x774] ss:$8 sps:$4 sm:$0xff]  }
  0xa7   :  { %2086 = vmatpush1.bf16.msra.mxu1 %v3210_v56  ;;  %v3306_v56 = vld [vmem:[%s4447_s1 + $0x370] ss:$8 sps:$4 sm:$0xff]  }
  0xa8   :  { %2298 = vmatpush1.bf16.msra.mxu0 %v3213_v57  ;;  %2087 = vmatprep.subr.bf16.mxu1 %v3218_v58  ;;  %v3309_v57 = vld [vmem:[%s4447_s1 + $0x770] ss:$8 sps:$4 sm:$0xff]   ;;  %v3314_v58 = vld [vmem:[%s4447_s1 + $0x384] ss:$8 sps:$4 sm:$0xff]  }
  0xa9   :  { %2299 = vmatprep.subr.bf16.mxu0 %v3221_v59  ;;  %v3317_v59 = vld [vmem:[%s4447_s1 + $0x784] ss:$8 sps:$4 sm:$0xff]  }
  0xab   :  { %2088 = vmatpush1.bf16.msra.mxu1 %v3216_v60  ;;  %v3312_v60 = vld [vmem:[%s4447_s1 + $0x380] ss:$8 sps:$4 sm:$0xff]  }
  0xac   :  { %2300 = vmatpush1.bf16.msra.mxu0 %v3219_v61  ;;  %2089 = vmatprep.subr.bf16.mxu1 %v3224_v62  ;;  %v3315_v61 = vld [vmem:[%s4447_s1 + $0x780] ss:$8 sps:$4 sm:$0xff]   ;;  %v3320_v62 = vld [vmem:[%s4447_s1 + $0x394] ss:$8 sps:$4 sm:$0xff]  }
  0xad   :  { %2301 = vmatprep.subr.bf16.mxu0 %v3227_v63  ;;  %v3323_v63 = vld [vmem:[%s4447_s1 + $0x794] ss:$8 sps:$4 sm:$0xff]  }
  0xaf   :  { %2090 = vmatpush1.bf16.msra.mxu1 %v3222_v0  ;;  %v3318_v0 = vld [vmem:[%s4447_s1 + $0x390] ss:$8 sps:$4 sm:$0xff]  }
  0xb0   :  { %2302 = vmatpush1.bf16.msra.mxu0 %v3225_v1  ;;  %2091 = vmatprep.subr.bf16.mxu1 %v3230_v2  ;;  %v3321_v1 = vld [vmem:[%s4447_s1 + $0x790] ss:$8 sps:$4 sm:$0xff]   ;;  %v3326_v2 = vld [vmem:[%s4447_s1 + $0x3a4] ss:$8 sps:$4 sm:$0xff]  }
  0xb1   :  { %2303 = vmatprep.subr.bf16.mxu0 %v3233_v3  ;;  %v3329_v3 = vld [vmem:[%s4447_s1 + $0x7a4] ss:$8 sps:$4 sm:$0xff]  }
  0xb3   :  { %2092 = vmatpush1.bf16.msra.mxu1 %v3228_v4  ;;  %v3324_v4 = vld [vmem:[%s4447_s1 + $0x3a0] ss:$8 sps:$4 sm:$0xff]  }
  0xb4   :  { %2304 = vmatpush1.bf16.msra.mxu0 %v3231_v5  ;;  %2093 = vmatprep.subr.bf16.mxu1 %v3236_v6  ;;  %v3327_v5 = vld [vmem:[%s4447_s1 + $0x7a0] ss:$8 sps:$4 sm:$0xff]   ;;  %v3332_v6 = vld [vmem:[%s4447_s1 + $0x3b4] ss:$8 sps:$4 sm:$0xff]  }
  0xb5   :  { %2305 = vmatprep.subr.bf16.mxu0 %v3239_v7  ;;  %v3335_v7 = vld [vmem:[%s4447_s1 + $0x7b4] ss:$8 sps:$4 sm:$0xff]  }
  0xb7   :  { %2094 = vmatpush1.bf16.msra.mxu1 %v3234_v8  ;;  %v3330_v8 = vld [vmem:[%s4447_s1 + $0x3b0] ss:$8 sps:$4 sm:$0xff]  }
  0xb8   :  { %2306 = vmatpush1.bf16.msra.mxu0 %v3237_v9  ;;  %2095 = vmatprep.subr.bf16.mxu1 %v3244_v10  ;;  %v3333_v9 = vld [vmem:[%s4447_s1 + $0x7b0] ss:$8 sps:$4 sm:$0xff]   ;;  %v3338_v10 = vld [vmem:[%s4447_s1 + $0x3c4] ss:$8 sps:$4 sm:$0xff]  }
  0xb9   :  { %2307 = vmatprep.subr.bf16.mxu0 %v3249_v11  ;;  %v3341_v11 = vld [vmem:[%s4447_s1 + $0x7c4] ss:$8 sps:$4 sm:$0xff]  }
  0xbb   :  { %2096 = vmatpush1.bf16.msra.mxu1 %v3242_v12  ;;  %v3336_v12 = vld [vmem:[%s4447_s1 + $0x3c0] ss:$8 sps:$4 sm:$0xff]  }
  0xbc   :  { %2308 = vmatpush1.bf16.msra.mxu0 %v3247_v13  ;;  %2097 = vmatprep.subr.bf16.mxu1 %v3254_v14  ;;  %v3339_v13 = vld [vmem:[%s4447_s1 + $0x7c0] ss:$8 sps:$4 sm:$0xff]   ;;  %v3344_v14 = vld [vmem:[%s4447_s1 + $0x3d4] ss:$8 sps:$4 sm:$0xff]  }
  0xbd   :  { %2309 = vmatprep.subr.bf16.mxu0 %v3257_v15  ;;  %v3347_v15 = vld [vmem:[%s4447_s1 + $0x7d4] ss:$8 sps:$4 sm:$0xff]  }
  0xbf   :  { %2098 = vmatpush1.bf16.msra.mxu1 %v3252_v16  ;;  %v3342_v16 = vld [vmem:[%s4447_s1 + $0x3d0] ss:$8 sps:$4 sm:$0xff]  }
  0xc0   :  { %2310 = vmatpush1.bf16.msra.mxu0 %v3255_v17  ;;  %2120 = vmatprep.subr.bf16.mxu1 %v3263_v18  ;;  %v3345_v17 = vld [vmem:[%s4447_s1 + $0x7d0] ss:$8 sps:$4 sm:$0xff]   ;;  %v3355_v18 = vld [vmem:[%s4447_s1 + $0x3e4] ss:$8 sps:$4 sm:$0xff]  }
  0xc1   :  { %2332 = vmatprep.subr.bf16.mxu0 %v3269_v19  ;;  %v3359_v19 = vld [vmem:[%s4447_s1 + $0x7e4] ss:$8 sps:$4 sm:$0xff]  }
  0xc2   :  { %2100 = vmatmul.mubr.bf16.vlgmr.msra.gmra.mrb[0].mxu1 %v3258_v20  ;;  %v3353_v20 = vld [vmem:[%s4447_s1 + $0x3e0] ss:$8 sps:$4 sm:$0xff]  }
  0xc3   :  { %2312 = vmatmul.mubr.bf16.vlgmr.msra.gmra.mrb[0].mxu0 %v3264_v22  ;;  %2121 = vmatpush1.bf16.msra.mxu1 %v3261_v21  ;;  %v3357_v21 = vld [vmem:[%s4447_s1 + $0x7e0] ss:$8 sps:$4 sm:$0xff]   ;;  %v3362_v22 = vld [vmem:[%s4447_s1 + $0x3f4] ss:$8 sps:$4 sm:$0xff]  }
  0xc4   :  { %2333 = vmatpush1.bf16.msra.mxu0 %v3267_v23  ;;  %2122 = vmatprep.subr.bf16.mxu1 %v3272_v24  ;;  %v3365_v23 = vld [vmem:[%s4447_s1 + $0x7f4] ss:$8 sps:$4 sm:$0xff]   ;;  %v3360_v24 = vld [vmem:[%s4447_s1 + $0x3f0] ss:$8 sps:$4 sm:$0xff]  }
  0xc5   :  { %2334 = vmatprep.subr.bf16.mxu0 %v3275_v25  ;;  %2109 = vmatprep.mubr.bf16.mxu1 %v3348_v26  ;;  %v3363_v25 = vld [vmem:[%s4447_s1 + $0x7f0] ss:$8 sps:$4 sm:$0xff]   ;;  %v3374_v26 = vld [vmem:[%s4447_s1 + $0x804] ss:$8 sps:$4 sm:$0xff]  }
  0xc6   :  { %2321 = vmatprep.mubr.bf16.mxu0 %v3350_v27  ;;  %v3366_v27 = vld [vmem:[%s4448_s0 + $0x18] ss:$72 sps:$4 sm:$0xff]  }
  0xc7   :  { %2123 = vmatpush1.bf16.msra.mxu1 %v3270_v28  ;;  %v3369_v28 = vld [vmem:[%s4448_s0 + $0x38] ss:$72 sps:$4 sm:$0xff]  }
  0xc8   :  { %2335 = vmatpush1.bf16.msra.mxu0 %v3273_v29  ;;  %2124 = vmatprep.subr.bf16.mxu1 %v3278_v30  ;;  %v3372_v29 = vld [vmem:[%s4447_s1 + $0x800] ss:$8 sps:$4 sm:$0xff]   ;;  %v3377_v30 = vld [vmem:[%s4447_s1 + $0x814] ss:$8 sps:$4 sm:$0xff]  }
  0xc9   :  { %2336 = vmatprep.subr.bf16.mxu0 %v3281_v31  ;;  %v3378_v31 = vld [vmem:[%s4448_s0 + $0xac] ss:$72 sps:$4 sm:$0xff]  }
  0xca   :  { %2110 = vmatmul.mubr.bf16.gmra.mrb[4].mxu1 %v3352_v34  ;;  %v3386_v34 = vld [vmem:[%s4447_s1 + $0x824] ss:$8 sps:$4 sm:$0xff]  }
  0xcb   :  { %2322 = vmatmul.mubr.bf16.gmra.mrb[4].mxu0 %v3356_v35  ;;  %2125 = vmatpush1.bf16.msra.mxu1 %v3276_v32  ;;  %v3380_v32 = vld [vmem:[%s4448_s0 + $0xcc] ss:$72 sps:$4 sm:$0xff]   ;;  %v3382_v35 = vld [vmem:[%s4448_s0 + $0xa8] ss:$72 sps:$4 sm:$0xff]  }
  0xcc   :  { %2337 = vmatpush1.bf16.msra.mxu0 %v3279_v33  ;;  %2126 = vmatprep.subr.bf16.mxu1 %v3284_v36  ;;  %v3375_v33 = vld [vmem:[%s4447_s1 + $0x810] ss:$8 sps:$4 sm:$0xff]  }
  0xcd   :  { %2338 = vmatprep.subr.bf16.mxu0 %v3287_v37  ;;  %2152 = vmatprep.mubr.bf16.mxu1 %v3368_v38  ;;  %v3383_v36 = vld [vmem:[%s4448_s0 + $0xc8] ss:$72 sps:$4 sm:$0xff]   ;;  %v3389_v38 = vld [vmem:[%s4447_s1 + $0x834] ss:$8 sps:$4 sm:$0xff]  }
  0xce   :  { %2364 = vmatprep.mubr.bf16.mxu0 %v3371_v39  ;;  %v3384_v37 = vld [vmem:[%s4447_s1 + $0x820] ss:$8 sps:$4 sm:$0xff]   ;;  %v3428_v39 = vld [vmem:[%s4448_s0 + $0x44] ss:$72 sps:$4 sm:$0xff]  }
  0xcf   :  { %2127 = vmatpush1.bf16.msra.mxu1 %v3282_v40  ;;  %v3431_v40 = vld [vmem:[%s4448_s0 + $0xd4] ss:$72 sps:$4 sm:$0xff]  }
  0xd0   :  { %2339 = vmatpush1.bf16.msra.mxu0 %v3285_v41  ;;  %2128 = vmatprep.subr.bf16.mxu1 %v3290_v42  ;;  %v3387_v41 = vld [vmem:[%s4447_s1 + $0x830] ss:$8 sps:$4 sm:$0xff]   ;;  %v3392_v42 = vld [vmem:[%s4447_s1 + $0x844] ss:$8 sps:$4 sm:$0xff]  }
  0xd1   :  { %2340 = vmatprep.subr.bf16.mxu0 %v3293_v43  ;;  %v3390_v43 = vld [vmem:[%s4447_s1 + $0x840] ss:$8 sps:$4 sm:$0xff]  }
  0xd3   :  { %2129 = vmatpush1.bf16.msra.mxu1 %v3288_v44  ;;  %v3395_v44 = vld [vmem:[%s4447_s1 + $0x854] ss:$8 sps:$4 sm:$0xff]  }
  0xd4   :  { %2341 = vmatpush1.bf16.msra.mxu0 %v3291_v45  ;;  %2130 = vmatprep.subr.bf16.mxu1 %v3296_v46  ;;  %v3393_v45 = vld [vmem:[%s4447_s1 + $0x850] ss:$8 sps:$4 sm:$0xff]   ;;  %v3398_v46 = vld [vmem:[%s4447_s1 + $0x864] ss:$8 sps:$4 sm:$0xff]  }
  0xd5   :  { %2342 = vmatprep.subr.bf16.mxu0 %v3299_v47  ;;  %v3396_v47 = vld [vmem:[%s4447_s1 + $0x860] ss:$8 sps:$4 sm:$0xff]  }
  0xd7   :  { %2131 = vmatpush1.bf16.msra.mxu1 %v3294_v48  ;;  %v3401_v48 = vld [vmem:[%s4447_s1 + $0x874] ss:$8 sps:$4 sm:$0xff]  }
  0xd8   :  { %2343 = vmatpush1.bf16.msra.mxu0 %v3297_v49  ;;  %2132 = vmatprep.subr.bf16.mxu1 %v3302_v50  ;;  %v3399_v49 = vld [vmem:[%s4447_s1 + $0x870] ss:$8 sps:$4 sm:$0xff]   ;;  %v3404_v50 = vld [vmem:[%s4447_s1 + $0x884] ss:$8 sps:$4 sm:$0xff]  }
  0xd9   :  { %2344 = vmatprep.subr.bf16.mxu0 %v3305_v51  ;;  %v3402_v51 = vld [vmem:[%s4447_s1 + $0x880] ss:$8 sps:$4 sm:$0xff]  }
  0xdb   :  { %2133 = vmatpush1.bf16.msra.mxu1 %v3300_v52  ;;  %v3407_v52 = vld [vmem:[%s4447_s1 + $0x894] ss:$8 sps:$4 sm:$0xff]  }
  0xdc   :  { %2345 = vmatpush1.bf16.msra.mxu0 %v3303_v53  ;;  %2134 = vmatprep.subr.bf16.mxu1 %v3308_v54  ;;  %v3405_v53 = vld [vmem:[%s4447_s1 + $0x890] ss:$8 sps:$4 sm:$0xff]   ;;  %v3410_v54 = vld [vmem:[%s4447_s1 + $0x8a4] ss:$8 sps:$4 sm:$0xff]  }
  0xdd   :  { %2346 = vmatprep.subr.bf16.mxu0 %v3311_v55  ;;  %v3408_v55 = vld [vmem:[%s4447_s1 + $0x8a0] ss:$8 sps:$4 sm:$0xff]  }
  0xdf   :  { %2135 = vmatpush1.bf16.msra.mxu1 %v3306_v56  ;;  %v3413_v56 = vld [vmem:[%s4447_s1 + $0x8b4] ss:$8 sps:$4 sm:$0xff]  }
  0xe0   :  { %2347 = vmatpush1.bf16.msra.mxu0 %v3309_v57  ;;  %2136 = vmatprep.subr.bf16.mxu1 %v3314_v58  ;;  %v3411_v57 = vld [vmem:[%s4447_s1 + $0x8b0] ss:$8 sps:$4 sm:$0xff]   ;;  %v3416_v58 = vld [vmem:[%s4447_s1 + $0x8c4] ss:$8 sps:$4 sm:$0xff]  }
  0xe1   :  { %2348 = vmatprep.subr.bf16.mxu0 %v3317_v59  ;;  %v3414_v59 = vld [vmem:[%s4447_s1 + $0x8c0] ss:$8 sps:$4 sm:$0xff]  }
  0xe3   :  { %2137 = vmatpush1.bf16.msra.mxu1 %v3312_v60  ;;  %v3419_v60 = vld [vmem:[%s4447_s1 + $0x8d4] ss:$8 sps:$4 sm:$0xff]  }
  0xe4   :  { %2349 = vmatpush1.bf16.msra.mxu0 %v3315_v61  ;;  %2138 = vmatprep.subr.bf16.mxu1 %v3320_v62  ;;  %v3417_v61 = vld [vmem:[%s4447_s1 + $0x8d0] ss:$8 sps:$4 sm:$0xff]   ;;  %v3422_v62 = vld [vmem:[%s4447_s1 + $0x8e4] ss:$8 sps:$4 sm:$0xff]  }
  0xe5   :  { %2350 = vmatprep.subr.bf16.mxu0 %v3323_v63  ;;  %v3420_v63 = vld [vmem:[%s4447_s1 + $0x8e0] ss:$8 sps:$4 sm:$0xff]  }
  0xe7   :  { %2139 = vmatpush1.bf16.msra.mxu1 %v3318_v0  ;;  %v3425_v0 = vld [vmem:[%s4447_s1 + $0x8f4] ss:$8 sps:$4 sm:$0xff]  }
  0xe8   :  { %2351 = vmatpush1.bf16.msra.mxu0 %v3321_v1  ;;  %2140 = vmatprep.subr.bf16.mxu1 %v3326_v2  ;;  %v3423_v1 = vld [vmem:[%s4447_s1 + $0x8f0] ss:$8 sps:$4 sm:$0xff]   ;;  %v3426_v2 = vld [vmem:[%s4448_s0 + $0x40] ss:$72 sps:$4 sm:$0xff]  }
  0xe9   :  { %2352 = vmatprep.subr.bf16.mxu0 %v3329_v3  ;;  %v3429_v3 = vld [vmem:[%s4448_s0 + $0xd0] ss:$72 sps:$4 sm:$0xff]  }
  0xeb   :  { %2141 = vmatpush1.bf16.msra.mxu1 %v3324_v4 }
  0xec   :  { %2353 = vmatpush1.bf16.msra.mxu0 %v3327_v5  ;;  %2142 = vmatprep.subr.bf16.mxu1 %v3332_v6 }
  0xed   :  { %2354 = vmatprep.subr.bf16.mxu0 %v3335_v7 }
  0xef   :  { %2143 = vmatpush1.bf16.msra.mxu1 %v3330_v8 }
  0xf0   :  { %2355 = vmatpush1.bf16.msra.mxu0 %v3333_v9  ;;  %2144 = vmatprep.subr.bf16.mxu1 %v3338_v10 }
  0xf1   :  { %2356 = vmatprep.subr.bf16.mxu0 %v3341_v11 }
  0xf3   :  { %2145 = vmatpush1.bf16.msra.mxu1 %v3336_v12 }
  0xf4   :  { %2357 = vmatpush1.bf16.msra.mxu0 %v3339_v13  ;;  %2146 = vmatprep.subr.bf16.mxu1 %v3344_v14 }
  0xf5   :  { %2358 = vmatprep.subr.bf16.mxu0 %v3347_v15 }
  0xf7   :  { %2147 = vmatpush1.bf16.msra.mxu1 %v3342_v16 }
  0xf8   :  { %2359 = vmatpush1.bf16.msra.mxu0 %v3345_v17  ;;  %2148 = vmatprep.subr.bf16.mxu1 %v3355_v18 }
  0xf9   :  { %2360 = vmatprep.subr.bf16.mxu0 %v3359_v19 }
  0xfb   :  { %2149 = vmatpush1.bf16.msra.mxu1 %v3353_v20  ;;  %v2440_v20 = vlaneseq }
  0xfc   :  { %2361 = vmatpush1.bf16.msra.mxu0 %v3357_v21  ;;  %2150 = vmatprep.subr.bf16.mxu1 %v3362_v22 }
  0xfd   :  { %2362 = vmatprep.subr.bf16.mxu0 %v3365_v23  ;;  %v2441_v21 = vshrl.u32 %v2440_v20, 7  ;;  %v2438_v23 = vld [vmem:[%s4449_s2] sm:$0x3] }
  0xff   :  { %2151 = vmatpush1.bf16.msra.mxu1 %v3360_v24  ;;  %v2442_v22 = vsub.s32 0, %v2441_v21  ;;  %v2446_v24 = vsub.s32 1, %v2441_v21 }
 0x100   :  { %2363 = vmatpush1.bf16.msra.mxu0 %v3363_v25  ;;  %2850 = vmatprep.subr.bf16.mxu1 %v3374_v26  ;;  %v2458_v25 = vld [vmem:[%s4450_s3] sm:$0x3] }
 0x101   :  { %2385 = vmatprep.subr.bf16.mxu0 %v3374_v26  ;;  %v2443_v26 = vrot.slane %v2438_v23, %v2442_v22 }
 0x102   :  { %2153 = vmatmul.mubr.bf16.vlgmr.msra.gmra.mrb[0].mxu1 %v3366_v27 }
 0x103   :  { %2365 = vmatmul.mubr.bf16.vlgmr.msra.gmra.mrb[0].mxu0 %v3369_v28  ;;  %2866 = vmatpush1.bf16.msra.mxu1 %v3372_v29 }
 0x104   :  { %2386 = vmatpush1.bf16.msra.mxu0 %v3372_v29  ;;  %2851 = vmatprep.subr.bf16.mxu1 %v3377_v30  ;;  %v2447_v29 = vrot.slane %v2438_v23, %v2446_v24 }
 0x105   :  { %2387 = vmatprep.subr.bf16.mxu0 %v3377_v30  ;;  %2162 = vmatprep.mubr.bf16.mxu1 %v3378_v31  ;;  %v2463_v31 = vrot.slane %v2458_v25, %v2442_v22 }
 0x106   :  { %2374 = vmatprep.mubr.bf16.mxu0 %v3380_v32 }
 0x107   :  { %2867 = vmatpush1.bf16.msra.mxu1 %v3375_v33 }
 0x108   :  { %2388 = vmatpush1.bf16.msra.mxu0 %v3375_v33  ;;  %2852 = vmatprep.subr.bf16.mxu1 %v3386_v34 }
 0x109   :  { %2389 = vmatprep.subr.bf16.mxu0 %v3386_v34 }
 0x10a   :  { %2163 = vmatmul.mubr.bf16.gmra.mrb[4].mxu1 %v3382_v35 }
 0x10b   :  { %2375 = vmatmul.mubr.bf16.gmra.mrb[4].mxu0 %v3383_v36  ;;  %2868 = vmatpush1.bf16.msra.mxu1 %v3384_v37  ;;  %v2467_v36 = vrot.slane %v2458_v25, %v2446_v24 }
 0x10c   :  { %2390 = vmatpush1.bf16.msra.mxu0 %v3384_v37  ;;  %2853 = vmatprep.subr.bf16.mxu1 %v3389_v38 }
 0x10d   :  { %2391 = vmatprep.subr.bf16.mxu0 %v3389_v38  ;;  %2417 = vmatprep.mubr.bf16.mxu0 %v3428_v39 }
 0x10e   :  { %2427 = vmatprep.mubr.bf16.mxu1 %v3431_v40 }
 0x10f   :  { %2869 = vmatpush1.bf16.msra.mxu1 %v3387_v41 }
 0x110   :  { %2392 = vmatpush1.bf16.msra.mxu0 %v3387_v41  ;;  %2854 = vmatprep.subr.bf16.mxu1 %v3392_v42 }
 0x111   :  { %2393 = vmatprep.subr.bf16.mxu0 %v3392_v42 }
 0x113   :  { %2870 = vmatpush1.bf16.msra.mxu1 %v3390_v43 }
 0x114   :  { %2394 = vmatpush1.bf16.msra.mxu0 %v3390_v43  ;;  %2855 = vmatprep.subr.bf16.mxu1 %v3395_v44 }
 0x115   :  { %2395 = vmatprep.subr.bf16.mxu0 %v3395_v44 }
 0x117   :  { %2871 = vmatpush1.bf16.msra.mxu1 %v3393_v45 }
 0x118   :  { %2396 = vmatpush1.bf16.msra.mxu0 %v3393_v45  ;;  %2856 = vmatprep.subr.bf16.mxu1 %v3398_v46 }
 0x119   :  { %2397 = vmatprep.subr.bf16.mxu0 %v3398_v46 }
 0x11b   :  { %2872 = vmatpush1.bf16.msra.mxu1 %v3396_v47 }
 0x11c   :  { %2398 = vmatpush1.bf16.msra.mxu0 %v3396_v47  ;;  %2857 = vmatprep.subr.bf16.mxu1 %v3401_v48 }
 0x11d   :  { %2399 = vmatprep.subr.bf16.mxu0 %v3401_v48 }
 0x11f   :  { %2873 = vmatpush1.bf16.msra.mxu1 %v3399_v49 }
 0x120   :  { %2400 = vmatpush1.bf16.msra.mxu0 %v3399_v49  ;;  %2858 = vmatprep.subr.bf16.mxu1 %v3404_v50 }
 0x121   :  { %2401 = vmatprep.subr.bf16.mxu0 %v3404_v50 }
 0x123   :  { %2874 = vmatpush1.bf16.msra.mxu1 %v3402_v51 }
 0x124   :  { %2402 = vmatpush1.bf16.msra.mxu0 %v3402_v51  ;;  %2859 = vmatprep.subr.bf16.mxu1 %v3407_v52 }
 0x125   :  { %2403 = vmatprep.subr.bf16.mxu0 %v3407_v52 }
 0x127   :  { %2875 = vmatpush1.bf16.msra.mxu1 %v3405_v53 }
 0x128   :  { %2404 = vmatpush1.bf16.msra.mxu0 %v3405_v53  ;;  %2860 = vmatprep.subr.bf16.mxu1 %v3410_v54 }
 0x129   :  { %2405 = vmatprep.subr.bf16.mxu0 %v3410_v54 }
 0x12b   :  { %2876 = vmatpush1.bf16.msra.mxu1 %v3408_v55 }
 0x12c   :  { %2406 = vmatpush1.bf16.msra.mxu0 %v3408_v55  ;;  %2861 = vmatprep.subr.bf16.mxu1 %v3413_v56 }
 0x12d   :  { %2407 = vmatprep.subr.bf16.mxu0 %v3413_v56 }
 0x12f   :  { %2877 = vmatpush1.bf16.msra.mxu1 %v3411_v57 }
 0x130   :  { %2408 = vmatpush1.bf16.msra.mxu0 %v3411_v57  ;;  %2862 = vmatprep.subr.bf16.mxu1 %v3416_v58 }
 0x131   :  { %2409 = vmatprep.subr.bf16.mxu0 %v3416_v58 }
 0x133   :  { %2878 = vmatpush1.bf16.msra.mxu1 %v3414_v59 }
 0x134   :  { %2410 = vmatpush1.bf16.msra.mxu0 %v3414_v59  ;;  %2863 = vmatprep.subr.bf16.mxu1 %v3419_v60 }
 0x135   :  { %2411 = vmatprep.subr.bf16.mxu0 %v3419_v60 }
 0x137   :  { %2879 = vmatpush1.bf16.msra.mxu1 %v3417_v61 }
 0x138   :  { %2412 = vmatpush1.bf16.msra.mxu0 %v3417_v61  ;;  %2864 = vmatprep.subr.bf16.mxu1 %v3422_v62 }
 0x139   :  { %2413 = vmatprep.subr.bf16.mxu0 %v3422_v62 }
 0x13b   :  { %2880 = vmatpush1.bf16.msra.mxu1 %v3420_v63 }
 0x13c   :  { %2414 = vmatpush1.bf16.msra.mxu0 %v3420_v63  ;;  %2865 = vmatprep.subr.bf16.mxu1 %v3425_v0 }
 0x13d   :  { %2415 = vmatprep.subr.bf16.mxu0 %v3425_v0 }
 0x13f   :  { %2881 = vmatpush1.bf16.msra.mxu1 %v3423_v1 }
 0x140   :  { %2416 = vmatpush1.bf16.msra.mxu0 %v3423_v1 }
 0x142   :  { %2428 = vmatmul.mubr.bf16.vlgmr.msra.gmra.mrb[8].mxu1 %v3429_v3 }
 0x143   :  { %2418 = vmatmul.mubr.bf16.vlgmr.msra.gmra.mrb[0].mxu0 %v3426_v2 }
 0x1d5   :  { %v2154_v4 = vpop.f32.mrb[0].mxu1 }
 0x1d6   :  { %v2156_v5 = vpop.f32.mrb[1].mxu1 }
 0x1d7   :  { %v2158_v6 = vpop.f32.mrb[2].mxu1 }
 0x1d8   :  { %v2160_v7 = vpop.f32.mrb[3].mxu1 }
 0x1dd   :  { %v2164_v8 = vpop.f32.mrb[4].mxu1 }
 0x1de   :  { %v2376_v9 = vpop.f32.mrb[4].mxu0  ;;  %v2166_v11 = vpop.f32.mrb[5].mxu1 }
 0x1df   :  { %v2886_v10 = vadd.f32 %v2376_v9, %v2164_v8  ;;  %v2378_v12 = vpop.f32.mrb[5].mxu0  ;;  %v2168_v14 = vpop.f32.mrb[6].mxu1 }
 0x1e0   :  { %v2888_v13 = vadd.f32 %v2378_v12, %v2166_v11  ;;  %v2380_v15 = vpop.f32.mrb[6].mxu0  ;;  %v2170_v17 = vpop.f32.mrb[7].mxu1 }
 0x1e1   :  { %v2890_v16 = vadd.f32 %v2380_v15, %v2168_v14  ;;  %v2382_v18 = vpop.f32.mrb[7].mxu0 }
 0x1e2   :  { %v2892_v19 = vadd.f32 %v2382_v18, %v2170_v17 }
 0x215   :  { %v2429_v28 = vpop.f32.mrb[8].mxu1 }
 0x216   :  { %v2419_v27 = vpop.f32.mrb[0].mxu0  ;;  %v2887_v32 = vadd.f32 %v2886_v10, %v2429_v28  ;;  %v2431_v34 = vpop.f32.mrb[9].mxu1 }
 0x217   :  { %v2882_v30 = vadd.f32 %v2419_v27, %v2154_v4  ;;  %v2421_v33 = vpop.f32.mrb[1].mxu0  ;;  %v2889_v37 = vadd.f32 %v2888_v13, %v2431_v34  ;;  %v2433_v39 = vpop.f32.mrb[10].mxu1 }
 0x218   :  { %v2883_v35 = vadd.f32 %v2421_v33, %v2156_v5  ;;  %v2423_v38 = vpop.f32.mrb[2].mxu0  ;;  %v2454_v41 = vmul.f32 %v2887_v32, %v2443_v26  ;;  %v2891_v43 = vadd.f32 %v2890_v16, %v2433_v39  ;;  %v2435_v45 = vpop.f32.mrb[11].mxu1 }
 0x219   :  { %v2450_v40 = vmul.f32 %v2882_v30, %v2443_v26  ;;  %v2884_v42 = vadd.f32 %v2423_v38, %v2158_v6  ;;  %v2425_v44 = vpop.f32.mrb[3].mxu0  ;;  %v2455_v47 = vmul.f32 %v2889_v37, %v2447_v29  ;;  %v2893_v49 = vadd.f32 %v2892_v19, %v2435_v45 }
 0x21a   :  { %v2451_v46 = vmul.f32 %v2883_v35, %v2447_v29  ;;  %v2885_v48 = vadd.f32 %v2425_v44, %v2160_v7  ;;  %v2474_v51 = vadd.f32 %v2463_v31, %v2454_v41  ;;  %v2456_v53 = vmul.f32 %v2891_v43, %v2443_v26 }
 0x21b   :  { %v2470_v50 = vadd.f32 %v2463_v31, %v2450_v40  ;;  %v2452_v52 = vmul.f32 %v2884_v42, %v2443_v26  ;;  %v2475_v55 = vadd.f32 %v2467_v36, %v2455_v47  ;;  %v2457_v57 = vmul.f32 %v2893_v49, %v2447_v29 }
 0x21c   :  { %v2471_v54 = vadd.f32 %v2467_v36, %v2451_v46  ;;  %v2453_v56 = vmul.f32 %v2885_v48, %v2447_v29  ;;  %v2482_v59 = vmax.f32 %v2474_v51, 0.0  ;;  %v2476_v61 = vadd.f32 %v2463_v31, %v2456_v53 }
 0x21d   :  { %v2478_v58 = vmax.f32 %v2470_v50, 0.0  ;;  %v2472_v60 = vadd.f32 %v2463_v31, %v2452_v52  ;;  %v2483_v63 = vmax.f32 %v2475_v55, 0.0  ;;  %v2477_v1 = vadd.f32 %v2467_v36, %v2457_v57 }
 0x21e   :  { %v2479_v62 = vmax.f32 %v2471_v54, 0.0  ;;  %v2473_v0 = vadd.f32 %v2467_v36, %v2453_v56  ;;  %v2484_v3 = vmax.f32 %v2476_v61, 0.0 }
 0x21f   :  { %v2480_v2 = vmax.f32 %v2472_v60, 0.0  ;;  %v2848_v5 = vpack.c.bf16 %v2483_v63, %v2482_v59  ;;  %v2485_v7 = vmax.f32 %v2477_v1, 0.0 }
 0x220   :  { %v2846_v4 = vpack.c.bf16 %v2479_v62, %v2478_v58  ;;  %v2481_v6 = vmax.f32 %v2473_v0, 0.0 }
 0x221   :  { %2512 = vst [vmem:[%s4451_s4 + $0x10] sm:$0xff] %v2848_v5  ;;  %v2849_v9 = vpack.c.bf16 %v2485_v7, %v2484_v3 }
 0x222   :  { %2510 = vst [vmem:[%s4451_s4] sm:$0xff] %v2846_v4  ;;  %v2847_v8 = vpack.c.bf16 %v2481_v6, %v2480_v2 }
 0x223   :  { %2513 = vst [vmem:[%s4451_s4 + $0x18] sm:$0xff] %v2849_v9 }
 0x224   :  { %2511 = vst [vmem:[%s4451_s4 + $0x8] sm:$0xff] %v2847_v8 }

// kernel: feature_extractor_forward.94
= control target key start
LH: loop header
LB: loop body
LE: loop exit
PB: predicated region body
PF: predicated region fallthrough
CT: control target
= control target key end

     0   :  { %s3121_s1 = inlined_call_operand.vmem [shape: bf16[2304,128], index: 1, kind: input, shape index: {}]   ;;  %s3122_s0 = inlined_call_operand.vmem [shape: bf16[32,2304], index: 0, kind: input, shape index: {}]   ;;  %s3123_s2 = inlined_call_operand.vmem [shape: f32[1,128], index: 2, kind: input, shape index: {}]   ;;  %s3124_s3 = inlined_call_operand.vmem [shape: f32[1,128], index: 3, kind: input, shape index: {}]   ;;  %s3125_s4 = inlined_call_operand.vmem [shape: bf16[32,128], index: 4, kind: output, shape index: {}]  }
   0x1   :  { %v2346_v0 = vld [vmem:[%s3121_s1 + $0x40] sm:$0xff]   ;;  %v2350_v4 = vld [vmem:[%s3121_s1 + $0x48] sm:$0xff]   ;;  %v2354_v8 = vld [vmem:[%s3121_s1 + $0x50] sm:$0xff]  }
   0x2   :  { %v2347_v1 = vld [vmem:[%s3121_s1 + $0xc0] sm:$0xff]   ;;  %2078 = vmatprep.subr.bf16.mxu0 %v2346_v0  ;;  %v2351_v5 = vld [vmem:[%s3121_s1 + $0xc8] sm:$0xff]   ;;  %v2355_v9 = vld [vmem:[%s3121_s1 + $0xd0] sm:$0xff]  }
   0x3   :  { %v2348_v2 = vld [vmem:[%s3121_s1] sm:$0xff]   ;;  %2106 = vmatprep.subr.bf16.mxu1 %v2347_v1  ;;  %v2352_v6 = vld [vmem:[%s3121_s1 + $0x8] sm:$0xff]   ;;  %v2356_v10 = vld [vmem:[%s3121_s1 + $0x10] sm:$0xff]  }
   0x4   :  { %v2349_v3 = vld [vmem:[%s3121_s1 + $0x80] sm:$0xff]   ;;  %2079 = vmatpush3.bf16.msra.mxu0 %v2348_v2  ;;  %v2353_v7 = vld [vmem:[%s3121_s1 + $0x88] sm:$0xff]   ;;  %v2357_v11 = vld [vmem:[%s3121_s1 + $0x90] sm:$0xff]  }
   0x5   :  { %2107 = vmatpush3.bf16.msra.mxu1 %v2349_v3  ;;  %2080 = vmatprep.subr.bf16.mxu0 %v2350_v4  ;;  %v2358_v12 = vld [vmem:[%s3121_s1 + $0x58] sm:$0xff]   ;;  %v2362_v16 = vld [vmem:[%s3121_s1 + $0x60] sm:$0xff]   ;;  %v2366_v20 = vld [vmem:[%s3121_s1 + $0x68] sm:$0xff]  }
   0x6   :  { %2108 = vmatprep.subr.bf16.mxu1 %v2351_v5  ;;  %v2359_v13 = vld [vmem:[%s3121_s1 + $0xd8] sm:$0xff]   ;;  %v2363_v17 = vld [vmem:[%s3121_s1 + $0xe0] sm:$0xff]   ;;  %v2367_v21 = vld [vmem:[%s3121_s1 + $0xe8] sm:$0xff]  }
   0x7   :  { %v2360_v14 = vld [vmem:[%s3121_s1 + $0x18] sm:$0xff]   ;;  %v2364_v18 = vld [vmem:[%s3121_s1 + $0x20] sm:$0xff]   ;;  %v2368_v22 = vld [vmem:[%s3121_s1 + $0x28] sm:$0xff]  }
   0x8   :  { %2081 = vmatpush3.bf16.msra.mxu0 %v2352_v6  ;;  %v2361_v15 = vld [vmem:[%s3121_s1 + $0x98] sm:$0xff]   ;;  %v2365_v19 = vld [vmem:[%s3121_s1 + $0xa0] sm:$0xff]   ;;  %v2369_v23 = vld [vmem:[%s3121_s1 + $0xa8] sm:$0xff]  }
   0x9   :  { %2109 = vmatpush3.bf16.msra.mxu1 %v2353_v7  ;;  %2082 = vmatprep.subr.bf16.mxu0 %v2354_v8  ;;  %v2370_v24 = vld [vmem:[%s3121_s1 + $0x70] sm:$0xff]   ;;  %v2374_v28 = vld [vmem:[%s3121_s1 + $0x78] sm:$0xff]   ;;  %v2378_v32 = vld [vmem:[%s3122_s0] ss:$72 sps:$4 sm:$0xff]  }
   0xa   :  { %2110 = vmatprep.subr.bf16.mxu1 %v2355_v9  ;;  %v2371_v25 = vld [vmem:[%s3121_s1 + $0xf0] sm:$0xff]   ;;  %v2375_v29 = vld [vmem:[%s3121_s1 + $0xf8] sm:$0xff]   ;;  %v2380_v33 = vld [vmem:[%s3122_s0 + $0x4] ss:$72 sps:$4 sm:$0xff]  }
   0xb   :  { %v2372_v26 = vld [vmem:[%s3121_s1 + $0x30] sm:$0xff]   ;;  %v2376_v30 = vld [vmem:[%s3121_s1 + $0x38] sm:$0xff]   ;;  %1418 = vmatprep.mubr.bf16.mxu0 %v2380_v33  ;;  %v2384_v36 = vld [vmem:[%s3121_s1 + $0x140] sm:$0xff]  }
   0xc   :  { %2083 = vmatpush3.bf16.msra.mxu0 %v2356_v10  ;;  %v2373_v27 = vld [vmem:[%s3121_s1 + $0xb0] sm:$0xff]   ;;  %v2377_v31 = vld [vmem:[%s3121_s1 + $0xb8] sm:$0xff]   ;;  %v2385_v37 = vld [vmem:[%s3121_s1 + $0x1c0] sm:$0xff]  }
   0xd   :  { %2111 = vmatpush3.bf16.msra.mxu1 %v2357_v11  ;;  %2084 = vmatprep.subr.bf16.mxu0 %v2358_v12  ;;  %v2381_v34 = vld [vmem:[%s3122_s0 + $0x8] ss:$72 sps:$4 sm:$0xff]   ;;  %v2383_v35 = vld [vmem:[%s3122_s0 + $0xc] ss:$72 sps:$4 sm:$0xff]   ;;  %v2386_v38 = vld [vmem:[%s3121_s1 + $0x100] sm:$0xff]  }
   0xe   :  { %2112 = vmatprep.subr.bf16.mxu1 %v2359_v13  ;;  %1467 = vmatprep.mubr.bf16.mxu1 %v2383_v35  ;;  %v2387_v39 = vld [vmem:[%s3121_s1 + $0x180] sm:$0xff]   ;;  %v2388_v40 = vld [vmem:[%s3121_s1 + $0x148] sm:$0xff]   ;;  %v2392_v44 = vld [vmem:[%s3121_s1 + $0x150] sm:$0xff]  }
   0xf   :  { %v2389_v41 = vld [vmem:[%s3121_s1 + $0x1c8] sm:$0xff]   ;;  %v2393_v45 = vld [vmem:[%s3121_s1 + $0x1d0] sm:$0xff]   ;;  %v2396_v48 = vld [vmem:[%s3121_s1 + $0x158] sm:$0xff]  }
  0x10   :  { %2085 = vmatpush3.bf16.msra.mxu0 %v2360_v14  ;;  %v2390_v42 = vld [vmem:[%s3121_s1 + $0x108] sm:$0xff]   ;;  %v2394_v46 = vld [vmem:[%s3121_s1 + $0x110] sm:$0xff]   ;;  %v2397_v49 = vld [vmem:[%s3121_s1 + $0x1d8] sm:$0xff]  }
  0x11   :  { %2113 = vmatpush3.bf16.msra.mxu1 %v2361_v15  ;;  %2086 = vmatprep.subr.bf16.mxu0 %v2362_v16  ;;  %v2391_v43 = vld [vmem:[%s3121_s1 + $0x188] sm:$0xff]   ;;  %v2395_v47 = vld [vmem:[%s3121_s1 + $0x190] sm:$0xff]   ;;  %v2398_v50 = vld [vmem:[%s3121_s1 + $0x118] sm:$0xff]  }
  0x12   :  { %2114 = vmatprep.subr.bf16.mxu1 %v2363_v17  ;;  %v2399_v51 = vld [vmem:[%s3121_s1 + $0x198] sm:$0xff]   ;;  %v2400_v52 = vld [vmem:[%s3121_s1 + $0x160] sm:$0xff]   ;;  %v2404_v56 = vld [vmem:[%s3121_s1 + $0x168] sm:$0xff]  }
  0x13   :  { %v2401_v53 = vld [vmem:[%s3121_s1 + $0x1e0] sm:$0xff]   ;;  %v2405_v57 = vld [vmem:[%s3121_s1 + $0x1e8] sm:$0xff]   ;;  %v2406_v58 = vld [vmem:[%s3122_s0 + $0x94] ss:$72 sps:$4 sm:$0xff]  }
  0x14   :  { %2087 = vmatpush3.bf16.msra.mxu0 %v2364_v18  ;;  %v2402_v54 = vld [vmem:[%s3121_s1 + $0x120] sm:$0xff]   ;;  %v2410_v60 = vld [vmem:[%s3121_s1 + $0x128] sm:$0xff]   ;;  %v2412_v62 = vld [vmem:[%s3122_s0 + $0x90] ss:$72 sps:$4 sm:$0xff]  }
  0x15   :  { %2115 = vmatpush3.bf16.msra.mxu1 %v2365_v19  ;;  %2088 = vmatprep.subr.bf16.mxu0 %v2366_v20  ;;  %v2403_v55 = vld [vmem:[%s3121_s1 + $0x1a0] sm:$0xff]   ;;  %v2411_v61 = vld [vmem:[%s3121_s1 + $0x1a8] sm:$0xff]   ;;  %v2414_v0 = vld [vmem:[%s3121_s1 + $0x170] sm:$0xff]  }
  0x16   :  { %2116 = vmatprep.subr.bf16.mxu1 %v2367_v21  ;;  %v2408_v59 = vld [vmem:[%s3122_s0 + $0x9c] ss:$72 sps:$4 sm:$0xff]   ;;  %v2413_v63 = vld [vmem:[%s3122_s0 + $0x98] ss:$72 sps:$4 sm:$0xff]   ;;  %v2415_v1 = vld [vmem:[%s3121_s1 + $0x1f0] sm:$0xff]  }
  0x17   :  { %v2416_v2 = vld [vmem:[%s3121_s1 + $0x130] sm:$0xff]   ;;  %v2418_v4 = vld [vmem:[%s3121_s1 + $0x178] sm:$0xff]   ;;  %v2428_v12 = vld [vmem:[%s3121_s1 + $0x240] sm:$0xff]  }
  0x18   :  { %2089 = vmatpush3.bf16.msra.mxu0 %v2368_v22  ;;  %v2417_v3 = vld [vmem:[%s3121_s1 + $0x1b0] sm:$0xff]   ;;  %v2419_v5 = vld [vmem:[%s3121_s1 + $0x1f8] sm:$0xff]   ;;  %v2429_v13 = vld [vmem:[%s3121_s1 + $0x2c0] sm:$0xff]  }
  0x19   :  { %2117 = vmatpush3.bf16.msra.mxu1 %v2369_v23  ;;  %2090 = vmatprep.subr.bf16.mxu0 %v2370_v24  ;;  %v2420_v6 = vld [vmem:[%s3121_s1 + $0x138] sm:$0xff]   ;;  %v2430_v14 = vld [vmem:[%s3121_s1 + $0x200] sm:$0xff]   ;;  %v2432_v16 = vld [vmem:[%s3121_s1 + $0x248] sm:$0xff]  }
  0x1a   :  { %2118 = vmatprep.subr.bf16.mxu1 %v2371_v25  ;;  %v2421_v7 = vld [vmem:[%s3121_s1 + $0x1b8] sm:$0xff]   ;;  %v2431_v15 = vld [vmem:[%s3121_s1 + $0x280] sm:$0xff]   ;;  %v2433_v17 = vld [vmem:[%s3121_s1 + $0x2c8] sm:$0xff]  }
  0x1b   :  { %v2422_v8 = vld [vmem:[%s3122_s0 + $0x10] ss:$72 sps:$4 sm:$0xff]   ;;  %v2424_v9 = vld [vmem:[%s3122_s0 + $0x14] ss:$72 sps:$4 sm:$0xff]   ;;  %v2434_v18 = vld [vmem:[%s3121_s1 + $0x208] sm:$0xff]  }
  0x1c   :  { %2091 = vmatpush3.bf16.msra.mxu0 %v2372_v26  ;;  %v2425_v10 = vld [vmem:[%s3122_s0 + $0x18] ss:$72 sps:$4 sm:$0xff]   ;;  %v2427_v11 = vld [vmem:[%s3122_s0 + $0x1c] ss:$72 sps:$4 sm:$0xff]   ;;  %v2435_v19 = vld [vmem:[%s3121_s1 + $0x288] sm:$0xff]  }
  0x1d   :  { %2119 = vmatpush3.bf16.msra.mxu1 %v2373_v27  ;;  %2092 = vmatprep.subr.bf16.mxu0 %v2374_v28  ;;  %v2436_v20 = vld [vmem:[%s3122_s0 + $0xa4] ss:$72 sps:$4 sm:$0xff]   ;;  %v2438_v21 = vld [vmem:[%s3122_s0 + $0xa0] ss:$72 sps:$4 sm:$0xff]   ;;  %v2439_v22 = vld [vmem:[%s3121_s1 + $0x250] sm:$0xff]  }
  0x1e   :  { %2120 = vmatprep.subr.bf16.mxu1 %v2375_v29  ;;  %v2440_v23 = vld [vmem:[%s3121_s1 + $0x2d0] sm:$0xff]   ;;  %v2446_v28 = vld [vmem:[%s3121_s1 + $0x258] sm:$0xff]   ;;  %v2451_v33 = vld [vmem:[%s3121_s1 + $0x2e0] sm:$0xff]  }
  0x1f   :  { %v2441_v24 = vld [vmem:[%s3122_s0 + $0xac] ss:$72 sps:$4 sm:$0xff]   ;;  %v2445_v27 = vld [vmem:[%s3122_s0 + $0xa8] ss:$72 sps:$4 sm:$0xff]   ;;  %v2447_v29 = vld [vmem:[%s3121_s1 + $0x2d8] sm:$0xff]  }
  0x20   :  { %2093 = vmatpush3.bf16.msra.mxu0 %v2376_v30  ;;  %v2443_v25 = vld [vmem:[%s3121_s1 + $0x210] sm:$0xff]   ;;  %v2448_v30 = vld [vmem:[%s3121_s1 + $0x218] sm:$0xff]   ;;  %v2453_v35 = vld [vmem:[%s3121_s1 + $0x2a0] sm:$0xff]  }
  0x21   :  { %2121 = vmatpush3.bf16.msra.mxu1 %v2377_v31  ;;  %2134 = vmatprep.subr.bf16.mxu0 %v2384_v36  ;;  %v2444_v26 = vld [vmem:[%s3121_s1 + $0x290] sm:$0xff]   ;;  %v2449_v31 = vld [vmem:[%s3121_s1 + $0x298] sm:$0xff]   ;;  %v2454_v36 = vld [vmem:[%s3121_s1 + $0x268] sm:$0xff]  }
  0x22   :  { %2162 = vmatprep.subr.bf16.mxu1 %v2385_v37  ;;  %v2455_v37 = vld [vmem:[%s3121_s1 + $0x2e8] sm:$0xff]  }
  0x23   :  { %1419 = vmatmul.mubr.bf16.vlgmr.msra.gmra.mrb[0].mxu0 %v2378_v32  ;;  %v2450_v32 = vld [vmem:[%s3121_s1 + $0x260] sm:$0xff]  }
  0x24   :  { %1468 = vmatmul.mubr.bf16.vlgmr.msra.gmra.mrb[0].mxu1 %v2381_v34  ;;  %2135 = vmatpush3.bf16.msra.mxu0 %v2386_v38  ;;  %v2452_v34 = vld [vmem:[%s3121_s1 + $0x220] sm:$0xff]   ;;  %v2456_v38 = vld [vmem:[%s3121_s1 + $0x228] sm:$0xff]  }
  0x25   :  { %2163 = vmatpush3.bf16.msra.mxu1 %v2387_v39  ;;  %2136 = vmatprep.subr.bf16.mxu0 %v2388_v40  ;;  %v2457_v39 = vld [vmem:[%s3121_s1 + $0x2a8] sm:$0xff]   ;;  %v2458_v40 = vld [vmem:[%s3121_s1 + $0x270] sm:$0xff]  }
  0x26   :  { %2164 = vmatprep.subr.bf16.mxu1 %v2389_v41  ;;  %1426 = vmatprep.mubr.bf16.mxu0 %v2406_v58  ;;  %v2459_v41 = vld [vmem:[%s3121_s1 + $0x2f0] sm:$0xff]   ;;  %v2478_v58 = vld [vmem:[%s3121_s1 + $0x308] sm:$0xff]  }
  0x27   :  { %1475 = vmatprep.mubr.bf16.mxu1 %v2408_v59  ;;  %v2479_v59 = vld [vmem:[%s3121_s1 + $0x388] sm:$0xff]  }
  0x28   :  { %2137 = vmatpush3.bf16.msra.mxu0 %v2390_v42  ;;  %v2460_v42 = vld [vmem:[%s3121_s1 + $0x230] sm:$0xff]  }
  0x29   :  { %2165 = vmatpush3.bf16.msra.mxu1 %v2391_v43  ;;  %2138 = vmatprep.subr.bf16.mxu0 %v2392_v44  ;;  %v2461_v43 = vld [vmem:[%s3121_s1 + $0x2b0] sm:$0xff]   ;;  %v2462_v44 = vld [vmem:[%s3121_s1 + $0x278] sm:$0xff]  }
  0x2a   :  { %2166 = vmatprep.subr.bf16.mxu1 %v2393_v45  ;;  %v2463_v45 = vld [vmem:[%s3121_s1 + $0x2f8] sm:$0xff]  }
  0x2b   :  { %1427 = vmatmul.mubr.bf16.gmra.mrb[4].mxu0 %v2412_v62  ;;  %v2483_v62 = vld [vmem:[%s3121_s1 + $0x350] sm:$0xff]  }
  0x2c   :  { %2139 = vmatpush3.bf16.msra.mxu0 %v2394_v46  ;;  %1476 = vmatmul.mubr.bf16.gmra.mrb[4].mxu1 %v2413_v63  ;;  %v2464_v46 = vld [vmem:[%s3121_s1 + $0x238] sm:$0xff]   ;;  %v2484_v63 = vld [vmem:[%s3121_s1 + $0x3d0] sm:$0xff]  }
  0x2d   :  { %2167 = vmatpush3.bf16.msra.mxu1 %v2395_v47  ;;  %2140 = vmatprep.subr.bf16.mxu0 %v2396_v48  ;;  %v2465_v47 = vld [vmem:[%s3121_s1 + $0x2b8] sm:$0xff]   ;;  %v2466_v48 = vld [vmem:[%s3122_s0 + $0x20] ss:$72 sps:$4 sm:$0xff]  }
  0x2e   :  { %2168 = vmatprep.subr.bf16.mxu1 %v2397_v49  ;;  %1516 = vmatprep.mubr.bf16.mxu0 %v2424_v9  ;;  %v2468_v49 = vld [vmem:[%s3122_s0 + $0x24] ss:$72 sps:$4 sm:$0xff]  }
  0x2f   :  { %1565 = vmatprep.mubr.bf16.mxu1 %v2427_v11  ;;  %v2495_v9 = vld [vmem:[%s3121_s1 + $0x3e0] sm:$0xff]  }
  0x30   :  { %2141 = vmatpush3.bf16.msra.mxu0 %v2398_v50  ;;  %v2469_v50 = vld [vmem:[%s3122_s0 + $0x28] ss:$72 sps:$4 sm:$0xff]   ;;  %v2497_v11 = vld [vmem:[%s3121_s1 + $0x3a0] sm:$0xff]  }
  0x31   :  { %2169 = vmatpush3.bf16.msra.mxu1 %v2399_v51  ;;  %2142 = vmatprep.subr.bf16.mxu0 %v2400_v52  ;;  %v2471_v51 = vld [vmem:[%s3122_s0 + $0x2c] ss:$72 sps:$4 sm:$0xff]   ;;  %v2472_v52 = vld [vmem:[%s3121_s1 + $0x340] sm:$0xff]  }
  0x32   :  { %2170 = vmatprep.subr.bf16.mxu1 %v2401_v53  ;;  %v2473_v53 = vld [vmem:[%s3121_s1 + $0x3c0] sm:$0xff]  }
  0x34   :  { %2143 = vmatpush3.bf16.msra.mxu0 %v2402_v54  ;;  %v2474_v54 = vld [vmem:[%s3121_s1 + $0x300] sm:$0xff]  }
  0x35   :  { %2171 = vmatpush3.bf16.msra.mxu1 %v2403_v55  ;;  %2144 = vmatprep.subr.bf16.mxu0 %v2404_v56  ;;  %v2475_v55 = vld [vmem:[%s3121_s1 + $0x380] sm:$0xff]   ;;  %v2476_v56 = vld [vmem:[%s3121_s1 + $0x348] sm:$0xff]  }
  0x36   :  { %2172 = vmatprep.subr.bf16.mxu1 %v2405_v57  ;;  %v2477_v57 = vld [vmem:[%s3121_s1 + $0x3c8] sm:$0xff]  }
  0x38   :  { %2145 = vmatpush3.bf16.msra.mxu0 %v2410_v60  ;;  %v2480_v60 = vld [vmem:[%s3122_s0 + $0xb4] ss:$72 sps:$4 sm:$0xff]  }
  0x39   :  { %2173 = vmatpush3.bf16.msra.mxu1 %v2411_v61  ;;  %2146 = vmatprep.subr.bf16.mxu0 %v2414_v0  ;;  %v2482_v61 = vld [vmem:[%s3122_s0 + $0xb0] ss:$72 sps:$4 sm:$0xff]   ;;  %v2485_v0 = vld [vmem:[%s3122_s0 + $0xbc] ss:$72 sps:$4 sm:$0xff]  }
  0x3a   :  { %2174 = vmatprep.subr.bf16.mxu1 %v2415_v1  ;;  %v2487_v1 = vld [vmem:[%s3121_s1 + $0x310] sm:$0xff]  }
  0x3c   :  { %2147 = vmatpush3.bf16.msra.mxu0 %v2416_v2  ;;  %v2488_v2 = vld [vmem:[%s3121_s1 + $0x390] sm:$0xff]  }
  0x3d   :  { %2175 = vmatpush3.bf16.msra.mxu1 %v2417_v3  ;;  %2148 = vmatprep.subr.bf16.mxu0 %v2418_v4  ;;  %v2489_v3 = vld [vmem:[%s3122_s0 + $0xb8] ss:$72 sps:$4 sm:$0xff]  }
  0x3e   :  { %2176 = vmatprep.subr.bf16.mxu1 %v2419_v5  ;;  %v2490_v4 = vld [vmem:[%s3121_s1 + $0x358] sm:$0xff]  }
  0x3f   :  { %v2491_v5 = vld [vmem:[%s3121_s1 + $0x3d8] sm:$0xff]  }
  0x40   :  { %2149 = vmatpush3.bf16.msra.mxu0 %v2420_v6  ;;  %v2492_v6 = vld [vmem:[%s3121_s1 + $0x318] sm:$0xff]  }
  0x41   :  { %2177 = vmatpush3.bf16.msra.mxu1 %v2421_v7  ;;  %2190 = vmatprep.subr.bf16.mxu0 %v2428_v12  ;;  %v2493_v7 = vld [vmem:[%s3121_s1 + $0x398] sm:$0xff]   ;;  %v2498_v12 = vld [vmem:[%s3121_s1 + $0x368] sm:$0xff]  }
  0x42   :  { %2218 = vmatprep.subr.bf16.mxu1 %v2429_v13  ;;  %v2499_v13 = vld [vmem:[%s3121_s1 + $0x3e8] sm:$0xff]  }
  0x43   :  { %1517 = vmatmul.mubr.bf16.vlgmr.msra.gmra.mrb[8].mxu0 %v2422_v8  ;;  %v2494_v8 = vld [vmem:[%s3121_s1 + $0x360] sm:$0xff]  }
  0x44   :  { %1566 = vmatmul.mubr.bf16.vlgmr.msra.gmra.mrb[8].mxu1 %v2425_v10  ;;  %2191 = vmatpush3.bf16.msra.mxu0 %v2430_v14  ;;  %v2496_v10 = vld [vmem:[%s3121_s1 + $0x320] sm:$0xff]   ;;  %v2500_v14 = vld [vmem:[%s3121_s1 + $0x328] sm:$0xff]  }
  0x45   :  { %2219 = vmatpush3.bf16.msra.mxu1 %v2431_v15  ;;  %2192 = vmatprep.subr.bf16.mxu0 %v2432_v16  ;;  %v2501_v15 = vld [vmem:[%s3121_s1 + $0x3a8] sm:$0xff]   ;;  %v2502_v16 = vld [vmem:[%s3121_s1 + $0x370] sm:$0xff]  }
  0x46   :  { %2220 = vmatprep.subr.bf16.mxu1 %v2433_v17  ;;  %1524 = vmatprep.mubr.bf16.mxu0 %v2436_v20  ;;  %v2503_v17 = vld [vmem:[%s3121_s1 + $0x3f0] sm:$0xff]   ;;  %v2506_v20 = vld [vmem:[%s3121_s1 + $0x378] sm:$0xff]  }
  0x47   :  { %1573 = vmatprep.mubr.bf16.mxu1 %v2441_v24  ;;  %v2510_v24 = vld [vmem:[%s3122_s0 + $0x30] ss:$72 sps:$4 sm:$0xff]  }
  0x48   :  { %2193 = vmatpush3.bf16.msra.mxu0 %v2434_v18  ;;  %v2504_v18 = vld [vmem:[%s3121_s1 + $0x330] sm:$0xff]  }
  0x49   :  { %2221 = vmatpush3.bf16.msra.mxu1 %v2435_v19  ;;  %2194 = vmatprep.subr.bf16.mxu0 %v2439_v22  ;;  %v2505_v19 = vld [vmem:[%s3121_s1 + $0x3b0] sm:$0xff]   ;;  %v2508_v22 = vld [vmem:[%s3121_s1 + $0x338] sm:$0xff]  }
  0x4a   :  { %2222 = vmatprep.subr.bf16.mxu1 %v2440_v23  ;;  %v2509_v23 = vld [vmem:[%s3121_s1 + $0x3b8] sm:$0xff]  }
  0x4b   :  { %1525 = vmatmul.mubr.bf16.gmra.mrb[12].mxu0 %v2438_v21  ;;  %v2507_v21 = vld [vmem:[%s3121_s1 + $0x3f8] sm:$0xff]  }
  0x4c   :  { %2195 = vmatpush3.bf16.msra.mxu0 %v2443_v25  ;;  %1574 = vmatmul.mubr.bf16.gmra.mrb[12].mxu1 %v2445_v27  ;;  %v2512_v25 = vld [vmem:[%s3122_s0 + $0x34] ss:$72 sps:$4 sm:$0xff]  }
  0x4d   :  { %2223 = vmatpush3.bf16.msra.mxu1 %v2444_v26  ;;  %2196 = vmatprep.subr.bf16.mxu0 %v2446_v28  ;;  %v2513_v26 = vld [vmem:[%s3122_s0 + $0x38] ss:$72 sps:$4 sm:$0xff]   ;;  %v2515_v27 = vld [vmem:[%s3122_s0 + $0x3c] ss:$72 sps:$4 sm:$0xff]  }
  0x4e   :  { %2224 = vmatprep.subr.bf16.mxu1 %v2447_v29  ;;  %1614 = vmatprep.mubr.bf16.mxu0 %v2468_v49  ;;  %v2516_v28 = vld [vmem:[%s3121_s1 + $0x440] sm:$0xff]   ;;  %v2537_v49 = vld [vmem:[%s3121_s1 + $0x438] sm:$0xff]  }
  0x4f   :  { %1663 = vmatprep.mubr.bf16.mxu1 %v2471_v51  ;;  %v2517_v29 = vld [vmem:[%s3121_s1 + $0x400] sm:$0xff]   ;;  %v2541_v51 = vld [vmem:[%s3122_s0 + $0xd0] ss:$72 sps:$4 sm:$0xff]  }
  0x50   :  { %2197 = vmatpush3.bf16.msra.mxu0 %v2448_v30  ;;  %v2518_v30 = vld [vmem:[%s3121_s1 + $0x448] sm:$0xff]  }
  0x51   :  { %2225 = vmatpush3.bf16.msra.mxu1 %v2449_v31  ;;  %2198 = vmatprep.subr.bf16.mxu0 %v2450_v32  ;;  %v2519_v31 = vld [vmem:[%s3121_s1 + $0x408] sm:$0xff]  }
  0x52   :  { %2226 = vmatprep.subr.bf16.mxu1 %v2451_v33  ;;  %v2520_v32 = vld [vmem:[%s3122_s0 + $0xc4] ss:$72 sps:$4 sm:$0xff]   ;;  %v2522_v33 = vld [vmem:[%s3122_s0 + $0xc0] ss:$72 sps:$4 sm:$0xff]  }
  0x54   :  { %2199 = vmatpush3.bf16.msra.mxu0 %v2452_v34  ;;  %v2523_v34 = vld [vmem:[%s3121_s1 + $0x450] sm:$0xff]  }
  0x55   :  { %2227 = vmatpush3.bf16.msra.mxu1 %v2453_v35  ;;  %2200 = vmatprep.subr.bf16.mxu0 %v2454_v36  ;;  %v2524_v35 = vld [vmem:[%s3122_s0 + $0xcc] ss:$72 sps:$4 sm:$0xff]  }
  0x56   :  { %2228 = vmatprep.subr.bf16.mxu1 %v2455_v37  ;;  %v2526_v36 = vld [vmem:[%s3121_s1 + $0x410] sm:$0xff]  }
  0x57   :  { %v2527_v37 = vld [vmem:[%s3122_s0 + $0xc8] ss:$72 sps:$4 sm:$0xff]  }
  0x58   :  { %2201 = vmatpush3.bf16.msra.mxu0 %v2456_v38  ;;  %v2528_v38 = vld [vmem:[%s3121_s1 + $0x458] sm:$0xff]  }
  0x59   :  { %2229 = vmatpush3.bf16.msra.mxu1 %v2457_v39  ;;  %2202 = vmatprep.subr.bf16.mxu0 %v2458_v40  ;;  %v2529_v39 = vld [vmem:[%s3121_s1 + $0x418] sm:$0xff]   ;;  %v2530_v40 = vld [vmem:[%s3121_s1 + $0x460] sm:$0xff]  }
  0x5a   :  { %2230 = vmatprep.subr.bf16.mxu1 %v2459_v41  ;;  %v2531_v41 = vld [vmem:[%s3121_s1 + $0x420] sm:$0xff]  }
  0x5c   :  { %2203 = vmatpush3.bf16.msra.mxu0 %v2460_v42  ;;  %v2532_v42 = vld [vmem:[%s3121_s1 + $0x468] sm:$0xff]  }
  0x5d   :  { %2231 = vmatpush3.bf16.msra.mxu1 %v2461_v43  ;;  %2204 = vmatprep.subr.bf16.mxu0 %v2462_v44  ;;  %v2533_v43 = vld [vmem:[%s3121_s1 + $0x428] sm:$0xff]  }
  0x5e   :  { %2232 = vmatprep.subr.bf16.mxu1 %v2463_v45  ;;  %v2540_v44 = vld [vmem:[%s3122_s0 + $0x44] ss:$72 sps:$4 sm:$0xff]   ;;  %v2534_v45 = vld [vmem:[%s3121_s1 + $0x470] sm:$0xff]  }
  0x60   :  { %2205 = vmatpush3.bf16.msra.mxu0 %v2464_v46  ;;  %v2543_v46 = vld [vmem:[%s3122_s0 + $0xd4] ss:$72 sps:$4 sm:$0xff]  }
  0x61   :  { %2233 = vmatpush3.bf16.msra.mxu1 %v2465_v47  ;;  %2246 = vmatprep.subr.bf16.mxu0 %v2472_v52  ;;  %v2535_v47 = vld [vmem:[%s3121_s1 + $0x430] sm:$0xff]  }
  0x62   :  { %2274 = vmatprep.subr.bf16.mxu1 %v2473_v53 }
  0x63   :  { %1615 = vmatmul.mubr.bf16.vlgmr.msra.gmra.mrb[16].mxu0 %v2466_v48  ;;  %v2536_v48 = vld [vmem:[%s3121_s1 + $0x478] sm:$0xff]  }
  0x64   :  { %1664 = vmatmul.mubr.bf16.vlgmr.msra.gmra.mrb[16].mxu1 %v2469_v50  ;;  %2247 = vmatpush3.bf16.msra.mxu0 %v2474_v54  ;;  %v2538_v50 = vld [vmem:[%s3122_s0 + $0x40] ss:$72 sps:$4 sm:$0xff]  }
  0x65   :  { %2275 = vmatpush3.bf16.msra.mxu1 %v2475_v55  ;;  %2248 = vmatprep.subr.bf16.mxu0 %v2476_v56 }
  0x66   :  { %2276 = vmatprep.subr.bf16.mxu1 %v2477_v57  ;;  %1622 = vmatprep.mubr.bf16.mxu0 %v2480_v60 }
  0x67   :  { %1671 = vmatprep.mubr.bf16.mxu1 %v2485_v0 }
  0x68   :  { %2249 = vmatpush3.bf16.msra.mxu0 %v2478_v58 }
  0x69   :  { %2277 = vmatpush3.bf16.msra.mxu1 %v2479_v59  ;;  %2250 = vmatprep.subr.bf16.mxu0 %v2483_v62 }
  0x6a   :  { %2278 = vmatprep.subr.bf16.mxu1 %v2484_v63 }
  0x6b   :  { %1623 = vmatmul.mubr.bf16.gmra.mrb[20].mxu0 %v2482_v61 }
  0x6c   :  { %2251 = vmatpush3.bf16.msra.mxu0 %v2487_v1  ;;  %1672 = vmatmul.mubr.bf16.gmra.mrb[20].mxu1 %v2489_v3 }
  0x6d   :  { %2279 = vmatpush3.bf16.msra.mxu1 %v2488_v2  ;;  %2252 = vmatprep.subr.bf16.mxu0 %v2490_v4 }
  0x6e   :  { %2280 = vmatprep.subr.bf16.mxu1 %v2491_v5  ;;  %1712 = vmatprep.mubr.bf16.mxu0 %v2512_v25 }
  0x6f   :  { %1761 = vmatprep.mubr.bf16.mxu1 %v2515_v27 }
  0x70   :  { %2253 = vmatpush3.bf16.msra.mxu0 %v2492_v6 }
  0x71   :  { %2281 = vmatpush3.bf16.msra.mxu1 %v2493_v7  ;;  %2254 = vmatprep.subr.bf16.mxu0 %v2494_v8 }
  0x72   :  { %2282 = vmatprep.subr.bf16.mxu1 %v2495_v9 }
  0x74   :  { %2255 = vmatpush3.bf16.msra.mxu0 %v2496_v10 }
  0x75   :  { %2283 = vmatpush3.bf16.msra.mxu1 %v2497_v11  ;;  %2256 = vmatprep.subr.bf16.mxu0 %v2498_v12 }
  0x76   :  { %2284 = vmatprep.subr.bf16.mxu1 %v2499_v13 }
  0x78   :  { %2257 = vmatpush3.bf16.msra.mxu0 %v2500_v14 }
  0x79   :  { %2285 = vmatpush3.bf16.msra.mxu1 %v2501_v15  ;;  %2258 = vmatprep.subr.bf16.mxu0 %v2502_v16 }
  0x7a   :  { %2286 = vmatprep.subr.bf16.mxu1 %v2503_v17 }
  0x7c   :  { %2259 = vmatpush3.bf16.msra.mxu0 %v2504_v18 }
  0x7d   :  { %2287 = vmatpush3.bf16.msra.mxu1 %v2505_v19  ;;  %2260 = vmatprep.subr.bf16.mxu0 %v2506_v20 }
  0x7e   :  { %2288 = vmatprep.subr.bf16.mxu1 %v2507_v21 }
  0x80   :  { %2261 = vmatpush3.bf16.msra.mxu0 %v2508_v22 }
  0x81   :  { %2289 = vmatpush3.bf16.msra.mxu1 %v2509_v23  ;;  %2302 = vmatprep.subr.bf16.mxu0 %v2516_v28 }
  0x82   :  { %2330 = vmatprep.subr.bf16.mxu1 %v2516_v28 }
  0x83   :  { %1713 = vmatmul.mubr.bf16.vlgmr.msra.gmra.mrb[24].mxu0 %v2510_v24 }
  0x84   :  { %1762 = vmatmul.mubr.bf16.vlgmr.msra.gmra.mrb[24].mxu1 %v2513_v26  ;;  %2303 = vmatpush3.bf16.msra.mxu0 %v2517_v29 }
  0x85   :  { %2338 = vmatpush3.bf16.msra.mxu1 %v2517_v29  ;;  %2304 = vmatprep.subr.bf16.mxu0 %v2518_v30 }
  0x86   :  { %2331 = vmatprep.subr.bf16.mxu1 %v2518_v30  ;;  %1720 = vmatprep.mubr.bf16.mxu0 %v2520_v32 }
  0x87   :  { %1769 = vmatprep.mubr.bf16.mxu1 %v2524_v35 }
  0x88   :  { %2305 = vmatpush3.bf16.msra.mxu0 %v2519_v31 }
  0x89   :  { %2339 = vmatpush3.bf16.msra.mxu1 %v2519_v31  ;;  %2306 = vmatprep.subr.bf16.mxu0 %v2523_v34 }
  0x8a   :  { %2332 = vmatprep.subr.bf16.mxu1 %v2523_v34 }
  0x8b   :  { %1721 = vmatmul.mubr.bf16.gmra.mrb[28].mxu0 %v2522_v33 }
  0x8c   :  { %2307 = vmatpush3.bf16.msra.mxu0 %v2526_v36  ;;  %1770 = vmatmul.mubr.bf16.gmra.mrb[28].mxu1 %v2527_v37 }
  0x8d   :  { %2340 = vmatpush3.bf16.msra.mxu1 %v2526_v36  ;;  %2308 = vmatprep.subr.bf16.mxu0 %v2528_v38 }
  0x8e   :  { %2333 = vmatprep.subr.bf16.mxu1 %v2528_v38  ;;  %1810 = vmatprep.mubr.bf16.mxu0 %v2540_v44 }
  0x8f   :  { %1818 = vmatprep.mubr.bf16.mxu1 %v2543_v46 }
  0x90   :  { %2309 = vmatpush3.bf16.msra.mxu0 %v2529_v39 }
  0x91   :  { %2341 = vmatpush3.bf16.msra.mxu1 %v2529_v39  ;;  %2310 = vmatprep.subr.bf16.mxu0 %v2530_v40 }
  0x92   :  { %2334 = vmatprep.subr.bf16.mxu1 %v2530_v40 }
  0x94   :  { %2311 = vmatpush3.bf16.msra.mxu0 %v2531_v41 }
  0x95   :  { %2342 = vmatpush3.bf16.msra.mxu1 %v2531_v41  ;;  %2312 = vmatprep.subr.bf16.mxu0 %v2532_v42 }
  0x96   :  { %2335 = vmatprep.subr.bf16.mxu1 %v2532_v42 }
  0x98   :  { %2313 = vmatpush3.bf16.msra.mxu0 %v2533_v43 }
  0x99   :  { %2343 = vmatpush3.bf16.msra.mxu1 %v2533_v43  ;;  %2314 = vmatprep.subr.bf16.mxu0 %v2534_v45 }
  0x9a   :  { %2336 = vmatprep.subr.bf16.mxu1 %v2534_v45 }
  0x9c   :  { %2315 = vmatpush3.bf16.msra.mxu0 %v2535_v47 }
  0x9d   :  { %2344 = vmatpush3.bf16.msra.mxu1 %v2535_v47  ;;  %2316 = vmatprep.subr.bf16.mxu0 %v2536_v48 }
  0x9e   :  { %2337 = vmatprep.subr.bf16.mxu1 %v2536_v48 }
  0xa0   :  { %2317 = vmatpush3.bf16.msra.mxu0 %v2537_v49 }
  0xa1   :  { %2345 = vmatpush3.bf16.msra.mxu1 %v2537_v49 }
  0xa3   :  { %1811 = vmatmul.mubr.bf16.vlgmr.msra.gmra.mrb[32].mxu0 %v2538_v50 }
  0xa4   :  { %1819 = vmatmul.mubr.bf16.vlgmr.msra.gmra.mrb[32].mxu1 %v2541_v51 }
  0xf6   :  { %v2094_v52 = vpop.f32.mrb[0].mxu0 }
  0xf7   :  { %v2122_v53 = vpop.f32.mrb[0].mxu1  ;;  %v2095_v54 = vpop.f32.mrb[1].mxu0 }
  0xf8   :  { %v2096_v55 = vadd.f32 %v2095_v54, %v2094_v52  ;;  %v2123_v56 = vpop.f32.mrb[1].mxu1  ;;  %v2097_v57 = vpop.f32.mrb[2].mxu0 }
  0xf9   :  { %v2124_v58 = vadd.f32 %v2123_v56, %v2122_v53  ;;  %v2125_v59 = vpop.f32.mrb[2].mxu1  ;;  %v2098_v60 = vpop.f32.mrb[3].mxu0 }
  0xfa   :  { %v2099_v61 = vadd.f32 %v2098_v60, %v2097_v57  ;;  %v2126_v62 = vpop.f32.mrb[3].mxu1 }
  0xfb   :  { %v1470_v63 = vadd.f32 %v2124_v58, %v2096_v55  ;;  %v2127_v0 = vadd.f32 %v2126_v62, %v2125_v59 }
  0xfd   :  { %v1473_v1 = vadd.f32 %v2127_v0, %v2099_v61 }
  0xfe   :  { %v2100_v2 = vpop.f32.mrb[4].mxu0 }
  0xff   :  { %v2128_v3 = vpop.f32.mrb[4].mxu1  ;;  %v2101_v4 = vpop.f32.mrb[5].mxu0 }
 0x100   :  { %v2102_v5 = vadd.f32 %v2101_v4, %v2100_v2  ;;  %v2129_v6 = vpop.f32.mrb[5].mxu1  ;;  %v2103_v7 = vpop.f32.mrb[6].mxu0 }
 0x101   :  { %v2130_v8 = vadd.f32 %v2129_v6, %v2128_v3  ;;  %v2131_v9 = vpop.f32.mrb[6].mxu1  ;;  %v2104_v10 = vpop.f32.mrb[7].mxu0 }
 0x102   :  { %v2105_v11 = vadd.f32 %v2104_v10, %v2103_v7  ;;  %v2132_v12 = vpop.f32.mrb[7].mxu1 }
 0x103   :  { %v1478_v13 = vadd.f32 %v2130_v8, %v2102_v5  ;;  %v2133_v14 = vadd.f32 %v2132_v12, %v2131_v9 }
 0x105   :  { %v1481_v15 = vadd.f32 %v2133_v14, %v2105_v11 }
 0x116   :  { %v2150_v16 = vpop.f32.mrb[8].mxu0 }
 0x117   :  { %v2178_v17 = vpop.f32.mrb[8].mxu1  ;;  %v2151_v18 = vpop.f32.mrb[9].mxu0 }
 0x118   :  { %v2152_v19 = vadd.f32 %v2151_v18, %v2150_v16  ;;  %v2179_v20 = vpop.f32.mrb[9].mxu1  ;;  %v2153_v21 = vpop.f32.mrb[10].mxu0 }
 0x119   :  { %v2180_v22 = vadd.f32 %v2179_v20, %v2178_v17  ;;  %v2181_v23 = vpop.f32.mrb[10].mxu1  ;;  %v2154_v24 = vpop.f32.mrb[11].mxu0 }
 0x11a   :  { %v1519_v25 = vadd.f32 %v2152_v19, %v1470_v63  ;;  %v2155_v26 = vadd.f32 %v2154_v24, %v2153_v21  ;;  %v2182_v27 = vpop.f32.mrb[11].mxu1 }
 0x11b   :  { %v2183_v28 = vadd.f32 %v2182_v27, %v2181_v23 }
 0x11c   :  { %v1568_v29 = vadd.f32 %v2180_v22, %v1519_v25  ;;  %v1522_v30 = vadd.f32 %v2155_v26, %v1473_v1 }
 0x11e   :  { %v1571_v31 = vadd.f32 %v2183_v28, %v1522_v30  ;;  %v2156_v32 = vpop.f32.mrb[12].mxu0 }
 0x11f   :  { %v2157_v33 = vpop.f32.mrb[13].mxu0  ;;  %v2184_v39 = vpop.f32.mrb[12].mxu1 }
 0x120   :  { %v2158_v34 = vadd.f32 %v2157_v33, %v2156_v32  ;;  %v2159_v35 = vpop.f32.mrb[14].mxu0  ;;  %v2185_v41 = vpop.f32.mrb[13].mxu1 }
 0x121   :  { %v2160_v36 = vpop.f32.mrb[15].mxu0  ;;  %v2186_v42 = vadd.f32 %v2185_v41, %v2184_v39  ;;  %v2187_v43 = vpop.f32.mrb[14].mxu1 }
 0x122   :  { %v1527_v37 = vadd.f32 %v2158_v34, %v1478_v13  ;;  %v2161_v38 = vadd.f32 %v2160_v36, %v2159_v35  ;;  %v2188_v44 = vpop.f32.mrb[15].mxu1 }
 0x123   :  { %v2189_v46 = vadd.f32 %v2188_v44, %v2187_v43 }
 0x124   :  { %v1530_v40 = vadd.f32 %v2161_v38, %v1481_v15  ;;  %v1576_v45 = vadd.f32 %v2186_v42, %v1527_v37 }
 0x126   :  { %v1579_v47 = vadd.f32 %v2189_v46, %v1530_v40 }
 0x136   :  { %v2206_v48 = vpop.f32.mrb[16].mxu0 }
 0x137   :  { %v2207_v49 = vpop.f32.mrb[17].mxu0  ;;  %v2234_v50 = vpop.f32.mrb[16].mxu1 }
 0x138   :  { %v2208_v51 = vadd.f32 %v2207_v49, %v2206_v48  ;;  %v2209_v52 = vpop.f32.mrb[18].mxu0  ;;  %v2235_v53 = vpop.f32.mrb[17].mxu1 }
 0x139   :  { %v2210_v54 = vpop.f32.mrb[19].mxu0  ;;  %v2236_v56 = vadd.f32 %v2235_v53, %v2234_v50  ;;  %v2237_v57 = vpop.f32.mrb[18].mxu1 }
 0x13a   :  { %v1617_v55 = vadd.f32 %v2208_v51, %v1568_v29  ;;  %v2211_v58 = vadd.f32 %v2210_v54, %v2209_v52  ;;  %v2238_v59 = vpop.f32.mrb[19].mxu1  ;;  %v2057_v54 = vld [vmem:[%s3123_s2] ss:$0 sm:$0xff] }
 0x13b   :  { %v2239_v62 = vadd.f32 %v2238_v59, %v2237_v57 }
 0x13c   :  { %v1666_v60 = vadd.f32 %v2236_v56, %v1617_v55  ;;  %v1620_v61 = vadd.f32 %v2211_v58, %v1571_v31 }
 0x13e   :  { %v1669_v63 = vadd.f32 %v2239_v62, %v1620_v61  ;;  %v2212_v0 = vpop.f32.mrb[20].mxu0  ;;  %v2058_v61 = vld [vmem:[%s3124_s3] ss:$0 sm:$0xff] }
 0x13f   :  { %v2213_v1 = vpop.f32.mrb[21].mxu0  ;;  %v2240_v7 = vpop.f32.mrb[20].mxu1 }
 0x140   :  { %v2214_v2 = vadd.f32 %v2213_v1, %v2212_v0  ;;  %v2215_v3 = vpop.f32.mrb[22].mxu0  ;;  %v2241_v9 = vpop.f32.mrb[21].mxu1 }
 0x141   :  { %v2216_v4 = vpop.f32.mrb[23].mxu0  ;;  %v2242_v10 = vadd.f32 %v2241_v9, %v2240_v7  ;;  %v2243_v11 = vpop.f32.mrb[22].mxu1 }
 0x142   :  { %v1625_v5 = vadd.f32 %v2214_v2, %v1576_v45  ;;  %v2217_v6 = vadd.f32 %v2216_v4, %v2215_v3  ;;  %v2244_v12 = vpop.f32.mrb[23].mxu1 }
 0x143   :  { %v2245_v14 = vadd.f32 %v2244_v12, %v2243_v11 }
 0x144   :  { %v1628_v8 = vadd.f32 %v2217_v6, %v1579_v47  ;;  %v1674_v13 = vadd.f32 %v2242_v10, %v1625_v5 }
 0x146   :  { %v1677_v15 = vadd.f32 %v2245_v14, %v1628_v8 }
 0x156   :  { %v2262_v16 = vpop.f32.mrb[24].mxu0 }
 0x157   :  { %v2290_v17 = vpop.f32.mrb[24].mxu1  ;;  %v2263_v18 = vpop.f32.mrb[25].mxu0 }
 0x158   :  { %v2264_v19 = vadd.f32 %v2263_v18, %v2262_v16  ;;  %v2291_v20 = vpop.f32.mrb[25].mxu1  ;;  %v2265_v21 = vpop.f32.mrb[26].mxu0 }
 0x159   :  { %v2292_v22 = vadd.f32 %v2291_v20, %v2290_v17  ;;  %v2293_v23 = vpop.f32.mrb[26].mxu1  ;;  %v2266_v24 = vpop.f32.mrb[27].mxu0 }
 0x15a   :  { %v1715_v25 = vadd.f32 %v2264_v19, %v1666_v60  ;;  %v2267_v26 = vadd.f32 %v2266_v24, %v2265_v21  ;;  %v2294_v27 = vpop.f32.mrb[27].mxu1 }
 0x15b   :  { %v2295_v28 = vadd.f32 %v2294_v27, %v2293_v23 }
 0x15c   :  { %v1764_v29 = vadd.f32 %v2292_v22, %v1715_v25  ;;  %v1718_v30 = vadd.f32 %v2267_v26, %v1669_v63 }
 0x15e   :  { %v1767_v31 = vadd.f32 %v2295_v28, %v1718_v30  ;;  %v2268_v32 = vpop.f32.mrb[28].mxu0 }
 0x15f   :  { %v2269_v33 = vpop.f32.mrb[29].mxu0  ;;  %v2296_v36 = vpop.f32.mrb[28].mxu1 }
 0x160   :  { %v2270_v34 = vadd.f32 %v2269_v33, %v2268_v32  ;;  %v2271_v35 = vpop.f32.mrb[30].mxu0  ;;  %v2297_v38 = vpop.f32.mrb[29].mxu1 }
 0x161   :  { %v2272_v37 = vpop.f32.mrb[31].mxu0  ;;  %v2298_v41 = vadd.f32 %v2297_v38, %v2296_v36  ;;  %v2299_v42 = vpop.f32.mrb[30].mxu1 }
 0x162   :  { %v1723_v39 = vadd.f32 %v2270_v34, %v1674_v13  ;;  %v2273_v40 = vadd.f32 %v2272_v37, %v2271_v35  ;;  %v2300_v43 = vpop.f32.mrb[31].mxu1 }
 0x163   :  { %v2301_v46 = vadd.f32 %v2300_v43, %v2299_v42 }
 0x164   :  { %v1726_v44 = vadd.f32 %v2273_v40, %v1677_v15  ;;  %v1772_v45 = vadd.f32 %v2298_v41, %v1723_v39 }
 0x166   :  { %v1775_v47 = vadd.f32 %v2301_v46, %v1726_v44 }
 0x176   :  { %v2318_v48 = vpop.f32.mrb[32].mxu0 }
 0x177   :  { %v2324_v49 = vpop.f32.mrb[32].mxu1  ;;  %v2319_v50 = vpop.f32.mrb[33].mxu0 }
 0x178   :  { %v2320_v51 = vadd.f32 %v2319_v50, %v2318_v48  ;;  %v2325_v52 = vpop.f32.mrb[33].mxu1  ;;  %v2321_v53 = vpop.f32.mrb[34].mxu0 }
 0x179   :  { %v2326_v55 = vadd.f32 %v2325_v52, %v2324_v49  ;;  %v2327_v56 = vpop.f32.mrb[34].mxu1  ;;  %v2322_v57 = vpop.f32.mrb[35].mxu0 }
 0x17a   :  { %v1813_v58 = vadd.f32 %v2320_v51, %v1764_v29  ;;  %v2323_v59 = vadd.f32 %v2322_v57, %v2321_v53  ;;  %v2328_v60 = vpop.f32.mrb[35].mxu1 }
 0x17b   :  { %v1821_v62 = vadd.f32 %v2326_v55, %v1772_v45  ;;  %v2329_v63 = vadd.f32 %v2328_v60, %v2327_v56 }
 0x17c   :  { %v1834_v0 = vmul.f32 %v2057_v54, %v1813_v58  ;;  %v1816_v1 = vadd.f32 %v2323_v59, %v1767_v31 }
 0x17d   :  { %v1836_v2 = vmul.f32 %v2057_v54, %v1821_v62  ;;  %v1824_v3 = vadd.f32 %v2329_v63, %v1775_v47 }
 0x17e   :  { %v1845_v4 = vadd.f32 %v2058_v61, %v1834_v0  ;;  %v1835_v5 = vmul.f32 %v2057_v54, %v1816_v1 }
 0x17f   :  { %v1847_v6 = vadd.f32 %v2058_v61, %v1836_v2  ;;  %v1837_v7 = vmul.f32 %v2057_v54, %v1824_v3 }
 0x180   :  { %v1846_v8 = vadd.f32 %v2058_v61, %v1835_v5  ;;  %v1849_v10 = vmax.f32 %v1845_v4, 0.0 }
 0x181   :  { %v1848_v9 = vadd.f32 %v2058_v61, %v1837_v7  ;;  %v1851_v12 = vmax.f32 %v1847_v6, 0.0 }
 0x182   :  { %v1850_v11 = vmax.f32 %v1846_v8, 0.0 }
 0x183   :  { %v1852_v13 = vmax.f32 %v1848_v9, 0.0 }
 0x184   :  { %v2070_v14 = vpack.c.bf16 %v1850_v11, %v1849_v10 }
 0x185   :  { %v2075_v15 = vpack.c.bf16 %v1852_v13, %v1851_v12 }
 0x186   :  { %2071 = vst [vmem:[%s3125_s4] sm:$0xff] %v2070_v14  }
 0x187   :  { %2077 = vst [vmem:[%s3125_s4 + $0x8] sm:$0xff] %v2075_v15  }

// kernel: feature_extractor_forward.83
= control target key start
LH: loop header
LB: loop body
LE: loop exit
PB: predicated region body
PF: predicated region fallthrough
CT: control target
= control target key end

     0   :  { %s4487_s1 = inlined_call_operand.vmem [shape: bf16[2304,256], index: 1, kind: input, shape index: {}]   ;;  %s4488_s0 = inlined_call_operand.vmem [shape: bf16[32,2304], index: 0, kind: input, shape index: {}]   ;;  %s4489_s2 = inlined_call_operand.vmem [shape: f32[1,256], index: 2, kind: input, shape index: {}]   ;;  %s4490_s3 = inlined_call_operand.vmem [shape: f32[1,256], index: 3, kind: input, shape index: {}]   ;;  %s4491_s4 = inlined_call_operand.vmem [shape: bf16[32,256], index: 4, kind: input, shape index: {}]   ;;  %s4492_s5 = inlined_call_operand.vmem [shape: bf16[32,256], index: 5, kind: output, shape index: {}]  }
   0x1   :  { %v2969_v0 = vld [vmem:[%s4487_s1 + $0x4] ss:$8 sps:$4 sm:$0xff]   ;;  %v2973_v2 = vld [vmem:[%s4487_s1] ss:$8 sps:$4 sm:$0xff]   ;;  %v2975_v4 = vld [vmem:[%s4487_s1 + $0x14] ss:$8 sps:$4 sm:$0xff]  }
   0x2   :  { %v2971_v1 = vld [vmem:[%s4487_s1 + $0x404] ss:$8 sps:$4 sm:$0xff]   ;;  %1964 = vmatprep.subr.bf16.mxu1 %v2969_v0  ;;  %v2974_v3 = vld [vmem:[%s4487_s1 + $0x400] ss:$8 sps:$4 sm:$0xff]   ;;  %v2977_v5 = vld [vmem:[%s4487_s1 + $0x414] ss:$8 sps:$4 sm:$0xff]  }
   0x3   :  { %2176 = vmatprep.subr.bf16.mxu0 %v2971_v1  ;;  %1965 = vmatpush1.bf16.msra.mxu1 %v2973_v2  ;;  %v2979_v6 = vld [vmem:[%s4487_s1 + $0x10] ss:$8 sps:$4 sm:$0xff]   ;;  %v2981_v8 = vld [vmem:[%s4487_s1 + $0x24] ss:$8 sps:$4 sm:$0xff]   ;;  %v2985_v10 = vld [vmem:[%s4487_s1 + $0x20] ss:$8 sps:$4 sm:$0xff]  }
   0x4   :  { %2177 = vmatpush1.bf16.msra.mxu0 %v2974_v3  ;;  %1966 = vmatprep.subr.bf16.mxu1 %v2975_v4  ;;  %v2980_v7 = vld [vmem:[%s4487_s1 + $0x410] ss:$8 sps:$4 sm:$0xff]   ;;  %v2983_v9 = vld [vmem:[%s4487_s1 + $0x424] ss:$8 sps:$4 sm:$0xff]   ;;  %v2986_v11 = vld [vmem:[%s4487_s1 + $0x420] ss:$8 sps:$4 sm:$0xff]  }
   0x5   :  { %2178 = vmatprep.subr.bf16.mxu0 %v2977_v5  ;;  %v2987_v12 = vld [vmem:[%s4487_s1 + $0x34] ss:$8 sps:$4 sm:$0xff]   ;;  %v2991_v14 = vld [vmem:[%s4487_s1 + $0x30] ss:$8 sps:$4 sm:$0xff]   ;;  %v2993_v16 = vld [vmem:[%s4487_s1 + $0x44] ss:$8 sps:$4 sm:$0xff]  }
   0x6   :  { %v2989_v13 = vld [vmem:[%s4487_s1 + $0x434] ss:$8 sps:$4 sm:$0xff]   ;;  %v2992_v15 = vld [vmem:[%s4487_s1 + $0x430] ss:$8 sps:$4 sm:$0xff]   ;;  %v2995_v17 = vld [vmem:[%s4487_s1 + $0x444] ss:$8 sps:$4 sm:$0xff]  }
   0x7   :  { %1967 = vmatpush1.bf16.msra.mxu1 %v2979_v6  ;;  %v2997_v18 = vld [vmem:[%s4487_s1 + $0x40] ss:$8 sps:$4 sm:$0xff]   ;;  %v2999_v20 = vld [vmem:[%s4487_s1 + $0x54] ss:$8 sps:$4 sm:$0xff]   ;;  %v3003_v22 = vld [vmem:[%s4487_s1 + $0x50] ss:$8 sps:$4 sm:$0xff]  }
   0x8   :  { %2179 = vmatpush1.bf16.msra.mxu0 %v2980_v7  ;;  %1968 = vmatprep.subr.bf16.mxu1 %v2981_v8  ;;  %v2998_v19 = vld [vmem:[%s4487_s1 + $0x440] ss:$8 sps:$4 sm:$0xff]   ;;  %v3001_v21 = vld [vmem:[%s4487_s1 + $0x454] ss:$8 sps:$4 sm:$0xff]   ;;  %v3004_v23 = vld [vmem:[%s4487_s1 + $0x450] ss:$8 sps:$4 sm:$0xff]  }
   0x9   :  { %2180 = vmatprep.subr.bf16.mxu0 %v2983_v9  ;;  %v3005_v24 = vld [vmem:[%s4487_s1 + $0x64] ss:$8 sps:$4 sm:$0xff]   ;;  %v3009_v26 = vld [vmem:[%s4487_s1 + $0x60] ss:$8 sps:$4 sm:$0xff]   ;;  %v3011_v28 = vld [vmem:[%s4487_s1 + $0x74] ss:$8 sps:$4 sm:$0xff]  }
   0xa   :  { %v3007_v25 = vld [vmem:[%s4487_s1 + $0x464] ss:$8 sps:$4 sm:$0xff]   ;;  %v3010_v27 = vld [vmem:[%s4487_s1 + $0x460] ss:$8 sps:$4 sm:$0xff]   ;;  %v3013_v29 = vld [vmem:[%s4487_s1 + $0x474] ss:$8 sps:$4 sm:$0xff]  }
   0xb   :  { %1969 = vmatpush1.bf16.msra.mxu1 %v2985_v10  ;;  %v3015_v30 = vld [vmem:[%s4487_s1 + $0x70] ss:$8 sps:$4 sm:$0xff]   ;;  %v3017_v32 = vld [vmem:[%s4487_s1 + $0x84] ss:$8 sps:$4 sm:$0xff]   ;;  %v3021_v34 = vld [vmem:[%s4487_s1 + $0x80] ss:$8 sps:$4 sm:$0xff]  }
   0xc   :  { %2181 = vmatpush1.bf16.msra.mxu0 %v2986_v11  ;;  %1970 = vmatprep.subr.bf16.mxu1 %v2987_v12  ;;  %v3016_v31 = vld [vmem:[%s4487_s1 + $0x470] ss:$8 sps:$4 sm:$0xff]   ;;  %v3019_v33 = vld [vmem:[%s4487_s1 + $0x484] ss:$8 sps:$4 sm:$0xff]   ;;  %v3022_v35 = vld [vmem:[%s4487_s1 + $0x480] ss:$8 sps:$4 sm:$0xff]  }
   0xd   :  { %2182 = vmatprep.subr.bf16.mxu0 %v2989_v13  ;;  %v3023_v36 = vld [vmem:[%s4487_s1 + $0x94] ss:$8 sps:$4 sm:$0xff]   ;;  %v3027_v38 = vld [vmem:[%s4487_s1 + $0x90] ss:$8 sps:$4 sm:$0xff]   ;;  %v3029_v40 = vld [vmem:[%s4487_s1 + $0xa4] ss:$8 sps:$4 sm:$0xff]  }
   0xe   :  { %v3025_v37 = vld [vmem:[%s4487_s1 + $0x494] ss:$8 sps:$4 sm:$0xff]   ;;  %v3028_v39 = vld [vmem:[%s4487_s1 + $0x490] ss:$8 sps:$4 sm:$0xff]   ;;  %v3031_v41 = vld [vmem:[%s4487_s1 + $0x4a4] ss:$8 sps:$4 sm:$0xff]  }
   0xf   :  { %1971 = vmatpush1.bf16.msra.mxu1 %v2991_v14  ;;  %v3033_v42 = vld [vmem:[%s4487_s1 + $0xa0] ss:$8 sps:$4 sm:$0xff]   ;;  %v3035_v44 = vld [vmem:[%s4487_s1 + $0xb4] ss:$8 sps:$4 sm:$0xff]   ;;  %v3039_v46 = vld [vmem:[%s4487_s1 + $0xb0] ss:$8 sps:$4 sm:$0xff]  }
  0x10   :  { %2183 = vmatpush1.bf16.msra.mxu0 %v2992_v15  ;;  %1972 = vmatprep.subr.bf16.mxu1 %v2993_v16  ;;  %v3034_v43 = vld [vmem:[%s4487_s1 + $0x4a0] ss:$8 sps:$4 sm:$0xff]   ;;  %v3037_v45 = vld [vmem:[%s4487_s1 + $0x4b4] ss:$8 sps:$4 sm:$0xff]   ;;  %v3040_v47 = vld [vmem:[%s4487_s1 + $0x4b0] ss:$8 sps:$4 sm:$0xff]  }
  0x11   :  { %2184 = vmatprep.subr.bf16.mxu0 %v2995_v17  ;;  %v3067_v48 = vld [vmem:[%s4488_s0 + $0x4] ss:$72 sps:$4 sm:$0xff]   ;;  %v3045_v52 = vld [vmem:[%s4487_s1 + $0xc0] ss:$8 sps:$4 sm:$0xff]   ;;  %v3047_v54 = vld [vmem:[%s4487_s1 + $0xd4] ss:$8 sps:$4 sm:$0xff]  }
  0x12   :  { %v3041_v49 = vld [vmem:[%s4487_s1 + $0xc4] ss:$8 sps:$4 sm:$0xff]   ;;  %1996 = vmatprep.mubr.bf16.mxu1 %v3067_v48  ;;  %v3046_v53 = vld [vmem:[%s4487_s1 + $0x4c0] ss:$8 sps:$4 sm:$0xff]   ;;  %v3049_v55 = vld [vmem:[%s4487_s1 + $0x4d4] ss:$8 sps:$4 sm:$0xff]  }
  0x13   :  { %1973 = vmatpush1.bf16.msra.mxu1 %v2997_v18  ;;  %v3043_v50 = vld [vmem:[%s4487_s1 + $0x4c4] ss:$8 sps:$4 sm:$0xff]   ;;  %v3051_v56 = vld [vmem:[%s4487_s1 + $0xd0] ss:$8 sps:$4 sm:$0xff]   ;;  %v3057_v60 = vld [vmem:[%s4487_s1 + $0xe0] ss:$8 sps:$4 sm:$0xff]  }
  0x14   :  { %2185 = vmatpush1.bf16.msra.mxu0 %v2998_v19  ;;  %1974 = vmatprep.subr.bf16.mxu1 %v2999_v20  ;;  %v3073_v51 = vld [vmem:[%s4488_s0 + $0x24] ss:$72 sps:$4 sm:$0xff]   ;;  %v3052_v57 = vld [vmem:[%s4487_s1 + $0x4d0] ss:$8 sps:$4 sm:$0xff]   ;;  %v3058_v61 = vld [vmem:[%s4487_s1 + $0x4e0] ss:$8 sps:$4 sm:$0xff]  }
  0x15   :  { %2186 = vmatprep.subr.bf16.mxu0 %v3001_v21  ;;  %2208 = vmatprep.mubr.bf16.mxu0 %v3073_v51  ;;  %v3053_v58 = vld [vmem:[%s4487_s1 + $0xe4] ss:$8 sps:$4 sm:$0xff]   ;;  %v3059_v62 = vld [vmem:[%s4487_s1 + $0xf4] ss:$8 sps:$4 sm:$0xff]   ;;  %v3063_v0 = vld [vmem:[%s4487_s1 + $0xf0] ss:$8 sps:$4 sm:$0xff]  }
  0x16   :  { %v3055_v59 = vld [vmem:[%s4487_s1 + $0x4e4] ss:$8 sps:$4 sm:$0xff]   ;;  %v3061_v63 = vld [vmem:[%s4487_s1 + $0x4f4] ss:$8 sps:$4 sm:$0xff]   ;;  %v3064_v1 = vld [vmem:[%s4487_s1 + $0x4f0] ss:$8 sps:$4 sm:$0xff]  }
  0x17   :  { %1975 = vmatpush1.bf16.msra.mxu1 %v3003_v22  ;;  %v3070_v2 = vld [vmem:[%s4487_s1 + $0x104] ss:$8 sps:$4 sm:$0xff]   ;;  %v3065_v4 = vld [vmem:[%s4488_s0] ss:$72 sps:$4 sm:$0xff]   ;;  %v3079_v8 = vld [vmem:[%s4487_s1 + $0x114] ss:$8 sps:$4 sm:$0xff]  }
  0x18   :  { %2187 = vmatpush1.bf16.msra.mxu0 %v3004_v23  ;;  %1976 = vmatprep.subr.bf16.mxu1 %v3005_v24  ;;  %v3076_v3 = vld [vmem:[%s4487_s1 + $0x504] ss:$8 sps:$4 sm:$0xff]   ;;  %v3068_v5 = vld [vmem:[%s4487_s1 + $0x100] ss:$8 sps:$4 sm:$0xff]   ;;  %v3082_v9 = vld [vmem:[%s4487_s1 + $0x514] ss:$8 sps:$4 sm:$0xff]  }
  0x19   :  { %2188 = vmatprep.subr.bf16.mxu0 %v3007_v25  ;;  %v3071_v6 = vld [vmem:[%s4488_s0 + $0x20] ss:$72 sps:$4 sm:$0xff]   ;;  %v3077_v10 = vld [vmem:[%s4487_s1 + $0x110] ss:$8 sps:$4 sm:$0xff]   ;;  %v3085_v12 = vld [vmem:[%s4487_s1 + $0x124] ss:$8 sps:$4 sm:$0xff]  }
  0x1a   :  { %v3074_v7 = vld [vmem:[%s4487_s1 + $0x500] ss:$8 sps:$4 sm:$0xff]   ;;  %v3080_v11 = vld [vmem:[%s4487_s1 + $0x510] ss:$8 sps:$4 sm:$0xff]   ;;  %v3088_v13 = vld [vmem:[%s4487_s1 + $0x524] ss:$8 sps:$4 sm:$0xff]  }
  0x1b   :  { %1977 = vmatpush1.bf16.msra.mxu1 %v3009_v26  ;;  %v3083_v14 = vld [vmem:[%s4487_s1 + $0x120] ss:$8 sps:$4 sm:$0xff]   ;;  %v3091_v16 = vld [vmem:[%s4487_s1 + $0x134] ss:$8 sps:$4 sm:$0xff]   ;;  %v3089_v18 = vld [vmem:[%s4487_s1 + $0x130] ss:$8 sps:$4 sm:$0xff]  }
  0x1c   :  { %2189 = vmatpush1.bf16.msra.mxu0 %v3010_v27  ;;  %1978 = vmatprep.subr.bf16.mxu1 %v3011_v28  ;;  %v3086_v15 = vld [vmem:[%s4487_s1 + $0x520] ss:$8 sps:$4 sm:$0xff]   ;;  %v3094_v17 = vld [vmem:[%s4487_s1 + $0x534] ss:$8 sps:$4 sm:$0xff]   ;;  %v3092_v19 = vld [vmem:[%s4487_s1 + $0x530] ss:$8 sps:$4 sm:$0xff]  }
  0x1d   :  { %2190 = vmatprep.subr.bf16.mxu0 %v3013_v29  ;;  %v3097_v20 = vld [vmem:[%s4487_s1 + $0x144] ss:$8 sps:$4 sm:$0xff]   ;;  %v3095_v22 = vld [vmem:[%s4487_s1 + $0x140] ss:$8 sps:$4 sm:$0xff]   ;;  %v3103_v24 = vld [vmem:[%s4487_s1 + $0x154] ss:$8 sps:$4 sm:$0xff]  }
  0x1e   :  { %v3100_v21 = vld [vmem:[%s4487_s1 + $0x544] ss:$8 sps:$4 sm:$0xff]   ;;  %v3098_v23 = vld [vmem:[%s4487_s1 + $0x540] ss:$8 sps:$4 sm:$0xff]   ;;  %v3106_v25 = vld [vmem:[%s4487_s1 + $0x554] ss:$8 sps:$4 sm:$0xff]  }
  0x1f   :  { %1979 = vmatpush1.bf16.msra.mxu1 %v3015_v30  ;;  %v3101_v26 = vld [vmem:[%s4487_s1 + $0x150] ss:$8 sps:$4 sm:$0xff]   ;;  %v3155_v28 = vld [vmem:[%s4488_s0 + $0x94] ss:$72 sps:$4 sm:$0xff]   ;;  %v3109_v29 = vld [vmem:[%s4487_s1 + $0x164] ss:$8 sps:$4 sm:$0xff]  }
  0x20   :  { %2191 = vmatpush1.bf16.msra.mxu0 %v3016_v31  ;;  %1980 = vmatprep.subr.bf16.mxu1 %v3017_v32  ;;  %v3104_v27 = vld [vmem:[%s4487_s1 + $0x550] ss:$8 sps:$4 sm:$0xff]   ;;  %v3112_v30 = vld [vmem:[%s4487_s1 + $0x564] ss:$8 sps:$4 sm:$0xff]   ;;  %v3160_v31 = vld [vmem:[%s4488_s0 + $0xb4] ss:$72 sps:$4 sm:$0xff]  }
  0x21   :  { %2192 = vmatprep.subr.bf16.mxu0 %v3019_v33  ;;  %v3107_v32 = vld [vmem:[%s4487_s1 + $0x160] ss:$8 sps:$4 sm:$0xff]   ;;  %v3125_v48 = vld [vmem:[%s4487_s1 + $0x190] ss:$8 sps:$4 sm:$0xff]   ;;  %v3136_v51 = vld [vmem:[%s4487_s1 + $0x5a4] ss:$8 sps:$4 sm:$0xff]  }
  0x22   :  { %v3110_v33 = vld [vmem:[%s4487_s1 + $0x560] ss:$8 sps:$4 sm:$0xff]  }
  0x23   :  { %1981 = vmatpush1.bf16.msra.mxu1 %v3021_v34  ;;  %v3165_v34 = vld [vmem:[%s4488_s0 + $0x90] ss:$72 sps:$4 sm:$0xff]  }
  0x24   :  { %2193 = vmatpush1.bf16.msra.mxu0 %v3022_v35  ;;  %1982 = vmatprep.subr.bf16.mxu1 %v3023_v36  ;;  %v3166_v35 = vld [vmem:[%s4488_s0 + $0xb0] ss:$72 sps:$4 sm:$0xff]   ;;  %v3115_v36 = vld [vmem:[%s4487_s1 + $0x174] ss:$8 sps:$4 sm:$0xff]  }
  0x25   :  { %2194 = vmatprep.subr.bf16.mxu0 %v3025_v37  ;;  %v3118_v37 = vld [vmem:[%s4487_s1 + $0x574] ss:$8 sps:$4 sm:$0xff]  }
  0x27   :  { %1983 = vmatpush1.bf16.msra.mxu1 %v3027_v38  ;;  %v3113_v38 = vld [vmem:[%s4487_s1 + $0x170] ss:$8 sps:$4 sm:$0xff]  }
  0x28   :  { %2195 = vmatpush1.bf16.msra.mxu0 %v3028_v39  ;;  %1984 = vmatprep.subr.bf16.mxu1 %v3029_v40  ;;  %v3116_v39 = vld [vmem:[%s4487_s1 + $0x570] ss:$8 sps:$4 sm:$0xff]   ;;  %v3175_v40 = vld [vmem:[%s4488_s0 + $0xc] ss:$72 sps:$4 sm:$0xff]  }
  0x29   :  { %2196 = vmatprep.subr.bf16.mxu0 %v3031_v41  ;;  %v3121_v41 = vld [vmem:[%s4487_s1 + $0x184] ss:$8 sps:$4 sm:$0xff]  }
  0x2b   :  { %1985 = vmatpush1.bf16.msra.mxu1 %v3033_v42  ;;  %v3124_v42 = vld [vmem:[%s4487_s1 + $0x584] ss:$8 sps:$4 sm:$0xff]  }
  0x2c   :  { %2197 = vmatpush1.bf16.msra.mxu0 %v3034_v43  ;;  %1986 = vmatprep.subr.bf16.mxu1 %v3035_v44  ;;  %v3181_v43 = vld [vmem:[%s4488_s0 + $0x2c] ss:$72 sps:$4 sm:$0xff]   ;;  %v3119_v44 = vld [vmem:[%s4487_s1 + $0x180] ss:$8 sps:$4 sm:$0xff]  }
  0x2d   :  { %2198 = vmatprep.subr.bf16.mxu0 %v3037_v45  ;;  %v3122_v45 = vld [vmem:[%s4487_s1 + $0x580] ss:$8 sps:$4 sm:$0xff]  }
  0x2f   :  { %1987 = vmatpush1.bf16.msra.mxu1 %v3039_v46  ;;  %v3127_v46 = vld [vmem:[%s4487_s1 + $0x194] ss:$8 sps:$4 sm:$0xff]  }
  0x30   :  { %2199 = vmatpush1.bf16.msra.mxu0 %v3040_v47  ;;  %1988 = vmatprep.subr.bf16.mxu1 %v3041_v49  ;;  %v3130_v47 = vld [vmem:[%s4487_s1 + $0x594] ss:$8 sps:$4 sm:$0xff]   ;;  %v3128_v49 = vld [vmem:[%s4487_s1 + $0x590] ss:$8 sps:$4 sm:$0xff]  }
  0x31   :  { %2200 = vmatprep.subr.bf16.mxu0 %v3043_v50  ;;  %v3133_v50 = vld [vmem:[%s4487_s1 + $0x1a4] ss:$8 sps:$4 sm:$0xff]  }
  0x33   :  { %1989 = vmatpush1.bf16.msra.mxu1 %v3045_v52  ;;  %v3131_v52 = vld [vmem:[%s4487_s1 + $0x1a0] ss:$8 sps:$4 sm:$0xff]  }
  0x34   :  { %2201 = vmatpush1.bf16.msra.mxu0 %v3046_v53  ;;  %1990 = vmatprep.subr.bf16.mxu1 %v3047_v54  ;;  %v3134_v53 = vld [vmem:[%s4487_s1 + $0x5a0] ss:$8 sps:$4 sm:$0xff]   ;;  %v3139_v54 = vld [vmem:[%s4487_s1 + $0x1b4] ss:$8 sps:$4 sm:$0xff]  }
  0x35   :  { %2202 = vmatprep.subr.bf16.mxu0 %v3049_v55  ;;  %v3142_v55 = vld [vmem:[%s4487_s1 + $0x5b4] ss:$8 sps:$4 sm:$0xff]  }
  0x37   :  { %1991 = vmatpush1.bf16.msra.mxu1 %v3051_v56  ;;  %v3137_v56 = vld [vmem:[%s4487_s1 + $0x1b0] ss:$8 sps:$4 sm:$0xff]  }
  0x38   :  { %2203 = vmatpush1.bf16.msra.mxu0 %v3052_v57  ;;  %1992 = vmatprep.subr.bf16.mxu1 %v3053_v58  ;;  %v3140_v57 = vld [vmem:[%s4487_s1 + $0x5b0] ss:$8 sps:$4 sm:$0xff]   ;;  %v3145_v58 = vld [vmem:[%s4487_s1 + $0x1c4] ss:$8 sps:$4 sm:$0xff]  }
  0x39   :  { %2204 = vmatprep.subr.bf16.mxu0 %v3055_v59  ;;  %v3148_v59 = vld [vmem:[%s4487_s1 + $0x5c4] ss:$8 sps:$4 sm:$0xff]  }
  0x3b   :  { %1993 = vmatpush1.bf16.msra.mxu1 %v3057_v60  ;;  %v3143_v60 = vld [vmem:[%s4487_s1 + $0x1c0] ss:$8 sps:$4 sm:$0xff]  }
  0x3c   :  { %2205 = vmatpush1.bf16.msra.mxu0 %v3058_v61  ;;  %1994 = vmatprep.subr.bf16.mxu1 %v3059_v62  ;;  %v3146_v61 = vld [vmem:[%s4487_s1 + $0x5c0] ss:$8 sps:$4 sm:$0xff]   ;;  %v3151_v62 = vld [vmem:[%s4487_s1 + $0x1d4] ss:$8 sps:$4 sm:$0xff]  }
  0x3d   :  { %2206 = vmatprep.subr.bf16.mxu0 %v3061_v63  ;;  %v3154_v63 = vld [vmem:[%s4487_s1 + $0x5d4] ss:$8 sps:$4 sm:$0xff]  }
  0x3f   :  { %1995 = vmatpush1.bf16.msra.mxu1 %v3063_v0  ;;  %v3149_v0 = vld [vmem:[%s4487_s1 + $0x1d0] ss:$8 sps:$4 sm:$0xff]  }
  0x40   :  { %2207 = vmatpush1.bf16.msra.mxu0 %v3064_v1  ;;  %2017 = vmatprep.subr.bf16.mxu1 %v3070_v2  ;;  %v3152_v1 = vld [vmem:[%s4487_s1 + $0x5d0] ss:$8 sps:$4 sm:$0xff]   ;;  %v3159_v2 = vld [vmem:[%s4487_s1 + $0x1e4] ss:$8 sps:$4 sm:$0xff]  }
  0x41   :  { %2229 = vmatprep.subr.bf16.mxu0 %v3076_v3  ;;  %v3164_v3 = vld [vmem:[%s4487_s1 + $0x5e4] ss:$8 sps:$4 sm:$0xff]  }
  0x42   :  { %1997 = vmatmul.mubr.bf16.vlgmr.msra.gmra.mrb[0].mxu1 %v3065_v4  ;;  %v3157_v4 = vld [vmem:[%s4487_s1 + $0x1e0] ss:$8 sps:$4 sm:$0xff]  }
  0x43   :  { %2209 = vmatmul.mubr.bf16.vlgmr.msra.gmra.mrb[0].mxu0 %v3071_v6  ;;  %2018 = vmatpush1.bf16.msra.mxu1 %v3068_v5  ;;  %v3162_v5 = vld [vmem:[%s4487_s1 + $0x5e0] ss:$8 sps:$4 sm:$0xff]   ;;  %v3169_v6 = vld [vmem:[%s4487_s1 + $0x1f4] ss:$8 sps:$4 sm:$0xff]  }
  0x44   :  { %2230 = vmatpush1.bf16.msra.mxu0 %v3074_v7  ;;  %2019 = vmatprep.subr.bf16.mxu1 %v3079_v8  ;;  %v3172_v7 = vld [vmem:[%s4487_s1 + $0x5f4] ss:$8 sps:$4 sm:$0xff]   ;;  %v3167_v8 = vld [vmem:[%s4487_s1 + $0x1f0] ss:$8 sps:$4 sm:$0xff]  }
  0x45   :  { %2231 = vmatprep.subr.bf16.mxu0 %v3082_v9  ;;  %2006 = vmatprep.mubr.bf16.mxu1 %v3155_v28  ;;  %v3170_v9 = vld [vmem:[%s4487_s1 + $0x5f0] ss:$8 sps:$4 sm:$0xff]   ;;  %v3199_v28 = vld [vmem:[%s4487_s1 + $0x234] ss:$8 sps:$4 sm:$0xff]  }
  0x46   :  { %2218 = vmatprep.mubr.bf16.mxu0 %v3160_v31  ;;  %v3200_v31 = vld [vmem:[%s4487_s1 + $0x630] ss:$8 sps:$4 sm:$0xff]  }
  0x47   :  { %2020 = vmatpush1.bf16.msra.mxu1 %v3077_v10  ;;  %v3178_v10 = vld [vmem:[%s4487_s1 + $0x204] ss:$8 sps:$4 sm:$0xff]  }
  0x48   :  { %2232 = vmatpush1.bf16.msra.mxu0 %v3080_v11  ;;  %2021 = vmatprep.subr.bf16.mxu1 %v3085_v12  ;;  %v3184_v11 = vld [vmem:[%s4487_s1 + $0x604] ss:$8 sps:$4 sm:$0xff]   ;;  %v3173_v12 = vld [vmem:[%s4488_s0 + $0x8] ss:$72 sps:$4 sm:$0xff]  }
  0x49   :  { %2233 = vmatprep.subr.bf16.mxu0 %v3088_v13  ;;  %v3176_v13 = vld [vmem:[%s4487_s1 + $0x200] ss:$8 sps:$4 sm:$0xff]  }
  0x4a   :  { %2007 = vmatmul.mubr.bf16.gmra.mrb[4].mxu1 %v3165_v34  ;;  %v3208_v34 = vld [vmem:[%s4487_s1 + $0x644] ss:$8 sps:$4 sm:$0xff]  }
  0x4b   :  { %2022 = vmatpush1.bf16.msra.mxu1 %v3083_v14  ;;  %2219 = vmatmul.mubr.bf16.gmra.mrb[4].mxu0 %v3166_v35  ;;  %v3179_v14 = vld [vmem:[%s4488_s0 + $0x28] ss:$72 sps:$4 sm:$0xff]   ;;  %v3289_v35 = vld [vmem:[%s4488_s0 + $0x34] ss:$72 sps:$4 sm:$0xff]  }
  0x4c   :  { %2234 = vmatpush1.bf16.msra.mxu0 %v3086_v15  ;;  %2023 = vmatprep.subr.bf16.mxu1 %v3091_v16  ;;  %v3182_v15 = vld [vmem:[%s4487_s1 + $0x600] ss:$8 sps:$4 sm:$0xff]   ;;  %v3187_v16 = vld [vmem:[%s4487_s1 + $0x214] ss:$8 sps:$4 sm:$0xff]  }
  0x4d   :  { %2235 = vmatprep.subr.bf16.mxu0 %v3094_v17  ;;  %2049 = vmatprep.mubr.bf16.mxu1 %v3175_v40  ;;  %v3190_v17 = vld [vmem:[%s4487_s1 + $0x614] ss:$8 sps:$4 sm:$0xff]   ;;  %v3209_v40 = vld [vmem:[%s4487_s1 + $0x250] ss:$8 sps:$4 sm:$0xff]  }
  0x4e   :  { %2261 = vmatprep.mubr.bf16.mxu0 %v3181_v43  ;;  %v3220_v43 = vld [vmem:[%s4487_s1 + $0x664] ss:$8 sps:$4 sm:$0xff]  }
  0x4f   :  { %2024 = vmatpush1.bf16.msra.mxu1 %v3089_v18  ;;  %v3185_v18 = vld [vmem:[%s4487_s1 + $0x210] ss:$8 sps:$4 sm:$0xff]  }
  0x50   :  { %2236 = vmatpush1.bf16.msra.mxu0 %v3092_v19  ;;  %2025 = vmatprep.subr.bf16.mxu1 %v3097_v20  ;;  %v3188_v19 = vld [vmem:[%s4487_s1 + $0x610] ss:$8 sps:$4 sm:$0xff]   ;;  %v3263_v20 = vld [vmem:[%s4488_s0 + $0x9c] ss:$72 sps:$4 sm:$0xff]  }
  0x51   :  { %2237 = vmatprep.subr.bf16.mxu0 %v3100_v21  ;;  %v3193_v21 = vld [vmem:[%s4487_s1 + $0x224] ss:$8 sps:$4 sm:$0xff]  }
  0x53   :  { %2026 = vmatpush1.bf16.msra.mxu1 %v3095_v22  ;;  %v3196_v22 = vld [vmem:[%s4487_s1 + $0x624] ss:$8 sps:$4 sm:$0xff]  }
  0x54   :  { %2238 = vmatpush1.bf16.msra.mxu0 %v3098_v23  ;;  %2027 = vmatprep.subr.bf16.mxu1 %v3103_v24  ;;  %v3268_v23 = vld [vmem:[%s4488_s0 + $0xbc] ss:$72 sps:$4 sm:$0xff]   ;;  %v3191_v24 = vld [vmem:[%s4487_s1 + $0x220] ss:$8 sps:$4 sm:$0xff]  }
  0x55   :  { %2239 = vmatprep.subr.bf16.mxu0 %v3106_v25  ;;  %v3194_v25 = vld [vmem:[%s4487_s1 + $0x620] ss:$8 sps:$4 sm:$0xff]  }
  0x57   :  { %2028 = vmatpush1.bf16.msra.mxu1 %v3101_v26  ;;  %v3273_v26 = vld [vmem:[%s4488_s0 + $0x98] ss:$72 sps:$4 sm:$0xff]  }
  0x58   :  { %2240 = vmatpush1.bf16.msra.mxu0 %v3104_v27  ;;  %2029 = vmatprep.subr.bf16.mxu1 %v3109_v29  ;;  %v3274_v27 = vld [vmem:[%s4488_s0 + $0xb8] ss:$72 sps:$4 sm:$0xff]   ;;  %v3202_v29 = vld [vmem:[%s4487_s1 + $0x634] ss:$8 sps:$4 sm:$0xff]  }
  0x59   :  { %2241 = vmatprep.subr.bf16.mxu0 %v3112_v30  ;;  %v3197_v30 = vld [vmem:[%s4487_s1 + $0x230] ss:$8 sps:$4 sm:$0xff]  }
  0x5b   :  { %2030 = vmatpush1.bf16.msra.mxu1 %v3107_v32  ;;  %v3283_v32 = vld [vmem:[%s4488_s0 + $0x14] ss:$72 sps:$4 sm:$0xff]  }
  0x5c   :  { %2242 = vmatpush1.bf16.msra.mxu0 %v3110_v33  ;;  %2031 = vmatprep.subr.bf16.mxu1 %v3115_v36  ;;  %v3205_v33 = vld [vmem:[%s4487_s1 + $0x244] ss:$8 sps:$4 sm:$0xff]   ;;  %v3203_v36 = vld [vmem:[%s4487_s1 + $0x240] ss:$8 sps:$4 sm:$0xff]  }
  0x5d   :  { %2243 = vmatprep.subr.bf16.mxu0 %v3118_v37  ;;  %v3206_v37 = vld [vmem:[%s4487_s1 + $0x640] ss:$8 sps:$4 sm:$0xff]  }
  0x5f   :  { %2032 = vmatpush1.bf16.msra.mxu1 %v3113_v38  ;;  %v3211_v38 = vld [vmem:[%s4487_s1 + $0x254] ss:$8 sps:$4 sm:$0xff]  }
  0x60   :  { %2244 = vmatpush1.bf16.msra.mxu0 %v3116_v39  ;;  %2033 = vmatprep.subr.bf16.mxu1 %v3121_v41  ;;  %v3214_v39 = vld [vmem:[%s4487_s1 + $0x654] ss:$8 sps:$4 sm:$0xff]   ;;  %v3212_v41 = vld [vmem:[%s4487_s1 + $0x650] ss:$8 sps:$4 sm:$0xff]  }
  0x61   :  { %2245 = vmatprep.subr.bf16.mxu0 %v3124_v42  ;;  %v3217_v42 = vld [vmem:[%s4487_s1 + $0x264] ss:$8 sps:$4 sm:$0xff]  }
  0x63   :  { %2034 = vmatpush1.bf16.msra.mxu1 %v3119_v44  ;;  %v3215_v44 = vld [vmem:[%s4487_s1 + $0x260] ss:$8 sps:$4 sm:$0xff]  }
  0x64   :  { %2246 = vmatpush1.bf16.msra.mxu0 %v3122_v45  ;;  %2035 = vmatprep.subr.bf16.mxu1 %v3127_v46  ;;  %v3218_v45 = vld [vmem:[%s4487_s1 + $0x660] ss:$8 sps:$4 sm:$0xff]   ;;  %v3223_v46 = vld [vmem:[%s4487_s1 + $0x274] ss:$8 sps:$4 sm:$0xff]  }
  0x65   :  { %2247 = vmatprep.subr.bf16.mxu0 %v3130_v47  ;;  %v3226_v47 = vld [vmem:[%s4487_s1 + $0x674] ss:$8 sps:$4 sm:$0xff]  }
  0x67   :  { %2036 = vmatpush1.bf16.msra.mxu1 %v3125_v48  ;;  %v3221_v48 = vld [vmem:[%s4487_s1 + $0x270] ss:$8 sps:$4 sm:$0xff]  }
  0x68   :  { %2248 = vmatpush1.bf16.msra.mxu0 %v3128_v49  ;;  %2037 = vmatprep.subr.bf16.mxu1 %v3133_v50  ;;  %v3224_v49 = vld [vmem:[%s4487_s1 + $0x670] ss:$8 sps:$4 sm:$0xff]   ;;  %v3229_v50 = vld [vmem:[%s4487_s1 + $0x284] ss:$8 sps:$4 sm:$0xff]  }
  0x69   :  { %2249 = vmatprep.subr.bf16.mxu0 %v3136_v51  ;;  %v3232_v51 = vld [vmem:[%s4487_s1 + $0x684] ss:$8 sps:$4 sm:$0xff]  }
  0x6b   :  { %2038 = vmatpush1.bf16.msra.mxu1 %v3131_v52  ;;  %v3227_v52 = vld [vmem:[%s4487_s1 + $0x280] ss:$8 sps:$4 sm:$0xff]  }
  0x6c   :  { %2250 = vmatpush1.bf16.msra.mxu0 %v3134_v53  ;;  %2039 = vmatprep.subr.bf16.mxu1 %v3139_v54  ;;  %v3230_v53 = vld [vmem:[%s4487_s1 + $0x680] ss:$8 sps:$4 sm:$0xff]   ;;  %v3235_v54 = vld [vmem:[%s4487_s1 + $0x294] ss:$8 sps:$4 sm:$0xff]  }
  0x6d   :  { %2251 = vmatprep.subr.bf16.mxu0 %v3142_v55  ;;  %v3238_v55 = vld [vmem:[%s4487_s1 + $0x694] ss:$8 sps:$4 sm:$0xff]  }
  0x6f   :  { %2040 = vmatpush1.bf16.msra.mxu1 %v3137_v56  ;;  %v3233_v56 = vld [vmem:[%s4487_s1 + $0x290] ss:$8 sps:$4 sm:$0xff]  }
  0x70   :  { %2252 = vmatpush1.bf16.msra.mxu0 %v3140_v57  ;;  %2041 = vmatprep.subr.bf16.mxu1 %v3145_v58  ;;  %v3236_v57 = vld [vmem:[%s4487_s1 + $0x690] ss:$8 sps:$4 sm:$0xff]   ;;  %v3241_v58 = vld [vmem:[%s4487_s1 + $0x2a4] ss:$8 sps:$4 sm:$0xff]  }
  0x71   :  { %2253 = vmatprep.subr.bf16.mxu0 %v3148_v59  ;;  %v3244_v59 = vld [vmem:[%s4487_s1 + $0x6a4] ss:$8 sps:$4 sm:$0xff]  }
  0x73   :  { %2042 = vmatpush1.bf16.msra.mxu1 %v3143_v60  ;;  %v3239_v60 = vld [vmem:[%s4487_s1 + $0x2a0] ss:$8 sps:$4 sm:$0xff]  }
  0x74   :  { %2254 = vmatpush1.bf16.msra.mxu0 %v3146_v61  ;;  %2043 = vmatprep.subr.bf16.mxu1 %v3151_v62  ;;  %v3242_v61 = vld [vmem:[%s4487_s1 + $0x6a0] ss:$8 sps:$4 sm:$0xff]   ;;  %v3247_v62 = vld [vmem:[%s4487_s1 + $0x2b4] ss:$8 sps:$4 sm:$0xff]  }
  0x75   :  { %2255 = vmatprep.subr.bf16.mxu0 %v3154_v63  ;;  %v3250_v63 = vld [vmem:[%s4487_s1 + $0x6b4] ss:$8 sps:$4 sm:$0xff]  }
  0x77   :  { %2044 = vmatpush1.bf16.msra.mxu1 %v3149_v0  ;;  %v3245_v0 = vld [vmem:[%s4487_s1 + $0x2b0] ss:$8 sps:$4 sm:$0xff]  }
  0x78   :  { %2256 = vmatpush1.bf16.msra.mxu0 %v3152_v1  ;;  %2045 = vmatprep.subr.bf16.mxu1 %v3159_v2  ;;  %v3248_v1 = vld [vmem:[%s4487_s1 + $0x6b0] ss:$8 sps:$4 sm:$0xff]   ;;  %v3253_v2 = vld [vmem:[%s4487_s1 + $0x2c4] ss:$8 sps:$4 sm:$0xff]  }
  0x79   :  { %2257 = vmatprep.subr.bf16.mxu0 %v3164_v3  ;;  %v3256_v3 = vld [vmem:[%s4487_s1 + $0x6c4] ss:$8 sps:$4 sm:$0xff]  }
  0x7b   :  { %2046 = vmatpush1.bf16.msra.mxu1 %v3157_v4  ;;  %v3251_v4 = vld [vmem:[%s4487_s1 + $0x2c0] ss:$8 sps:$4 sm:$0xff]  }
  0x7c   :  { %2258 = vmatpush1.bf16.msra.mxu0 %v3162_v5  ;;  %2047 = vmatprep.subr.bf16.mxu1 %v3169_v6  ;;  %v3254_v5 = vld [vmem:[%s4487_s1 + $0x6c0] ss:$8 sps:$4 sm:$0xff]   ;;  %v3259_v6 = vld [vmem:[%s4487_s1 + $0x2d4] ss:$8 sps:$4 sm:$0xff]  }
  0x7d   :  { %2259 = vmatprep.subr.bf16.mxu0 %v3172_v7  ;;  %v3262_v7 = vld [vmem:[%s4487_s1 + $0x6d4] ss:$8 sps:$4 sm:$0xff]  }
  0x7f   :  { %2048 = vmatpush1.bf16.msra.mxu1 %v3167_v8  ;;  %v3257_v8 = vld [vmem:[%s4487_s1 + $0x2d0] ss:$8 sps:$4 sm:$0xff]  }
  0x80   :  { %2260 = vmatpush1.bf16.msra.mxu0 %v3170_v9  ;;  %2070 = vmatprep.subr.bf16.mxu1 %v3178_v10  ;;  %v3260_v9 = vld [vmem:[%s4487_s1 + $0x6d0] ss:$8 sps:$4 sm:$0xff]   ;;  %v3267_v10 = vld [vmem:[%s4487_s1 + $0x2e4] ss:$8 sps:$4 sm:$0xff]  }
  0x81   :  { %2282 = vmatprep.subr.bf16.mxu0 %v3184_v11  ;;  %v3272_v11 = vld [vmem:[%s4487_s1 + $0x6e4] ss:$8 sps:$4 sm:$0xff]  }
  0x82   :  { %2050 = vmatmul.mubr.bf16.vlgmr.msra.gmra.mrb[0].mxu1 %v3173_v12  ;;  %v3265_v12 = vld [vmem:[%s4487_s1 + $0x2e0] ss:$8 sps:$4 sm:$0xff]  }
  0x83   :  { %2262 = vmatmul.mubr.bf16.vlgmr.msra.gmra.mrb[0].mxu0 %v3179_v14  ;;  %2071 = vmatpush1.bf16.msra.mxu1 %v3176_v13  ;;  %v3270_v13 = vld [vmem:[%s4487_s1 + $0x6e0] ss:$8 sps:$4 sm:$0xff]   ;;  %v3277_v14 = vld [vmem:[%s4487_s1 + $0x2f4] ss:$8 sps:$4 sm:$0xff]  }
  0x84   :  { %2283 = vmatpush1.bf16.msra.mxu0 %v3182_v15  ;;  %2072 = vmatprep.subr.bf16.mxu1 %v3187_v16  ;;  %v3280_v15 = vld [vmem:[%s4487_s1 + $0x6f4] ss:$8 sps:$4 sm:$0xff]   ;;  %v3275_v16 = vld [vmem:[%s4487_s1 + $0x2f0] ss:$8 sps:$4 sm:$0xff]  }
  0x85   :  { %2284 = vmatprep.subr.bf16.mxu0 %v3190_v17  ;;  %2059 = vmatprep.mubr.bf16.mxu1 %v3263_v20  ;;  %v3278_v17 = vld [vmem:[%s4487_s1 + $0x6f0] ss:$8 sps:$4 sm:$0xff]  }
  0x86   :  { %2271 = vmatprep.mubr.bf16.mxu0 %v3268_v23  ;;  %v3281_v20 = vld [vmem:[%s4488_s0 + $0x10] ss:$72 sps:$4 sm:$0xff]   ;;  %v3290_v23 = vld [vmem:[%s4487_s1 + $0x700] ss:$8 sps:$4 sm:$0xff]  }
  0x87   :  { %2073 = vmatpush1.bf16.msra.mxu1 %v3185_v18  ;;  %v3286_v18 = vld [vmem:[%s4487_s1 + $0x304] ss:$8 sps:$4 sm:$0xff]  }
  0x88   :  { %2285 = vmatpush1.bf16.msra.mxu0 %v3188_v19  ;;  %2074 = vmatprep.subr.bf16.mxu1 %v3193_v21  ;;  %v3292_v19 = vld [vmem:[%s4487_s1 + $0x704] ss:$8 sps:$4 sm:$0xff]   ;;  %v3284_v21 = vld [vmem:[%s4487_s1 + $0x300] ss:$8 sps:$4 sm:$0xff]  }
  0x89   :  { %2286 = vmatprep.subr.bf16.mxu0 %v3196_v22  ;;  %v3287_v22 = vld [vmem:[%s4488_s0 + $0x30] ss:$72 sps:$4 sm:$0xff]  }
  0x8a   :  { %2060 = vmatmul.mubr.bf16.gmra.mrb[4].mxu1 %v3273_v26  ;;  %v3371_v26 = vld [vmem:[%s4488_s0 + $0xa4] ss:$72 sps:$4 sm:$0xff]  }
  0x8b   :  { %2272 = vmatmul.mubr.bf16.gmra.mrb[4].mxu0 %v3274_v27  ;;  %2075 = vmatpush1.bf16.msra.mxu1 %v3191_v24  ;;  %v3295_v24 = vld [vmem:[%s4487_s1 + $0x314] ss:$8 sps:$4 sm:$0xff]   ;;  %v3373_v27 = vld [vmem:[%s4488_s0 + $0xc4] ss:$72 sps:$4 sm:$0xff]  }
  0x8c   :  { %2287 = vmatpush1.bf16.msra.mxu0 %v3194_v25  ;;  %2076 = vmatprep.subr.bf16.mxu1 %v3199_v28  ;;  %v3298_v25 = vld [vmem:[%s4487_s1 + $0x714] ss:$8 sps:$4 sm:$0xff]   ;;  %v3293_v28 = vld [vmem:[%s4487_s1 + $0x310] ss:$8 sps:$4 sm:$0xff]  }
  0x8d   :  { %2288 = vmatprep.subr.bf16.mxu0 %v3202_v29  ;;  %2102 = vmatprep.mubr.bf16.mxu1 %v3283_v32  ;;  %v3296_v29 = vld [vmem:[%s4487_s1 + $0x710] ss:$8 sps:$4 sm:$0xff]   ;;  %v3299_v32 = vld [vmem:[%s4487_s1 + $0x320] ss:$8 sps:$4 sm:$0xff]  }
  0x8e   :  { %2314 = vmatprep.mubr.bf16.mxu0 %v3289_v35  ;;  %v3379_v35 = vld [vmem:[%s4488_s0 + $0xc0] ss:$72 sps:$4 sm:$0xff]  }
  0x8f   :  { %2077 = vmatpush1.bf16.msra.mxu1 %v3197_v30  ;;  %v3301_v30 = vld [vmem:[%s4487_s1 + $0x324] ss:$8 sps:$4 sm:$0xff]  }
  0x90   :  { %2289 = vmatpush1.bf16.msra.mxu0 %v3200_v31  ;;  %2078 = vmatprep.subr.bf16.mxu1 %v3205_v33  ;;  %v3304_v31 = vld [vmem:[%s4487_s1 + $0x724] ss:$8 sps:$4 sm:$0xff]   ;;  %v3302_v33 = vld [vmem:[%s4487_s1 + $0x720] ss:$8 sps:$4 sm:$0xff]  }
  0x91   :  { %2290 = vmatprep.subr.bf16.mxu0 %v3208_v34  ;;  %v3375_v34 = vld [vmem:[%s4488_s0 + $0xa0] ss:$72 sps:$4 sm:$0xff]  }
  0x93   :  { %2079 = vmatpush1.bf16.msra.mxu1 %v3203_v36  ;;  %v3307_v36 = vld [vmem:[%s4487_s1 + $0x334] ss:$8 sps:$4 sm:$0xff]  }
  0x94   :  { %2291 = vmatpush1.bf16.msra.mxu0 %v3206_v37  ;;  %2080 = vmatprep.subr.bf16.mxu1 %v3211_v38  ;;  %v3310_v37 = vld [vmem:[%s4487_s1 + $0x734] ss:$8 sps:$4 sm:$0xff]  }
  0x95   :  { %2292 = vmatprep.subr.bf16.mxu0 %v3214_v39  ;;  %v3391_v38 = vld [vmem:[%s4488_s0 + $0x1c] ss:$72 sps:$4 sm:$0xff]  }
  0x96   :  { %v3394_v39 = vld [vmem:[%s4488_s0 + $0x3c] ss:$72 sps:$4 sm:$0xff]  }
  0x97   :  { %2081 = vmatpush1.bf16.msra.mxu1 %v3209_v40  ;;  %v3305_v40 = vld [vmem:[%s4487_s1 + $0x330] ss:$8 sps:$4 sm:$0xff]  }
  0x98   :  { %2293 = vmatpush1.bf16.msra.mxu0 %v3212_v41  ;;  %2082 = vmatprep.subr.bf16.mxu1 %v3217_v42  ;;  %v3308_v41 = vld [vmem:[%s4487_s1 + $0x730] ss:$8 sps:$4 sm:$0xff]   ;;  %v3313_v42 = vld [vmem:[%s4487_s1 + $0x344] ss:$8 sps:$4 sm:$0xff]  }
  0x99   :  { %2294 = vmatprep.subr.bf16.mxu0 %v3220_v43  ;;  %v3316_v43 = vld [vmem:[%s4487_s1 + $0x744] ss:$8 sps:$4 sm:$0xff]  }
  0x9b   :  { %2083 = vmatpush1.bf16.msra.mxu1 %v3215_v44  ;;  %v3311_v44 = vld [vmem:[%s4487_s1 + $0x340] ss:$8 sps:$4 sm:$0xff]  }
  0x9c   :  { %2295 = vmatpush1.bf16.msra.mxu0 %v3218_v45  ;;  %2084 = vmatprep.subr.bf16.mxu1 %v3223_v46  ;;  %v3314_v45 = vld [vmem:[%s4487_s1 + $0x740] ss:$8 sps:$4 sm:$0xff]   ;;  %v3319_v46 = vld [vmem:[%s4487_s1 + $0x354] ss:$8 sps:$4 sm:$0xff]  }
  0x9d   :  { %2296 = vmatprep.subr.bf16.mxu0 %v3226_v47  ;;  %v3322_v47 = vld [vmem:[%s4487_s1 + $0x754] ss:$8 sps:$4 sm:$0xff]  }
  0x9f   :  { %2085 = vmatpush1.bf16.msra.mxu1 %v3221_v48  ;;  %v3317_v48 = vld [vmem:[%s4487_s1 + $0x350] ss:$8 sps:$4 sm:$0xff]  }
  0xa0   :  { %2297 = vmatpush1.bf16.msra.mxu0 %v3224_v49  ;;  %2086 = vmatprep.subr.bf16.mxu1 %v3229_v50  ;;  %v3320_v49 = vld [vmem:[%s4487_s1 + $0x750] ss:$8 sps:$4 sm:$0xff]   ;;  %v3325_v50 = vld [vmem:[%s4487_s1 + $0x364] ss:$8 sps:$4 sm:$0xff]  }
  0xa1   :  { %2298 = vmatprep.subr.bf16.mxu0 %v3232_v51  ;;  %v3328_v51 = vld [vmem:[%s4487_s1 + $0x764] ss:$8 sps:$4 sm:$0xff]  }
  0xa3   :  { %2087 = vmatpush1.bf16.msra.mxu1 %v3227_v52  ;;  %v3323_v52 = vld [vmem:[%s4487_s1 + $0x360] ss:$8 sps:$4 sm:$0xff]  }
  0xa4   :  { %2299 = vmatpush1.bf16.msra.mxu0 %v3230_v53  ;;  %2088 = vmatprep.subr.bf16.mxu1 %v3235_v54  ;;  %v3326_v53 = vld [vmem:[%s4487_s1 + $0x760] ss:$8 sps:$4 sm:$0xff]   ;;  %v3331_v54 = vld [vmem:[%s4487_s1 + $0x374] ss:$8 sps:$4 sm:$0xff]  }
  0xa5   :  { %2300 = vmatprep.subr.bf16.mxu0 %v3238_v55  ;;  %v3334_v55 = vld [vmem:[%s4487_s1 + $0x774] ss:$8 sps:$4 sm:$0xff]  }
  0xa7   :  { %2089 = vmatpush1.bf16.msra.mxu1 %v3233_v56  ;;  %v3329_v56 = vld [vmem:[%s4487_s1 + $0x370] ss:$8 sps:$4 sm:$0xff]  }
  0xa8   :  { %2301 = vmatpush1.bf16.msra.mxu0 %v3236_v57  ;;  %2090 = vmatprep.subr.bf16.mxu1 %v3241_v58  ;;  %v3332_v57 = vld [vmem:[%s4487_s1 + $0x770] ss:$8 sps:$4 sm:$0xff]   ;;  %v3337_v58 = vld [vmem:[%s4487_s1 + $0x384] ss:$8 sps:$4 sm:$0xff]  }
  0xa9   :  { %2302 = vmatprep.subr.bf16.mxu0 %v3244_v59  ;;  %v3340_v59 = vld [vmem:[%s4487_s1 + $0x784] ss:$8 sps:$4 sm:$0xff]  }
  0xab   :  { %2091 = vmatpush1.bf16.msra.mxu1 %v3239_v60  ;;  %v3335_v60 = vld [vmem:[%s4487_s1 + $0x380] ss:$8 sps:$4 sm:$0xff]  }
  0xac   :  { %2303 = vmatpush1.bf16.msra.mxu0 %v3242_v61  ;;  %2092 = vmatprep.subr.bf16.mxu1 %v3247_v62  ;;  %v3338_v61 = vld [vmem:[%s4487_s1 + $0x780] ss:$8 sps:$4 sm:$0xff]   ;;  %v3343_v62 = vld [vmem:[%s4487_s1 + $0x394] ss:$8 sps:$4 sm:$0xff]  }
  0xad   :  { %2304 = vmatprep.subr.bf16.mxu0 %v3250_v63  ;;  %v3346_v63 = vld [vmem:[%s4487_s1 + $0x794] ss:$8 sps:$4 sm:$0xff]  }
  0xaf   :  { %2093 = vmatpush1.bf16.msra.mxu1 %v3245_v0  ;;  %v3341_v0 = vld [vmem:[%s4487_s1 + $0x390] ss:$8 sps:$4 sm:$0xff]  }
  0xb0   :  { %2305 = vmatpush1.bf16.msra.mxu0 %v3248_v1  ;;  %2094 = vmatprep.subr.bf16.mxu1 %v3253_v2  ;;  %v3344_v1 = vld [vmem:[%s4487_s1 + $0x790] ss:$8 sps:$4 sm:$0xff]   ;;  %v3349_v2 = vld [vmem:[%s4487_s1 + $0x3a4] ss:$8 sps:$4 sm:$0xff]  }
  0xb1   :  { %2306 = vmatprep.subr.bf16.mxu0 %v3256_v3  ;;  %v3352_v3 = vld [vmem:[%s4487_s1 + $0x7a4] ss:$8 sps:$4 sm:$0xff]  }
  0xb3   :  { %2095 = vmatpush1.bf16.msra.mxu1 %v3251_v4  ;;  %v3347_v4 = vld [vmem:[%s4487_s1 + $0x3a0] ss:$8 sps:$4 sm:$0xff]  }
  0xb4   :  { %2307 = vmatpush1.bf16.msra.mxu0 %v3254_v5  ;;  %2096 = vmatprep.subr.bf16.mxu1 %v3259_v6  ;;  %v3350_v5 = vld [vmem:[%s4487_s1 + $0x7a0] ss:$8 sps:$4 sm:$0xff]   ;;  %v3355_v6 = vld [vmem:[%s4487_s1 + $0x3b4] ss:$8 sps:$4 sm:$0xff]  }
  0xb5   :  { %2308 = vmatprep.subr.bf16.mxu0 %v3262_v7  ;;  %v3358_v7 = vld [vmem:[%s4487_s1 + $0x7b4] ss:$8 sps:$4 sm:$0xff]  }
  0xb7   :  { %2097 = vmatpush1.bf16.msra.mxu1 %v3257_v8  ;;  %v3353_v8 = vld [vmem:[%s4487_s1 + $0x3b0] ss:$8 sps:$4 sm:$0xff]  }
  0xb8   :  { %2309 = vmatpush1.bf16.msra.mxu0 %v3260_v9  ;;  %2098 = vmatprep.subr.bf16.mxu1 %v3267_v10  ;;  %v3356_v9 = vld [vmem:[%s4487_s1 + $0x7b0] ss:$8 sps:$4 sm:$0xff]   ;;  %v3361_v10 = vld [vmem:[%s4487_s1 + $0x3c4] ss:$8 sps:$4 sm:$0xff]  }
  0xb9   :  { %2310 = vmatprep.subr.bf16.mxu0 %v3272_v11  ;;  %v3364_v11 = vld [vmem:[%s4487_s1 + $0x7c4] ss:$8 sps:$4 sm:$0xff]  }
  0xbb   :  { %2099 = vmatpush1.bf16.msra.mxu1 %v3265_v12  ;;  %v3359_v12 = vld [vmem:[%s4487_s1 + $0x3c0] ss:$8 sps:$4 sm:$0xff]  }
  0xbc   :  { %2311 = vmatpush1.bf16.msra.mxu0 %v3270_v13  ;;  %2100 = vmatprep.subr.bf16.mxu1 %v3277_v14  ;;  %v3362_v13 = vld [vmem:[%s4487_s1 + $0x7c0] ss:$8 sps:$4 sm:$0xff]   ;;  %v3367_v14 = vld [vmem:[%s4487_s1 + $0x3d4] ss:$8 sps:$4 sm:$0xff]  }
  0xbd   :  { %2312 = vmatprep.subr.bf16.mxu0 %v3280_v15  ;;  %v3370_v15 = vld [vmem:[%s4487_s1 + $0x7d4] ss:$8 sps:$4 sm:$0xff]  }
  0xbf   :  { %2101 = vmatpush1.bf16.msra.mxu1 %v3275_v16  ;;  %v3365_v16 = vld [vmem:[%s4487_s1 + $0x3d0] ss:$8 sps:$4 sm:$0xff]  }
  0xc0   :  { %2313 = vmatpush1.bf16.msra.mxu0 %v3278_v17  ;;  %2123 = vmatprep.subr.bf16.mxu1 %v3286_v18  ;;  %v3368_v17 = vld [vmem:[%s4487_s1 + $0x7d0] ss:$8 sps:$4 sm:$0xff]   ;;  %v3378_v18 = vld [vmem:[%s4487_s1 + $0x3e4] ss:$8 sps:$4 sm:$0xff]  }
  0xc1   :  { %2335 = vmatprep.subr.bf16.mxu0 %v3292_v19  ;;  %v3382_v19 = vld [vmem:[%s4487_s1 + $0x7e4] ss:$8 sps:$4 sm:$0xff]  }
  0xc2   :  { %2103 = vmatmul.mubr.bf16.vlgmr.msra.gmra.mrb[0].mxu1 %v3281_v20  ;;  %v3376_v20 = vld [vmem:[%s4487_s1 + $0x3e0] ss:$8 sps:$4 sm:$0xff]  }
  0xc3   :  { %2315 = vmatmul.mubr.bf16.vlgmr.msra.gmra.mrb[0].mxu0 %v3287_v22  ;;  %2124 = vmatpush1.bf16.msra.mxu1 %v3284_v21  ;;  %v3380_v21 = vld [vmem:[%s4487_s1 + $0x7e0] ss:$8 sps:$4 sm:$0xff]   ;;  %v3385_v22 = vld [vmem:[%s4487_s1 + $0x3f4] ss:$8 sps:$4 sm:$0xff]  }
  0xc4   :  { %2336 = vmatpush1.bf16.msra.mxu0 %v3290_v23  ;;  %2125 = vmatprep.subr.bf16.mxu1 %v3295_v24  ;;  %v3388_v23 = vld [vmem:[%s4487_s1 + $0x7f4] ss:$8 sps:$4 sm:$0xff]   ;;  %v3383_v24 = vld [vmem:[%s4487_s1 + $0x3f0] ss:$8 sps:$4 sm:$0xff]  }
  0xc5   :  { %2337 = vmatprep.subr.bf16.mxu0 %v3298_v25  ;;  %2112 = vmatprep.mubr.bf16.mxu1 %v3371_v26  ;;  %v3386_v25 = vld [vmem:[%s4487_s1 + $0x7f0] ss:$8 sps:$4 sm:$0xff]   ;;  %v3397_v26 = vld [vmem:[%s4487_s1 + $0x804] ss:$8 sps:$4 sm:$0xff]  }
  0xc6   :  { %2324 = vmatprep.mubr.bf16.mxu0 %v3373_v27  ;;  %v3389_v27 = vld [vmem:[%s4488_s0 + $0x18] ss:$72 sps:$4 sm:$0xff]  }
  0xc7   :  { %2126 = vmatpush1.bf16.msra.mxu1 %v3293_v28  ;;  %v3392_v28 = vld [vmem:[%s4488_s0 + $0x38] ss:$72 sps:$4 sm:$0xff]  }
  0xc8   :  { %2338 = vmatpush1.bf16.msra.mxu0 %v3296_v29  ;;  %2127 = vmatprep.subr.bf16.mxu1 %v3301_v30  ;;  %v3395_v29 = vld [vmem:[%s4487_s1 + $0x800] ss:$8 sps:$4 sm:$0xff]   ;;  %v3400_v30 = vld [vmem:[%s4487_s1 + $0x814] ss:$8 sps:$4 sm:$0xff]  }
  0xc9   :  { %2339 = vmatprep.subr.bf16.mxu0 %v3304_v31  ;;  %v3401_v31 = vld [vmem:[%s4488_s0 + $0xac] ss:$72 sps:$4 sm:$0xff]  }
  0xca   :  { %2113 = vmatmul.mubr.bf16.gmra.mrb[4].mxu1 %v3375_v34  ;;  %v3409_v34 = vld [vmem:[%s4487_s1 + $0x824] ss:$8 sps:$4 sm:$0xff]  }
  0xcb   :  { %2325 = vmatmul.mubr.bf16.gmra.mrb[4].mxu0 %v3379_v35  ;;  %2128 = vmatpush1.bf16.msra.mxu1 %v3299_v32  ;;  %v3403_v32 = vld [vmem:[%s4488_s0 + $0xcc] ss:$72 sps:$4 sm:$0xff]   ;;  %v3405_v35 = vld [vmem:[%s4488_s0 + $0xa8] ss:$72 sps:$4 sm:$0xff]  }
  0xcc   :  { %2340 = vmatpush1.bf16.msra.mxu0 %v3302_v33  ;;  %2129 = vmatprep.subr.bf16.mxu1 %v3307_v36  ;;  %v3398_v33 = vld [vmem:[%s4487_s1 + $0x810] ss:$8 sps:$4 sm:$0xff]  }
  0xcd   :  { %2341 = vmatprep.subr.bf16.mxu0 %v3310_v37  ;;  %2155 = vmatprep.mubr.bf16.mxu1 %v3391_v38  ;;  %v3406_v36 = vld [vmem:[%s4488_s0 + $0xc8] ss:$72 sps:$4 sm:$0xff]   ;;  %v3412_v38 = vld [vmem:[%s4487_s1 + $0x834] ss:$8 sps:$4 sm:$0xff]  }
  0xce   :  { %2367 = vmatprep.mubr.bf16.mxu0 %v3394_v39  ;;  %v3407_v37 = vld [vmem:[%s4487_s1 + $0x820] ss:$8 sps:$4 sm:$0xff]   ;;  %v3451_v39 = vld [vmem:[%s4488_s0 + $0x44] ss:$72 sps:$4 sm:$0xff]  }
  0xcf   :  { %2130 = vmatpush1.bf16.msra.mxu1 %v3305_v40  ;;  %v3454_v40 = vld [vmem:[%s4488_s0 + $0xd4] ss:$72 sps:$4 sm:$0xff]  }
  0xd0   :  { %2342 = vmatpush1.bf16.msra.mxu0 %v3308_v41  ;;  %2131 = vmatprep.subr.bf16.mxu1 %v3313_v42  ;;  %v3410_v41 = vld [vmem:[%s4487_s1 + $0x830] ss:$8 sps:$4 sm:$0xff]   ;;  %v3415_v42 = vld [vmem:[%s4487_s1 + $0x844] ss:$8 sps:$4 sm:$0xff]  }
  0xd1   :  { %2343 = vmatprep.subr.bf16.mxu0 %v3316_v43  ;;  %v3413_v43 = vld [vmem:[%s4487_s1 + $0x840] ss:$8 sps:$4 sm:$0xff]  }
  0xd3   :  { %2132 = vmatpush1.bf16.msra.mxu1 %v3311_v44  ;;  %v3418_v44 = vld [vmem:[%s4487_s1 + $0x854] ss:$8 sps:$4 sm:$0xff]  }
  0xd4   :  { %2344 = vmatpush1.bf16.msra.mxu0 %v3314_v45  ;;  %2133 = vmatprep.subr.bf16.mxu1 %v3319_v46  ;;  %v3416_v45 = vld [vmem:[%s4487_s1 + $0x850] ss:$8 sps:$4 sm:$0xff]   ;;  %v3421_v46 = vld [vmem:[%s4487_s1 + $0x864] ss:$8 sps:$4 sm:$0xff]  }
  0xd5   :  { %2345 = vmatprep.subr.bf16.mxu0 %v3322_v47  ;;  %v3419_v47 = vld [vmem:[%s4487_s1 + $0x860] ss:$8 sps:$4 sm:$0xff]  }
  0xd7   :  { %2134 = vmatpush1.bf16.msra.mxu1 %v3317_v48  ;;  %v3424_v48 = vld [vmem:[%s4487_s1 + $0x874] ss:$8 sps:$4 sm:$0xff]  }
  0xd8   :  { %2346 = vmatpush1.bf16.msra.mxu0 %v3320_v49  ;;  %2135 = vmatprep.subr.bf16.mxu1 %v3325_v50  ;;  %v3422_v49 = vld [vmem:[%s4487_s1 + $0x870] ss:$8 sps:$4 sm:$0xff]   ;;  %v3427_v50 = vld [vmem:[%s4487_s1 + $0x884] ss:$8 sps:$4 sm:$0xff]  }
  0xd9   :  { %2347 = vmatprep.subr.bf16.mxu0 %v3328_v51  ;;  %v3425_v51 = vld [vmem:[%s4487_s1 + $0x880] ss:$8 sps:$4 sm:$0xff]  }
  0xdb   :  { %2136 = vmatpush1.bf16.msra.mxu1 %v3323_v52  ;;  %v3430_v52 = vld [vmem:[%s4487_s1 + $0x894] ss:$8 sps:$4 sm:$0xff]  }
  0xdc   :  { %2348 = vmatpush1.bf16.msra.mxu0 %v3326_v53  ;;  %2137 = vmatprep.subr.bf16.mxu1 %v3331_v54  ;;  %v3428_v53 = vld [vmem:[%s4487_s1 + $0x890] ss:$8 sps:$4 sm:$0xff]   ;;  %v3433_v54 = vld [vmem:[%s4487_s1 + $0x8a4] ss:$8 sps:$4 sm:$0xff]  }
  0xdd   :  { %2349 = vmatprep.subr.bf16.mxu0 %v3334_v55  ;;  %v3431_v55 = vld [vmem:[%s4487_s1 + $0x8a0] ss:$8 sps:$4 sm:$0xff]  }
  0xdf   :  { %2138 = vmatpush1.bf16.msra.mxu1 %v3329_v56  ;;  %v3436_v56 = vld [vmem:[%s4487_s1 + $0x8b4] ss:$8 sps:$4 sm:$0xff]  }
  0xe0   :  { %2350 = vmatpush1.bf16.msra.mxu0 %v3332_v57  ;;  %2139 = vmatprep.subr.bf16.mxu1 %v3337_v58  ;;  %v3434_v57 = vld [vmem:[%s4487_s1 + $0x8b0] ss:$8 sps:$4 sm:$0xff]   ;;  %v3439_v58 = vld [vmem:[%s4487_s1 + $0x8c4] ss:$8 sps:$4 sm:$0xff]  }
  0xe1   :  { %2351 = vmatprep.subr.bf16.mxu0 %v3340_v59  ;;  %v3437_v59 = vld [vmem:[%s4487_s1 + $0x8c0] ss:$8 sps:$4 sm:$0xff]  }
  0xe3   :  { %2140 = vmatpush1.bf16.msra.mxu1 %v3335_v60  ;;  %v3442_v60 = vld [vmem:[%s4487_s1 + $0x8d4] ss:$8 sps:$4 sm:$0xff]  }
  0xe4   :  { %2352 = vmatpush1.bf16.msra.mxu0 %v3338_v61  ;;  %2141 = vmatprep.subr.bf16.mxu1 %v3343_v62  ;;  %v3440_v61 = vld [vmem:[%s4487_s1 + $0x8d0] ss:$8 sps:$4 sm:$0xff]   ;;  %v3445_v62 = vld [vmem:[%s4487_s1 + $0x8e4] ss:$8 sps:$4 sm:$0xff]  }
  0xe5   :  { %2353 = vmatprep.subr.bf16.mxu0 %v3346_v63  ;;  %v3443_v63 = vld [vmem:[%s4487_s1 + $0x8e0] ss:$8 sps:$4 sm:$0xff]  }
  0xe7   :  { %2142 = vmatpush1.bf16.msra.mxu1 %v3341_v0  ;;  %v3448_v0 = vld [vmem:[%s4487_s1 + $0x8f4] ss:$8 sps:$4 sm:$0xff]  }
  0xe8   :  { %2354 = vmatpush1.bf16.msra.mxu0 %v3344_v1  ;;  %2143 = vmatprep.subr.bf16.mxu1 %v3349_v2  ;;  %v3446_v1 = vld [vmem:[%s4487_s1 + $0x8f0] ss:$8 sps:$4 sm:$0xff]   ;;  %v3449_v2 = vld [vmem:[%s4488_s0 + $0x40] ss:$72 sps:$4 sm:$0xff]  }
  0xe9   :  { %2355 = vmatprep.subr.bf16.mxu0 %v3352_v3  ;;  %v3452_v3 = vld [vmem:[%s4488_s0 + $0xd0] ss:$72 sps:$4 sm:$0xff]  }
  0xeb   :  { %2144 = vmatpush1.bf16.msra.mxu1 %v3347_v4 }
  0xec   :  { %2356 = vmatpush1.bf16.msra.mxu0 %v3350_v5  ;;  %2145 = vmatprep.subr.bf16.mxu1 %v3355_v6 }
  0xed   :  { %2357 = vmatprep.subr.bf16.mxu0 %v3358_v7 }
  0xef   :  { %2146 = vmatpush1.bf16.msra.mxu1 %v3353_v8 }
  0xf0   :  { %2358 = vmatpush1.bf16.msra.mxu0 %v3356_v9  ;;  %2147 = vmatprep.subr.bf16.mxu1 %v3361_v10 }
  0xf1   :  { %2359 = vmatprep.subr.bf16.mxu0 %v3364_v11 }
  0xf3   :  { %2148 = vmatpush1.bf16.msra.mxu1 %v3359_v12 }
  0xf4   :  { %2360 = vmatpush1.bf16.msra.mxu0 %v3362_v13  ;;  %2149 = vmatprep.subr.bf16.mxu1 %v3367_v14 }
  0xf5   :  { %2361 = vmatprep.subr.bf16.mxu0 %v3370_v15 }
  0xf7   :  { %2150 = vmatpush1.bf16.msra.mxu1 %v3365_v16 }
  0xf8   :  { %2362 = vmatpush1.bf16.msra.mxu0 %v3368_v17  ;;  %2151 = vmatprep.subr.bf16.mxu1 %v3378_v18 }
  0xf9   :  { %2363 = vmatprep.subr.bf16.mxu0 %v3382_v19 }
  0xfb   :  { %2152 = vmatpush1.bf16.msra.mxu1 %v3376_v20  ;;  %v2443_v20 = vlaneseq }
  0xfc   :  { %2364 = vmatpush1.bf16.msra.mxu0 %v3380_v21  ;;  %2153 = vmatprep.subr.bf16.mxu1 %v3385_v22 }
  0xfd   :  { %2365 = vmatprep.subr.bf16.mxu0 %v3388_v23  ;;  %v2444_v21 = vshrl.u32 %v2443_v20, 7 }
  0xff   :  { %2154 = vmatpush1.bf16.msra.mxu1 %v3383_v24  ;;  %v2445_v22 = vsub.s32 0, %v2444_v21  ;;  %v2449_v23 = vsub.s32 1, %v2444_v21  ;;  %v2441_v24 = vld [vmem:[%s4489_s2] sm:$0x3] }
 0x100   :  { %2366 = vmatpush1.bf16.msra.mxu0 %v3386_v25  ;;  %2873 = vmatprep.subr.bf16.mxu1 %v3397_v26  ;;  %v2461_v25 = vld [vmem:[%s4490_s3] sm:$0x3] }
 0x101   :  { %2388 = vmatprep.subr.bf16.mxu0 %v3397_v26  ;;  %v2481_v26 = vld [vmem:[%s4491_s4] sm:$0xff] }
 0x102   :  { %2156 = vmatmul.mubr.bf16.vlgmr.msra.gmra.mrb[0].mxu1 %v3389_v27  ;;  %v2483_v27 = vld [vmem:[%s4491_s4 + $0x10] sm:$0xff] }
 0x103   :  { %2368 = vmatmul.mubr.bf16.vlgmr.msra.gmra.mrb[0].mxu0 %v3392_v28  ;;  %2889 = vmatpush1.bf16.msra.mxu1 %v3395_v29  ;;  %v2482_v28 = vld [vmem:[%s4491_s4 + $0x8] sm:$0xff] }
 0x104   :  { %2389 = vmatpush1.bf16.msra.mxu0 %v3395_v29  ;;  %2874 = vmatprep.subr.bf16.mxu1 %v3400_v30  ;;  %v2484_v29 = vld [vmem:[%s4491_s4 + $0x18] sm:$0xff] }
 0x105   :  { %2390 = vmatprep.subr.bf16.mxu0 %v3400_v30  ;;  %2165 = vmatprep.mubr.bf16.mxu1 %v3401_v31  ;;  %v2446_v30 = vrot.slane %v2441_v24, %v2445_v22  ;;  %v2466_v31 = vrot.slane %v2461_v25, %v2445_v22 }
 0x106   :  { %2377 = vmatprep.mubr.bf16.mxu0 %v3403_v32  ;;  %v2450_v32 = vrot.slane %v2441_v24, %v2449_v23 }
 0x107   :  { %2890 = vmatpush1.bf16.msra.mxu1 %v3398_v33 }
 0x108   :  { %2391 = vmatpush1.bf16.msra.mxu0 %v3398_v33  ;;  %2875 = vmatprep.subr.bf16.mxu1 %v3409_v34  ;;  %v2470_v33 = vrot.slane %v2461_v25, %v2449_v23 }
 0x109   :  { %2392 = vmatprep.subr.bf16.mxu0 %v3409_v34 }
 0x10a   :  { %2166 = vmatmul.mubr.bf16.gmra.mrb[4].mxu1 %v3405_v35  ;;  %v2485_v35 = vunpack.c.l.bf16 %v2481_v26 }
 0x10b   :  { %2378 = vmatmul.mubr.bf16.gmra.mrb[4].mxu0 %v3406_v36  ;;  %2891 = vmatpush1.bf16.msra.mxu1 %v3407_v37 }
 0x10c   :  { %2393 = vmatpush1.bf16.msra.mxu0 %v3407_v37  ;;  %2876 = vmatprep.subr.bf16.mxu1 %v3412_v38  ;;  %v2489_v37 = vunpack.c.l.bf16 %v2483_v27 }
 0x10d   :  { %2394 = vmatprep.subr.bf16.mxu0 %v3412_v38  ;;  %2420 = vmatprep.mubr.bf16.mxu0 %v3451_v39  ;;  %v2486_v38 = vunpack.c.h.bf16 %v2481_v26  ;;  %v2490_v39 = vunpack.c.h.bf16 %v2483_v27 }
 0x10e   :  { %2430 = vmatprep.mubr.bf16.mxu1 %v3454_v40 }
 0x10f   :  { %2892 = vmatpush1.bf16.msra.mxu1 %v3410_v41 }
 0x110   :  { %2395 = vmatpush1.bf16.msra.mxu0 %v3410_v41  ;;  %2877 = vmatprep.subr.bf16.mxu1 %v3415_v42 }
 0x111   :  { %2396 = vmatprep.subr.bf16.mxu0 %v3415_v42 }
 0x113   :  { %2893 = vmatpush1.bf16.msra.mxu1 %v3413_v43 }
 0x114   :  { %2397 = vmatpush1.bf16.msra.mxu0 %v3413_v43  ;;  %2878 = vmatprep.subr.bf16.mxu1 %v3418_v44 }
 0x115   :  { %2398 = vmatprep.subr.bf16.mxu0 %v3418_v44  ;;  %v2487_v44 = vunpack.c.l.bf16 %v2482_v28 }
 0x117   :  { %2894 = vmatpush1.bf16.msra.mxu1 %v3416_v45 }
 0x118   :  { %2399 = vmatpush1.bf16.msra.mxu0 %v3416_v45  ;;  %2879 = vmatprep.subr.bf16.mxu1 %v3421_v46  ;;  %v2491_v45 = vunpack.c.l.bf16 %v2484_v29 }
 0x119   :  { %2400 = vmatprep.subr.bf16.mxu0 %v3421_v46 }
 0x11b   :  { %2895 = vmatpush1.bf16.msra.mxu1 %v3419_v47 }
 0x11c   :  { %2401 = vmatpush1.bf16.msra.mxu0 %v3419_v47  ;;  %2880 = vmatprep.subr.bf16.mxu1 %v3424_v48 }
 0x11d   :  { %2402 = vmatprep.subr.bf16.mxu0 %v3424_v48 }
 0x11f   :  { %2896 = vmatpush1.bf16.msra.mxu1 %v3422_v49 }
 0x120   :  { %2403 = vmatpush1.bf16.msra.mxu0 %v3422_v49  ;;  %2881 = vmatprep.subr.bf16.mxu1 %v3427_v50 }
 0x121   :  { %2404 = vmatprep.subr.bf16.mxu0 %v3427_v50  ;;  %v2488_v50 = vunpack.c.h.bf16 %v2482_v28 }
 0x123   :  { %2897 = vmatpush1.bf16.msra.mxu1 %v3425_v51 }
 0x124   :  { %2405 = vmatpush1.bf16.msra.mxu0 %v3425_v51  ;;  %2882 = vmatprep.subr.bf16.mxu1 %v3430_v52  ;;  %v2492_v51 = vunpack.c.h.bf16 %v2484_v29 }
 0x125   :  { %2406 = vmatprep.subr.bf16.mxu0 %v3430_v52 }
 0x127   :  { %2898 = vmatpush1.bf16.msra.mxu1 %v3428_v53 }
 0x128   :  { %2407 = vmatpush1.bf16.msra.mxu0 %v3428_v53  ;;  %2883 = vmatprep.subr.bf16.mxu1 %v3433_v54 }
 0x129   :  { %2408 = vmatprep.subr.bf16.mxu0 %v3433_v54 }
 0x12b   :  { %2899 = vmatpush1.bf16.msra.mxu1 %v3431_v55 }
 0x12c   :  { %2409 = vmatpush1.bf16.msra.mxu0 %v3431_v55  ;;  %2884 = vmatprep.subr.bf16.mxu1 %v3436_v56 }
 0x12d   :  { %2410 = vmatprep.subr.bf16.mxu0 %v3436_v56 }
 0x12f   :  { %2900 = vmatpush1.bf16.msra.mxu1 %v3434_v57 }
 0x130   :  { %2411 = vmatpush1.bf16.msra.mxu0 %v3434_v57  ;;  %2885 = vmatprep.subr.bf16.mxu1 %v3439_v58 }
 0x131   :  { %2412 = vmatprep.subr.bf16.mxu0 %v3439_v58 }
 0x133   :  { %2901 = vmatpush1.bf16.msra.mxu1 %v3437_v59 }
 0x134   :  { %2413 = vmatpush1.bf16.msra.mxu0 %v3437_v59  ;;  %2886 = vmatprep.subr.bf16.mxu1 %v3442_v60 }
 0x135   :  { %2414 = vmatprep.subr.bf16.mxu0 %v3442_v60 }
 0x137   :  { %2902 = vmatpush1.bf16.msra.mxu1 %v3440_v61 }
 0x138   :  { %2415 = vmatpush1.bf16.msra.mxu0 %v3440_v61  ;;  %2887 = vmatprep.subr.bf16.mxu1 %v3445_v62 }
 0x139   :  { %2416 = vmatprep.subr.bf16.mxu0 %v3445_v62 }
 0x13b   :  { %2903 = vmatpush1.bf16.msra.mxu1 %v3443_v63 }
 0x13c   :  { %2417 = vmatpush1.bf16.msra.mxu0 %v3443_v63  ;;  %2888 = vmatprep.subr.bf16.mxu1 %v3448_v0 }
 0x13d   :  { %2418 = vmatprep.subr.bf16.mxu0 %v3448_v0 }
 0x13f   :  { %2904 = vmatpush1.bf16.msra.mxu1 %v3446_v1 }
 0x140   :  { %2419 = vmatpush1.bf16.msra.mxu0 %v3446_v1 }
 0x142   :  { %2431 = vmatmul.mubr.bf16.vlgmr.msra.gmra.mrb[8].mxu1 %v3452_v3 }
 0x143   :  { %2421 = vmatmul.mubr.bf16.vlgmr.msra.gmra.mrb[0].mxu0 %v3449_v2 }
 0x1d5   :  { %v2157_v4 = vpop.f32.mrb[0].mxu1 }
 0x1d6   :  { %v2159_v5 = vpop.f32.mrb[1].mxu1 }
 0x1d7   :  { %v2161_v6 = vpop.f32.mrb[2].mxu1 }
 0x1d8   :  { %v2163_v7 = vpop.f32.mrb[3].mxu1 }
 0x1dd   :  { %v2167_v8 = vpop.f32.mrb[4].mxu1 }
 0x1de   :  { %v2379_v9 = vpop.f32.mrb[4].mxu0  ;;  %v2169_v11 = vpop.f32.mrb[5].mxu1 }
 0x1df   :  { %v2909_v10 = vadd.f32 %v2379_v9, %v2167_v8  ;;  %v2381_v12 = vpop.f32.mrb[5].mxu0  ;;  %v2171_v14 = vpop.f32.mrb[6].mxu1 }
 0x1e0   :  { %v2911_v13 = vadd.f32 %v2381_v12, %v2169_v11  ;;  %v2383_v15 = vpop.f32.mrb[6].mxu0  ;;  %v2173_v17 = vpop.f32.mrb[7].mxu1 }
 0x1e1   :  { %v2913_v16 = vadd.f32 %v2383_v15, %v2171_v14  ;;  %v2385_v18 = vpop.f32.mrb[7].mxu0 }
 0x1e2   :  { %v2915_v19 = vadd.f32 %v2385_v18, %v2173_v17 }
 0x215   :  { %v2432_v36 = vpop.f32.mrb[8].mxu1 }
 0x216   :  { %v2422_v34 = vpop.f32.mrb[0].mxu0  ;;  %v2910_v41 = vadd.f32 %v2909_v10, %v2432_v36  ;;  %v2434_v43 = vpop.f32.mrb[9].mxu1 }
 0x217   :  { %v2905_v40 = vadd.f32 %v2422_v34, %v2157_v4  ;;  %v2424_v42 = vpop.f32.mrb[1].mxu0  ;;  %v2912_v47 = vadd.f32 %v2911_v13, %v2434_v43  ;;  %v2436_v49 = vpop.f32.mrb[10].mxu1 }
 0x218   :  { %v2906_v46 = vadd.f32 %v2424_v42, %v2159_v5  ;;  %v2426_v48 = vpop.f32.mrb[2].mxu0  ;;  %v2457_v53 = vmul.f32 %v2910_v41, %v2446_v30  ;;  %v2914_v55 = vadd.f32 %v2913_v16, %v2436_v49  ;;  %v2438_v57 = vpop.f32.mrb[11].mxu1 }
 0x219   :  { %v2453_v52 = vmul.f32 %v2905_v40, %v2446_v30  ;;  %v2907_v54 = vadd.f32 %v2426_v48, %v2161_v6  ;;  %v2428_v56 = vpop.f32.mrb[3].mxu0  ;;  %v2458_v59 = vmul.f32 %v2912_v47, %v2450_v32  ;;  %v2916_v61 = vadd.f32 %v2915_v19, %v2438_v57 }
 0x21a   :  { %v2454_v58 = vmul.f32 %v2906_v46, %v2450_v32  ;;  %v2908_v60 = vadd.f32 %v2428_v56, %v2163_v7  ;;  %v2477_v63 = vadd.f32 %v2466_v31, %v2457_v53  ;;  %v2459_v1 = vmul.f32 %v2914_v55, %v2446_v30 }
 0x21b   :  { %v2473_v62 = vadd.f32 %v2466_v31, %v2453_v52  ;;  %v2455_v0 = vmul.f32 %v2907_v54, %v2446_v30  ;;  %v2478_v3 = vadd.f32 %v2470_v33, %v2458_v59  ;;  %v2460_v5 = vmul.f32 %v2916_v61, %v2450_v32 }
 0x21c   :  { %v2474_v2 = vadd.f32 %v2470_v33, %v2454_v58  ;;  %v2456_v4 = vmul.f32 %v2908_v60, %v2450_v32  ;;  %v2497_v9 = vadd.f32 %v2489_v37, %v2477_v63  ;;  %v2479_v11 = vadd.f32 %v2466_v31, %v2459_v1 }
 0x21d   :  { %v2493_v8 = vadd.f32 %v2485_v35, %v2473_v62  ;;  %v2475_v10 = vadd.f32 %v2466_v31, %v2455_v0  ;;  %v2498_v12 = vadd.f32 %v2490_v39, %v2478_v3  ;;  %v2480_v14 = vadd.f32 %v2470_v33, %v2460_v5 }
 0x21e   :  { %v2494_v6 = vadd.f32 %v2486_v38, %v2474_v2  ;;  %v2476_v13 = vadd.f32 %v2470_v33, %v2456_v4  ;;  %v2505_v16 = vmax.f32 %v2497_v9, 0.0  ;;  %v2499_v17 = vadd.f32 %v2491_v45, %v2479_v11 }
 0x21f   :  { %v2501_v15 = vmax.f32 %v2493_v8, 0.0  ;;  %v2495_v7 = vadd.f32 %v2487_v44, %v2475_v10  ;;  %v2506_v19 = vmax.f32 %v2498_v12, 0.0  ;;  %v2500_v21 = vadd.f32 %v2492_v51, %v2480_v14 }
 0x220   :  { %v2502_v18 = vmax.f32 %v2494_v6, 0.0  ;;  %v2496_v20 = vadd.f32 %v2488_v50, %v2476_v13  ;;  %v2507_v23 = vmax.f32 %v2499_v17, 0.0 }
 0x221   :  { %v2503_v22 = vmax.f32 %v2495_v7, 0.0  ;;  %v2871_v25 = vpack.c.bf16 %v2506_v19, %v2505_v16  ;;  %v2508_v27 = vmax.f32 %v2500_v21, 0.0 }
 0x222   :  { %v2869_v24 = vpack.c.bf16 %v2502_v18, %v2501_v15  ;;  %v2504_v26 = vmax.f32 %v2496_v20, 0.0 }
 0x223   :  { %2535 = vst [vmem:[%s4492_s5 + $0x10] sm:$0xff] %v2871_v25  ;;  %v2872_v29 = vpack.c.bf16 %v2508_v27, %v2507_v23 }
 0x224   :  { %2533 = vst [vmem:[%s4492_s5] sm:$0xff] %v2869_v24  ;;  %v2870_v28 = vpack.c.bf16 %v2504_v26, %v2503_v22 }
 0x225   :  { %2536 = vst [vmem:[%s4492_s5 + $0x18] sm:$0xff] %v2872_v29 }
 0x226   :  { %2534 = vst [vmem:[%s4492_s5 + $0x8] sm:$0xff] %v2870_v28 }

</bundles_post_ra>
